<compile_context>
chip_gen: v6e
topology: v6e:2x2x1
jax: 0.10.0
libtpu: 0.0.40
codegen_flags: <defaults>
</compile_context>

<pallas_src>
import functools
import math

import numpy as np
import jax
import jax.numpy as jnp
from jax import lax
from jax.experimental import pallas as pl
from jax.experimental.pallas import tpu as pltpu


# ----------------------------------------------------------------------------
# Fused ConvBlock kernel (one image per grid step)
# ----------------------------------------------------------------------------
def _conv_block_kernel(x_ref, w1_ref, b1_ref, w2_ref, b2_ref, pool_ref, o_ref,
                       pad1, pad2, *, H, W, Cin, Cout):
    """Fused conv-bn-relu x2 + avg-pool on one NHWC image.

    x_ref    : (1, H, W, Cin)        bf16  input tile
    w1_ref   : (9, Cin, Cout)        bf16  conv1 weights (BN1 folded), tap-major
    b1_ref   : (1, Cout)             f32   BN1 shift
    w2_ref   : (9, Cout, Cout)       bf16  conv2 weights (BN2 folded)
    b2_ref   : (1, Cout)             f32   BN2 shift
    pool_ref : (Hp*Wp, H*W)          f32   avg-pool matrix (exact 1/(ph*pw) weights)
    o_ref    : (1, Hp*Wp, Cout)      f32   pooled output (lane-dense, C last)
    pad1     : VMEM (H+2, W+2, Cin)  bf16  zero-padded input scratch
    pad2     : VMEM (H+2, W+2, Cout) bf16  zero-padded conv1-output scratch
    """
    # ---- conv1 (+ folded BN1) + ReLU ----------------------------------------
    # 9-tap reduction from a padded VMEM scratch: no im2col in HBM.
    # Note: for small Cin the per-tap contraction (K=Cin) underfills the MXU, but
    # this layer's FLOPs are negligible; the HBM-traffic fix is what matters.
    pad1[...] = jnp.zeros_like(pad1)
    pad1[1:H + 1, 1:W + 1, :] = x_ref[0]

    acc = jnp.zeros((H * W, Cout), jnp.float32)
    for t in range(9):
        dy, dx = t // 3, t % 3
        a = pad1[dy:dy + H, dx:dx + W, :].reshape(H * W, Cin)
        acc = acc + jnp.dot(a, w1_ref[t], preferred_element_type=jnp.float32)
    y1 = jnp.maximum(acc + b1_ref[...], 0.0)                     # (H*W, Cout) f32

    # ---- conv2 (+ folded BN2) + ReLU ----------------------------------------
    pad2[...] = jnp.zeros_like(pad2)
    pad2[1:H + 1, 1:W + 1, :] = y1.reshape(H, W, Cout).astype(pad2.dtype)

    acc = jnp.zeros((H * W, Cout), jnp.float32)
    for t in range(9):
        dy, dx = t // 3, t % 3
        a = pad2[dy:dy + H, dx:dx + W, :].reshape(H * W, Cout)
        acc = acc + jnp.dot(a, w2_ref[t], preferred_element_type=jnp.float32)
    y2 = jnp.maximum(acc + b2_ref[...], 0.0)                     # (H*W, Cout) f32

    # ---- avg-pool as a small f32 matmul (keeps the final store lane-dense) --
    o_ref[0] = jnp.dot(pool_ref[...], y2,
                       preferred_element_type=jnp.float32).astype(o_ref.dtype)


# ----------------------------------------------------------------------------
# Wrapper: BN folding, bf16 packing, pallas_call
# ----------------------------------------------------------------------------
def _fold_bn(w_kkio, bn, eps=1e-5):
    """conv(no bias) -> BN(eval) == conv with scaled weights + shift bias."""
    scale = bn["gamma"] / jnp.sqrt(bn["var"] + eps)              # (Cout,)
    shift = bn["beta"] - bn["mean"] * scale                      # (Cout,)
    return w_kkio * scale, shift


def _avg_pool_matrix(H, W, ph, pw):
    Hp, Wp = H // ph, W // pw
    P = np.zeros((Hp * Wp, H * W), np.float32)
    inv = 1.0 / (ph * pw)
    for i in range(Hp):
        for j in range(Wp):
            o = i * Wp + j
            for di in range(ph):
                for dj in range(pw):
                    P[o, (ph * i + di) * W + (pw * j + dj)] = inv
    return jnp.asarray(P)


def conv_block_forward(params, x_nchw, pool_size=(2, 2), pool_type="avg"):
    """Pallas ConvBlock.forward (inference/eval BatchNorm semantics).

    x_nchw: (B, Cin, H, W) f32  ->  (B, Cout, H/ph, W/pw) f32   (NCHW, like PyTorch)
    """
    if pool_type != "avg":
        # TODO(synk): 'max' and 'avg+max' pooling branches not implemented in the fused kernel.
        raise NotImplementedError("only pool_type='avg' is implemented")

    B, Cin, H, W = x_nchw.shape
    ph, pw = pool_size
    assert H % ph == 0 and W % pw == 0
    Cout = params["w1"].shape[-1]
    Hp, Wp = H // ph, W // pw

    # Fold eval-mode BN into conv weights/bias; bf16 operands for the MXU.
    w1, b1 = _fold_bn(params["w1"], params["bn1"])
    w2, b2 = _fold_bn(params["w2"], params["bn2"])
    w1p = w1.reshape(9, Cin, Cout).astype(jnp.bfloat16)
    w2p = w2.reshape(9, Cout, Cout).astype(jnp.bfloat16)
    b1p = b1.reshape(1, Cout).astype(jnp.float32)
    b2p = b2.reshape(1, Cout).astype(jnp.float32)
    x_nhwc = jnp.transpose(x_nchw, (0, 2, 3, 1)).astype(jnp.bfloat16)
    pool_mat = _avg_pool_matrix(H, W, ph, pw)

    # Rough per-grid-step VMEM footprint: double-buffered in/out blocks + resident
    # weights + pool matrix + padded scratches + live f32 intermediates.
    vmem_est = (
        2 * (H * W * Cin * 2 + Hp * Wp * Cout * 4)
        + 2 * 9 * (Cin + Cout) * Cout * 2
        + 2 * Hp * Wp * H * W * 4
        + (H + 2) * (W + 2) * (Cin + Cout) * 2
        + 4 * H * W * Cout * 4
    )
    if vmem_est > 24 * 1024 * 1024:
        # TODO(synk): for large images, tile rows with halo DMA instead of one image/step.
        raise ValueError(f"ConvBlock image too large for single-step kernel ({vmem_est} bytes)")

    flops = B * (2 * 9 * H * W * Cin * Cout
                 + 2 * 9 * H * W * Cout * Cout
                 + 2 * Hp * Wp * H * W * Cout)
    bytes_accessed = (B * H * W * Cin * 2 + 9 * (Cin + Cout) * Cout * 2
                      + 2 * Cout * 4 + Hp * Wp * H * W * 4
                      + B * Hp * Wp * Cout * 4)

    kernel = functools.partial(_conv_block_kernel, H=H, W=W, Cin=Cin, Cout=Cout)
    out = pl.pallas_call(
        kernel,
        out_shape=jax.ShapeDtypeStruct((B, Hp * Wp, Cout), jnp.float32),
        grid=(B,),
        in_specs=[
            pl.BlockSpec((1, H, W, Cin), lambda b: (b, 0, 0, 0)),
            pl.BlockSpec((9, Cin, Cout), lambda b: (0, 0, 0)),
            pl.BlockSpec((1, Cout), lambda b: (0, 0)),
            pl.BlockSpec((9, Cout, Cout), lambda b: (0, 0, 0)),
            pl.BlockSpec((1, Cout), lambda b: (0, 0)),
            pl.BlockSpec((Hp * Wp, H * W), lambda b: (0, 0)),
        ],
        out_specs=pl.BlockSpec((1, Hp * Wp, Cout), lambda b: (b, 0, 0)),
        scratch_shapes=[
            pltpu.VMEM((H + 2, W + 2, Cin), jnp.bfloat16),
            pltpu.VMEM((H + 2, W + 2, Cout), jnp.bfloat16),
        ],
        compiler_params=pltpu.CompilerParams(dimension_semantics=("parallel",)),
        cost_estimate=pl.CostEstimate(flops=flops, transcendentals=0,
                                      bytes_accessed=bytes_accessed),
    )(x_nhwc, w1p, b1p, w2p, b2p, pool_mat)

    out = out.reshape(B, Hp, Wp, Cout)
    return jnp.transpose(out, (0, 3, 1, 2))                      # back to NCHW


# ----------------------------------------------------------------------------
# Pure-JAX f32 reference (PyTorch ConvBlock semantics, eval BN)
# ----------------------------------------------------------------------------
def conv_block_ref(params, x_nchw, pool_size=(2, 2), eps=1e-5):
    def conv3x3(x, w):
        return lax.conv_general_dilated(
            x, w, window_strides=(1, 1), padding=((1, 1), (1, 1)),
            dimension_numbers=("NHWC", "HWIO", "NHWC"))

    def bn(x, p):
        return (x - p["mean"]) / jnp.sqrt(p["var"] + eps) * p["gamma"] + p["beta"]

    x = jnp.transpose(x_nchw, (0, 2, 3, 1))
    x = jax.nn.relu(bn(conv3x3(x, params["w1"]), params["bn1"]))
    x = jax.nn.relu(bn(conv3x3(x, params["w2"]), params["bn2"]))
    B, H, W, C = x.shape
    ph, pw = pool_size
    x = x.reshape(B, H // ph, ph, W // pw, pw, C).mean(axis=(2, 4))
    return jnp.transpose(x, (0, 3, 1, 2))


# ----------------------------------------------------------------------------
# Deterministic parameter construction
# ----------------------------------------------------------------------------
def make_params(key, in_channels, out_channels):
    ks = jax.random.split(key, 4)

    def xavier(rng, shape):                       # shape: (3, 3, Cin, Cout) = HWIO
        fan_in = shape[0] * shape[1] * shape[2]
        fan_out = shape[0] * shape[1] * shape[3]
        a = math.sqrt(6.0 / (fan_in + fan_out))
        return jax.random.uniform(rng, shape, jnp.float32, -a, a)

    def bn_params(rng, c):                        # eval-mode BN stats (slightly perturbed)
        g, b, m, v = jax.random.split(rng, 4)
        return dict(
            gamma=1.0 + 0.1 * jax.random.normal(g, (c,), jnp.float32),
            beta=0.1 * jax.random.normal(b, (c,), jnp.float32),
            mean=0.1 * jax.random.normal(m, (c,), jnp.float32),
            var=1.0 + 0.5 * jax.random.uniform(v, (c,), jnp.float32),
        )

    return dict(
        w1=xavier(ks[0], (3, 3, in_channels, out_channels)),
        w2=xavier(ks[1], (3, 3, out_channels, out_channels)),
        bn1=bn_params(ks[2], out_channels),
        bn2=bn_params(ks[3], out_channels),
    )


# ----------------------------------------------------------------------------
if __name__ == "__main__":
    key = jax.random.PRNGKey(0)
    pkey, xkey = jax.random.split(key)

    B, CIN, COUT, H, W = 2, 4, 128, 16, 16        # COUT=128 -> lane-dense output stores
    params = make_params(pkey, CIN, COUT)
    x = jax.random.normal(xkey, (B, CIN, H, W), jnp.float32)

    fwd = jax.jit(functools.partial(conv_block_forward, params))
    out = fwd(x)
    jax.block_until_ready(out)

    assert out.shape == (B, COUT, H // 2, W // 2)
    assert bool(jnp.all(jnp.isfinite(out)))

    ref = conv_block_ref(params, x)
    err = float(jnp.max(jnp.abs(out - ref)))
    assert err < 5e-2, f"mismatch vs f32 reference: max abs err = {err}"
    print("KERNEL_OK")
</pallas_src>

<mosaic_0001>
module attributes {stable_mosaic.version = 11 : i64} {
  func.func @_conv_block_kernel(%arg0: i32, %arg1: memref<1x16x16x4xbf16, #tpu.memory_space<vmem>>, %arg2: memref<9x4x128xbf16, #tpu.memory_space<vmem>>, %arg3: memref<1x128xf32, #tpu.memory_space<vmem>>, %arg4: memref<9x128x128xbf16, #tpu.memory_space<vmem>>, %arg5: memref<1x128xf32, #tpu.memory_space<vmem>>, %arg6: memref<64x256xf32, #tpu.memory_space<vmem>>, %arg7: memref<1x64x128xf32, #tpu.memory_space<vmem>>, %arg8: memref<18x18x4xbf16, #tpu.memory_space<vmem>>, %arg9: memref<18x18x128xbf16, #tpu.memory_space<vmem>>) attributes {dimension_semantics = [#tpu.dimension_semantics<parallel>], iteration_bounds = array<i64: 2>, scalar_prefetch = 0 : i64, scratch_operands = 2 : i64, tpu.core_type = #tpu.core_type<tc>, window_params = [{transform_indices = @transform_0, window_bounds = array<i64: 1, 16, 16, 4>}, {pipeline_mode = #tpu.pipeline_mode<synchronous>, transform_indices = @transform_1, window_bounds = array<i64: 9, 4, 128>}, {pipeline_mode = #tpu.pipeline_mode<synchronous>, transform_indices = @transform_2, window_bounds = array<i64: 1, 128>}, {pipeline_mode = #tpu.pipeline_mode<synchronous>, transform_indices = @transform_3, window_bounds = array<i64: 9, 128, 128>}, {pipeline_mode = #tpu.pipeline_mode<synchronous>, transform_indices = @transform_4, window_bounds = array<i64: 1, 128>}, {pipeline_mode = #tpu.pipeline_mode<synchronous>, transform_indices = @transform_5, window_bounds = array<i64: 64, 256>}, {transform_indices = @transform_6, window_bounds = array<i64: 1, 64, 128>}]} {
    %cst = arith.constant 0.000000e+00 : bf16
    %0 = vector.broadcast %cst : bf16 to vector<18x18x4xbf16>
    %c0 = arith.constant 0 : index
    %c0_0 = arith.constant 0 : index
    %c0_1 = arith.constant 0 : index
    %1 = vector.load %arg8[%c0, %c0_0, %c0_1] : memref<18x18x4xbf16, #tpu.memory_space<vmem>>, vector<18x18x4xbf16>
    tpu.vector_store %arg8[%c0, %c0_0, %c0_1], %0 {strides = array<i32>} : memref<18x18x4xbf16, #tpu.memory_space<vmem>>, vector<18x18x4xbf16>,
    %c0_2 = arith.constant 0 : index
    %c0_3 = arith.constant 0 : index
    %c0_4 = arith.constant 0 : index
    %c0_5 = arith.constant 0 : index
    %2 = vector.load %arg1[%c0_2, %c0_3, %c0_4, %c0_5] : memref<1x16x16x4xbf16, #tpu.memory_space<vmem>>, vector<1x16x16x4xbf16>
    %3 = vector.shape_cast %2 : vector<1x16x16x4xbf16> to vector<16x16x4xbf16>
    %c1 = arith.constant 1 : index
    %c1_6 = arith.constant 1 : index
    %c0_7 = arith.constant 0 : index
    %4 = vector.load %arg8[%c1, %c1_6, %c0_7] : memref<18x18x4xbf16, #tpu.memory_space<vmem>>, vector<16x16x4xbf16>
    tpu.vector_store %arg8[%c1, %c1_6, %c0_7], %3 {strides = array<i32>} : memref<18x18x4xbf16, #tpu.memory_space<vmem>>, vector<16x16x4xbf16>,
    %cst_8 = arith.constant 0.000000e+00 : f32
    %5 = vector.broadcast %cst_8 : f32 to vector<256x128xf32>
    %c0_9 = arith.constant 0 : index
    %c0_10 = arith.constant 0 : index
    %c0_11 = arith.constant 0 : index
    %6 = vector.load %arg8[%c0_9, %c0_10, %c0_11] : memref<18x18x4xbf16, #tpu.memory_space<vmem>>, vector<16x16x4xbf16>
    %7 = vector.shape_cast %6 : vector<16x16x4xbf16> to vector<256x4xbf16>
    %c0_12 = arith.constant 0 : index
    %c0_13 = arith.constant 0 : index
    %c0_14 = arith.constant 0 : index
    %8 = vector.load %arg2[%c0_12, %c0_13, %c0_14] : memref<9x4x128xbf16, #tpu.memory_space<vmem>>, vector<1x4x128xbf16>
    %9 = vector.shape_cast %8 : vector<1x4x128xbf16> to vector<4x128xbf16>
    %cst_15 = arith.constant dense<0.000000e+00> : vector<256x128xf32>
    %10 = tpu.matmul %7, %9, %cst_15 {dimension_numbers = #tpu.dot_dimension_numbers<[1], [0], [0], [1], [0, 0, 1, 1], [], []>} : vector<256x4xbf16>, vector<4x128xbf16>, vector<256x128xf32> -> vector<256x128xf32>
    %11 = arith.addf %5, %10 : vector<256x128xf32>
    %c0_16 = arith.constant 0 : index
    %c1_17 = arith.constant 1 : index
    %c0_18 = arith.constant 0 : index
    %12 = vector.load %arg8[%c0_16, %c1_17, %c0_18] : memref<18x18x4xbf16, #tpu.memory_space<vmem>>, vector<16x16x4xbf16>
    %13 = vector.shape_cast %12 : vector<16x16x4xbf16> to vector<256x4xbf16>
    %c1_19 = arith.constant 1 : index
    %c0_20 = arith.constant 0 : index
    %c0_21 = arith.constant 0 : index
    %14 = vector.load %arg2[%c1_19, %c0_20, %c0_21] : memref<9x4x128xbf16, #tpu.memory_space<vmem>>, vector<1x4x128xbf16>
    %15 = vector.shape_cast %14 : vector<1x4x128xbf16> to vector<4x128xbf16>
    %cst_22 = arith.constant dense<0.000000e+00> : vector<256x128xf32>
    %16 = tpu.matmul %13, %15, %cst_22 {dimension_numbers = #tpu.dot_dimension_numbers<[1], [0], [0], [1], [0, 0, 1, 1], [], []>} : vector<256x4xbf16>, vector<4x128xbf16>, vector<256x128xf32> -> vector<256x128xf32>
    %17 = arith.addf %11, %16 : vector<256x128xf32>
    %c0_23 = arith.constant 0 : index
    %c2 = arith.constant 2 : index
    %c0_24 = arith.constant 0 : index
    %18 = vector.load %arg8[%c0_23, %c2, %c0_24] : memref<18x18x4xbf16, #tpu.memory_space<vmem>>, vector<16x16x4xbf16>
    %19 = vector.shape_cast %18 : vector<16x16x4xbf16> to vector<256x4xbf16>
    %c2_25 = arith.constant 2 : index
    %c0_26 = arith.constant 0 : index
    %c0_27 = arith.constant 0 : index
    %20 = vector.load %arg2[%c2_25, %c0_26, %c0_27] : memref<9x4x128xbf16, #tpu.memory_space<vmem>>, vector<1x4x128xbf16>
    %21 = vector.shape_cast %20 : vector<1x4x128xbf16> to vector<4x128xbf16>
    %cst_28 = arith.constant dense<0.000000e+00> : vector<256x128xf32>
    %22 = tpu.matmul %19, %21, %cst_28 {dimension_numbers = #tpu.dot_dimension_numbers<[1], [0], [0], [1], [0, 0, 1, 1], [], []>} : vector<256x4xbf16>, vector<4x128xbf16>, vector<256x128xf32> -> vector<256x128xf32>
    %23 = arith.addf %17, %22 : vector<256x128xf32>
    %c1_29 = arith.constant 1 : index
    %c0_30 = arith.constant 0 : index
    %c0_31 = arith.constant 0 : index
    %24 = vector.load %arg8[%c1_29, %c0_30, %c0_31] : memref<18x18x4xbf16, #tpu.memory_space<vmem>>, vector<16x16x4xbf16>
    %25 = vector.shape_cast %24 : vector<16x16x4xbf16> to vector<256x4xbf16>
    %c3 = arith.constant 3 : index
    %c0_32 = arith.constant 0 : index
    %c0_33 = arith.constant 0 : index
    %26 = vector.load %arg2[%c3, %c0_32, %c0_33] : memref<9x4x128xbf16, #tpu.memory_space<vmem>>, vector<1x4x128xbf16>
    %27 = vector.shape_cast %26 : vector<1x4x128xbf16> to vector<4x128xbf16>
    %cst_34 = arith.constant dense<0.000000e+00> : vector<256x128xf32>
    %28 = tpu.matmul %25, %27, %cst_34 {dimension_numbers = #tpu.dot_dimension_numbers<[1], [0], [0], [1], [0, 0, 1, 1], [], []>} : vector<256x4xbf16>, vector<4x128xbf16>, vector<256x128xf32> -> vector<256x128xf32>
    %29 = arith.addf %23, %28 : vector<256x128xf32>
    %c1_35 = arith.constant 1 : index
    %c1_36 = arith.constant 1 : index
    %c0_37 = arith.constant 0 : index
    %30 = vector.load %arg8[%c1_35, %c1_36, %c0_37] : memref<18x18x4xbf16, #tpu.memory_space<vmem>>, vector<16x16x4xbf16>
    %31 = vector.shape_cast %30 : vector<16x16x4xbf16> to vector<256x4xbf16>
    %c4 = arith.constant 4 : index
    %c0_38 = arith.constant 0 : index
    %c0_39 = arith.constant 0 : index
    %32 = vector.load %arg2[%c4, %c0_38, %c0_39] : memref<9x4x128xbf16, #tpu.memory_space<vmem>>, vector<1x4x128xbf16>
    %33 = vector.shape_cast %32 : vector<1x4x128xbf16> to vector<4x128xbf16>
    %cst_40 = arith.constant dense<0.000000e+00> : vector<256x128xf32>
    %34 = tpu.matmul %31, %33, %cst_40 {dimension_numbers = #tpu.dot_dimension_numbers<[1], [0], [0], [1], [0, 0, 1, 1], [], []>} : vector<256x4xbf16>, vector<4x128xbf16>, vector<256x128xf32> -> vector<256x128xf32>
    %35 = arith.addf %29, %34 : vector<256x128xf32>
    %c1_41 = arith.constant 1 : index
    %c2_42 = arith.constant 2 : index
    %c0_43 = arith.constant 0 : index
    %36 = vector.load %arg8[%c1_41, %c2_42, %c0_43] : memref<18x18x4xbf16, #tpu.memory_space<vmem>>, vector<16x16x4xbf16>
    %37 = vector.shape_cast %36 : vector<16x16x4xbf16> to vector<256x4xbf16>
    %c5 = arith.constant 5 : index
    %c0_44 = arith.constant 0 : index
    %c0_45 = arith.constant 0 : index
    %38 = vector.load %arg2[%c5, %c0_44, %c0_45] : memref<9x4x128xbf16, #tpu.memory_space<vmem>>, vector<1x4x128xbf16>
    %39 = vector.shape_cast %38 : vector<1x4x128xbf16> to vector<4x128xbf16>
    %cst_46 = arith.constant dense<0.000000e+00> : vector<256x128xf32>
    %40 = tpu.matmul %37, %39, %cst_46 {dimension_numbers = #tpu.dot_dimension_numbers<[1], [0], [0], [1], [0, 0, 1, 1], [], []>} : vector<256x4xbf16>, vector<4x128xbf16>, vector<256x128xf32> -> vector<256x128xf32>
    %41 = arith.addf %35, %40 : vector<256x128xf32>
    %c2_47 = arith.constant 2 : index
    %c0_48 = arith.constant 0 : index
    %c0_49 = arith.constant 0 : index
    %42 = vector.load %arg8[%c2_47, %c0_48, %c0_49] : memref<18x18x4xbf16, #tpu.memory_space<vmem>>, vector<16x16x4xbf16>
    %43 = vector.shape_cast %42 : vector<16x16x4xbf16> to vector<256x4xbf16>
    %c6 = arith.constant 6 : index
    %c0_50 = arith.constant 0 : index
    %c0_51 = arith.constant 0 : index
    %44 = vector.load %arg2[%c6, %c0_50, %c0_51] : memref<9x4x128xbf16, #tpu.memory_space<vmem>>, vector<1x4x128xbf16>
    %45 = vector.shape_cast %44 : vector<1x4x128xbf16> to vector<4x128xbf16>
    %cst_52 = arith.constant dense<0.000000e+00> : vector<256x128xf32>
    %46 = tpu.matmul %43, %45, %cst_52 {dimension_numbers = #tpu.dot_dimension_numbers<[1], [0], [0], [1], [0, 0, 1, 1], [], []>} : vector<256x4xbf16>, vector<4x128xbf16>, vector<256x128xf32> -> vector<256x128xf32>
    %47 = arith.addf %41, %46 : vector<256x128xf32>
    %c2_53 = arith.constant 2 : index
    %c1_54 = arith.constant 1 : index
    %c0_55 = arith.constant 0 : index
    %48 = vector.load %arg8[%c2_53, %c1_54, %c0_55] : memref<18x18x4xbf16, #tpu.memory_space<vmem>>, vector<16x16x4xbf16>
    %49 = vector.shape_cast %48 : vector<16x16x4xbf16> to vector<256x4xbf16>
    %c7 = arith.constant 7 : index
    %c0_56 = arith.constant 0 : index
    %c0_57 = arith.constant 0 : index
    %50 = vector.load %arg2[%c7, %c0_56, %c0_57] : memref<9x4x128xbf16, #tpu.memory_space<vmem>>, vector<1x4x128xbf16>
    %51 = vector.shape_cast %50 : vector<1x4x128xbf16> to vector<4x128xbf16>
    %cst_58 = arith.constant dense<0.000000e+00> : vector<256x128xf32>
    %52 = tpu.matmul %49, %51, %cst_58 {dimension_numbers = #tpu.dot_dimension_numbers<[1], [0], [0], [1], [0, 0, 1, 1], [], []>} : vector<256x4xbf16>, vector<4x128xbf16>, vector<256x128xf32> -> vector<256x128xf32>
    %53 = arith.addf %47, %52 : vector<256x128xf32>
    %c2_59 = arith.constant 2 : index
    %c2_60 = arith.constant 2 : index
    %c0_61 = arith.constant 0 : index
    %54 = vector.load %arg8[%c2_59, %c2_60, %c0_61] : memref<18x18x4xbf16, #tpu.memory_space<vmem>>, vector<16x16x4xbf16>
    %55 = vector.shape_cast %54 : vector<16x16x4xbf16> to vector<256x4xbf16>
    %c8 = arith.constant 8 : index
    %c0_62 = arith.constant 0 : index
    %c0_63 = arith.constant 0 : index
    %56 = vector.load %arg2[%c8, %c0_62, %c0_63] : memref<9x4x128xbf16, #tpu.memory_space<vmem>>, vector<1x4x128xbf16>
    %57 = vector.shape_cast %56 : vector<1x4x128xbf16> to vector<4x128xbf16>
    %cst_64 = arith.constant dense<0.000000e+00> : vector<256x128xf32>
    %58 = tpu.matmul %55, %57, %cst_64 {dimension_numbers = #tpu.dot_dimension_numbers<[1], [0], [0], [1], [0, 0, 1, 1], [], []>} : vector<256x4xbf16>, vector<4x128xbf16>, vector<256x128xf32> -> vector<256x128xf32>
    %59 = arith.addf %53, %58 : vector<256x128xf32>
    %c0_65 = arith.constant 0 : index
    %c0_66 = arith.constant 0 : index
    %60 = vector.load %arg3[%c0_65, %c0_66] : memref<1x128xf32, #tpu.memory_space<vmem>>, vector<1x128xf32>
    %61 = vector.broadcast %60 : vector<1x128xf32> to vector<256x128xf32>
    %62 = arith.addf %59, %61 : vector<256x128xf32>
    %cst_67 = arith.constant 0.000000e+00 : f32
    %63 = vector.broadcast %cst_67 : f32 to vector<256x128xf32>
    %64 = arith.maximumf %62, %63 : vector<256x128xf32>
    %cst_68 = arith.constant 0.000000e+00 : bf16
    %65 = vector.broadcast %cst_68 : bf16 to vector<18x18x128xbf16>
    %c0_69 = arith.constant 0 : index
    %c0_70 = arith.constant 0 : index
    %c0_71 = arith.constant 0 : index
    %66 = vector.load %arg9[%c0_69, %c0_70, %c0_71] : memref<18x18x128xbf16, #tpu.memory_space<vmem>>, vector<18x18x128xbf16>
    tpu.vector_store %arg9[%c0_69, %c0_70, %c0_71], %65 {strides = array<i32>} : memref<18x18x128xbf16, #tpu.memory_space<vmem>>, vector<18x18x128xbf16>,
    %67 = vector.shape_cast %64 : vector<256x128xf32> to vector<16x16x128xf32>
    %68 = arith.truncf %67 : vector<16x16x128xf32> to vector<16x16x128xbf16>
    %c1_72 = arith.constant 1 : index
    %c1_73 = arith.constant 1 : index
    %c0_74 = arith.constant 0 : index
    %69 = vector.load %arg9[%c1_72, %c1_73, %c0_74] : memref<18x18x128xbf16, #tpu.memory_space<vmem>>, vector<16x16x128xbf16>
    tpu.vector_store %arg9[%c1_72, %c1_73, %c0_74], %68 {strides = array<i32>} : memref<18x18x128xbf16, #tpu.memory_space<vmem>>, vector<16x16x128xbf16>,
    %cst_75 = arith.constant 0.000000e+00 : f32
    %70 = vector.broadcast %cst_75 : f32 to vector<256x128xf32>
    %c0_76 = arith.constant 0 : index
    %c0_77 = arith.constant 0 : index
    %c0_78 = arith.constant 0 : index
    %71 = vector.load %arg9[%c0_76, %c0_77, %c0_78] : memref<18x18x128xbf16, #tpu.memory_space<vmem>>, vector<16x16x128xbf16>
    %72 = vector.shape_cast %71 : vector<16x16x128xbf16> to vector<256x128xbf16>
    %c0_79 = arith.constant 0 : index
    %c0_80 = arith.constant 0 : index
    %c0_81 = arith.constant 0 : index
    %73 = vector.load %arg4[%c0_79, %c0_80, %c0_81] : memref<9x128x128xbf16, #tpu.memory_space<vmem>>, vector<1x128x128xbf16>
    %74 = vector.shape_cast %73 : vector<1x128x128xbf16> to vector<128x128xbf16>
    %cst_82 = arith.constant dense<0.000000e+00> : vector<256x128xf32>
    %75 = tpu.matmul %72, %74, %cst_82 {dimension_numbers = #tpu.dot_dimension_numbers<[1], [0], [0], [1], [0, 0, 1, 1], [], []>} : vector<256x128xbf16>, vector<128x128xbf16>, vector<256x128xf32> -> vector<256x128xf32>
    %76 = arith.addf %70, %75 : vector<256x128xf32>
    %c0_83 = arith.constant 0 : index
    %c1_84 = arith.constant 1 : index
    %c0_85 = arith.constant 0 : index
    %77 = vector.load %arg9[%c0_83, %c1_84, %c0_85] : memref<18x18x128xbf16, #tpu.memory_space<vmem>>, vector<16x16x128xbf16>
    %78 = vector.shape_cast %77 : vector<16x16x128xbf16> to vector<256x128xbf16>
    %c1_86 = arith.constant 1 : index
    %c0_87 = arith.constant 0 : index
    %c0_88 = arith.constant 0 : index
    %79 = vector.load %arg4[%c1_86, %c0_87, %c0_88] : memref<9x128x128xbf16, #tpu.memory_space<vmem>>, vector<1x128x128xbf16>
    %80 = vector.shape_cast %79 : vector<1x128x128xbf16> to vector<128x128xbf16>
    %cst_89 = arith.constant dense<0.000000e+00> : vector<256x128xf32>
    %81 = tpu.matmul %78, %80, %cst_89 {dimension_numbers = #tpu.dot_dimension_numbers<[1], [0], [0], [1], [0, 0, 1, 1], [], []>} : vector<256x128xbf16>, vector<128x128xbf16>, vector<256x128xf32> -> vector<256x128xf32>
    %82 = arith.addf %76, %81 : vector<256x128xf32>
    %c0_90 = arith.constant 0 : index
    %c2_91 = arith.constant 2 : index
    %c0_92 = arith.constant 0 : index
    %83 = vector.load %arg9[%c0_90, %c2_91, %c0_92] : memref<18x18x128xbf16, #tpu.memory_space<vmem>>, vector<16x16x128xbf16>
    %84 = vector.shape_cast %83 : vector<16x16x128xbf16> to vector<256x128xbf16>
    %c2_93 = arith.constant 2 : index
    %c0_94 = arith.constant 0 : index
    %c0_95 = arith.constant 0 : index
    %85 = vector.load %arg4[%c2_93, %c0_94, %c0_95] : memref<9x128x128xbf16, #tpu.memory_space<vmem>>, vector<1x128x128xbf16>
    %86 = vector.shape_cast %85 : vector<1x128x128xbf16> to vector<128x128xbf16>
    %cst_96 = arith.constant dense<0.000000e+00> : vector<256x128xf32>
    %87 = tpu.matmul %84, %86, %cst_96 {dimension_numbers = #tpu.dot_dimension_numbers<[1], [0], [0], [1], [0, 0, 1, 1], [], []>} : vector<256x128xbf16>, vector<128x128xbf16>, vector<256x128xf32> -> vector<256x128xf32>
    %88 = arith.addf %82, %87 : vector<256x128xf32>
    %c1_97 = arith.constant 1 : index
    %c0_98 = arith.constant 0 : index
    %c0_99 = arith.constant 0 : index
    %89 = vector.load %arg9[%c1_97, %c0_98, %c0_99] : memref<18x18x128xbf16, #tpu.memory_space<vmem>>, vector<16x16x128xbf16>
    %90 = vector.shape_cast %89 : vector<16x16x128xbf16> to vector<256x128xbf16>
    %c3_100 = arith.constant 3 : index
    %c0_101 = arith.constant 0 : index
    %c0_102 = arith.constant 0 : index
    %91 = vector.load %arg4[%c3_100, %c0_101, %c0_102] : memref<9x128x128xbf16, #tpu.memory_space<vmem>>, vector<1x128x128xbf16>
    %92 = vector.shape_cast %91 : vector<1x128x128xbf16> to vector<128x128xbf16>
    %cst_103 = arith.constant dense<0.000000e+00> : vector<256x128xf32>
    %93 = tpu.matmul %90, %92, %cst_103 {dimension_numbers = #tpu.dot_dimension_numbers<[1], [0], [0], [1], [0, 0, 1, 1], [], []>} : vector<256x128xbf16>, vector<128x128xbf16>, vector<256x128xf32> -> vector<256x128xf32>
    %94 = arith.addf %88, %93 : vector<256x128xf32>
    %c1_104 = arith.constant 1 : index
    %c1_105 = arith.constant 1 : index
    %c0_106 = arith.constant 0 : index
    %95 = vector.load %arg9[%c1_104, %c1_105, %c0_106] : memref<18x18x128xbf16, #tpu.memory_space<vmem>>, vector<16x16x128xbf16>
    %96 = vector.shape_cast %95 : vector<16x16x128xbf16> to vector<256x128xbf16>
    %c4_107 = arith.constant 4 : index
    %c0_108 = arith.constant 0 : index
    %c0_109 = arith.constant 0 : index
    %97 = vector.load %arg4[%c4_107, %c0_108, %c0_109] : memref<9x128x128xbf16, #tpu.memory_space<vmem>>, vector<1x128x128xbf16>
    %98 = vector.shape_cast %97 : vector<1x128x128xbf16> to vector<128x128xbf16>
    %cst_110 = arith.constant dense<0.000000e+00> : vector<256x128xf32>
    %99 = tpu.matmul %96, %98, %cst_110 {dimension_numbers = #tpu.dot_dimension_numbers<[1], [0], [0], [1], [0, 0, 1, 1], [], []>} : vector<256x128xbf16>, vector<128x128xbf16>, vector<256x128xf32> -> vector<256x128xf32>
    %100 = arith.addf %94, %99 : vector<256x128xf32>
    %c1_111 = arith.constant 1 : index
    %c2_112 = arith.constant 2 : index
    %c0_113 = arith.constant 0 : index
    %101 = vector.load %arg9[%c1_111, %c2_112, %c0_113] : memref<18x18x128xbf16, #tpu.memory_space<vmem>>, vector<16x16x128xbf16>
    %102 = vector.shape_cast %101 : vector<16x16x128xbf16> to vector<256x128xbf16>
    %c5_114 = arith.constant 5 : index
    %c0_115 = arith.constant 0 : index
    %c0_116 = arith.constant 0 : index
    %103 = vector.load %arg4[%c5_114, %c0_115, %c0_116] : memref<9x128x128xbf16, #tpu.memory_space<vmem>>, vector<1x128x128xbf16>
    %104 = vector.shape_cast %103 : vector<1x128x128xbf16> to vector<128x128xbf16>
    %cst_117 = arith.constant dense<0.000000e+00> : vector<256x128xf32>
    %105 = tpu.matmul %102, %104, %cst_117 {dimension_numbers = #tpu.dot_dimension_numbers<[1], [0], [0], [1], [0, 0, 1, 1], [], []>} : vector<256x128xbf16>, vector<128x128xbf16>, vector<256x128xf32> -> vector<256x128xf32>
    %106 = arith.addf %100, %105 : vector<256x128xf32>
    %c2_118 = arith.constant 2 : index
    %c0_119 = arith.constant 0 : index
    %c0_120 = arith.constant 0 : index
    %107 = vector.load %arg9[%c2_118, %c0_119, %c0_120] : memref<18x18x128xbf16, #tpu.memory_space<vmem>>, vector<16x16x128xbf16>
    %108 = vector.shape_cast %107 : vector<16x16x128xbf16> to vector<256x128xbf16>
    %c6_121 = arith.constant 6 : index
    %c0_122 = arith.constant 0 : index
    %c0_123 = arith.constant 0 : index
    %109 = vector.load %arg4[%c6_121, %c0_122, %c0_123] : memref<9x128x128xbf16, #tpu.memory_space<vmem>>, vector<1x128x128xbf16>
    %110 = vector.shape_cast %109 : vector<1x128x128xbf16> to vector<128x128xbf16>
    %cst_124 = arith.constant dense<0.000000e+00> : vector<256x128xf32>
    %111 = tpu.matmul %108, %110, %cst_124 {dimension_numbers = #tpu.dot_dimension_numbers<[1], [0], [0], [1], [0, 0, 1, 1], [], []>} : vector<256x128xbf16>, vector<128x128xbf16>, vector<256x128xf32> -> vector<256x128xf32>
    %112 = arith.addf %106, %111 : vector<256x128xf32>
    %c2_125 = arith.constant 2 : index
    %c1_126 = arith.constant 1 : index
    %c0_127 = arith.constant 0 : index
    %113 = vector.load %arg9[%c2_125, %c1_126, %c0_127] : memref<18x18x128xbf16, #tpu.memory_space<vmem>>, vector<16x16x128xbf16>
    %114 = vector.shape_cast %113 : vector<16x16x128xbf16> to vector<256x128xbf16>
    %c7_128 = arith.constant 7 : index
    %c0_129 = arith.constant 0 : index
    %c0_130 = arith.constant 0 : index
    %115 = vector.load %arg4[%c7_128, %c0_129, %c0_130] : memref<9x128x128xbf16, #tpu.memory_space<vmem>>, vector<1x128x128xbf16>
    %116 = vector.shape_cast %115 : vector<1x128x128xbf16> to vector<128x128xbf16>
    %cst_131 = arith.constant dense<0.000000e+00> : vector<256x128xf32>
    %117 = tpu.matmul %114, %116, %cst_131 {dimension_numbers = #tpu.dot_dimension_numbers<[1], [0], [0], [1], [0, 0, 1, 1], [], []>} : vector<256x128xbf16>, vector<128x128xbf16>, vector<256x128xf32> -> vector<256x128xf32>
    %118 = arith.addf %112, %117 : vector<256x128xf32>
    %c2_132 = arith.constant 2 : index
    %c2_133 = arith.constant 2 : index
    %c0_134 = arith.constant 0 : index
    %119 = vector.load %arg9[%c2_132, %c2_133, %c0_134] : memref<18x18x128xbf16, #tpu.memory_space<vmem>>, vector<16x16x128xbf16>
    %120 = vector.shape_cast %119 : vector<16x16x128xbf16> to vector<256x128xbf16>
    %c8_135 = arith.constant 8 : index
    %c0_136 = arith.constant 0 : index
    %c0_137 = arith.constant 0 : index
    %121 = vector.load %arg4[%c8_135, %c0_136, %c0_137] : memref<9x128x128xbf16, #tpu.memory_space<vmem>>, vector<1x128x128xbf16>
    %122 = vector.shape_cast %121 : vector<1x128x128xbf16> to vector<128x128xbf16>
    %cst_138 = arith.constant dense<0.000000e+00> : vector<256x128xf32>
    %123 = tpu.matmul %120, %122, %cst_138 {dimension_numbers = #tpu.dot_dimension_numbers<[1], [0], [0], [1], [0, 0, 1, 1], [], []>} : vector<256x128xbf16>, vector<128x128xbf16>, vector<256x128xf32> -> vector<256x128xf32>
    %124 = arith.addf %118, %123 : vector<256x128xf32>
    %c0_139 = arith.constant 0 : index
    %c0_140 = arith.constant 0 : index
    %125 = vector.load %arg5[%c0_139, %c0_140] : memref<1x128xf32, #tpu.memory_space<vmem>>, vector<1x128xf32>
    %126 = vector.broadcast %125 : vector<1x128xf32> to vector<256x128xf32>
    %127 = arith.addf %124, %126 : vector<256x128xf32>
    %cst_141 = arith.constant 0.000000e+00 : f32
    %128 = vector.broadcast %cst_141 : f32 to vector<256x128xf32>
    %129 = arith.maximumf %127, %128 : vector<256x128xf32>
    %c0_142 = arith.constant 0 : index
    %c0_143 = arith.constant 0 : index
    %130 = vector.load %arg6[%c0_142, %c0_143] : memref<64x256xf32, #tpu.memory_space<vmem>>, vector<64x256xf32>
    %cst_144 = arith.constant dense<0.000000e+00> : vector<64x128xf32>
    %131 = tpu.matmul %130, %129, %cst_144 {dimension_numbers = #tpu.dot_dimension_numbers<[1], [0], [0], [1], [0, 0, 1, 1], [], []>} : vector<64x256xf32>, vector<256x128xf32>, vector<64x128xf32> -> vector<64x128xf32>
    %c0_145 = arith.constant 0 : index
    %c0_146 = arith.constant 0 : index
    %c0_147 = arith.constant 0 : index
    %132 = vector.load %arg7[%c0_145, %c0_146, %c0_147] : memref<1x64x128xf32, #tpu.memory_space<vmem>>, vector<1x64x128xf32>
    %133 = vector.shape_cast %132 : vector<1x64x128xf32> to vector<64x128xf32>
    %134 = vector.shape_cast %131 : vector<64x128xf32> to vector<1x64x128xf32>
    tpu.vector_store %arg7[%c0_145, %c0_146, %c0_147], %134 {strides = array<i32>} : memref<1x64x128xf32, #tpu.memory_space<vmem>>, vector<1x64x128xf32>,
    return
  }
  func.func @transform_0(%arg0: i32) -> (i32, i32, i32, i32) {
    %c0_i32 = arith.constant 0 : i32
    %c0_i32_0 = arith.constant 0 : i32
    %c0_i32_1 = arith.constant 0 : i32
    %c0_i32_2 = arith.constant 0 : i32
    return %arg0, %c0_i32, %c0_i32_0, %c0_i32_1 : i32, i32, i32, i32
  }
  func.func @transform_1(%arg0: i32) -> (i32, i32, i32) {
    %c0_i32 = arith.constant 0 : i32
    %c0_i32_0 = arith.constant 0 : i32
    %c0_i32_1 = arith.constant 0 : i32
    %c0_i32_2 = arith.constant 0 : i32
    return %c0_i32, %c0_i32_0, %c0_i32_1 : i32, i32, i32
  }
  func.func @transform_2(%arg0: i32) -> (i32, i32) {
    %c0_i32 = arith.constant 0 : i32
    %c0_i32_0 = arith.constant 0 : i32
    %c0_i32_1 = arith.constant 0 : i32
    return %c0_i32, %c0_i32_0 : i32, i32
  }
  func.func @transform_3(%arg0: i32) -> (i32, i32, i32) {
    %c0_i32 = arith.constant 0 : i32
    %c0_i32_0 = arith.constant 0 : i32
    %c0_i32_1 = arith.constant 0 : i32
    %c0_i32_2 = arith.constant 0 : i32
    return %c0_i32, %c0_i32_0, %c0_i32_1 : i32, i32, i32
  }
  func.func @transform_4(%arg0: i32) -> (i32, i32) {
    %c0_i32 = arith.constant 0 : i32
    %c0_i32_0 = arith.constant 0 : i32
    %c0_i32_1 = arith.constant 0 : i32
    return %c0_i32, %c0_i32_0 : i32, i32
  }
  func.func @transform_5(%arg0: i32) -> (i32, i32) {
    %c0_i32 = arith.constant 0 : i32
    %c0_i32_0 = arith.constant 0 : i32
    %c0_i32_1 = arith.constant 0 : i32
    return %c0_i32, %c0_i32_0 : i32, i32
  }
  func.func @transform_6(%arg0: i32) -> (i32, i32, i32) {
    %c0_i32 = arith.constant 0 : i32
    %c0_i32_0 = arith.constant 0 : i32
    %c0_i32_1 = arith.constant 0 : i32
    return %arg0, %c0_i32, %c0_i32_0 : i32, i32, i32
  }
}

</mosaic_0001>

<bundles_post_ra>
// kernel: conv_block_forward.1
= control target key start
LH: loop header
LB: loop body
LE: loop exit
PB: predicated region body
PF: predicated region fallthrough
CT: control target
= control target key end

     0   :  { %11 = vsyncpa [#allocation5], 0  ;;  %s18436_s0 = inlined_call_operand.vmem [shape: bf16[2,16,16,4], index: 0, kind: input, shape index: {}]   ;;  %s18437_s1 = inlined_call_operand.vmem [shape: bf16[9,4,128], index: 1, kind: input, shape index: {}]   ;;  %s18438_s2 = inlined_call_operand.vmem [shape: f32[1,128], index: 2, kind: input, shape index: {}]   ;;  %s18439_s3 = inlined_call_operand.hbm [shape: bf16[9,128,128], index: 3, kind: input, shape index: {}]   ;;  %s18440_s4 = inlined_call_operand.vmem [shape: f32[1,128], index: 4, kind: input, shape index: {}]   ;;  %s18441_s5 = inlined_call_operand.vmem [shape: f32[64,256], index: 5, kind: input, shape index: {}]   ;;  %s18442_s6 = inlined_call_operand.hbm [shape: f32[2,64,128], index: 6, kind: output, shape index: {}]  }
   0x1   :  { %12 = vsyncpa [#allocation6], 0 }
   0x2   :  { %14 = vsyncpa [#allocation6 + $0x1], 0  ;;  %s13332_s21 = smov 0   ;;  %s13334_s22 = smov 0  }
   0x3   :  { %s13336_s23 = smov 0   ;;  %s13338_s24 = smov 0  }
   0x4 LB: > { %s13353_s25 = sadd.s32 4294967295, %s13288_s24   ;;  %s11101_s26 = sadd.s32 4294967294, %s13288_s24   ;;  %s13288_s24 = sphi %s13338_s24, %s18778_s24   ;;  %s13284_s23 = sphi %s13336_s23, %s18777_s23   ;;  %s13280_s22 = sphi %s13334_s22, %s18776_s22   ;;  %s13276_s21 = sphi %s13332_s21, %s18775_s21  }
   0x5   : > { %s13357_s27 = sadd.s32 1, %s13288_s24   ;;  %s158_s28 = sadd.s32 1, %s13284_s23 }
   0x6   : > { %s155_s29 = ssub.s32 %s13288_s24, %s13357_s27  ;;  %p168_p0 = scmp.ne.s32.totalorder %s13284_s23, %s13280_s22 }
   0x7   : > { %p156_p1 = scmp.eq.s32.totalorder %s155_s29, 0  ;;  %p169_p2 = scmp.eq.s32.totalorder %s13353_s25, 1 }
   0x8   : > { %p174_p3 = scmp.ne.s32.totalorder %s13280_s22, %s13276_s21  ;;  %p175_p4 = scmp.eq.s32.totalorder %s11101_s26, 1 }
   0x9   : > { %s13368_s30 = scalar_select %p156_p1, %s13284_s23, %s158_s28  }
   0xa   : > { %p13370_p5 = por %p169_p2, %p168_p0  ;;  %p13374_p6 = por %p175_p4, %p174_p3 }
   0xb   : > { %p11102_p7 = scmp.ge.s32.totalorder %s13288_s24, 1  ;;  %p182_p8 = scmp.lt.s32.totalorder %s13288_s24, 3 }
   0xc   : > { %s18460_s8 = scalar_select %p13374_p6, 1, 0 }
   0xd   : > { %p12980_p9 = scmp.eq.s32.totalorder %s13353_s25, 0  ;;  %p13381_p10 = pnand %p11102_p7, %p182_p8 }
   0xe   : > { %s13290_s10 = smov [#allocation4]  }
   0xf   : > { %s200_s11 = sshll.u32 %s13290_s10, 4  ;;  %p12972_p11 = pneg %p13381_p10  ;;  %s201_s11 = int_to_ptr.vmem [resolvable:$true] %s200_s11 }
  0x10   : > { %s13209_s12 = scalar_lea.vmem %s201_s11, 9216  ;;  %p13217_p3 = scmp.lt.s32.totalorder %s201_s11, %s201_s11 }
  0x11   : > { %p12973_p12 = pnand %p12980_p9, %p12972_p11  ;;  %p13210_p0 = scmp.ne.s32.totalorder %s201_s11, %s13209_s12 }
  0x12   : > { %p13218_p4 = scmp.lt.s32.totalorder %s13209_s12, %s13209_s12 }
  0x13   : > { %p13200_p13 = pneg %p12973_p12 }
  0x14   : > { %p13219_p6 = por %p13218_p4, %p13217_p3 }
  0x15   : > { %p13212_p1 = pnand %p13210_p0, %p13200_p13 }
  0x17   : > { %p13213_p2 = pneg %p13212_p1 }
  0x19   : > { %p13220_p7 = pnand %p13219_p6, %p13213_p2 }
  0x1b   : > { %13223 = shalt.err (!%p13220_p7)
}
  0x1c   : > { %s13291_s13 = smov 64   ;;  %s13292_s14 = smov 4  }
  0x1d   : > { %12975 = dma.hbm_to_vmem [thread:$0]  (!%p12973_p12), %s18439_s3, 9216, %s201_s11, [#allocation5], %s13291_s13, %s13291_s13, %s13292_s14  }
  0x1e   : > { %230 = sbr.rel (%p13381_p10) target bundleno = 1508 (0x5e4), region = 44 }
  0x23   : > { %13267 = dma.done.wait (%p12980_p9), [#allocation5], 9216  }
  0x24   : > { %13269 = vsyncadd (%p12980_p9), [#allocation5], 4294958080  ;;  %vm266_vm0 = vcmask 27648   ;;  %vm269_vm1 = vcmask 24576   ;;  %v13293_v0 = vmov 0   ;;  %p260_p6 = scmp.lt.s32.totalorder %s13353_s25, 1 }
  0x25   : > { %267 = vst.msk [vmem:[#allocation2] sm:$0xf] %vm266_vm0, %v13293_v0  ;;  %268 = vst.msk [vmem:[#allocation2 + $0x4] sm:$0xf] %vm266_vm0, %v13293_v0  ;;  %vm1330_vm2 = vcmask 1041408   ;;  %vm1281_vm7 = vcmask 31744  }
  0x26   : > { %270 = vst.msk [vmem:[#allocation2 + $0x8] sm:$0x1] %vm269_vm1, %v13293_v0  ;;  %273 = vst.msk [vmem:[#allocation2 + $0x14] sm:$0x1] %vm269_vm1, %v13293_v0  ;;  %s261_s17 = scalar_select %p260_p6, %s13353_s25, 1  ;;  %v18464_v27 = vmov 0 }
  0x27   : > { %271 = vst.msk [vmem:[#allocation2 + $0xc] sm:$0xf] %vm266_vm0, %v13293_v0  ;;  %272 = vst.msk [vmem:[#allocation2 + $0x10] sm:$0xf] %vm266_vm0, %v13293_v0  ;;  %vm844_vm3 = vsmask.f32 3328 }
  0x28   : > { %274 = vst.msk [vmem:[#allocation2 + $0x18] sm:$0xf] %vm266_vm0, %v13293_v0  ;;  %275 = vst.msk [vmem:[#allocation2 + $0x1c] sm:$0xf] %vm266_vm0, %v13293_v0  ;;  %s11757_s18 = sshll.u32 %s261_s17, 7  ;;  %v18467_v33 = vmov 0 }
  0x29   : > { %276 = vst.msk [vmem:[#allocation2 + $0x20] sm:$0x1] %vm269_vm1, %v13293_v0  ;;  %279 = vst.msk [vmem:[#allocation2 + $0x2c] sm:$0x1] %vm269_vm1, %v13293_v0  ;;  %vm845_vm4 = vsmask.f32 7440  ;;  %s13565_s26 = scalar_lea.vmem %s18436_s0, %s11757_s18 }
  0x2a   : > { %277 = vst.msk [vmem:[#allocation2 + $0x24] sm:$0xf] %vm266_vm0, %v13293_v0  ;;  %278 = vst.msk [vmem:[#allocation2 + $0x28] sm:$0xf] %vm266_vm0, %v13293_v0  ;;  %vm354_vm5 = vsmask.f32 256 }
  0x2b   : > { %280 = vst.msk [vmem:[#allocation2 + $0x30] sm:$0xf] %vm266_vm0, %v13293_v0  ;;  %281 = vst.msk [vmem:[#allocation2 + $0x34] sm:$0xf] %vm266_vm0, %v13293_v0  ;;  %vm679_vm6 = vsmask.f32 7938 }
  0x2c   : > { %282 = vst.msk [vmem:[#allocation2 + $0x38] sm:$0x1] %vm269_vm1, %v13293_v0  ;;  %285 = vst.msk [vmem:[#allocation2 + $0x44] sm:$0x1] %vm269_vm1, %v13293_v0  ;;  %v11110_v1 = vld [vmem:[%s18437_s1 + $0x2] sm:$0x3] }
  0x2d   : > { %283 = vst.msk [vmem:[#allocation2 + $0x3c] sm:$0xf] %vm266_vm0, %v13293_v0  ;;  %284 = vst.msk [vmem:[#allocation2 + $0x40] sm:$0xf] %vm266_vm0, %v13293_v0  ;;  %v322_v2 = vld [vmem:[%s13565_s26] sm:$0xf]  ;;  %12956 = vmatprep.subr.msk.bf16.mxu0 %vm1330_vm2, %v11110_v1  ;;  %12957 = vmatprep.subr.msk.bf16.mxu1 %vm1330_vm2, %v11110_v1 }
  0x2e   : > { %286 = vst.msk [vmem:[#allocation2 + $0x48] sm:$0xf] %vm266_vm0, %v13293_v0  ;;  %287 = vst.msk [vmem:[#allocation2 + $0x4c] sm:$0xf] %vm266_vm0, %v13293_v0  ;;  %v323_v3 = vld [vmem:[%s13565_s26 + $0x4] sm:$0xf] }
  0x2f   : > { %288 = vst.msk [vmem:[#allocation2 + $0x50] sm:$0x1] %vm269_vm1, %v13293_v0  ;;  %291 = vst.msk [vmem:[#allocation2 + $0x5c] sm:$0x1] %vm269_vm1, %v13293_v0  ;;  %v1332_v4 = vsel %vm1330_vm2, %v11110_v1, 0  ;;  %v358_v7 = vshrl.u32 %v322_v2, 16 }
  0x30   : > { %289 = vst.msk [vmem:[#allocation2 + $0x54] sm:$0xf] %vm266_vm0, %v13293_v0  ;;  %290 = vst.msk [vmem:[#allocation2 + $0x58] sm:$0xf] %vm266_vm0, %v13293_v0  ;;  %v13575_v5 = vld [vmem:[#allocation2] sm:$0xf]  ;;  %12217 = vmatpush3.bf16.msra.mxu0 %v1332_v4  ;;  %12955 = vmatpush3.bf16.msra.mxu1 %v1332_v4 }
  0x31   : > { %292 = vst.msk [vmem:[#allocation2 + $0x60] sm:$0xf] %vm266_vm0, %v13293_v0  ;;  %293 = vst.msk [vmem:[#allocation2 + $0x64] sm:$0xf] %vm266_vm0, %v13293_v0  ;;  %v13577_v6 = vld [vmem:[#allocation2 + $0x4] sm:$0xf] }
  0x32   : > { %294 = vst.msk [vmem:[#allocation2 + $0x68] sm:$0x1] %vm269_vm1, %v13293_v0  ;;  %297 = vst.msk [vmem:[#allocation2 + $0x74] sm:$0x1] %vm269_vm1, %v13293_v0  ;;  %v13579_v8 = vld [vmem:[#allocation2 + $0x8] sm:$0x1] }
  0x33   : > { %295 = vst.msk [vmem:[#allocation2 + $0x6c] sm:$0xf] %vm266_vm0, %v13293_v0  ;;  %296 = vst.msk [vmem:[#allocation2 + $0x70] sm:$0xf] %vm266_vm0, %v13293_v0  ;;  %v848_v9 = vshrl.u32 %v13575_v5, 16  ;;  %v851_v10 = vshll.u32 %v13575_v5, 16 }
  0x34   : > { %298 = vst.msk [vmem:[#allocation2 + $0x78] sm:$0xf] %vm266_vm0, %v13293_v0  ;;  %299 = vst.msk [vmem:[#allocation2 + $0x7c] sm:$0xf] %vm266_vm0, %v13293_v0  ;;  %v857_v11 = vshll.u32 %v13577_v6, 16  ;;  %v861_v12 = vshrl.u32 %v13577_v6, 16 }
  0x35   : > { %300 = vst.msk [vmem:[#allocation2 + $0x80] sm:$0x1] %vm269_vm1, %v13293_v0  ;;  %303 = vst.msk [vmem:[#allocation2 + $0x8c] sm:$0x1] %vm269_vm1, %v13293_v0  ;;  %v867_v13 = vshll.u32 %v13579_v8, 16  ;;  %v360_v14 = vrot.slane %v358_v7, 7 }
  0x36   : > { %301 = vst.msk [vmem:[#allocation2 + $0x84] sm:$0xf] %vm266_vm0, %v13293_v0  ;;  %302 = vst.msk [vmem:[#allocation2 + $0x88] sm:$0xf] %vm266_vm0, %v13293_v0  ;;  %vm355_vm8 = vsmask.f32 4368 }
  0x37   : > { %304 = vst.msk [vmem:[#allocation2 + $0x90] sm:$0xf] %vm266_vm0, %v13293_v0  ;;  %305 = vst.msk [vmem:[#allocation2 + $0x94] sm:$0xf] %vm266_vm0, %v13293_v0  ;;  %v361_v15 = vshll.u32 %v322_v2, 16  ;;  %v850_v16 = vrot.slane %v848_v9, 4 }
  0x38   : > { %306 = vst.msk [vmem:[#allocation2 + $0x98] sm:$0x1] %vm269_vm1, %v13293_v0  ;;  %309 = vst.msk [vmem:[#allocation2 + $0xa4] sm:$0x1] %vm269_vm1, %v13293_v0  ;;  %v853_v17 = vrot.slane %v851_v10, 5  ;;  %v859_v18 = vrot.slane %v857_v11, 5 }
  0x39   : > { %307 = vst.msk [vmem:[#allocation2 + $0x9c] sm:$0xf] %vm266_vm0, %v13293_v0  ;;  %308 = vst.msk [vmem:[#allocation2 + $0xa0] sm:$0xf] %vm266_vm0, %v13293_v0  ;;  %v863_v19 = vrot.slane %v861_v12, 4  ;;  %v869_v22 = vrot.slane %v867_v13, 5  ;;  %v363_v23 = vor.u32 %v361_v15, %v360_v14 }
  0x3a   : > { %310 = vst.msk [vmem:[#allocation2 + $0xa8] sm:$0xf] %vm266_vm0, %v13293_v0  ;;  %311 = vst.msk [vmem:[#allocation2 + $0xac] sm:$0xf] %vm266_vm0, %v13293_v0  ;;  %v681_v21 = vld [vmem:[#allocation2 + $0xc] sm:$0xf]  ;;  %v854_v28 = vor.u32 %v853_v17, %v850_v16 }
  0x3b   : > { %312 = vst.msk [vmem:[#allocation2 + $0xb0] sm:$0x1] %vm269_vm1, %v13293_v0  ;;  %315 = vst.msk [vmem:[#allocation2 + $0xbc] sm:$0x1] %vm269_vm1, %v13293_v0  ;;  %v364_v24 = vrot.slane %v360_v14, 4  ;;  %v366_v25 = vshrl.u32 %v323_v3, 16  ;;  %v864_v29 = vor.u32 %v863_v19, %v859_v18 }
  0x3c   : > { %313 = vst.msk [vmem:[#allocation2 + $0xb4] sm:$0xf] %vm266_vm0, %v13293_v0  ;;  %314 = vst.msk [vmem:[#allocation2 + $0xb8] sm:$0xf] %vm266_vm0, %v13293_v0  ;;  %v344_v26 = vld [vmem:[%s13565_s26 + $0x58] sm:$0xf] }
  0x3d   : > { %316 = vst.msk [vmem:[#allocation2 + $0xc0] sm:$0xf] %vm266_vm0, %v13293_v0  ;;  %317 = vst.msk [vmem:[#allocation2 + $0xc4] sm:$0xf] %vm266_vm0, %v13293_v0  ;;  %v369_v30 = vshll.u32 %v323_v3, 16  ;;  %v545_v32 = vshrl.u32 %v344_v26, 16 }
  0x3e   : > { %318 = vst.msk [vmem:[#allocation2 + $0xc8] sm:$0x1] %vm269_vm1, %v13293_v0  ;;  %321 = vst.msk [vmem:[#allocation2 + $0xd4] sm:$0x1] %vm269_vm1, %v13293_v0  ;;  %v345_v31 = vld [vmem:[%s13565_s26 + $0x5c] sm:$0xf] }
  0x3f   : > { %319 = vst.msk [vmem:[#allocation2 + $0xcc] sm:$0xf] %vm266_vm0, %v13293_v0  ;;  %320 = vst.msk [vmem:[#allocation2 + $0xd0] sm:$0xf] %vm266_vm0, %v13293_v0  ;;  %v368_v34 = vrot.slane %v366_v25, 7  ;;  %v548_v37 = vshll.u32 %v344_v26, 16 }
  0x40   : > { %5424 = vst [vmem:[#allocation3] sm:$0xf] %v13293_v0  ;;  %5425 = vst [vmem:[#allocation3 + $0x4] sm:$0xf] %v13293_v0  ;;  %v687_v36 = vld [vmem:[#allocation2 + $0x14] sm:$0x1] }
  0x41   : > { %5426 = vst [vmem:[#allocation3 + $0x8] sm:$0x1] %v13293_v0  ;;  %5427 = vst [vmem:[#allocation3 + $0xc] sm:$0xf] %v13293_v0  ;;  %v553_v38 = vshrl.u32 %v345_v31, 16  ;;  %v855_v39 = vrot.slane %v854_v28, 4  ;;  %v371_v45 = vor.u32 %v369_v30, %v368_v34 }
  0x42   : > { %5428 = vst [vmem:[#allocation3 + $0x10] sm:$0xf] %v13293_v0  ;;  %5429 = vst [vmem:[#allocation3 + $0x14] sm:$0x1] %v13293_v0  ;;  %v865_v40 = vrot.slane %v864_v29, 4  ;;  %v547_v42 = vrot.slane %v545_v32, 7 }
  0x43   : > { %5430 = vst [vmem:[#allocation3 + $0x18] sm:$0xf] %v13293_v0  ;;  %5431 = vst [vmem:[#allocation3 + $0x1c] sm:$0xf] %v13293_v0  ;;  %v556_v43 = vshll.u32 %v345_v31, 16  ;;  %v373_v46 = vrot.slane %v368_v34, 4 }
  0x44   : > { %5432 = vst [vmem:[#allocation3 + $0x20] sm:$0x1] %v13293_v0  ;;  %5433 = vst [vmem:[#allocation3 + $0x24] sm:$0xf] %v13293_v0  ;;  %v346_v44 = vld [vmem:[%s13565_s26 + $0x60] sm:$0xf]  ;;  %v550_v52 = vor.u32 %v548_v37, %v547_v42 }
  0x45   : > { %5434 = vst [vmem:[#allocation3 + $0x28] sm:$0xf] %v13293_v0  ;;  %5435 = vst [vmem:[#allocation3 + $0x2c] sm:$0x1] %v13293_v0  ;;  %v555_v47 = vrot.slane %v553_v38, 7  ;;  %v562_v49 = vshrl.u32 %v346_v44, 16 }
  0x46   : > { %5436 = vst [vmem:[#allocation3 + $0x30] sm:$0xf] %v13293_v0  ;;  %5437 = vst [vmem:[#allocation3 + $0x34] sm:$0xf] %v13293_v0  ;;  %v760_v48 = vld [vmem:[#allocation2 + $0x90] sm:$0xf] }
  0x47   : > { %5438 = vst [vmem:[#allocation3 + $0x38] sm:$0x1] %v13293_v0  ;;  %5439 = vst [vmem:[#allocation3 + $0x3c] sm:$0xf] %v13293_v0  ;;  %v551_v53 = vrot.slane %v547_v42, 4  ;;  %v558_v58 = vor.u32 %v556_v43, %v555_v47  ;;  %v560_v61 = vrot.slane %v555_v47, 4 }
  0x48   : > { %5440 = vst [vmem:[#allocation3 + $0x40] sm:$0xf] %v13293_v0  ;;  %5441 = vst [vmem:[#allocation3 + $0x44] sm:$0x1] %v13293_v0  ;;  %v347_v54 = vld [vmem:[%s13565_s26 + $0x64] sm:$0xf] }
  0x49   : > { %5442 = vst [vmem:[#allocation3 + $0x48] sm:$0xf] %v13293_v0  ;;  %5443 = vst [vmem:[#allocation3 + $0x4c] sm:$0xf] %v13293_v0  ;;  %v764_v59 = vld [vmem:[#allocation2 + $0x98] sm:$0x1] }
  0x4a   : > { %5444 = vst [vmem:[#allocation3 + $0x50] sm:$0x1] %v13293_v0  ;;  %5445 = vst [vmem:[#allocation3 + $0x54] sm:$0xf] %v13293_v0  ;;  %v324_v60 = vld [vmem:[%s13565_s26 + $0x8] sm:$0xf] }
  0x4b   : > { %5446 = vst [vmem:[#allocation3 + $0x58] sm:$0xf] %v13293_v0  ;;  %5447 = vst [vmem:[#allocation3 + $0x5c] sm:$0x1] %v13293_v0  ;;  %v564_v63 = vrot.slane %v562_v49, 7  ;;  %v570_v3 = vshrl.u32 %v347_v54, 16 }
  0x4c   : > { %5448 = vst [vmem:[#allocation3 + $0x60] sm:$0xf] %v13293_v0  ;;  %5449 = vst [vmem:[#allocation3 + $0x64] sm:$0xf] %v13293_v0  ;;  %v13629_v1 = vld [vmem:[%s13565_s26 + $0xc] sm:$0xf] }
  0x4d   : > { %5450 = vst [vmem:[#allocation3 + $0x68] sm:$0x1] %v13293_v0  ;;  %5451 = vst [vmem:[#allocation3 + $0x6c] sm:$0xf] %v13293_v0  ;;  %v573_v4 = vshll.u32 %v347_v54, 16  ;;  %v375_v9 = vshrl.u32 %v324_v60, 16 }
  0x4e   : > { %5452 = vst [vmem:[#allocation3 + $0x70] sm:$0xf] %v13293_v0  ;;  %5453 = vst [vmem:[#allocation3 + $0x74] sm:$0x1] %v13293_v0  ;;  %v767_v7 = vld [vmem:[#allocation2 + $0x9c] sm:$0xf] }
  0x4f   : > { %5454 = vst [vmem:[#allocation3 + $0x78] sm:$0xf] %v13293_v0  ;;  %5455 = vst [vmem:[#allocation3 + $0x7c] sm:$0xf] %v13293_v0  ;;  %v1843_v10 = vrot.slane %v13579_v8, 5  ;;  %v378_v13 = vshll.u32 %v324_v60, 16 }
  0x50   : > { %5456 = vst [vmem:[#allocation3 + $0x80] sm:$0x1] %v13293_v0  ;;  %5457 = vst [vmem:[#allocation3 + $0x84] sm:$0xf] %v13293_v0  ;;  %v13639_v14 = vld [vmem:[%s13565_s26 + $0x10] sm:$0xf] }
  0x51   : > { %5458 = vst [vmem:[#allocation3 + $0x88] sm:$0xf] %v13293_v0  ;;  %5459 = vst [vmem:[#allocation3 + $0x8c] sm:$0x1] %v13293_v0  ;;  %v568_v16 = vrot.slane %v564_v63, 4  ;;  %v572_v17 = vrot.slane %v570_v3, 7 }
  0x52   : > { %5460 = vst [vmem:[#allocation3 + $0x90] sm:$0xf] %v13293_v0  ;;  %5461 = vst [vmem:[#allocation3 + $0x94] sm:$0xf] %v13293_v0  ;;  %v383_v19 = vshrl.u32 %v13629_v1, 16  ;;  %v392_v30 = vshrl.u32 %v13639_v14, 16 }
  0x53   : > { %5462 = vst [vmem:[#allocation3 + $0x98] sm:$0x1] %v13293_v0  ;;  %5463 = vst [vmem:[#allocation3 + $0x9c] sm:$0xf] %v13293_v0  ;;  %v690_v25 = vld [vmem:[#allocation2 + $0x18] sm:$0xf]  ;;  %v575_v26 = vor.u32 %v573_v4, %v572_v17 }
  0x54   : > { %5464 = vst [vmem:[#allocation3 + $0xa0] sm:$0xf] %v13293_v0  ;;  %5465 = vst [vmem:[#allocation3 + $0xa4] sm:$0x1] %v13293_v0  ;;  %v577_v28 = vrot.slane %v572_v17, 4  ;;  %vm1835_vm13 = vcmask 1042432  }
  0x55   : > { %5466 = vst [vmem:[#allocation3 + $0xa8] sm:$0xf] %v13293_v0  ;;  %5467 = vst [vmem:[#allocation3 + $0xac] sm:$0xf] %v13293_v0  ;;  %vm1836_vm14 = vcmask 1046532   ;;  %s257_s18 = sand.u32 1, %s13280_s22  }
  0x56   : > { %5468 = vst [vmem:[#allocation3 + $0xb0] sm:$0x1] %v13293_v0  ;;  %5469 = vst [vmem:[#allocation3 + $0xb4] sm:$0xf] %v13293_v0  ;;  %s11107_s19 = sshll.u32 %s257_s18, 6  ;;  %s11790_s28 = sshll.u32 %s13353_s25, 10 }
  0x57   : > { %5470 = vst [vmem:[#allocation3 + $0xb8] sm:$0xf] %v13293_v0  ;;  %5471 = vst [vmem:[#allocation3 + $0xbc] sm:$0x1] %v13293_v0  ;;  %s18375_s20 = scalar_lea.vmem [#allocation7], %s11107_s19  ;;  %s18391_s10 = scalar_lea.hbm %s18442_s6, %s11790_s28 }
  0x58   : > { %5472 = vst [vmem:[#allocation3 + $0xc0] sm:$0xf] %v13293_v0  ;;  %5473 = vst [vmem:[#allocation3 + $0xc4] sm:$0xf] %v13293_v0  ;;  %s18396_s11 = scalar_lea.sflag [#allocation6], %s257_s18  ;;  %s13294_s25 = smov [#allocation7]  }
  0x59   : > { %5474 = vst [vmem:[#allocation3 + $0xc8] sm:$0x1] %v13293_v0  ;;  %5475 = vst [vmem:[#allocation3 + $0xcc] sm:$0xf] %v13293_v0  ;;  %s13228_s13 = sshll.u32 %s13294_s25, 4  ;;  %s13229_s13 = int_to_ptr.vmem [resolvable:$false] %s13228_s13 }
  0x5a   : > { %5476 = vst [vmem:[#allocation3 + $0xd0] sm:$0xf] %v13293_v0  ;;  %5477 = vst [vmem:[#allocation3 + $0xd4] sm:$0x1] %v13293_v0  ;;  %v565_v0 = vshll.u32 %v346_v44, 16  ;;  %s13230_s14 = scalar_lea.vmem %s13229_s13, 2048 }
  0x5b   : > { %vm13588_vm9 = vmand %vm266_vm0, %vm679_vm6 }
  0x5c   : > { %vm13595_vm10 = vmor %vm844_vm3, %vm845_vm4  ;;  %v682_v35 = vsel %vm13588_vm9, %v363_v23, %v681_v21  ;;  %v761_v62 = vsel %vm13588_vm9, %v550_v52, %v760_v48  ;;  %v567_v12 = vor.u32 %v565_v0, %v564_v63  ;;  %v395_v52 = vshll.u32 %v13639_v14, 16 }
  0x5d   : > { %v18465_v27 = vsel %vm13595_vm10, 4294967295, %v18464_v27  ;;  %vm13602_vm11 = vmor %vm354_vm5, %vm355_vm8  ;;  %683 = vst [vmem:[#allocation2 + $0xc] sm:$0xf] %v682_v35  ;;  %v860_v50 = vsel %vm13595_vm10, %v855_v39, %v859_v18  ;;  %v870_v51 = vsel %vm13595_vm10, %v865_v40, %v869_v22  ;;  %v13643_v18 = vrot.slane %v375_v9, 7 }
  0x5e   : > { %18466 = vst [vmem:[#allocation10_spill] sm:$0xff] %v18465_v27  ;;  %v18468_v33 = vsel %vm13602_vm11, 4294967295, %v18467_v33  ;;  %vm13610_vm12 = vmand %vm269_vm1, %vm354_vm5  ;;  %v11111_v55 = vcombine.low %v860_v50, %v870_v51  ;;  %v372_v56 = vsel %vm13602_vm11, %v364_v24, %v371_v45  ;;  %v559_v2 = vsel %vm13602_vm11, %v551_v53, %v558_v58  ;;  %v771_v24 = vld [vmem:[#allocation2 + $0xa4] sm:$0x1] }
  0x5f   : > { %18469 = vst [vmem:[#allocation11_spill] sm:$0xff] %v18468_v33  ;;  %v688_v57 = vsel %vm13610_vm12, %v373_v46, %v687_v36  ;;  %684 = vst.msk [vmem:[#allocation2 + $0x10] sm:$0xf] %vm266_vm0, %v372_v56  ;;  %v765_v11 = vsel %vm13610_vm12, %v560_v61, %v764_v59  ;;  %v768_v23 = vsel %vm13588_vm9, %v567_v12, %v767_v7  ;;  %v381_v34 = vrot.slane %v13643_v18, 4 }
  0x60   : > { %689 = vst [vmem:[#allocation2 + $0x14] sm:$0x1] %v688_v57  ;;  %12218 = vmatprep.mubr.msk.bf16.mxu0 %vm1281_vm7, %v11111_v55  ;;  %762 = vst [vmem:[#allocation2 + $0x90] sm:$0xf] %v761_v62  ;;  %v380_v29 = vor.u32 %v378_v13, %v13643_v18  ;;  %v386_v35 = vshll.u32 %v13629_v1, 16  ;;  %v576_v38 = vsel %vm13602_vm11, %v568_v16, %v575_v26  ;;  %v13660_v40 = vrot.slane %v383_v19, 7 }
  0x61   : > { %763 = vst.msk [vmem:[#allocation2 + $0x94] sm:$0xf] %vm266_vm0, %v559_v2  ;;  %766 = vst [vmem:[#allocation2 + $0x98] sm:$0x1] %v765_v11  ;;  %v772_v39 = vsel %vm13610_vm12, %v577_v28, %v771_v24  ;;  %v13667_v51 = vrot.slane %v392_v30, 7  ;;  %vm5901_vm1 = vcmask 1040384  }
  0x62   : > { %769 = vst [vmem:[#allocation2 + $0x9c] sm:$0xf] %v768_v23  ;;  %v691_v42 = vsel %vm13588_vm9, %v380_v29, %v690_v25  ;;  %770 = vst.msk [vmem:[#allocation2 + $0xa0] sm:$0xf] %vm266_vm0, %v576_v38  ;;  %v388_v14 = vor.u32 %v386_v35, %v13660_v40 }
  0x63   : > { %773 = vst [vmem:[#allocation2 + $0xa4] sm:$0x1] %v772_v39  ;;  %692 = vst [vmem:[#allocation2 + $0x18] sm:$0xf] %v691_v42  ;;  %v397_v23 = vor.u32 %v395_v52, %v13667_v51 }
  0x64   : > { %v13641_v15 = vld [vmem:[#allocation2 + $0xc] sm:$0xf]  ;;  %vm14041_vm15 = vmor %vm1835_vm13, %vm1836_vm14 }
  0x65   : > { %v872_v21 = vshrl.u32 %v13641_v15, 16  ;;  %v875_v22 = vshll.u32 %v13641_v15, 16  ;;  %vm16070_vm3 = vmand %vm5901_vm1, %vm354_vm5 }
  0x66   : > { %v13654_v36 = vld [vmem:[#allocation2 + $0x10] sm:$0xf] }
  0x67   : > { %v874_v31 = vrot.slane %v872_v21, 4  ;;  %v877_v32 = vrot.slane %v875_v22, 5  ;;  %v829_v37 = vld [vmem:[#allocation2 + $0x14] sm:$0x1]  ;;  %v881_v44 = vshll.u32 %v13654_v36, 16  ;;  %v885_v45 = vshrl.u32 %v13654_v36, 16 }
  0x68   : > { %v891_v46 = vshll.u32 %v829_v37, 16  ;;  %v819_v47 = vld [vmem:[#allocation2 + $0x90] sm:$0xf]  ;;  %v820_v48 = vld [vmem:[#allocation2 + $0x94] sm:$0xf]  ;;  %v1847_v56 = vrot.slane %v13654_v36, 5 }
  0x69   : > { %v878_v43 = vor.u32 %v877_v32, %v874_v31  ;;  %v1136_v49 = vshrl.u32 %v819_v47, 16  ;;  %v1139_v50 = vshll.u32 %v819_v47, 16  ;;  %v883_v54 = vrot.slane %v881_v44, 5  ;;  %v840_v57 = vld [vmem:[#allocation2 + $0x98] sm:$0x1] }
  0x6a   : > { %v887_v55 = vrot.slane %v885_v45, 4  ;;  %v1145_v60 = vshll.u32 %v820_v48, 16  ;;  %v1149_v61 = vshrl.u32 %v820_v48, 16  ;;  %v893_v0 = vrot.slane %v891_v46, 5  ;;  %v821_v2 = vld [vmem:[#allocation2 + $0x9c] sm:$0xf] }
  0x6b   : > { %v879_v53 = vrot.slane %v878_v43, 4  ;;  %v1138_v58 = vrot.slane %v1136_v49, 4  ;;  %v1141_v59 = vrot.slane %v1139_v50, 5  ;;  %v1155_v1 = vshll.u32 %v840_v57, 16  ;;  %v822_v19 = vld [vmem:[#allocation2 + $0xa0] sm:$0xf] }
  0x6c   : > { %v888_v63 = vor.u32 %v887_v55, %v883_v54  ;;  %v1147_v4 = vrot.slane %v1145_v60, 5  ;;  %v1151_v7 = vrot.slane %v1149_v61, 4  ;;  %v1160_v9 = vshrl.u32 %v821_v2, 16  ;;  %v841_v21 = vld [vmem:[#allocation2 + $0xa4] sm:$0x1] }
  0x6d   : > { %v884_v62 = vsel %vm13595_vm10, %v879_v53, %v883_v54  ;;  %v1142_v3 = vor.u32 %v1141_v59, %v1138_v58  ;;  %v1157_v12 = vrot.slane %v1155_v1, 5  ;;  %v1163_v13 = vshll.u32 %v821_v2, 16  ;;  %v13677_v29 = vld [vmem:[#allocation2 + $0x18] sm:$0xf]  ;;  %v13684_v37 = vld [vmem:[%s18437_s1] sm:$0x3] }
  0x6e   : > { %v889_v11 = vrot.slane %v888_v63, 4  ;;  %v1152_v17 = vor.u32 %v1151_v7, %v1147_v4  ;;  %v1162_v22 = vrot.slane %v1160_v9, 4  ;;  %v1169_v26 = vshll.u32 %v822_v19, 16  ;;  %v694_v44 = vld [vmem:[#allocation2 + $0x20] sm:$0x1]  ;;  %12958 = vmatprep.subr.msk.bf16.mxu1 %vm1330_vm2, %v13684_v37 }
  0x6f   : > { %v1143_v16 = vrot.slane %v1142_v3, 4  ;;  %v1165_v25 = vrot.slane %v1163_v13, 5  ;;  %v1173_v28 = vshrl.u32 %v822_v19, 16  ;;  %v1179_v35 = vshll.u32 %v841_v21, 16  ;;  %v327_v45 = vld [vmem:[%s13565_s26 + $0x14] sm:$0xf] }
  0x70   : > { %v894_v24 = vsel %vm13595_vm10, %v889_v11, %v893_v0  ;;  %v1153_v32 = vrot.slane %v1152_v17, 4  ;;  %v1171_v39 = vrot.slane %v1169_v26, 5  ;;  %v389_v43 = vsel %vm13602_vm11, %v381_v34, %v388_v14  ;;  %v697_v53 = vld [vmem:[#allocation2 + $0x24] sm:$0xf]  ;;  %v348_v54 = vld [vmem:[%s13565_s26 + $0x68] sm:$0xf] }
  0x71   : > { %v11112_v30 = vcombine.low %v884_v62, %v894_v24  ;;  %v1148_v31 = vsel %vm13595_vm10, %v1143_v16, %v1147_v4  ;;  %v1166_v38 = vor.u32 %v1165_v25, %v1162_v22  ;;  %v1175_v42 = vrot.slane %v1173_v28, 4  ;;  %693 = vst.msk [vmem:[#allocation2 + $0x1c] sm:$0xf] %vm266_vm0, %v389_v43  ;;  %v350_v4 = vld [vmem:[%s13565_s26 + $0x70] sm:$0xf] }
  0x72   : > { %v1158_v46 = vsel %vm13595_vm10, %v1153_v32, %v1157_v12  ;;  %v1181_v47 = vrot.slane %v1179_v35, 5  ;;  %v390_v48 = vrot.slane %v13660_v40, 4  ;;  %v896_v18 = vshrl.u32 %v13677_v29, 16  ;;  %v349_v40 = vld [vmem:[%s13565_s26 + $0x6c] sm:$0xf] }
  0x73   : > { %12219 = vmatmul.mubr.msk.bf16.vlgmr.msra.gmra.mxu0 %vm1281_vm7, %v11112_v30  ;;  %v11123_v49 = vcombine.low %v1148_v31, %v1158_v46  ;;  %v1167_v34 = vrot.slane %v1166_v38, 4  ;;  %v1176_v50 = vor.u32 %v1175_v42, %v1171_v39  ;;  %v899_v52 = vshll.u32 %v13677_v29, 16  ;;  %v701_v9 = vld [vmem:[#allocation2 + $0x2c] sm:$0x1]  ;;  %v351_v19 = vld [vmem:[%s13565_s26 + $0x74] sm:$0xf] }
  0x74   : > { %v695_v55 = vsel %vm13610_vm12, %v390_v48, %v694_v44  ;;  %v898_v57 = vrot.slane %v896_v18, 4  ;;  %v398_v58 = vrot.slane %v13667_v51, 4  ;;  %v400_v59 = vshrl.u32 %v327_v45, 16  ;;  %v774_v32 = vld [vmem:[#allocation2 + $0xa8] sm:$0xf] }
  0x75   : > { %12242 = vmatprep.mubr.msk.bf16.mxu1 %vm1281_vm7, %v11123_v49  ;;  %v1172_v60 = vsel %vm13595_vm10, %v1167_v34, %v1171_v39  ;;  %v1177_v61 = vrot.slane %v1176_v50, 4  ;;  %696 = vst [vmem:[#allocation2 + $0x20] sm:$0x1] %v695_v55  ;;  %v901_v62 = vrot.slane %v899_v52, 5  ;;  %v403_v63 = vshll.u32 %v327_v45, 16 }
  0x76   : > { %v402_v0 = vrot.slane %v400_v59, 7  ;;  %v698_v1 = vsel %vm13588_vm9, %v397_v23, %v697_v53  ;;  %v579_v2 = vshrl.u32 %v348_v54, 16  ;;  %v582_v3 = vshll.u32 %v348_v54, 16  ;;  %v778_v35 = vld [vmem:[#allocation2 + $0xb0] sm:$0x1] }
  0x77   : > { %v1182_v51 = vsel %vm13595_vm10, %v1177_v61, %v1181_v47  ;;  %v902_v7 = vor.u32 %v901_v62, %v898_v57  ;;  %699 = vst [vmem:[#allocation2 + $0x24] sm:$0xf] %v698_v1  ;;  %v587_v11 = vshrl.u32 %v349_v40, 16  ;;  %v590_v12 = vshll.u32 %v349_v40, 16  ;;  %v781_v52 = vld [vmem:[#allocation2 + $0xb4] sm:$0xf] }
  0x78   : > { %v11124_v13 = vcombine.low %v1172_v60, %v1182_v51  ;;  %v405_v14 = vor.u32 %v403_v63, %v402_v0  ;;  %v407_v16 = vrot.slane %v402_v0, 4  ;;  %v581_v17 = vrot.slane %v579_v2, 7  ;;  %v13714_v21 = vld [vmem:[#allocation2 + $0x1c] sm:$0xf]  ;;  %v328_v59 = vld [vmem:[%s13565_s26 + $0x18] sm:$0xf] }
  0x79   : > { %v903_v22 = vrot.slane %v902_v7, 4  ;;  %v589_v23 = vrot.slane %v587_v11, 7  ;;  %v596_v24 = vshrl.u32 %v350_v4, 16  ;;  %v599_v25 = vshll.u32 %v350_v4, 16  ;;  %v13742_v63 = vld [vmem:[%s13565_s26 + $0x1c] sm:$0xf] }
  0x7a   : > { %12243 = vmatmul.mubr.msk.bf16.vlgmr.msra.gmra.mxu1 %vm1281_vm7, %v11124_v13  ;;  %v905_v26 = vshll.u32 %v13714_v21, 16  ;;  %v909_v28 = vshrl.u32 %v13714_v21, 16  ;;  %v406_v30 = vsel %vm13602_vm11, %v398_v58, %v405_v14  ;;  %v702_v31 = vsel %vm13610_vm12, %v407_v16, %v701_v9  ;;  %v785_v9 = vld [vmem:[#allocation2 + $0xbc] sm:$0x1] }
  0x7b   : > { %700 = vst.msk [vmem:[#allocation2 + $0x28] sm:$0xf] %vm266_vm0, %v406_v30  ;;  %703 = vst [vmem:[#allocation2 + $0x2c] sm:$0x1] %v702_v31  ;;  %v584_v38 = vor.u32 %v582_v3, %v581_v17  ;;  %v585_v39 = vrot.slane %v581_v17, 4  ;;  %v592_v42 = vor.u32 %v590_v12, %v589_v23  ;;  %v594_v43 = vrot.slane %v589_v23, 4 }
  0x7c   : > { %v13724_v44 = vld [vmem:[#allocation2 + $0x20] sm:$0x1]  ;;  %v907_v45 = vrot.slane %v905_v26, 5  ;;  %v911_v46 = vrot.slane %v909_v28, 4  ;;  %v598_v47 = vrot.slane %v596_v24, 7  ;;  %v604_v48 = vshrl.u32 %v351_v19, 16 }
  0x7d   : > { %v915_v18 = vshll.u32 %v13724_v44, 16  ;;  %v593_v49 = vsel %vm13602_vm11, %v585_v39, %v592_v42  ;;  %v775_v34 = vsel %vm13588_vm9, %v584_v38, %v774_v32  ;;  %v779_v50 = vsel %vm13610_vm12, %v594_v43, %v778_v35  ;;  %v13765_v31 = vld [vmem:[%s18437_s1 + $0x4] sm:$0x3] }
  0x7e   : > { %v908_v53 = vsel %vm13595_vm10, %v903_v22, %v907_v45  ;;  %v912_v54 = vor.u32 %v911_v46, %v907_v45  ;;  %v13735_v55 = vld [vmem:[#allocation2 + $0x24] sm:$0xf]  ;;  %776 = vst [vmem:[#allocation2 + $0xa8] sm:$0xf] %v775_v34  ;;  %777 = vst.msk [vmem:[#allocation2 + $0xac] sm:$0xf] %vm266_vm0, %v593_v49  ;;  %v601_v57 = vor.u32 %v599_v25, %v598_v47  ;;  %12959 = vmatprep.subr.msk.bf16.mxu0 %vm1330_vm2, %v13765_v31 }
  0x7f   : > { %780 = vst [vmem:[#allocation2 + $0xb0] sm:$0x1] %v779_v50  ;;  %v602_v58 = vrot.slane %v598_v47, 4  ;;  %v917_v40 = vrot.slane %v915_v18, 5  ;;  %v920_v60 = vshrl.u32 %v13735_v55, 16  ;;  %v923_v61 = vshll.u32 %v13735_v55, 16 }
  0x80   : > { %v606_v62 = vrot.slane %v604_v48, 7  ;;  %v913_v0 = vrot.slane %v912_v54, 4  ;;  %v607_v1 = vshll.u32 %v351_v19, 16  ;;  %v782_v2 = vsel %vm13588_vm9, %v601_v57, %v781_v52 }
  0x81   : > { %v1624_v3 = vsel %vm1330_vm2, %v13684_v37, 0  ;;  %v922_v4 = vrot.slane %v920_v60, 4  ;;  %v925_v51 = vrot.slane %v923_v61, 5  ;;  %783 = vst [vmem:[#allocation2 + $0xb4] sm:$0xf] %v782_v2  ;;  %v409_v11 = vshrl.u32 %v328_v59, 16 }
  0x82   : > { %v611_v7 = vrot.slane %v606_v62, 4  ;;  %12251 = vmatpush3.bf16.msra.mxu1 %v1624_v3  ;;  %v918_v12 = vsel %vm13595_vm10, %v913_v0, %v917_v40  ;;  %v13750_v13 = vld [vmem:[#allocation2 + $0x28] sm:$0xf]  ;;  %v13752_v14 = vld [vmem:[#allocation2 + $0x2c] sm:$0x1]  ;;  %v609_v16 = vor.u32 %v607_v1, %v606_v62  ;;  %v412_v17 = vshll.u32 %v328_v59, 16 }
  0x83   : > { %v417_v19 = vshrl.u32 %v13742_v63, 16  ;;  %v11113_v22 = vcombine.low %v908_v53, %v918_v12  ;;  %v926_v37 = vor.u32 %v925_v51, %v922_v4  ;;  %v929_v23 = vshll.u32 %v13750_v13, 16  ;;  %v708_v12 = vld [vmem:[#allocation2 + $0x38] sm:$0x1] }
  0x84   : > { %v933_v24 = vshrl.u32 %v13750_v13, 16  ;;  %v939_v25 = vshll.u32 %v13752_v14, 16  ;;  %v610_v26 = vsel %vm13602_vm11, %v602_v58, %v609_v16  ;;  %v786_v28 = vsel %vm13610_vm12, %v611_v7, %v785_v9 }
  0x85   : > { %v411_v30 = vrot.slane %v409_v11, 7  ;;  %12222 = vmatprep.mubr.msk.bf16.mxu0 %vm1281_vm7, %v11113_v22  ;;  %v927_v32 = vrot.slane %v926_v37, 4  ;;  %v931_v35 = vrot.slane %v929_v23, 5  ;;  %v13768_v39 = vld [vmem:[#allocation2 + $0xa8] sm:$0xf]  ;;  %v419_v42 = vrot.slane %v417_v19, 7 }
  0x86   : > { %v935_v38 = vrot.slane %v933_v24, 4  ;;  %784 = vst.msk [vmem:[#allocation2 + $0xb8] sm:$0xf] %vm266_vm0, %v610_v26  ;;  %787 = vst [vmem:[#allocation2 + $0xbc] sm:$0x1] %v786_v28  ;;  %v941_v43 = vrot.slane %v939_v25, 5  ;;  %v11143_v18 = vcombine.low %v13575_v5, %v13577_v6 }
  0x87   : > { %v13773_v45 = vld [vmem:[#allocation2 + $0xac] sm:$0xf]  ;;  %v842_v46 = vld [vmem:[#allocation2 + $0xb0] sm:$0x1]  ;;  %v1184_v47 = vshrl.u32 %v13768_v39, 16  ;;  %v414_v48 = vor.u32 %v412_v17, %v411_v30  ;;  %v932_v49 = vsel %vm13595_vm10, %v927_v32, %v931_v35  ;;  %v1187_v50 = vshll.u32 %v13768_v39, 16 }
  0x88   : > { %v936_v34 = vor.u32 %v935_v38, %v931_v35  ;;  %v1193_v52 = vshll.u32 %v13773_v45, 16  ;;  %v1197_v54 = vshrl.u32 %v13773_v45, 16  ;;  %v1203_v57 = vshll.u32 %v842_v46, 16  ;;  %v825_v58 = vld [vmem:[#allocation2 + $0xb4] sm:$0xf] }
  0x89   : > { %v1186_v53 = vrot.slane %v1184_v47, 4  ;;  %v415_v59 = vrot.slane %v411_v30, 4  ;;  %v1189_v60 = vrot.slane %v1187_v50, 5  ;;  %v1208_v62 = vshrl.u32 %v825_v58, 16  ;;  %v704_v11 = vld [vmem:[#allocation2 + $0x30] sm:$0xf] }
  0x8a   : > { %v937_v40 = vrot.slane %v936_v34, 4  ;;  %v1195_v61 = vrot.slane %v1193_v52, 5  ;;  %v1199_v0 = vrot.slane %v1197_v54, 4  ;;  %v1205_v1 = vrot.slane %v1203_v57, 5  ;;  %v330_v28 = vld [vmem:[%s13565_s26 + $0x20] sm:$0xf] }
  0x8b   : > { %v1211_v2 = vshll.u32 %v825_v58, 16  ;;  %v420_v3 = vshll.u32 %v13742_v63, 16  ;;  %v1190_v51 = vor.u32 %v1189_v60, %v1186_v53  ;;  %v1210_v7 = vrot.slane %v1208_v62, 4  ;;  %v332_v34 = vld [vmem:[%s13565_s26 + $0x28] sm:$0xf] }
  0x8c   : > { %v942_v4 = vsel %vm13595_vm10, %v937_v40, %v941_v43  ;;  %v424_v9 = vrot.slane %v419_v42, 4  ;;  %v1200_v17 = vor.u32 %v1199_v0, %v1195_v61  ;;  %v705_v38 = vsel %vm13588_vm9, %v414_v48, %v704_v11  ;;  %v333_v54 = vld [vmem:[%s13565_s26 + $0x2c] sm:$0xf]  ;;  %v13809_v57 = vld [vmem:[%s18437_s1 + $0x6] sm:$0x3] }
  0x8d   : > { %v11114_v16 = vcombine.low %v932_v49, %v942_v4  ;;  %v13786_v19 = vld [vmem:[#allocation2 + $0xb8] sm:$0xf]  ;;  %v843_v22 = vld [vmem:[#allocation2 + $0xbc] sm:$0x1]  ;;  %v1213_v37 = vrot.slane %v1211_v2, 5  ;;  %v422_v23 = vor.u32 %v420_v3, %v419_v42  ;;  %v1191_v24 = vrot.slane %v1190_v51, 4  ;;  %12960 = vmatprep.subr.msk.bf16.mxu1 %vm1330_vm2, %v13809_v57 }
  0x8e   : > { %v1217_v63 = vshll.u32 %v13786_v19, 16  ;;  %v1221_v25 = vshrl.u32 %v13786_v19, 16  ;;  %v1227_v26 = vshll.u32 %v843_v22, 16  ;;  %v1201_v30 = vrot.slane %v1200_v17, 4  ;;  %v331_v42 = vld [vmem:[%s13565_s26 + $0x24] sm:$0xf] }
  0x8f   : > { %12223 = vmatmul.mubr.msk.bf16.gmra.mxu0 %vm1281_vm7, %v11114_v16  ;;  %v1214_v32 = vor.u32 %v1213_v37, %v1210_v7  ;;  %v423_v35 = vsel %vm13602_vm11, %v415_v59, %v422_v23  ;;  %v1196_v43 = vsel %vm13595_vm10, %v1191_v24, %v1195_v61  ;;  %706 = vst [vmem:[#allocation2 + $0x30] sm:$0xf] %v705_v38  ;;  %v426_v48 = vshrl.u32 %v330_v28, 16  ;;  %v711_v61 = vld [vmem:[#allocation2 + $0x3c] sm:$0xf] }
  0x90   : > { %v1219_v46 = vrot.slane %v1217_v63, 5  ;;  %v1223_v47 = vrot.slane %v1221_v25, 4  ;;  %v1229_v49 = vrot.slane %v1227_v26, 5  ;;  %707 = vst.msk [vmem:[#allocation2 + $0x34] sm:$0xf] %vm266_vm0, %v423_v35  ;;  %v1206_v50 = vsel %vm13595_vm10, %v1201_v30, %v1205_v1 }
  0x91   : > { %v1215_v52 = vrot.slane %v1214_v32, 4  ;;  %v709_v53 = vsel %vm13610_vm12, %v424_v9, %v708_v12  ;;  %v11125_v58 = vcombine.low %v1196_v43, %v1206_v50  ;;  %v429_v40 = vshll.u32 %v330_v28, 16  ;;  %v334_v3 = vld [vmem:[%s13565_s26 + $0x30] sm:$0xf]  ;;  %v715_v7 = vld [vmem:[#allocation2 + $0x44] sm:$0x1] }
  0x92   : > { %v1224_v59 = vor.u32 %v1223_v47, %v1219_v46  ;;  %710 = vst [vmem:[#allocation2 + $0x38] sm:$0x1] %v709_v53  ;;  %v434_v60 = vshrl.u32 %v331_v42, 16  ;;  %v428_v0 = vrot.slane %v426_v48, 7  ;;  %v437_v1 = vshll.u32 %v331_v42, 16 }
  0x93   : > { %v1220_v62 = vsel %vm13595_vm10, %v1215_v52, %v1219_v46  ;;  %v11144_v2 = vcombine.low %v13641_v15, %v13654_v36  ;;  %12246 = vmatprep.mubr.msk.bf16.mxu1 %vm1281_vm7, %v11125_v58  ;;  %v443_v9 = vshrl.u32 %v332_v34, 16  ;;  %v446_v11 = vshll.u32 %v332_v34, 16  ;;  %v718_v25 = vld [vmem:[#allocation2 + $0x48] sm:$0xf]  ;;  %v335_v34 = vld [vmem:[%s13565_s26 + $0x34] sm:$0xf] }
  0x94   : > { %v1225_v4 = vrot.slane %v1224_v59, 4  ;;  %v436_v51 = vrot.slane %v434_v60, 7  ;;  %v431_v12 = vor.u32 %v429_v40, %v428_v0  ;;  %v432_v16 = vrot.slane %v428_v0, 4 }
  0x95   : > { %v451_v17 = vshrl.u32 %v333_v54, 16  ;;  %v454_v22 = vshll.u32 %v333_v54, 16  ;;  %v445_v63 = vrot.slane %v443_v9, 7  ;;  %v460_v38 = vshrl.u32 %v334_v3, 16 }
  0x96   : > { %v1230_v37 = vsel %vm13595_vm10, %v1225_v4, %v1229_v49  ;;  %v439_v23 = vor.u32 %v437_v1, %v436_v51  ;;  %v441_v24 = vrot.slane %v436_v51, 4  ;;  %v13821_v28 = vld [vmem:[#allocation2 + $0x30] sm:$0xf]  ;;  %v712_v32 = vsel %vm13588_vm9, %v431_v12, %v711_v61 }
  0x97   : > { %v11126_v26 = vcombine.low %v1220_v62, %v1230_v37  ;;  %v13823_v30 = vld [vmem:[#allocation2 + $0x34] sm:$0xf]  ;;  %v453_v35 = vrot.slane %v451_v17, 7  ;;  %v944_v42 = vshrl.u32 %v13821_v28, 16  ;;  %v947_v43 = vshll.u32 %v13821_v28, 16 }
  0x98   : > { %v953_v46 = vshll.u32 %v13823_v30, 16  ;;  %v957_v47 = vshrl.u32 %v13823_v30, 16  ;;  %713 = vst [vmem:[#allocation2 + $0x3c] sm:$0xf] %v712_v32  ;;  %v722_v49 = vld [vmem:[#allocation2 + $0x50] sm:$0x1]  ;;  %v440_v52 = vsel %vm13602_vm11, %v432_v16, %v439_v23  ;;  %v716_v53 = vsel %vm13610_vm12, %v441_v24, %v715_v7 }
  0x99   : > { %12247 = vmatmul.mubr.msk.bf16.gmra.mxu1 %vm1281_vm7, %v11126_v26  ;;  %v13833_v50 = vld [vmem:[#allocation2 + $0x38] sm:$0x1]  ;;  %v448_v48 = vor.u32 %v446_v11, %v445_v63  ;;  %v449_v54 = vrot.slane %v445_v63, 4  ;;  %v946_v58 = vrot.slane %v944_v42, 4  ;;  %v949_v59 = vrot.slane %v947_v43, 5 }
  0x9a   : > { %v955_v40 = vrot.slane %v953_v46, 5  ;;  %v959_v60 = vrot.slane %v957_v47, 4  ;;  %714 = vst.msk [vmem:[#allocation2 + $0x40] sm:$0xf] %vm266_vm0, %v440_v52  ;;  %717 = vst [vmem:[#allocation2 + $0x44] sm:$0x1] %v716_v53  ;;  %12252 = vmatprep.mubr.msk.bf16.mxu1 %vm1281_vm7, %v11143_v18  ;;  %v456_v62 = vor.u32 %v454_v22, %v453_v35  ;;  %v11146_v26 = vcombine.low %v13735_v55, %v13750_v13 }
  0x9b   : > { %v963_v61 = vshll.u32 %v13833_v50, 16  ;;  %v458_v0 = vrot.slane %v453_v35, 4  ;;  %v719_v1 = vsel %vm13588_vm9, %v448_v48, %v718_v25  ;;  %v950_v4 = vor.u32 %v949_v59, %v946_v58  ;;  %v725_v37 = vld [vmem:[#allocation2 + $0x54] sm:$0xf]  ;;  %v729_v63 = vld [vmem:[#allocation2 + $0x5c] sm:$0x1] }
  0x9c   : > { %v960_v51 = vor.u32 %v959_v60, %v955_v40  ;;  %720 = vst [vmem:[#allocation2 + $0x48] sm:$0xf] %v719_v1  ;;  %v462_v7 = vrot.slane %v460_v38, 7  ;;  %v463_v9 = vshll.u32 %v334_v3, 16  ;;  %v457_v12 = vsel %vm13602_vm11, %v449_v54, %v456_v62  ;;  %v336_v43 = vld [vmem:[%s13565_s26 + $0x38] sm:$0xf] }
  0x9d   : > { %v965_v11 = vrot.slane %v963_v61, 5  ;;  %v723_v5 = vsel %vm13610_vm12, %v458_v0, %v722_v49  ;;  %v468_v6 = vshrl.u32 %v335_v34, 16  ;;  %v951_v18 = vrot.slane %v950_v4, 4  ;;  %721 = vst.msk [vmem:[#allocation2 + $0x4c] sm:$0xf] %vm266_vm0, %v457_v12 }
  0x9e   : > { %v961_v16 = vrot.slane %v960_v51, 4  ;;  %724 = vst [vmem:[#allocation2 + $0x50] sm:$0x1] %v723_v5  ;;  %v465_v17 = vor.u32 %v463_v9, %v462_v7  ;;  %v466_v22 = vrot.slane %v462_v7, 4  ;;  %v471_v24 = vshll.u32 %v335_v34, 16 }
  0x9f   : > { %v13852_v23 = vld [vmem:[#allocation2 + $0x3c] sm:$0xf]  ;;  %v470_v3 = vrot.slane %v468_v6, 7  ;;  %v11145_v25 = vcombine.low %v13677_v29, %v13714_v21  ;;  %v956_v32 = vsel %vm13595_vm10, %v951_v18, %v955_v40  ;;  %v477_v59 = vshrl.u32 %v336_v43, 16 }
  0xa0   : > { %v966_v35 = vsel %vm13595_vm10, %v961_v16, %v965_v11  ;;  %v968_v38 = vshrl.u32 %v13852_v23, 16  ;;  %v971_v42 = vshll.u32 %v13852_v23, 16  ;;  %v726_v55 = vsel %vm13588_vm9, %v465_v17, %v725_v37 }
  0xa1   : > { %v11115_v46 = vcombine.low %v956_v32, %v966_v35  ;;  %v13865_v47 = vld [vmem:[#allocation2 + $0x40] sm:$0xf]  ;;  %v13867_v49 = vld [vmem:[#allocation2 + $0x44] sm:$0x1]  ;;  %12253 = vmatmul.mubr.msk.bf16.vlgmr.msra.gmra.mxu1 %vm1281_vm7, %v11144_v2  ;;  %v473_v29 = vor.u32 %v471_v24, %v470_v3  ;;  %v475_v21 = vrot.slane %v470_v3, 4  ;;  %v11147_v7 = vcombine.low %v13821_v28, %v13823_v30 }
  0xa2   : > { %v970_v34 = vrot.slane %v968_v38, 4  ;;  %v973_v52 = vrot.slane %v971_v42, 5  ;;  %v977_v53 = vshll.u32 %v13865_v47, 16  ;;  %v981_v48 = vshrl.u32 %v13865_v47, 16  ;;  %727 = vst [vmem:[#allocation2 + $0x54] sm:$0xf] %v726_v55  ;;  %12256 = vmatprep.mubr.msk.bf16.mxu1 %vm1281_vm7, %v11145_v25 }
  0xa3   : > { %12226 = vmatprep.mubr.msk.bf16.mxu0 %vm1281_vm7, %v11115_v46  ;;  %v987_v15 = vshll.u32 %v13867_v49, 16  ;;  %v13880_v54 = vld [vmem:[#allocation2 + $0x48] sm:$0xf]  ;;  %v474_v2 = vsel %vm13602_vm11, %v466_v22, %v473_v29  ;;  %v730_v58 = vsel %vm13610_vm12, %v475_v21, %v729_v63  ;;  %v11148_v9 = vcombine.low %v13852_v23, %v13865_v47  ;;  %v337_v28 = vld [vmem:[%s13565_s26 + $0x3c] sm:$0xf] }
  0xa4   : > { %v974_v40 = vor.u32 %v973_v52, %v970_v34  ;;  %v979_v60 = vrot.slane %v977_v53, 5  ;;  %v983_v61 = vrot.slane %v981_v48, 4  ;;  %v992_v62 = vshrl.u32 %v13880_v54, 16  ;;  %728 = vst.msk [vmem:[#allocation2 + $0x58] sm:$0xf] %vm266_vm0, %v474_v2 }
  0xa5   : > { %731 = vst [vmem:[#allocation2 + $0x5c] sm:$0x1] %v730_v58  ;;  %v989_v0 = vrot.slane %v987_v15, 5  ;;  %v13888_v1 = vld [vmem:[#allocation2 + $0x4c] sm:$0xf]  ;;  %v995_v51 = vshll.u32 %v13880_v54, 16 }
  0xa6   : > { %v13890_v4 = vld [vmem:[#allocation2 + $0x50] sm:$0x1]  ;;  %v975_v11 = vrot.slane %v974_v40, 4  ;;  %v984_v12 = vor.u32 %v983_v61, %v979_v60  ;;  %v994_v5 = vrot.slane %v992_v62, 4  ;;  %v1001_v6 = vshll.u32 %v13888_v1, 16 }
  0xa7   : > { %v997_v18 = vrot.slane %v995_v51, 5  ;;  %v1005_v16 = vshrl.u32 %v13888_v1, 16  ;;  %v1011_v17 = vshll.u32 %v13890_v4, 16  ;;  %v479_v22 = vrot.slane %v477_v59, 7  ;;  %v732_v34 = vld [vmem:[#allocation2 + $0x60] sm:$0xf] }
  0xa8   : > { %v980_v37 = vsel %vm13595_vm10, %v975_v11, %v979_v60  ;;  %v985_v3 = vrot.slane %v984_v12, 4  ;;  %v1003_v24 = vrot.slane %v1001_v6, 5  ;;  %v480_v63 = vshll.u32 %v336_v43, 16  ;;  %v736_v60 = vld [vmem:[#allocation2 + $0x68] sm:$0x1] }
  0xa9   : > { %v998_v25 = vor.u32 %v997_v18, %v994_v5  ;;  %v1007_v32 = vrot.slane %v1005_v16, 4  ;;  %v1013_v35 = vrot.slane %v1011_v17, 5  ;;  %v13903_v38 = vld [vmem:[#allocation2 + $0x54] sm:$0xf]  ;;  %12257 = vmatmul.mubr.msk.bf16.gmra.mxu1 %vm1281_vm7, %v11146_v26  ;;  %v483_v42 = vrot.slane %v479_v22, 4 }
  0xaa   : > { %v990_v46 = vsel %vm13595_vm10, %v985_v3, %v989_v0  ;;  %v1016_v29 = vshrl.u32 %v13903_v38, 16  ;;  %v1019_v21 = vshll.u32 %v13903_v38, 16  ;;  %v482_v55 = vor.u32 %v480_v63, %v479_v22  ;;  %12260 = vmatprep.mubr.msk.bf16.mxu1 %vm1281_vm7, %v11147_v7  ;;  %v338_v7 = vld [vmem:[%s13565_s26 + $0x40] sm:$0xf]  ;;  %v339_v18 = vld [vmem:[%s13565_s26 + $0x44] sm:$0xf] }
  0xab   : > { %v11116_v43 = vcombine.low %v980_v37, %v990_v46  ;;  %v999_v52 = vrot.slane %v998_v25, 4  ;;  %v1008_v53 = vor.u32 %v1007_v32, %v1003_v24  ;;  %v13911_v48 = vld [vmem:[#allocation2 + $0x58] sm:$0xf]  ;;  %v485_v26 = vshrl.u32 %v337_v28, 16  ;;  %v340_v3 = vld [vmem:[%s13565_s26 + $0x48] sm:$0xf] }
  0xac   : > { %v13913_v15 = vld [vmem:[#allocation2 + $0x5c] sm:$0x1]  ;;  %v1018_v2 = vrot.slane %v1016_v29, 4  ;;  %v1021_v58 = vrot.slane %v1019_v21, 5  ;;  %v1025_v59 = vshll.u32 %v13911_v48, 16  ;;  %v1029_v40 = vshrl.u32 %v13911_v48, 16 }
  0xad   : > { %12227 = vmatmul.mubr.msk.bf16.gmra.mxu0 %vm1281_vm7, %v11116_v43  ;;  %v1004_v61 = vsel %vm13595_vm10, %v999_v52, %v1003_v24  ;;  %v1009_v62 = vrot.slane %v1008_v53, 4  ;;  %v1035_v0 = vshll.u32 %v13913_v15, 16  ;;  %v487_v51 = vrot.slane %v485_v26, 7  ;;  %v341_v46 = vld [vmem:[%s13565_s26 + $0x4c] sm:$0xf] }
  0xae   : > { %v1022_v11 = vor.u32 %v1021_v58, %v1018_v2  ;;  %v1027_v12 = vrot.slane %v1025_v59, 5  ;;  %v1031_v5 = vrot.slane %v1029_v40, 4  ;;  %v488_v6 = vshll.u32 %v337_v28, 16  ;;  %v739_v53 = vld [vmem:[#allocation2 + $0x6c] sm:$0xf] }
  0xaf   : > { %v1014_v16 = vsel %vm13595_vm10, %v1009_v62, %v1013_v35  ;;  %v1037_v17 = vrot.slane %v1035_v0, 5  ;;  %v492_v22 = vrot.slane %v487_v51, 4  ;;  %v733_v37 = vsel %vm13588_vm9, %v482_v55, %v732_v34  ;;  %v342_v26 = vld [vmem:[%s13565_s26 + $0x50] sm:$0xf]  ;;  %v13944_v23 = vld [vmem:[%s18437_s1 + $0x8] sm:$0x3] }
  0xb0   : > { %v11117_v24 = vcombine.low %v1004_v61, %v1014_v16  ;;  %v1023_v63 = vrot.slane %v1022_v11, 4  ;;  %v1032_v25 = vor.u32 %v1031_v5, %v1027_v12  ;;  %v490_v32 = vor.u32 %v488_v6, %v487_v51  ;;  %734 = vst [vmem:[#allocation2 + $0x60] sm:$0xf] %v733_v37  ;;  %v13950_v40 = vld [vmem:[%s13565_s26 + $0x54] sm:$0xf] }
  0xb1   : > { %v737_v28 = vsel %vm13610_vm12, %v492_v22, %v736_v60  ;;  %v494_v29 = vshrl.u32 %v338_v7, 16  ;;  %v497_v21 = vshll.u32 %v338_v7, 16  ;;  %v502_v43 = vshrl.u32 %v339_v18, 16  ;;  %12261 = vmatmul.mubr.msk.bf16.gmra.mxu1 %vm1281_vm7, %v11148_v9  ;;  %v746_v37 = vld [vmem:[#allocation2 + $0x78] sm:$0xf] }
  0xb2   : > { %12230 = vmatprep.mubr.msk.bf16.mxu0 %vm1281_vm7, %v11117_v24  ;;  %v1028_v35 = vsel %vm13595_vm10, %v1023_v63, %v1027_v12  ;;  %v1033_v55 = vrot.slane %v1032_v25, 4  ;;  %v491_v34 = vsel %vm13602_vm11, %v483_v42, %v490_v32  ;;  %738 = vst [vmem:[#allocation2 + $0x68] sm:$0x1] %v737_v28  ;;  %v505_v52 = vshll.u32 %v339_v18, 16  ;;  %v743_v12 = vld [vmem:[#allocation2 + $0x74] sm:$0x1] }
  0xb3   : > { %735 = vst.msk [vmem:[#allocation2 + $0x64] sm:$0xf] %vm266_vm0, %v491_v34  ;;  %v496_v9 = vrot.slane %v494_v29, 7  ;;  %v504_v2 = vrot.slane %v502_v43, 7  ;;  %v2049_v58 = vsel %vm1330_vm2, %v13765_v31, 0  ;;  %v511_v59 = vshrl.u32 %v340_v3, 16 }
  0xb4   : > { %v1038_v42 = vsel %vm13595_vm10, %v1033_v55, %v1037_v17  ;;  %12285 = vmatpush3.bf16.msra.mxu0 %v2049_v58  ;;  %v514_v60 = vshll.u32 %v340_v3, 16  ;;  %v519_v61 = vshrl.u32 %v341_v46, 16  ;;  %v522_v62 = vshll.u32 %v341_v46, 16  ;;  %v750_v28 = vld [vmem:[#allocation2 + $0x80] sm:$0x1] }
  0xb5   : > { %v11118_v0 = vcombine.low %v1028_v35, %v1038_v42  ;;  %v499_v51 = vor.u32 %v497_v21, %v496_v9  ;;  %v500_v7 = vrot.slane %v496_v9, 4  ;;  %v507_v11 = vor.u32 %v505_v52, %v504_v2  ;;  %12961 = vmatprep.subr.msk.bf16.mxu0 %vm1330_vm2, %v13944_v23  ;;  %v753_v34 = vld [vmem:[#allocation2 + $0x84] sm:$0xf] }
  0xb6   : > { %v509_v5 = vrot.slane %v504_v2, 4  ;;  %v513_v31 = vrot.slane %v511_v59, 7  ;;  %v521_v6 = vrot.slane %v519_v61, 7  ;;  %v528_v18 = vshrl.u32 %v342_v26, 16 }
  0xb7   : > { %12231 = vmatmul.mubr.msk.bf16.gmra.mxu0 %vm1281_vm7, %v11118_v0  ;;  %v13957_v16 = vld [vmem:[#allocation2 + $0x60] sm:$0xf]  ;;  %v508_v17 = vsel %vm13602_vm11, %v500_v7, %v507_v11  ;;  %v740_v22 = vsel %vm13588_vm9, %v499_v51, %v739_v53  ;;  %v531_v3 = vshll.u32 %v342_v26, 16  ;;  %v536_v24 = vshrl.u32 %v13950_v40, 16 }
  0xb8   : > { %v1040_v63 = vshrl.u32 %v13957_v16, 16  ;;  %v1043_v25 = vshll.u32 %v13957_v16, 16  ;;  %741 = vst [vmem:[#allocation2 + $0x6c] sm:$0xf] %v740_v22  ;;  %742 = vst.msk [vmem:[#allocation2 + $0x70] sm:$0xf] %vm266_vm0, %v508_v17  ;;  %v744_v32 = vsel %vm13610_vm12, %v509_v5, %v743_v12  ;;  %v516_v46 = vor.u32 %v514_v60, %v513_v31 }
  0xb9   : > { %v13969_v29 = vld [vmem:[#allocation2 + $0x68] sm:$0x1]  ;;  %745 = vst [vmem:[#allocation2 + $0x74] sm:$0x1] %v744_v32  ;;  %v517_v21 = vrot.slane %v513_v31, 4  ;;  %v524_v43 = vor.u32 %v522_v62, %v521_v6  ;;  %v526_v35 = vrot.slane %v521_v6, 4  ;;  %v11149_v17 = vcombine.low %v13880_v54, %v13888_v1 }
  0xba   : > { %v530_v55 = vrot.slane %v528_v18, 7  ;;  %v13971_v52 = vld [vmem:[#allocation2 + $0x64] sm:$0xf]  ;;  %v1042_v53 = vrot.slane %v1040_v63, 4  ;;  %v1045_v26 = vrot.slane %v1043_v25, 5  ;;  %v1059_v9 = vshll.u32 %v13969_v29, 16 }
  0xbb   : > { %v747_v2 = vsel %vm13588_vm9, %v516_v46, %v746_v37  ;;  %v1049_v58 = vshll.u32 %v13971_v52, 16  ;;  %v1053_v59 = vshrl.u32 %v13971_v52, 16  ;;  %v525_v42 = vsel %vm13602_vm11, %v517_v21, %v524_v43  ;;  %v757_v18 = vld [vmem:[#allocation2 + $0x8c] sm:$0x1]  ;;  %12264 = vmatprep.mubr.msk.bf16.mxu1 %vm1281_vm7, %v11149_v17 }
  0xbc   : > { %748 = vst [vmem:[#allocation2 + $0x78] sm:$0xf] %v747_v2  ;;  %v751_v60 = vsel %vm13610_vm12, %v526_v35, %v750_v28  ;;  %v1046_v61 = vor.u32 %v1045_v26, %v1042_v53  ;;  %v1061_v62 = vrot.slane %v1059_v9, 5  ;;  %749 = vst.msk [vmem:[#allocation2 + $0x7c] sm:$0xf] %vm266_vm0, %v525_v42  ;;  %v533_v0 = vor.u32 %v531_v3, %v530_v55 }
  0xbd   : > { %752 = vst [vmem:[#allocation2 + $0x80] sm:$0x1] %v751_v60  ;;  %v534_v51 = vrot.slane %v530_v55, 4  ;;  %v1051_v7 = vrot.slane %v1049_v58, 5  ;;  %v1055_v11 = vrot.slane %v1053_v59, 4  ;;  %v538_v12 = vrot.slane %v536_v24, 7 }
  0xbe   : > { %v539_v5 = vshll.u32 %v13950_v40, 16  ;;  %v1047_v31 = vrot.slane %v1046_v61, 4  ;;  %v754_v6 = vsel %vm13588_vm9, %v533_v0, %v753_v34  ;;  %v11150_v22 = vcombine.low %v13903_v38, %v13911_v48 }
  0xbf   : > { %v1056_v37 = vor.u32 %v1055_v11, %v1051_v7  ;;  %v13990_v63 = vld [vmem:[#allocation2 + $0x6c] sm:$0xf]  ;;  %v13992_v3 = vld [vmem:[#allocation2 + $0x70] sm:$0xf]  ;;  %v543_v24 = vrot.slane %v538_v12, 4  ;;  %v11151_v61 = vcombine.low %v13957_v16, %v13971_v52 }
  0xc0   : > { %v541_v25 = vor.u32 %v539_v5, %v538_v12  ;;  %755 = vst [vmem:[#allocation2 + $0x84] sm:$0xf] %v754_v6  ;;  %v1052_v40 = vsel %vm13595_vm10, %v1047_v31, %v1051_v7  ;;  %v13996_v32 = vld [vmem:[#allocation2 + $0x74] sm:$0x1]  ;;  %v1064_v46 = vshrl.u32 %v13990_v63, 16  ;;  %v1067_v54 = vshll.u32 %v13990_v63, 16  ;;  %12265 = vmatmul.mubr.msk.bf16.gmra.mxu1 %vm1281_vm7, %v11150_v22 }
  0xc1   : > { %v1073_v38 = vshll.u32 %v13992_v3, 16  ;;  %v1057_v28 = vrot.slane %v1056_v37, 4  ;;  %v1077_v21 = vshrl.u32 %v13992_v3, 16  ;;  %v1083_v43 = vshll.u32 %v13996_v32, 16  ;;  %v1787_v12 = vld [vmem:[#allocation2] sm:$0xe]  ;;  %12268 = vmatprep.mubr.msk.bf16.mxu1 %vm1281_vm7, %v11151_v61 }
  0xc2   : > { %v542_v35 = vsel %vm13602_vm11, %v534_v51, %v541_v25  ;;  %v1066_v55 = vrot.slane %v1064_v46, 4  ;;  %v1069_v34 = vrot.slane %v1067_v54, 5  ;;  %v758_v9 = vsel %vm13610_vm12, %v543_v24, %v757_v18 }
  0xc3   : > { %v1075_v53 = vrot.slane %v1073_v38, 5  ;;  %v14007_v26 = vld [vmem:[#allocation2 + $0x78] sm:$0xf]  ;;  %756 = vst.msk [vmem:[#allocation2 + $0x88] sm:$0xf] %vm266_vm0, %v542_v35  ;;  %v1062_v2 = vsel %vm13595_vm10, %v1057_v28, %v1061_v62  ;;  %v1079_v58 = vrot.slane %v1077_v21, 4 }
  0xc4   : > { %v1085_v59 = vrot.slane %v1083_v43, 5  ;;  %v14014_v42 = vld [vmem:[#allocation2 + $0x7c] sm:$0xf]  ;;  %v14016_v60 = vld [vmem:[#allocation2 + $0x80] sm:$0x1]  ;;  %v11119_v0 = vcombine.low %v1052_v40, %v1062_v2  ;;  %v1070_v51 = vor.u32 %v1069_v34, %v1066_v55  ;;  %v1088_v7 = vshrl.u32 %v14007_v26, 16 }
  0xc5   : > { %759 = vst [vmem:[#allocation2 + $0x8c] sm:$0x1] %v758_v9  ;;  %v1091_v11 = vshll.u32 %v14007_v26, 16  ;;  %v1080_v5 = vor.u32 %v1079_v58, %v1075_v53  ;;  %v1097_v62 = vshll.u32 %v14014_v42, 16  ;;  %v1101_v31 = vshrl.u32 %v14014_v42, 16 }
  0xc6   : > { %v1107_v6 = vshll.u32 %v14016_v60, 16  ;;  %12234 = vmatprep.mubr.msk.bf16.mxu0 %vm1281_vm7, %v11119_v0  ;;  %v1071_v18 = vrot.slane %v1070_v51, 4  ;;  %v1090_v16 = vrot.slane %v1088_v7, 4  ;;  %v11175_v55 = vrot.slane %v1787_v12, 9  ;;  %v13174_v34 = vld [vmem:[#allocation2 + $0x4] sm:$0xf] }
  0xc7   : > { %v1093_v17 = vrot.slane %v1091_v11, 5  ;;  %v14027_v22 = vld [vmem:[#allocation2 + $0x84] sm:$0xf]  ;;  %v1081_v37 = vrot.slane %v1080_v5, 4  ;;  %v1099_v25 = vrot.slane %v1097_v62, 5  ;;  %v1103_v24 = vrot.slane %v1101_v31, 4 }
  0xc8   : > { %v1109_v40 = vrot.slane %v1107_v6, 5  ;;  %v1076_v46 = vsel %vm13595_vm10, %v1071_v18, %v1075_v53  ;;  %v1112_v38 = vshrl.u32 %v14027_v22, 16  ;;  %v1115_v28 = vshll.u32 %v14027_v22, 16  ;;  %v1788_v2 = vld [vmem:[#allocation2 + $0xc] sm:$0xe] }
  0xc9   : > { %v1094_v54 = vor.u32 %v1093_v17, %v1090_v16  ;;  %v1086_v21 = vsel %vm13595_vm10, %v1081_v37, %v1085_v59  ;;  %v1104_v43 = vor.u32 %v1103_v24, %v1099_v25  ;;  %v1840_v9 = vrot.slane %v13174_v34, 5  ;;  %v13175_v62 = vld [vmem:[#allocation2 + $0x14] sm:$0x1]  ;;  %v14530_v20 = vld [vmem:[#allocation2 + $0x80] sm:$0x1] }
  0xca   : > { %v14035_v35 = vld [vmem:[#allocation2 + $0x88] sm:$0xf]  ;;  %v11120_v58 = vcombine.low %v1076_v46, %v1086_v21  ;;  %v1114_v53 = vrot.slane %v1112_v38, 4  ;;  %v1117_v51 = vrot.slane %v1115_v28, 5  ;;  %v18472_v7 = vmov 0 }
  0xcb   : > { %v1095_v61 = vrot.slane %v1094_v54, 4  ;;  %v18473_v7 = vsel %vm14041_vm15, 4294967295, %v18472_v7  ;;  %v1105_v59 = vrot.slane %v1104_v43, 4  ;;  %v1121_v11 = vshll.u32 %v14035_v35, 16  ;;  %v1789_v54 = vld [vmem:[#allocation2 + $0x18] sm:$0xe] }
  0xcc   : > { %v14037_v0 = vld [vmem:[#allocation2 + $0x8c] sm:$0x1]  ;;  %18474 = vst [vmem:[#allocation12_spill] sm:$0xff] %v18473_v7  ;;  %v1125_v12 = vshrl.u32 %v14035_v35, 16  ;;  %v1850_v31 = vrot.slane %v13175_v62, 5  ;;  %12235 = vmatmul.mubr.msk.bf16.gmra.mxu0 %vm1281_vm7, %v11120_v58  ;;  %v1118_v18 = vor.u32 %v1117_v51, %v1114_v53  ;;  %v1842_v16 = vrot.slane %v1840_v9, 4 }
  0xcd   : > { %v1131_v5 = vshll.u32 %v14037_v0, 16  ;;  %v1100_v6 = vsel %vm13595_vm10, %v1095_v61, %v1099_v25  ;;  %v1110_v17 = vsel %vm13595_vm10, %v1105_v59, %v1109_v40  ;;  %v1123_v37 = vrot.slane %v1121_v11, 5  ;;  %v1790_v59 = vld [vmem:[#allocation2 + $0x24] sm:$0xe] }
  0xce   : > { %v1127_v24 = vrot.slane %v1125_v12, 4  ;;  %v1841_v46 = vsel %vm14041_vm15, %v11175_v55, %v1840_v9  ;;  %v11121_v38 = vcombine.low %v1100_v6, %v1110_v17  ;;  %v1119_v28 = vrot.slane %v1118_v18, 4 }
  0xcf   : > { %v1133_v21 = vrot.slane %v1131_v5, 5  ;;  %v11176_v43 = vrot.slane %v1788_v2, 9  ;;  %v1844_v25 = vsel %vm14041_vm15, %v1842_v16, %v1843_v10  ;;  %v1849_v58 = vrot.slane %v1847_v56, 4  ;;  %v13176_v2 = vld [vmem:[#allocation2 + $0x1c] sm:$0xf] }
  0xd0   : > { %v1128_v34 = vor.u32 %v1127_v24, %v1123_v37  ;;  %v11152_v40 = vcombine.low %v13990_v63, %v13992_v3  ;;  %12238 = vmatprep.mubr.msk.bf16.mxu0 %vm1281_vm7, %v11121_v38  ;;  %v11177_v9 = vrot.slane %v1789_v54, 9  ;;  %v1854_v8 = vrot.slane %v13176_v2, 5  ;;  %v1791_v63 = vld [vmem:[#allocation2 + $0x30] sm:$0xe]  ;;  %v14098_v38 = vld [vmem:[#allocation2 + $0x94] sm:$0xf] }
  0xd1   : > { %v14068_v55 = vsel %vm14041_vm15, %v11176_v43, %v1847_v56  ;;  %v1124_v10 = vsel %vm13595_vm10, %v1119_v28, %v1123_v37  ;;  %v14074_v53 = vsel %vm14041_vm15, %v1849_v58, %v1850_v31  ;;  %v11153_v36 = vcombine.low %v14007_v26, %v14014_v42  ;;  %v1792_v31 = vld [vmem:[#allocation2 + $0x3c] sm:$0xe]  ;;  %v13177_v54 = vld [vmem:[#allocation2 + $0x90] sm:$0xf]  ;;  %v1794_v43 = vld [vmem:[#allocation2 + $0x54] sm:$0xe] }
  0xd2   : > { %v1129_v61 = vrot.slane %v1128_v34, 4  ;;  %12269 = vmatmul.mubr.msk.bf16.gmra.mxu1 %vm1281_vm7, %v11152_v40  ;;  %v11192_v51 = vcombine.low %v1841_v46, %v1844_v25  ;;  %v11193_v56 = vcombine.low %v14068_v55, %v14074_v53  ;;  %v1856_v12 = vrot.slane %v1854_v8, 4  ;;  %v1793_v55 = vld [vmem:[#allocation2 + $0x48] sm:$0xe] }
  0xd3   : > { %v1857_v5 = vrot.slane %v13724_v44, 5  ;;  %12272 = vmatprep.mubr.msk.bf16.mxu1 %vm1281_vm7, %v11153_v36  ;;  %v1861_v62 = vrot.slane %v13750_v13, 5  ;;  %v1855_v26 = vsel %vm14041_vm15, %v11177_v9, %v1854_v8  ;;  %v11179_v18 = vrot.slane %v1791_v63, 9  ;;  %v1795_v36 = vld [vmem:[#allocation2 + $0x60] sm:$0xe] }
  0xd4   : > { %v1134_v11 = vsel %vm13595_vm10, %v1129_v61, %v1133_v21  ;;  %v1868_v16 = vrot.slane %v13823_v30, 5  ;;  %v11178_v17 = vrot.slane %v1790_v59, 9  ;;  %v1864_v37 = vrot.slane %v13752_v14, 5  ;;  %v14136_v63 = vld [vmem:[%s18437_s1 + $0xa] sm:$0x3] }
  0xd5   : > { %v11122_v6 = vcombine.low %v1124_v10, %v1134_v11  ;;  %v11154_v24 = vcombine.low %v14027_v22, %v14035_v35  ;;  %v1871_v44 = vrot.slane %v13833_v50, 5  ;;  %v11155_v30 = vcombine.low %v13177_v54, %v14098_v38  ;;  %v14140_v59 = vld [vmem:[#allocation2 + $0xa0] sm:$0xf]  ;;  %v13181_v54 = vld [vmem:[#allocation2 + $0x98] sm:$0x1] }
  0xd6   : > { %v14096_v13 = vsel %vm14041_vm15, %v11179_v18, %v1868_v16  ;;  %v1870_v46 = vrot.slane %v1868_v16, 4  ;;  %v11180_v28 = vrot.slane %v1792_v31, 9  ;;  %v1858_v14 = vsel %vm14041_vm15, %v1856_v12, %v1857_v5  ;;  %v1796_v5 = vld [vmem:[#allocation2 + $0x6c] sm:$0xe] }
  0xd7   : > { %12239 = vmatmul.mubr.msk.bf16.gmra.mxu0 %vm1281_vm7, %v11122_v6  ;;  %v1863_v22 = vrot.slane %v1861_v62, 4  ;;  %v1875_v50 = vrot.slane %v13865_v47, 5  ;;  %v1878_v21 = vrot.slane %v13867_v49, 5  ;;  %v11194_v9 = vcombine.low %v1855_v26, %v1858_v14  ;;  %v1798_v14 = vld [vmem:[#allocation2 + $0x84] sm:$0xe] }
  0xd8   : > { %12286 = vmatprep.mubr.msk.bf16.mxu0 %vm1281_vm7, %v11192_v51  ;;  %v14108_v34 = vsel %vm14041_vm15, %v1870_v46, %v1871_v44  ;;  %v14119_v47 = vsel %vm14041_vm15, %v11178_v17, %v1861_v62  ;;  %v1882_v49 = vrot.slane %v13888_v1, 5  ;;  %v11182_v2 = vrot.slane %v1794_v43, 9  ;;  %v13179_v51 = vld [vmem:[#allocation2 + $0x9c] sm:$0xf]  ;;  %v1799_v46 = vld [vmem:[#allocation2 + $0x90] sm:$0xe] }
  0xd9   : > { %v11196_v25 = vcombine.low %v14096_v13, %v14108_v34  ;;  %v14115_v58 = vsel %vm14041_vm15, %v11180_v28, %v1875_v50  ;;  %v1877_v40 = vrot.slane %v1875_v50, 4  ;;  %v14125_v8 = vsel %vm14041_vm15, %v1863_v22, %v1864_v37  ;;  %v14233_v13 = vld [vmem:[#allocation2 + $0x14] sm:$0x1] }
  0xda   : > { %12273 = vmatmul.mubr.msk.bf16.gmra.mxu1 %vm1281_vm7, %v11154_v24  ;;  %v1889_v61 = vrot.slane %v13911_v48, 5  ;;  %v1892_v53 = vrot.slane %v13913_v15, 5  ;;  %v11156_v11 = vcombine.low %v13179_v51, %v14140_v59  ;;  %v11181_v12 = vrot.slane %v1793_v55, 9 }
  0xdb   : > { %12276 = vmatprep.mubr.msk.bf16.mxu1 %vm1281_vm7, %v11155_v30  ;;  %v14129_v10 = vsel %vm14041_vm15, %v1877_v40, %v1878_v21  ;;  %v2407_v48 = vsel %vm1330_vm2, %v13809_v57, 0  ;;  %v1885_v15 = vrot.slane %v13890_v4, 5  ;;  %v1896_v6 = vrot.slane %v13971_v52, 5  ;;  %v14160_v4 = vld [vmem:[%s18437_s1 + $0xc] sm:$0x3] }
  0xdc   : > { %v11197_v1 = vcombine.low %v14115_v58, %v14129_v10  ;;  %v14148_v62 = vsel %vm14041_vm15, %v11182_v2, %v1889_v61  ;;  %v1891_v31 = vrot.slane %v1889_v61, 4  ;;  %12319 = vmatpush3.bf16.msra.mxu1 %v2407_v48  ;;  %v1884_v26 = vrot.slane %v1882_v49, 4  ;;  %v14285_v10 = vld [vmem:[#allocation2 + $0x20] sm:$0x1] }
  0xdd   : > { %v11157_v18 = vcombine.low %v13768_v39, %v13773_v45  ;;  %v11183_v16 = vrot.slane %v1795_v36, 9  ;;  %v1903_v57 = vrot.slane %v13992_v3, 5  ;;  %12962 = vmatprep.subr.msk.bf16.mxu1 %vm1330_vm2, %v14136_v63  ;;  %v11184_v39 = vrot.slane %v1796_v5, 9  ;;  %v1797_v3 = vld [vmem:[#allocation2 + $0x78] sm:$0xe] }
  0xde   : > { %v14165_v52 = vsel %vm14041_vm15, %v1891_v31, %v1892_v53  ;;  %v3133_v45 = vsel %vm1330_vm2, %v13944_v23, 0  ;;  %v1898_v37 = vrot.slane %v1896_v6, 4  ;;  %v1906_v44 = vrot.slane %v13996_v32, 5  ;;  %v13182_v32 = vld [vmem:[#allocation2 + $0xb4] sm:$0xf] }
  0xdf   : > { %12287 = vmatmul.mubr.msk.bf16.vlgmr.msra.gmra.mxu0 %vm1281_vm7, %v11193_v56  ;;  %v1899_v56 = vrot.slane %v13969_v29, 5  ;;  %v11199_v17 = vcombine.low %v14148_v62, %v14165_v52  ;;  %v1905_v24 = vrot.slane %v1903_v57, 4  ;;  %v1927_v30 = vrot.slane %v13181_v54, 5 }
  0xe0   : > { %12290 = vmatprep.mubr.msk.bf16.mxu0 %vm1281_vm7, %v11194_v9  ;;  %12353 = vmatpush3.bf16.msra.mxu0 %v3133_v45  ;;  %v11195_v28 = vcombine.low %v14119_v47, %v14125_v8  ;;  %v14178_v23 = vsel %vm14041_vm15, %v11181_v12, %v1882_v49  ;;  %v1910_v29 = vrot.slane %v14014_v42, 5  ;;  %v11158_v22 = vcombine.low %v13182_v32, %v13786_v19  ;;  %v1800_v47 = vld [vmem:[#allocation2 + $0x9c] sm:$0xe]  ;;  %v1801_v8 = vld [vmem:[#allocation2 + $0xa8] sm:$0xe] }
  0xe1   : > { %12963 = vmatprep.subr.msk.bf16.mxu0 %vm1330_vm2, %v14160_v4  ;;  %v11185_v50 = vrot.slane %v1797_v3, 9  ;;  %v1913_v21 = vrot.slane %v14016_v60, 5  ;;  %v1917_v43 = vrot.slane %v14035_v35, 5  ;;  %v14189_v40 = vsel %vm14041_vm15, %v1884_v26, %v1885_v15  ;;  %v13022_v35 = vld [vmem:[#allocation2 + $0xc] sm:$0xff]  }
  0xe2   : > { %12277 = vmatmul.mubr.msk.bf16.gmra.mxu1 %vm1281_vm7, %v11156_v11  ;;  %v14193_v42 = vsel %vm14041_vm15, %v11183_v16, %v1896_v6  ;;  %v14197_v55 = vsel %vm14041_vm15, %v11184_v39, %v1903_v57  ;;  %v1912_v9 = vrot.slane %v1910_v29, 4  ;;  %v14201_v19 = vsel %vm14041_vm15, %v1898_v37, %v1899_v56  ;;  %v2602_v15 = vld [vmem:[#allocation2 + $0xc] sm:$0xf]  ;;  %v14231_v6 = vld [vmem:[#allocation2 + $0x10] sm:$0xf] }
  0xe3   : > { %12280 = vmatprep.mubr.msk.bf16.mxu1 %vm1281_vm7, %v11157_v18  ;;  %v14205_v60 = vsel %vm14041_vm15, %v1905_v24, %v1906_v44  ;;  %v11186_v49 = vrot.slane %v1798_v14, 9  ;;  %v1924_v2 = vrot.slane %v14098_v38, 5  ;;  %v1919_v61 = vrot.slane %v1917_v43, 4  ;;  %v14219_v38 = vld [vmem:[#allocation2 + $0xb4] sm:$0xe]  ;;  %v13023_v14 = vld [vmem:[#allocation2 + $0x18] sm:$0xff]  }
  0xe4   : > { %v1920_v53 = vrot.slane %v14037_v0, 5  ;;  %v11187_v36 = vrot.slane %v1799_v46, 9  ;;  %v1931_v51 = vrot.slane %v14140_v59, 5  ;;  %v14213_v11 = vsel %vm14041_vm15, %v11185_v50, %v1910_v29  ;;  %v13183_v18 = vld [vmem:[#allocation2 + $0xa4] sm:$0x1] }
  0xe5   : > { %v14217_v12 = vsel %vm14041_vm15, %v1912_v9, %v1913_v21  ;;  %v1926_v48 = vrot.slane %v1924_v2, 4  ;;  %v11188_v5 = vrot.slane %v1800_v47, 9  ;;  %v11198_v0 = vcombine.low %v14178_v23, %v14189_v40  ;;  %v13184_v56 = vld [vmem:[#allocation2 + $0xac] sm:$0xf]  ;;  %v2605_v37 = vld [vmem:[#allocation2 + $0x18] sm:$0xf] }
  0xe6   : > { %v11200_v59 = vcombine.low %v14193_v42, %v14201_v19  ;;  %v11201_v31 = vcombine.low %v14197_v55, %v14205_v60  ;;  %v1933_v26 = vrot.slane %v1931_v51, 4  ;;  %v1934_v16 = vrot.slane %v13183_v18, 5  ;;  %v13185_v46 = vld [vmem:[#allocation2 + $0xb0] sm:$0x1]  ;;  %v14259_v29 = vld [vmem:[#allocation2 + $0x1c] sm:$0xf] }
  0xe7   : > { %12291 = vmatmul.mubr.msk.bf16.gmra.mxu0 %vm1281_vm7, %v11195_v28  ;;  %v11189_v57 = vrot.slane %v1801_v8, 9  ;;  %v1938_v39 = vrot.slane %v13184_v56, 5  ;;  %v11202_v34 = vcombine.low %v14213_v11, %v14217_v12  ;;  %v14244_v45 = vsel %vm14041_vm15, %v1919_v61, %v1920_v53  ;;  %v13186_v28 = vld [vmem:[#allocation2 + $0xb8] sm:$0xf]  ;;  %v2608_v47 = vld [vmem:[#allocation2 + $0x24] sm:$0xf] }
  0xe8   : > { %12294 = vmatprep.mubr.msk.bf16.mxu0 %vm1281_vm7, %v11196_v25  ;;  %v14240_v25 = vsel %vm14041_vm15, %v11186_v49, %v1917_v43  ;;  %v14248_v3 = vsel %vm14041_vm15, %v11187_v36, %v1924_v2  ;;  %v14253_v24 = vsel %vm14041_vm15, %v1926_v48, %v1927_v30  ;;  %v14257_v44 = vsel %vm14041_vm15, %v11188_v5, %v1931_v51  ;;  %v13024_v61 = vld [vmem:[#allocation2 + $0x24] sm:$0xff]   ;;  %v13187_v5 = vld [vmem:[#allocation2 + $0xbc] sm:$0x1] }
  0xe9   : > { %v1941_v54 = vrot.slane %v13185_v46, 5  ;;  %v1945_v23 = vrot.slane %v13186_v28, 5  ;;  %v11190_v32 = vrot.slane %v14219_v38, 9  ;;  %v2654_v50 = vshll.u32 %v2602_v15, 16  ;;  %v2611_v28 = vld [vmem:[#allocation2 + $0x30] sm:$0xf] }
  0xea   : > { %12281 = vmatmul.mubr.msk.bf16.gmra.mxu1 %vm1281_vm7, %v11158_v22  ;;  %v2651_v22 = vshrl.u32 %v2602_v15, 16  ;;  %v2660_v21 = vshll.u32 %v14231_v6, 16  ;;  %v14265_v30 = vsel %vm14041_vm15, %v1933_v26, %v1934_v16  ;;  %v14269_v43 = vsel %vm14041_vm15, %v11189_v57, %v1938_v39  ;;  %v14282_v16 = vld [vmem:[#allocation2 + $0x28] sm:$0xf] }
  0xeb   : > { %12320 = vmatprep.mubr.msk.bf16.mxu1 %vm1281_vm7, %v13022_v35  ;;  %v1940_v40 = vrot.slane %v1938_v39, 4  ;;  %v2664_v9 = vshrl.u32 %v14231_v6, 16  ;;  %v2656_v49 = vrot.slane %v2654_v50, 5  ;;  %v2670_v8 = vshll.u32 %v14233_v13, 16 }
  0xec   : > { %v2653_v35 = vrot.slane %v2651_v22, 4  ;;  %v14272_v2 = vrot.slane %v2660_v21, 5  ;;  %v1947_v53 = vrot.slane %v1945_v23, 4  ;;  %v2675_v51 = vshrl.u32 %v2605_v37, 16 }
  0xed   : > { %v2666_v36 = vrot.slane %v2664_v9, 4  ;;  %v2678_v48 = vshll.u32 %v2605_v37, 16  ;;  %v1948_v38 = vrot.slane %v13187_v5, 5  ;;  %v2684_v26 = vshll.u32 %v14259_v29, 16 }
  0xee   : > { %v2657_v15 = vor.u32 %v2656_v49, %v2653_v35  ;;  %v2688_v18 = vshrl.u32 %v14259_v29, 16  ;;  %v2699_v56 = vshrl.u32 %v2608_v47, 16  ;;  %v2672_v39 = vrot.slane %v2670_v8, 5  ;;  %v13030_v35 = vld [vmem:[#allocation2 + $0x6c] sm:$0xff]  }
  0xef   : > { %12295 = vmatmul.mubr.msk.bf16.gmra.mxu0 %vm1281_vm7, %v11197_v1  ;;  %v2667_v58 = vor.u32 %v2666_v36, %v14272_v2  ;;  %v2677_v1 = vrot.slane %v2675_v51, 4  ;;  %v2680_v57 = vrot.slane %v2678_v48, 5  ;;  %v14292_v37 = vrot.slane %v2684_v26, 5  ;;  %v13025_v51 = vld [vmem:[#allocation2 + $0x30] sm:$0xff]  }
  0xf0   : > { %12298 = vmatprep.mubr.msk.bf16.mxu0 %vm1281_vm7, %v11198_v0  ;;  %v14290_v0 = vsel %vm14041_vm15, %v1940_v40, %v1941_v54  ;;  %v2690_v46 = vrot.slane %v2688_v18, 4  ;;  %v2658_v22 = vrot.slane %v2657_v15, 4  ;;  %v2701_v21 = vrot.slane %v2699_v56, 4  ;;  %v14317_v18 = vld [vmem:[#allocation2 + $0x2c] sm:$0x1] }
  0xf1   : > { %v2668_v50 = vrot.slane %v2667_v58, 4  ;;  %v2702_v9 = vshll.u32 %v2608_v47, 16  ;;  %v2708_v54 = vshll.u32 %v14282_v16, 16  ;;  %v2712_v40 = vshrl.u32 %v14282_v16, 16  ;;  %v14307_v47 = vld [vmem:[#allocation2 + $0x34] sm:$0xf] }
  0xf2   : > { %12321 = vmatmul.mubr.msk.bf16.vlgmr.msra.gmra.mxu1 %vm1281_vm7, %v13023_v14  ;;  %v14305_v8 = vsel %vm14041_vm15, %v11190_v32, %v1945_v23  ;;  %v14313_v5 = vsel %vm14041_vm15, %v1947_v53, %v1948_v38  ;;  %v2691_v15 = vor.u32 %v2690_v46, %v14292_v37  ;;  %v2694_v26 = vshll.u32 %v14285_v10, 16  ;;  %v13026_v23 = vld [vmem:[#allocation2 + $0x3c] sm:$0xff]  }
  0xf3   : > { %12324 = vmatprep.mubr.msk.bf16.mxu1 %vm1281_vm7, %v13024_v61  ;;  %v2681_v61 = vor.u32 %v2680_v57, %v2677_v1  ;;  %v2704_v36 = vrot.slane %v2702_v9, 5  ;;  %v2663_v32 = vsel %vm13595_vm10, %v2658_v22, %v14272_v2  ;;  %v2673_v53 = vsel %vm13595_vm10, %v2668_v50, %v2672_v39  ;;  %v2614_v57 = vld [vmem:[#allocation2 + $0x3c] sm:$0xf]  ;;  %v14339_v22 = vld [vmem:[#allocation2 + $0x40] sm:$0xf] }
  0xf4   : > { %v14328_v38 = vrot.slane %v2708_v54, 5  ;;  %v2723_v58 = vshrl.u32 %v2611_v28, 16  ;;  %v2714_v62 = vrot.slane %v2712_v40, 4  ;;  %v2726_v52 = vshll.u32 %v2611_v28, 16 }
  0xf5   : > { %v2705_v1 = vor.u32 %v2704_v36, %v2701_v21  ;;  %v14335_v56 = vrot.slane %v2681_v61, 4  ;;  %v2718_v2 = vshll.u32 %v14317_v18, 16  ;;  %v2736_v39 = vshrl.u32 %v14307_v47, 16  ;;  %v2617_v61 = vld [vmem:[#allocation2 + $0x48] sm:$0xf] }
  0xf6   : > { %v2725_v46 = vrot.slane %v2723_v58, 4  ;;  %v14342_v42 = vrot.slane %v2691_v15, 4  ;;  %v14344_v19 = vrot.slane %v2694_v26, 5  ;;  %v2728_v28 = vrot.slane %v2726_v52, 5  ;;  %v14359_v58 = vld [vmem:[#allocation2 + $0x4c] sm:$0xf] }
  0xf7   : > { %12299 = vmatmul.mubr.msk.bf16.gmra.mxu0 %vm1281_vm7, %v11199_v17  ;;  %v2732_v17 = vshll.u32 %v14307_v47, 16  ;;  %v2738_v9 = vrot.slane %v2736_v39, 4  ;;  %v2747_v54 = vshrl.u32 %v2614_v57, 16  ;;  %v2750_v40 = vshll.u32 %v2614_v57, 16 }
  0xf8   : > { %12302 = vmatprep.mubr.msk.bf16.mxu0 %vm1281_vm7, %v11200_v59  ;;  %v14346_v59 = vld [vmem:[#allocation2 + $0x38] sm:$0x1]  ;;  %v14353_v36 = vcombine.low %v2663_v32, %v2673_v53  ;;  %v2715_v15 = vor.u32 %v2714_v62, %v14328_v38  ;;  %v2756_v26 = vshll.u32 %v14339_v22, 16  ;;  %v14365_v52 = vrot.slane %v2718_v2, 5  ;;  %v13027_v32 = vld [vmem:[#allocation2 + $0x48] sm:$0xff]  }
  0xf9   : > { %v14348_v50 = vrot.slane %v2732_v17, 5  ;;  %v2729_v17 = vor.u32 %v2728_v28, %v2725_v46  ;;  %v2742_v57 = vshll.u32 %v14346_v59, 16  ;;  %v13028_v53 = vld [vmem:[#allocation2 + $0x54] sm:$0xff]   ;;  %v2749_v39 = vrot.slane %v2747_v54, 4  ;;  %v14378_v2 = vld [vmem:[#allocation2 + $0x44] sm:$0x1] }
  0xfa   : > { %12325 = vmatmul.mubr.msk.bf16.gmra.mxu1 %vm1281_vm7, %v13025_v51  ;;  %v14355_v51 = vrot.slane %v2705_v1, 4  ;;  %v2697_v1 = vsel %vm13595_vm10, %v14342_v42, %v14344_v19  ;;  %v2760_v21 = vshrl.u32 %v14339_v22, 16  ;;  %v2752_v46 = vrot.slane %v2750_v40, 5  ;;  %v2620_v19 = vld [vmem:[#allocation2 + $0x54] sm:$0xf] }
  0xfb   : > { %12328 = vmatprep.mubr.msk.bf16.mxu1 %vm1281_vm7, %v13026_v23  ;;  %v2739_v62 = vor.u32 %v2738_v9, %v14348_v50  ;;  %v14380_v28 = vrot.slane %v2756_v26, 5  ;;  %v2771_v48 = vshrl.u32 %v2617_v61, 16  ;;  %v2774_v49 = vshll.u32 %v2617_v61, 16  ;;  %v14391_v61 = vld [vmem:[#allocation2 + $0x58] sm:$0xf] }
  0xfc   : > { %v2711_v42 = vsel %vm13595_vm10, %v14355_v51, %v14328_v38  ;;  %v2716_v55 = vrot.slane %v2715_v15, 4  ;;  %v2762_v60 = vrot.slane %v2760_v21, 4  ;;  %v2730_v9 = vrot.slane %v2729_v17, 4  ;;  %v2623_v17 = vld [vmem:[#allocation2 + $0x60] sm:$0xf] }
  0xfd   : > { %v2744_v54 = vrot.slane %v2742_v57, 5  ;;  %v2773_v40 = vrot.slane %v2771_v48, 4  ;;  %v2776_v26 = vrot.slane %v2774_v49, 5  ;;  %v2740_v11 = vrot.slane %v2739_v62, 4  ;;  %v14402_v49 = vld [vmem:[#allocation2 + $0x5c] sm:$0x1] }
  0xfe   : > { %v2766_v12 = vshll.u32 %v14378_v2, 16  ;;  %v2784_v38 = vshrl.u32 %v14359_v58, 16  ;;  %v2753_v21 = vor.u32 %v2752_v46, %v2749_v39  ;;  %v2763_v51 = vor.u32 %v2762_v60, %v14380_v28  ;;  %18475 = vst [vmem:[#allocation13_spill] sm:$0xff] %v14402_v49  ;;  %v13029_v57 = vld [vmem:[#allocation2 + $0x60] sm:$0xff]  }
  0xff   : > { %12303 = vmatmul.mubr.msk.bf16.gmra.mxu0 %vm1281_vm7, %v11201_v31  ;;  %v2780_v31 = vshll.u32 %v14359_v58, 16  ;;  %v2777_v48 = vor.u32 %v2776_v26, %v2773_v40  ;;  %v2795_v15 = vshrl.u32 %v2620_v19, 16  ;;  %v2804_v14 = vshll.u32 %v14391_v61, 16 }
 0x100   : > { %12306 = vmatprep.mubr.msk.bf16.mxu0 %vm1281_vm7, %v11202_v34  ;;  %v14395_v34 = vld [vmem:[#allocation2 + $0x50] sm:$0x1]  ;;  %v2786_v62 = vrot.slane %v2784_v38, 4  ;;  %v2808_v60 = vshrl.u32 %v14391_v61, 16  ;;  %v2745_v40 = vsel %vm13595_vm10, %v2740_v11, %v2744_v54  ;;  %v14415_v26 = vrot.slane %v2766_v12, 5 }
 0x101   : > { %v14397_v23 = vrot.slane %v2780_v31, 5  ;;  %v2798_v31 = vshll.u32 %v2620_v19, 16  ;;  %v2790_v39 = vshll.u32 %v14395_v34, 16  ;;  %v2797_v46 = vrot.slane %v2795_v15, 4  ;;  %v14430_v54 = vld [vmem:[#allocation2 + $0x64] sm:$0xf] }
 0x102   : > { %12329 = vmatmul.mubr.msk.bf16.gmra.mxu1 %vm1281_vm7, %v13027_v32  ;;  %v2721_v32 = vsel %vm13595_vm10, %v2716_v55, %v14365_v52  ;;  %v18476_v19 = vcombine.low %v14240_v25, %v14244_v45  ;;  %v14426_v38 = vrot.slane %v2777_v48, 4  ;;  %v14428_v15 = vrot.slane %v2804_v14, 5  ;;  %18477 = vst [vmem:[#allocation14_spill] sm:$0xff] %v14430_v54 }
 0x103   : > { %12332 = vmatprep.mubr.msk.bf16.mxu1 %vm1281_vm7, %v13028_v53  ;;  %v2735_v53 = vsel %vm13595_vm10, %v2730_v9, %v14348_v50  ;;  %v2787_v52 = vor.u32 %v2786_v62, %v14397_v23  ;;  %v2800_v55 = vrot.slane %v2798_v31, 5  ;;  %v14422_v50 = vrot.slane %v2753_v21, 4 }
 0x104   : > { %v14424_v9 = vrot.slane %v2763_v51, 4  ;;  %v18478_v11 = vcombine.low %v14248_v3, %v14253_v24  ;;  %v2810_v25 = vrot.slane %v2808_v60, 4  ;;  %v2814_v45 = vshll.u32 %v14402_v49, 16  ;;  %v352_v24 = vld [vmem:[%s13565_s26 + $0x78] sm:$0xf] }
 0x105   : > { %v2819_v12 = vshrl.u32 %v2623_v17, 16  ;;  %v2822_v21 = vshll.u32 %v2623_v17, 16  ;;  %v18479_v51 = vsel %vm13595_vm10, %v14335_v56, %v14292_v37  ;;  %v14444_v48 = vrot.slane %v2787_v52, 4 }
 0x106   : > { %v14442_v14 = vcombine.low %v18479_v51, %v2697_v1  ;;  %v14446_v62 = vrot.slane %v2790_v39, 5  ;;  %v2801_v3 = vor.u32 %v2800_v55, %v2797_v46  ;;  %v2832_v17 = vshrl.u32 %v14430_v54, 16  ;;  %v14466_v39 = vld [vmem:[#allocation2 + $0x68] sm:$0x1]  ;;  %v2626_v46 = vld [vmem:[#allocation2 + $0x6c] sm:$0xf] }
 0x107   : > { %12307 = vmatmul.mubr.msk.bf16.gmra.mxu0 %vm1281_vm7, %v18476_v19  ;;  %v2821_v31 = vrot.slane %v2819_v12, 4  ;;  %v2824_v60 = vrot.slane %v2822_v21, 5  ;;  %v2828_v19 = vshll.u32 %v14430_v54, 16  ;;  %v14454_v37 = vcombine.low %v2711_v42, %v2721_v32  ;;  %18480 = vst [vmem:[#allocation15_spill] sm:$0xff] %v14466_v39  ;;  %v788_v51 = vld [vmem:[#allocation2 + $0xc0] sm:$0xf] }
 0x108   : > { %12310 = vmatprep.mubr.msk.bf16.mxu0 %vm1281_vm7, %v18478_v11  ;;  %v353_v11 = vld [vmem:[%s13565_s26 + $0x7c] sm:$0xf]  ;;  %v14456_v56 = vcombine.low %v2735_v53, %v2745_v40  ;;  %v2811_v42 = vor.u32 %v2810_v25, %v14428_v15  ;;  %v14473_v32 = vrot.slane %v2814_v45, 5  ;;  %v613_v53 = vshrl.u32 %v352_v24, 16  ;;  %v13032_v1 = vld [vmem:[#allocation2 + $0x84] sm:$0xff]   ;;  %s11027_s26 = sshll.u32 %s18375_s20, 4  ;;  %s18386_s26 = int_to_ptr.vmem [resolvable:$true] %s11027_s26 }
 0x109   : > { %v13031_v40 = vld [vmem:[#allocation2 + $0x78] sm:$0xff]   ;;  %v14475_v52 = vrot.slane %v2801_v3, 4  ;;  %v2825_v55 = vor.u32 %v2824_v60, %v2821_v31  ;;  %v616_v12 = vshll.u32 %v352_v24, 16  ;;  %v621_v21 = vshrl.u32 %v353_v11, 16  ;;  %v14486_v54 = vld [vmem:[%s18437_s1 + $0xe] sm:$0x3]  ;;  %p13231_p11 = scmp.lt.s32.totalorder %s18386_s26, %s13229_s13 }
 0x10a   : > { %12333 = vmatmul.mubr.msk.bf16.gmra.mxu1 %vm1281_vm7, %v13029_v57  ;;  %v2834_v25 = vrot.slane %v2832_v17, 4  ;;  %v615_v45 = vrot.slane %v613_v53, 7  ;;  %v18481_v3 = vcombine.low %v14257_v44, %v14265_v30  ;;  %v2838_v24 = vshll.u32 %v14466_v39, 16  ;;  %v14497_v17 = vld [vmem:[#allocation2 + $0x70] sm:$0xf]  ;;  %s13224_s12 = scalar_lea.vmem %s18386_s26, 1024 }
 0x10b   : > { %12336 = vmatprep.mubr.msk.bf16.mxu1 %vm1281_vm7, %v13030_v35  ;;  %v14481_v35 = vrot.slane %v2828_v19, 5  ;;  %v14493_v31 = vrot.slane %v621_v21, 7  ;;  %v624_v60 = vshll.u32 %v353_v11, 16  ;;  %v3603_v19 = vsel %vm1330_vm2, %v14136_v63, 0  ;;  %v14503_v30 = vld [vmem:[#allocation2 + $0x74] sm:$0x1]  ;;  %p13225_p8 = scmp.ne.s32.totalorder %s18386_s26, %s13224_s12  ;;  %p13232_p12 = scmp.lt.s32.totalorder %s13230_s14, %s13224_s12 }
 0x10c   : > { %v18482_v53 = vcombine.low %v14269_v43, %v14290_v0  ;;  %v2812_v57 = vrot.slane %v2811_v42, 4  ;;  %v618_v49 = vor.u32 %v616_v12, %v615_v45  ;;  %v619_v44 = vrot.slane %v615_v45, 4  ;;  %12387 = vmatpush3.bf16.msra.mxu1 %v3603_v19  ;;  %v2629_v43 = vld [vmem:[#allocation2 + $0x78] sm:$0xf]  ;;  %v14512_v0 = vld [vmem:[#allocation2 + $0x7c] sm:$0xf] }
 0x10d   : > { %v2807_v11 = vsel %vm13595_vm10, %v14475_v52, %v14428_v15  ;;  %v14509_v63 = vrot.slane %v2825_v55, 4  ;;  %v626_v21 = vor.u32 %v624_v60, %v14493_v31  ;;  %v2846_v39 = vshll.u32 %v2626_v46, 16  ;;  %12964 = vmatprep.subr.msk.bf16.mxu1 %vm1330_vm2, %v14486_v54  ;;  %p13226_p9 = pnand %p13225_p8, %p13370_p5  ;;  %p13233_p13 = por %p13232_p12, %p13231_p11 }
 0x10e   : > { %v2835_v42 = vor.u32 %v2834_v25, %v14481_v35  ;;  %v789_v12 = vsel %vm13588_vm9, %v618_v49, %v788_v51  ;;  %v2852_v15 = vshll.u32 %v14497_v17, 16  ;;  %v14522_v52 = vrot.slane %v2838_v24, 5 }
 0x10f   : > { %12311 = vmatmul.mubr.msk.bf16.gmra.mxu0 %vm1281_vm7, %v18481_v3  ;;  %v2843_v3 = vshrl.u32 %v2626_v46, 16  ;;  %v627_v46 = vsel %vm13602_vm11, %v619_v44, %v626_v21  ;;  %790 = vst [vmem:[#allocation2 + $0xc0] sm:$0xf] %v789_v12  ;;  %v2848_v55 = vrot.slane %v2846_v39, 5  ;;  %v2856_v60 = vshrl.u32 %v14497_v17, 16  ;;  %p13227_p10 = pneg %p13226_p9 }
 0x110   : > { %12314 = vmatprep.mubr.msk.bf16.mxu0 %vm1281_vm7, %v18482_v53  ;;  %791 = vst.msk [vmem:[#allocation2 + $0xc4] sm:$0xf] %vm266_vm0, %v627_v46  ;;  %v2867_v49 = vshrl.u32 %v2629_v43, 16  ;;  %v2870_v51 = vshll.u32 %v2629_v43, 16  ;;  %v2876_v25 = vshll.u32 %v14512_v0, 16  ;;  %v2862_v53 = vshll.u32 %v14503_v30, 16 }
 0x111   : > { %v2845_v45 = vrot.slane %v2843_v3, 4  ;;  %v2858_v19 = vrot.slane %v2856_v60, 4  ;;  %v2880_v44 = vshrl.u32 %v14512_v0, 16  ;;  %v14535_v39 = vrot.slane %v2835_v42, 4  ;;  %v13034_v43 = vld [vmem:[#allocation2 + $0x9c] sm:$0xff]   ;;  %p13234_p0 = pnand %p13233_p13, %p13227_p10 }
 0x112   : > { %12337 = vmatmul.mubr.msk.bf16.gmra.mxu1 %vm1281_vm7, %v13031_v40  ;;  %v14528_v40 = vrot.slane %v2852_v15, 5  ;;  %v2869_v3 = vrot.slane %v2867_v49, 4  ;;  %v2872_v21 = vrot.slane %v2870_v51, 5  ;;  %v14537_v12 = vrot.slane %v2876_v25, 5  ;;  %v3328_v15 = vld [vmem:[#allocation2 + $0xc] sm:$0xe] }
 0x113   : > { %12340 = vmatprep.mubr.msk.bf16.mxu1 %vm1281_vm7, %v13032_v1  ;;  %v13033_v1 = vld [vmem:[#allocation2 + $0x90] sm:$0xff]   ;;  %v2849_v24 = vor.u32 %v2848_v55, %v2845_v45  ;;  %v18483_v46 = vcombine.low %v14305_v8, %v14313_v5  ;;  %v2817_v45 = vsel %vm13595_vm10, %v2812_v57, %v14473_v32  ;;  %v2882_v60 = vrot.slane %v2880_v44, 4  ;;  %v3329_v25 = vld [vmem:[#allocation2 + $0x18] sm:$0xe] }
 0x114   : > { %v2859_v55 = vor.u32 %v2858_v19, %v14528_v40  ;;  %v2886_v42 = vshll.u32 %v14530_v20, 16  ;;  %v18484_v8 = vsel %vm13595_vm10, %v14424_v9, %v14415_v26  ;;  %v18485_v5 = vsel %vm13595_vm10, %v14422_v50, %v14380_v28  ;;  %v2632_v9 = vld [vmem:[#allocation2 + $0x84] sm:$0xf] }
 0x115   : > { %v14560_v49 = vcombine.low %v18485_v5, %v18484_v8  ;;  %v14562_v57 = vrot.slane %v2849_v24, 4  ;;  %v2873_v32 = vor.u32 %v2872_v21, %v2869_v3  ;;  %v3394_v51 = vrot.slane %v14231_v6, 5  ;;  %v14598_v21 = vld [vmem:[#allocation2 + $0x8c] sm:$0x1] }
 0x116   : > { %v14565_v19 = vrot.slane %v2859_v55, 4  ;;  %v2883_v44 = vor.u32 %v2882_v60, %v14537_v12  ;;  %v11290_v26 = vrot.slane %v3328_v15, 9  ;;  %v18486_v28 = vsel %vm13595_vm10, %v14444_v48, %v14446_v62  ;;  %v14593_v48 = vld [vmem:[#allocation2 + $0x88] sm:$0xf]  ;;  %v2635_v62 = vld [vmem:[#allocation2 + $0x90] sm:$0xf] }
 0x117   : > { %12315 = vmatmul.mubr.msk.bf16.gmra.mxu0 %vm1281_vm7, %v18483_v46  ;;  %v18487_v6 = vsel %vm13595_vm10, %v14426_v38, %v14397_v23  ;;  %v14583_v24 = vcombine.low %v2807_v11, %v2817_v45  ;;  %v2874_v23 = vrot.slane %v2873_v32, 4  ;;  %v2888_v38 = vrot.slane %v2886_v42, 5  ;;  %v13035_v15 = vld [vmem:[#allocation2 + $0xa8] sm:$0xff]   ;;  %v14604_v55 = vld [vmem:[#allocation2 + $0x94] sm:$0xf] }
 0x118   : > { %12354 = vmatprep.mubr.msk.bf16.mxu0 %vm1281_vm7, %v14353_v36  ;;  %v14567_v36 = vrot.slane %v2862_v53, 5  ;;  %v14581_v50 = vcombine.low %v18487_v6, %v18486_v28  ;;  %v2831_v53 = vsel %vm13595_vm10, %v14509_v63, %v14481_v35  ;;  %v3397_v11 = vrot.slane %v14233_v13, 5  ;;  %v13036_v32 = vld [vmem:[#allocation2 + $0xb4] sm:$0xff]   ;;  %v14674_v63 = vld [vmem:[#allocation2 + $0xa0] sm:$0xf] }
 0x119   : > { %v3401_v3 = vrot.slane %v14259_v29, 5  ;;  %v2855_v46 = vsel %vm13595_vm10, %v14562_v57, %v14528_v40  ;;  %v11291_v45 = vrot.slane %v3329_v25, 9  ;;  %v14612_v29 = vsel %vm14041_vm15, %v11290_v26, %v3394_v51  ;;  %v14622_v57 = vld [vmem:[%s18437_s1 + $0x10] sm:$0x3] }
 0x11a   : > { %12341 = vmatmul.mubr.msk.bf16.gmra.mxu1 %vm1281_vm7, %v13033_v1  ;;  %v2841_v1 = vsel %vm13595_vm10, %v14535_v39, %v14522_v52  ;;  %v2884_v52 = vrot.slane %v2883_v44, 4  ;;  %v3396_v39 = vrot.slane %v3394_v51, 4  ;;  %v2865_v13 = vsel %vm13595_vm10, %v14565_v19, %v14567_v36 }
 0x11b   : > { %12344 = vmatprep.mubr.msk.bf16.mxu1 %vm1281_vm7, %v13034_v43  ;;  %v3962_v43 = vsel %vm1330_vm2, %v14160_v4, 0  ;;  %v2891_v60 = vshrl.u32 %v2632_v9, 16  ;;  %v3404_v40 = vrot.slane %v14285_v10, 5  ;;  %v2894_v42 = vshll.u32 %v2632_v9, 16 }
 0x11c   : > { %v2900_v8 = vshll.u32 %v14593_v48, 16  ;;  %v2904_v5 = vshrl.u32 %v14593_v48, 16  ;;  %v2879_v4 = vsel %vm13595_vm10, %v2874_v23, %v14537_v12  ;;  %v3403_v51 = vrot.slane %v3401_v3, 4  ;;  %v14638_v12 = vld [vmem:[#allocation2 + $0x98] sm:$0x1] }
 0x11d   : > { %v2893_v10 = vrot.slane %v2891_v60, 4  ;;  %v2915_v25 = vshrl.u32 %v2635_v62, 16  ;;  %v2896_v19 = vrot.slane %v2894_v42, 5  ;;  %v2910_v26 = vshll.u32 %v14598_v21, 16 }
 0x11e   : > { %v2902_v36 = vrot.slane %v2900_v8, 5  ;;  %v2906_v44 = vrot.slane %v2904_v5, 4  ;;  %v14636_v9 = vsel %vm14041_vm15, %v11291_v45, %v3401_v3  ;;  %v2918_v28 = vshll.u32 %v2635_v62, 16 }
 0x11f   : > { %12355 = vmatmul.mubr.msk.bf16.vlgmr.msra.gmra.mxu0 %vm1281_vm7, %v14442_v14  ;;  %v3398_v14 = vsel %vm14041_vm15, %v3396_v39, %v3397_v11  ;;  %v2924_v6 = vshll.u32 %v14604_v55, 16  ;;  %v2897_v23 = vor.u32 %v2896_v19, %v2893_v10  ;;  %v2928_v11 = vshrl.u32 %v14604_v55, 16  ;;  %v3330_v39 = vld [vmem:[#allocation2 + $0x24] sm:$0xe] }
 0x120   : > { %12358 = vmatprep.mubr.msk.bf16.mxu0 %vm1281_vm7, %v14454_v37  ;;  %12421 = vmatpush3.bf16.msra.mxu0 %v3962_v43  ;;  %v2889_v37 = vsel %vm13595_vm10, %v2884_v52, %v2888_v38  ;;  %v2907_v43 = vor.u32 %v2906_v44, %v2902_v36  ;;  %v14650_v62 = vsel %vm14041_vm15, %v3403_v51, %v3404_v40  ;;  %v2917_v3 = vrot.slane %v2915_v25, 4 }
 0x121   : > { %12965 = vmatprep.subr.msk.bf16.mxu0 %vm1330_vm2, %v14622_v57  ;;  %v2920_v45 = vrot.slane %v2918_v28, 5  ;;  %v3408_v60 = vrot.slane %v14282_v16, 5  ;;  %v2898_v42 = vrot.slane %v2897_v23, 4  ;;  %v2912_v8 = vrot.slane %v2910_v26, 5  ;;  %v13037_v16 = vld [vmem:[#allocation2 + $0xc0] sm:$0xff]  }
 0x122   : > { %12345 = vmatmul.mubr.msk.bf16.gmra.mxu1 %vm1281_vm7, %v13035_v15  ;;  %v2908_v15 = vrot.slane %v2907_v43, 4  ;;  %v2934_v38 = vshll.u32 %v14638_v12, 16  ;;  %v628_v52 = vrot.slane %v14493_v31, 4  ;;  %v14655_v5 = vrot.slane %v2924_v6, 5  ;;  %v3331_v26 = vld [vmem:[#allocation2 + $0x30] sm:$0xe] }
 0x123   : > { %12348 = vmatprep.mubr.msk.bf16.mxu1 %vm1281_vm7, %v13036_v32  ;;  %v2930_v10 = vrot.slane %v2928_v11, 4  ;;  %v11292_v19 = vrot.slane %v3330_v39, 9  ;;  %v2638_v32 = vld [vmem:[#allocation2 + $0x9c] sm:$0xf]  ;;  %v14662_v40 = vcombine.low %v2831_v53, %v2841_v1  ;;  %v14664_v51 = vcombine.low %v2855_v46, %v2865_v13  ;;  %v3335_v31 = vld [vmem:[#allocation2 + $0x60] sm:$0xe] }
 0x124   : > { %v14666_v25 = vcombine.low %v2879_v4, %v2889_v37  ;;  %v11307_v44 = vcombine.low %v14612_v29, %v3398_v14  ;;  %v11308_v28 = vcombine.low %v14636_v9, %v14650_v62  ;;  %v2921_v6 = vor.u32 %v2920_v45, %v2917_v3  ;;  %v2641_v9 = vld [vmem:[#allocation2 + $0xa8] sm:$0xf] }
 0x125   : > { %v3410_v23 = vrot.slane %v3408_v60, 4  ;;  %v3411_v35 = vrot.slane %v14317_v18, 5  ;;  %v2903_v53 = vsel %vm13595_vm10, %v2898_v42, %v2902_v36  ;;  %v2913_v1 = vsel %vm13595_vm10, %v2908_v15, %v2912_v8 }
 0x126   : > { %v14682_v46 = vrot.slane %v2934_v38, 5  ;;  %v2939_v13 = vshrl.u32 %v2638_v32, 16  ;;  %v2931_v29 = vor.u32 %v2930_v10, %v14655_v5  ;;  %v3409_v18 = vsel %vm14041_vm15, %v11292_v19, %v3408_v60 }
 0x127   : > { %12359 = vmatmul.mubr.msk.bf16.gmra.mxu0 %vm1281_vm7, %v14456_v56  ;;  %v14684_v56 = vld [vmem:[#allocation2 + $0xa4] sm:$0x1]  ;;  %v11293_v4 = vrot.slane %v3331_v26, 9  ;;  %v2942_v14 = vshll.u32 %v2638_v32, 16  ;;  %v3415_v36 = vrot.slane %v14307_v47, 5  ;;  %v2948_v43 = vshll.u32 %v14674_v63, 16 }
 0x128   : > { %12362 = vmatprep.mubr.msk.bf16.mxu0 %vm1281_vm7, %v14560_v49  ;;  %v14689_v49 = vld [vmem:[#allocation2 + $0xac] sm:$0xf]  ;;  %v2941_v37 = vrot.slane %v2939_v13, 4  ;;  %v2952_v11 = vshrl.u32 %v14674_v63, 16  ;;  %v14696_v39 = vcombine.low %v2903_v53, %v2913_v1  ;;  %v2922_v62 = vrot.slane %v2921_v6, 4 }
 0x129   : > { %v3412_v3 = vsel %vm14041_vm15, %v3410_v23, %v3411_v35  ;;  %v2944_v45 = vrot.slane %v2942_v14, 5  ;;  %v14700_v60 = vrot.slane %v2948_v43, 5  ;;  %v2958_v15 = vshll.u32 %v14684_v56, 16  ;;  %v14703_v47 = vld [vmem:[#allocation2 + $0xb0] sm:$0x1] }
 0x12a   : > { %12349 = vmatmul.mubr.msk.bf16.gmra.mxu1 %vm1281_vm7, %v13037_v16  ;;  %v2954_v42 = vrot.slane %v2952_v11, 4  ;;  %v2963_v8 = vshrl.u32 %v2641_v9, 16  ;;  %v2932_v38 = vrot.slane %v2931_v29, 4  ;;  %v2966_v19 = vshll.u32 %v2641_v9, 16  ;;  %v3332_v16 = vld [vmem:[#allocation2 + $0x3c] sm:$0xe] }
 0x12b   : > { %12388 = vmatprep.mubr.msk.bf16.mxu1 %vm1281_vm7, %v11307_v44  ;;  %v2945_v10 = vor.u32 %v2944_v45, %v2941_v37  ;;  %v2972_v32 = vshll.u32 %v14689_v49, 16  ;;  %v11309_v44 = vcombine.low %v3409_v18, %v3412_v3  ;;  %v3417_v26 = vrot.slane %v3415_v36, 4  ;;  %v3333_v35 = vld [vmem:[#allocation2 + $0x48] sm:$0xe] }
 0x12c   : > { %v3418_v6 = vrot.slane %v14346_v59, 5  ;;  %v2955_v23 = vor.u32 %v2954_v42, %v14700_v60  ;;  %v2927_v53 = vsel %vm13595_vm10, %v2922_v62, %v14655_v5  ;;  %v2965_v1 = vrot.slane %v2963_v8, 4  ;;  %v14727_v62 = vld [vmem:[#allocation2 + $0xb8] sm:$0xf] }
 0x12d   : > { %v2968_v13 = vrot.slane %v2966_v19, 5  ;;  %v2976_v29 = vshrl.u32 %v14689_v49, 16  ;;  %v3416_v59 = vsel %vm14041_vm15, %v11293_v4, %v3415_v36  ;;  %v14718_v18 = vrot.slane %v2958_v15, 5  ;;  %v792_v15 = vld [vmem:[#allocation2 + $0xc8] sm:$0x1] }
 0x12e   : > { %v11294_v14 = vrot.slane %v3332_v16, 9  ;;  %v3422_v9 = vrot.slane %v14339_v22, 5  ;;  %v14721_v37 = vrot.slane %v2945_v10, 4  ;;  %v14723_v43 = vrot.slane %v2972_v32, 5  ;;  %v2647_v10 = vld [vmem:[#allocation2 + $0xc0] sm:$0xf] }
 0x12f   : > { %12363 = vmatmul.mubr.msk.bf16.gmra.mxu0 %vm1281_vm7, %v14581_v50  ;;  %v2644_v50 = vld [vmem:[#allocation2 + $0xb4] sm:$0xf]  ;;  %v2982_v5 = vshll.u32 %v14703_v47, 16  ;;  %v3425_v11 = vrot.slane %v14378_v2, 5  ;;  %v3419_v22 = vsel %vm14041_vm15, %v3417_v26, %v3418_v6  ;;  %v14735_v4 = vrot.slane %v2955_v23, 4 }
 0x130   : > { %12366 = vmatprep.mubr.msk.bf16.mxu0 %vm1281_vm7, %v14583_v24  ;;  %v2937_v24 = vsel %vm13595_vm10, %v2932_v38, %v14682_v46  ;;  %v3424_v36 = vrot.slane %v3422_v9, 4  ;;  %v2969_v3 = vor.u32 %v2968_v13, %v2965_v1  ;;  %v2978_v45 = vrot.slane %v2976_v29, 4  ;;  %v3334_v26 = vld [vmem:[#allocation2 + $0x54] sm:$0xe] }
 0x131   : > { %v11295_v42 = vrot.slane %v3333_v35, 9  ;;  %v3429_v2 = vrot.slane %v14359_v58, 5  ;;  %v2987_v8 = vshrl.u32 %v2644_v50, 16  ;;  %v2990_v38 = vshll.u32 %v2644_v50, 16  ;;  %v14751_v58 = vld [vmem:[#allocation2 + $0xc4] sm:$0xf] }
 0x132   : > { %12389 = vmatmul.mubr.msk.bf16.vlgmr.msra.gmra.mxu1 %vm1281_vm7, %v11308_v28  ;;  %v3423_v28 = vsel %vm14041_vm15, %v11294_v14, %v3422_v9  ;;  %v3426_v46 = vsel %vm14041_vm15, %v3424_v36, %v3425_v11  ;;  %v14743_v19 = vcombine.low %v2927_v53, %v2937_v24  ;;  %v11310_v32 = vcombine.low %v3416_v59, %v3419_v22 }
 0x133   : > { %12392 = vmatprep.mubr.msk.bf16.mxu1 %vm1281_vm7, %v11309_v44  ;;  %v2951_v16 = vsel %vm13595_vm10, %v14721_v37, %v14700_v60  ;;  %v14749_v44 = vrot.slane %v2982_v5, 5  ;;  %v2961_v6 = vsel %vm13595_vm10, %v14735_v4, %v14718_v18  ;;  %v3431_v23 = vrot.slane %v3429_v2, 4  ;;  %v14769_v18 = vld [vmem:[#allocation2 + $0xbc] sm:$0x1] }
 0x134   : > { %v3432_v35 = vrot.slane %v14395_v34, 5  ;;  %v2996_v53 = vshll.u32 %v14727_v62, 16  ;;  %v14761_v1 = vrot.slane %v2969_v3, 4  ;;  %v2979_v60 = vor.u32 %v2978_v45, %v14723_v43  ;;  %v3336_v3 = vld [vmem:[#allocation2 + $0x6c] sm:$0xe] }
 0x135   : > { %v11311_v13 = vcombine.low %v3423_v28, %v3426_v46  ;;  %v3000_v29 = vshrl.u32 %v14727_v62, 16  ;;  %v3430_v59 = vsel %vm14041_vm15, %v11295_v42, %v3429_v2  ;;  %v2989_v34 = vrot.slane %v2987_v8, 4 }
 0x136   : > { %v2992_v14 = vrot.slane %v2990_v38, 5  ;;  %v14775_v9 = vrot.slane %v2996_v53, 5  ;;  %v3011_v37 = vshrl.u32 %v2647_v10, 16  ;;  %v3014_v5 = vshll.u32 %v2647_v10, 16  ;;  %v3337_v53 = vld [vmem:[#allocation2 + $0x78] sm:$0xe] }
 0x137   : > { %12367 = vmatmul.mubr.msk.bf16.gmra.mxu0 %vm1281_vm7, %v14662_v40  ;;  %v793_v40 = vsel %vm13610_vm12, %v628_v52, %v792_v15  ;;  %v3002_v50 = vrot.slane %v3000_v29, 4  ;;  %v3020_v11 = vshll.u32 %v14751_v58, 16  ;;  %v3024_v24 = vshrl.u32 %v14751_v58, 16  ;;  %v18488_v15 = vld [vmem:[#allocation13_spill] sm:$0xff] }
 0x138   : > { %12370 = vmatprep.mubr.msk.bf16.mxu0 %vm1281_vm7, %v14664_v51  ;;  %794 = vst [vmem:[#allocation2 + $0xc8] sm:$0x1] %v793_v40  ;;  %v3433_v51 = vsel %vm14041_vm15, %v3431_v23, %v3432_v35  ;;  %v11296_v22 = vrot.slane %v3334_v26, 9  ;;  %v3006_v41 = vshll.u32 %v14769_v18, 16  ;;  %v3013_v52 = vrot.slane %v3011_v37, 4 }
 0x139   : > { %v3016_v4 = vrot.slane %v3014_v5, 5  ;;  %v3436_v36 = vrot.slane %v14391_v61, 5  ;;  %v2993_v45 = vor.u32 %v2992_v14, %v2989_v34  ;;  %v14785_v42 = vrot.slane %v3020_v11, 5  ;;  %v18489_v61 = vld [vmem:[#allocation14_spill] sm:$0xff]  ;;  %v18490_v34 = vld [vmem:[#allocation15_spill] sm:$0xff] }
 0x13a   : > { %12393 = vmatmul.mubr.msk.bf16.gmra.mxu1 %vm1281_vm7, %v11310_v32  ;;  %v3026_v2 = vrot.slane %v3024_v24, 4  ;;  %v3439_v28 = vrot.slane %v18488_v15, 5  ;;  %v14788_v46 = vrot.slane %v2979_v60, 4  ;;  %v3003_v8 = vor.u32 %v3002_v50, %v14775_v9 }
 0x13b   : > { %12396 = vmatprep.mubr.msk.bf16.mxu1 %vm1281_vm7, %v11311_v13  ;;  %v3437_v38 = vsel %vm14041_vm15, %v11296_v22, %v3436_v36  ;;  %v3438_v10 = vrot.slane %v3436_v36, 4  ;;  %v11312_v32 = vcombine.low %v3430_v59, %v3433_v51  ;;  %v3017_v26 = vor.u32 %v3016_v4, %v3013_v52 }
 0x13c   : > { %v3027_v23 = vor.u32 %v3026_v2, %v14785_v42  ;;  %v3443_v35 = vrot.slane %v18489_v61, 5  ;;  %v11270_v13 = vcombine.low %v2951_v16, %v2961_v6  ;;  %v11297_v29 = vrot.slane %v3335_v31, 9  ;;  %v3338_v31 = vld [vmem:[#allocation2 + $0x84] sm:$0xe]  ;;  %v3340_v2 = vld [vmem:[#allocation2 + $0x9c] sm:$0xe] }
 0x13d   : > { %v3440_v60 = vsel %vm14041_vm15, %v3438_v10, %v3439_v28  ;;  %v3446_v14 = vrot.slane %v18490_v34, 5  ;;  %v14802_v59 = vrot.slane %v2993_v45, 4  ;;  %v3008_v40 = vrot.slane %v3006_v41, 5  ;;  %v3341_v61 = vld [vmem:[#allocation2 + $0xa8] sm:$0xe] }
 0x13e   : > { %v11313_v37 = vcombine.low %v3437_v38, %v3440_v60  ;;  %v11298_v5 = vrot.slane %v3336_v3, 9  ;;  %v3004_v51 = vrot.slane %v3003_v8, 4  ;;  %v3445_v16 = vrot.slane %v3443_v35, 4 }
 0x13f   : > { %12371 = vmatmul.mubr.msk.bf16.gmra.mxu0 %vm1281_vm7, %v14666_v25  ;;  %v14804_v50 = vld [vmem:[#allocation2 + $0xc8] sm:$0x1]  ;;  %v3450_v6 = vrot.slane %v14497_v17, 5  ;;  %v3018_v11 = vrot.slane %v3017_v26, 4  ;;  %v3028_v24 = vrot.slane %v3027_v23, 4  ;;  %v3453_v22 = vrot.slane %v14503_v30, 5 }
 0x140   : > { %12374 = vmatprep.mubr.msk.bf16.mxu0 %vm1281_vm7, %v14696_v39  ;;  %v3030_v25 = vshll.u32 %v14804_v50, 16  ;;  %v3457_v39 = vrot.slane %v14512_v0, 5  ;;  %v3444_v41 = vsel %vm14041_vm15, %v11297_v29, %v3443_v35  ;;  %v3447_v52 = vsel %vm14041_vm15, %v3445_v16, %v3446_v14  ;;  %v3339_v17 = vld [vmem:[#allocation2 + $0x90] sm:$0xe]  ;;  %v14854_v29 = vpop.f32.mrf.mxu1 }
 0x141   : > { %v3452_v4 = vrot.slane %v3450_v6, 4  ;;  %v11299_v36 = vrot.slane %v3337_v53, 9  ;;  %v2975_v3 = vsel %vm13595_vm10, %v14761_v1, %v14723_v43  ;;  %v3451_v0 = vsel %vm14041_vm15, %v11298_v5, %v3450_v6  ;;  %18491 = vst [vmem:[#allocation13_spill] sm:$0xff] %v14854_v29 }
 0x142   : > { %12397 = vmatmul.mubr.msk.bf16.gmra.mxu1 %vm1281_vm7, %v11312_v32  ;;  %v3032_v30 = vrot.slane %v3030_v25, 5  ;;  %v3460_v45 = vrot.slane %v14530_v20, 5  ;;  %v2985_v15 = vsel %vm13595_vm10, %v14788_v46, %v14749_v44  ;;  %v3459_v8 = vrot.slane %v3457_v39, 4  ;;  %v14871_v25 = vld [vmem:[#allocation2 + $0x1c] sm:$0xf] }
 0x143   : > { %12400 = vmatprep.mubr.msk.bf16.mxu1 %vm1281_vm7, %v11313_v37  ;;  %v3454_v28 = vsel %vm14041_vm15, %v3452_v4, %v3453_v22  ;;  %v3464_v38 = vrot.slane %v14593_v48, 5  ;;  %v2999_v43 = vsel %vm13595_vm10, %v14802_v59, %v14775_v9  ;;  %v11314_v1 = vcombine.low %v3444_v41, %v3447_v52  ;;  %v14881_v22 = vld [vmem:[#allocation2 + $0x20] sm:$0x1]  ;;  %v14883_v41 = vpop.f32.mrf.mxu0  ;;  %v14886_v4 = vpop.f32.mrf.mxu1 }
 0x144   : > { %v11300_v10 = vrot.slane %v3338_v31, 9  ;;  %v3467_v20 = vrot.slane %v14598_v21, 5  ;;  %v3009_v44 = vsel %vm13595_vm10, %v3004_v51, %v3008_v40  ;;  %v11315_v46 = vcombine.low %v3451_v0, %v3454_v28  ;;  %v4157_v40 = vld [vmem:[#allocation2 + $0x18] sm:$0xf]  ;;  %18492 = vst [vmem:[#allocation14_spill] sm:$0xff] %v14886_v4 }
 0x145   : > { %v3466_v32 = vrot.slane %v3464_v38, 4  ;;  %v3471_v26 = vrot.slane %v14604_v55, 5  ;;  %v3023_v48 = vsel %vm13595_vm10, %v3018_v11, %v14785_v42  ;;  %v11301_v9 = vrot.slane %v3339_v17, 9  ;;  %v3342_v55 = vld [vmem:[#allocation2 + $0xb4] sm:$0xe] }
 0x146   : > { %v3474_v23 = vrot.slane %v14638_v12, 5  ;;  %v3478_v21 = vrot.slane %v14674_v63, 5  ;;  %v11302_v53 = vrot.slane %v3340_v2, 9  ;;  %v3481_v60 = vrot.slane %v14684_v56, 5 }
 0x147   : > { %12375 = vmatmul.mubr.msk.bf16.gmra.mxu0 %vm1281_vm7, %v14743_v19  ;;  %v3458_v19 = vsel %vm14041_vm15, %v11299_v36, %v3457_v39  ;;  %v3473_v35 = vrot.slane %v3471_v26, 4  ;;  %v3461_v42 = vsel %vm14041_vm15, %v3459_v8, %v3460_v45  ;;  %v3485_v63 = vrot.slane %v14689_v49, 5  ;;  %v4160_v39 = vld [vmem:[#allocation2 + $0x24] sm:$0xf]  ;;  %v14897_v45 = vld [vmem:[#allocation2 + $0x28] sm:$0xf] }
 0x148   : > { %12378 = vmatprep.mubr.msk.bf16.mxu0 %vm1281_vm7, %v11270_v13  ;;  %v3033_v13 = vsel %vm13595_vm10, %v3028_v24, %v3032_v30  ;;  %v3480_v12 = vrot.slane %v3478_v21, 4  ;;  %v11271_v34 = vcombine.low %v2975_v3, %v2985_v15  ;;  %v3465_v56 = vsel %vm14041_vm15, %v11300_v10, %v3464_v38  ;;  %v3343_v8 = vld [vmem:[#allocation2 + $0xc0] sm:$0xe]  ;;  %v14906_v10 = vld [vmem:[#allocation2 + $0x2c] sm:$0x1] }
 0x149   : > { %v3468_v14 = vsel %vm14041_vm15, %v3466_v32, %v3467_v20  ;;  %v11303_v59 = vrot.slane %v3341_v61, 9  ;;  %v11272_v37 = vcombine.low %v2999_v43, %v3009_v44  ;;  %v14864_v5 = vsel %vm14041_vm15, %v11301_v9, %v3471_v26  ;;  %v14909_v20 = vpop.f32.mrf.mxu0  ;;  %v14911_v44 = vpop.f32.mrf.mxu1  ;;  %v13038_v61 = vld [vmem:[#allocation2 + $0x18] sm:$0xff]  }
 0x14a   : > { %12401 = vmatmul.mubr.msk.bf16.gmra.mxu1 %vm1281_vm7, %v11314_v1  ;;  %v14868_v51 = vsel %vm14041_vm15, %v3473_v35, %v3474_v23  ;;  %v3492_v49 = vrot.slane %v14727_v62, 5  ;;  %v11273_v16 = vcombine.low %v3023_v48, %v3033_v13  ;;  %v11316_v6 = vcombine.low %v3458_v19, %v3461_v42  ;;  %18493 = vst [vmem:[#allocation15_spill] sm:$0xff] %v14911_v44 }
 0x14b   : > { %12404 = vmatprep.mubr.msk.bf16.mxu1 %vm1281_vm7, %v11315_v46  ;;  %v14875_v11 = vsel %vm14041_vm15, %v11302_v53, %v3478_v21  ;;  %v14879_v24 = vsel %vm14041_vm15, %v3480_v12, %v3481_v60  ;;  %v11317_v31 = vcombine.low %v3465_v56, %v3468_v14  ;;  %v3487_v52 = vrot.slane %v3485_v63, 4  ;;  %v4163_v21 = vld [vmem:[#allocation2 + $0x30] sm:$0xf]  ;;  %v14937_v56 = vpop.f32.mrf.mxu1 }
 0x14c   : > { %v3488_v62 = vrot.slane %v14703_v47, 5  ;;  %v11304_v36 = vrot.slane %v3342_v55, 9  ;;  %v11318_v17 = vcombine.low %v14864_v5, %v14868_v51  ;;  %v14893_v3 = vsel %vm14041_vm15, %v11303_v59, %v3485_v63  ;;  %v14933_v63 = vld [vmem:[#allocation2 + $0x34] sm:$0xf]  ;;  %18494 = vst [vmem:[#allocation16_spill] sm:$0xff] %v14937_v56 }
 0x14d   : > { %v4688_v30 = vsel %vm1330_vm2, %v14486_v54, 0  ;;  %v4206_v0 = vshrl.u32 %v4157_v40, 16  ;;  %v11319_v47 = vcombine.low %v14875_v11, %v14879_v24  ;;  %v3494_v2 = vrot.slane %v3492_v49, 4 }
 0x14e   : > { %v3495_v15 = vrot.slane %v14769_v18, 5  ;;  %12455 = vmatpush3.bf16.msra.mxu1 %v4688_v30  ;;  %v4209_v28 = vshll.u32 %v4157_v40, 16  ;;  %v3499_v38 = vrot.slane %v14751_v58, 5  ;;  %v4215_v1 = vshll.u32 %v14871_v25, 16  ;;  %v14952_v30 = vld [vmem:[#allocation2 + $0x38] sm:$0x1] }
 0x14f   : > { %12379 = vmatmul.mubr.msk.bf16.gmra.mxu0 %vm1281_vm7, %v11271_v34  ;;  %v4208_v43 = vrot.slane %v4206_v0, 4  ;;  %v4219_v54 = vshrl.u32 %v14871_v25, 16  ;;  %v4225_v18 = vshll.u32 %v14881_v22, 16  ;;  %v4230_v32 = vshrl.u32 %v4160_v39, 16  ;;  %v14935_v34 = vpop.f32.mrf.mxu0 }
 0x150   : > { %12382 = vmatprep.mubr.msk.bf16.mxu0 %vm1281_vm7, %v11272_v37  ;;  %v4211_v46 = vrot.slane %v4209_v28, 5  ;;  %v4233_v26 = vshll.u32 %v4160_v39, 16  ;;  %v14917_v58 = vsel %vm14041_vm15, %v3487_v52, %v3488_v62  ;;  %v14921_v48 = vsel %vm14041_vm15, %v11304_v36, %v3492_v49  ;;  %v14949_v52 = vld [vmem:[#allocation2 + $0x40] sm:$0xf] }
 0x151   : > { %v14923_v9 = vrot.slane %v4215_v1, 5  ;;  %v4221_v23 = vrot.slane %v4219_v54, 4  ;;  %v11305_v19 = vrot.slane %v3343_v8, 9  ;;  %v3502_v35 = vrot.slane %v14804_v50, 5  ;;  %v14964_v1 = vpop.f32.mrf.mxu0 }
 0x152   : > { %12405 = vmatmul.mubr.msk.bf16.gmra.mxu1 %vm1281_vm7, %v11316_v6  ;;  %v4212_v53 = vor.u32 %v4211_v46, %v4208_v43  ;;  %v4239_v60 = vshll.u32 %v14897_v45, 16  ;;  %v14929_v55 = vsel %vm14041_vm15, %v3494_v2, %v3495_v15  ;;  %v3501_v13 = vrot.slane %v3499_v38, 4  ;;  %v15083_v6 = vld [vmem:[#allocation2 + $0x68] sm:$0x1] }
 0x153   : > { %12408 = vmatprep.mubr.msk.bf16.mxu1 %vm1281_vm7, %v11317_v31  ;;  %v4222_v42 = vor.u32 %v4221_v23, %v14923_v9  ;;  %v4243_v12 = vshrl.u32 %v14897_v45, 16  ;;  %v14939_v14 = vrot.slane %v4225_v18, 5  ;;  %v4232_v50 = vrot.slane %v4230_v32, 4  ;;  %v4166_v31 = vld [vmem:[#allocation2 + $0x3c] sm:$0xf] }
 0x154   : > { %v4235_v59 = vrot.slane %v4233_v26, 5  ;;  %v4249_v40 = vshll.u32 %v14906_v10, 16  ;;  %v14943_v37 = vrot.slane %v4212_v53, 4  ;;  %v14945_v49 = vrot.slane %v4239_v60, 5  ;;  %v14998_v60 = vpop.f32.mrf.mxu0 }
 0x155   : > { %v4223_v62 = vrot.slane %v4222_v42, 4  ;;  %v4245_v36 = vrot.slane %v4243_v12, 4  ;;  %v4254_v0 = vshrl.u32 %v4163_v21, 16  ;;  %v4257_v2 = vshll.u32 %v4163_v21, 16 }
 0x156   : > { %v11320_v15 = vcombine.low %v14893_v3, %v14917_v58  ;;  %v11321_v28 = vcombine.low %v14921_v48, %v14929_v55  ;;  %v4263_v8 = vshll.u32 %v14933_v63, 16  ;;  %v4267_v43 = vshrl.u32 %v14933_v63, 16  ;;  %v4169_v58 = vld [vmem:[#allocation2 + $0x48] sm:$0xf]  ;;  %v13040_v48 = vld [vmem:[#allocation2 + $0x30] sm:$0xff]  }
 0x157   : > { %12383 = vmatmul.mubr.msk.bf16.gmra.mxu0 %vm1281_vm7, %v11273_v16  ;;  %v13039_v16 = vld [vmem:[#allocation2 + $0x24] sm:$0xff]   ;;  %v14970_v46 = vsel %vm14041_vm15, %v11305_v19, %v3499_v38  ;;  %v4236_v3 = vor.u32 %v4235_v59, %v4232_v50  ;;  %v4256_v18 = vrot.slane %v4254_v0, 4  ;;  %v4259_v32 = vrot.slane %v4257_v2, 5  ;;  %v4172_v0 = vld [vmem:[#allocation2 + $0x54] sm:$0xf]  ;;  %v13041_v2 = vld [vmem:[#allocation2 + $0x3c] sm:$0xff]  }
 0x158   : > { %12422 = vmatprep.mubr.msk.bf16.mxu0 %vm1281_vm7, %v13038_v61  ;;  %v14976_v26 = vrot.slane %v4249_v40, 5  ;;  %v5158_v5 = vsel %vm1330_vm2, %v14622_v57, 0  ;;  %v14980_v51 = vrot.slane %v4263_v8, 5  ;;  %v4246_v23 = vor.u32 %v4245_v36, %v14945_v49  ;;  %v14995_v19 = vld [vmem:[#allocation2 + $0x44] sm:$0x1] }
 0x159   : > { %v14966_v54 = vpop.f32.mrf.mxu1  ;;  %v4278_v21 = vshrl.u32 %v4166_v31, 16  ;;  %v4281_v61 = vshll.u32 %v4166_v31, 16  ;;  %v4287_v11 = vshll.u32 %v14949_v52, 16  ;;  %v14988_v24 = vsel %vm14041_vm15, %v3501_v13, %v3502_v35  ;;  %v15013_v31 = vld [vmem:[#allocation2 + $0x50] sm:$0x1] }
 0x15a   : > { %12409 = vmatmul.mubr.msk.bf16.gmra.mxu1 %vm1281_vm7, %v11318_v17  ;;  %18495 = vst [vmem:[#allocation17_spill] sm:$0xff] %v14966_v54  ;;  %v4269_v17 = vrot.slane %v4267_v43, 4  ;;  %v4218_v57 = vsel %vm13595_vm10, %v14943_v37, %v14923_v9  ;;  %v4291_v53 = vshrl.u32 %v14949_v52, 16  ;;  %v4228_v35 = vsel %vm13595_vm10, %v4223_v62, %v14939_v14  ;;  %v15008_v9 = vld [vmem:[#allocation2 + $0x4c] sm:$0xf] }
 0x15b   : > { %12412 = vmatprep.mubr.msk.bf16.mxu1 %vm1281_vm7, %v11319_v47  ;;  %v14982_v38 = vpop.f32.mrf.mxu1  ;;  %v4273_v47 = vshll.u32 %v14952_v30, 16  ;;  %v15005_v13 = vrot.slane %v4236_v3, 4  ;;  %v4260_v42 = vor.u32 %v4259_v32, %v4256_v18  ;;  %v4280_v50 = vrot.slane %v4278_v21, 4  ;;  %v15025_v18 = vpop.f32.mrf.mxu0  ;;  %v15029_v21 = vld [vmem:[#allocation2 + $0x58] sm:$0xf] }
 0x15c   : > { %18496 = vst [vmem:[#allocation18_spill] sm:$0xff] %v14982_v38  ;;  %v4270_v12 = vor.u32 %v4269_v17, %v14980_v51  ;;  %v4283_v59 = vrot.slane %v4281_v61, 5  ;;  %v15011_v40 = vrot.slane %v4287_v11, 5  ;;  %v4293_v37 = vrot.slane %v4291_v53, 4  ;;  %v13042_v61 = vld [vmem:[#allocation2 + $0x48] sm:$0xff]  }
 0x15d   : > { %v15000_v55 = vpop.f32.mrf.mxu1  ;;  %v15018_v14 = vrot.slane %v4246_v23, 4  ;;  %v4302_v62 = vshrl.u32 %v4169_v58, 16  ;;  %v11373_v8 = vcombine.low %v4218_v57, %v4228_v35  ;;  %v15022_v43 = vrot.slane %v4273_v47, 5 }
 0x15e   : > { %18497 = vst [vmem:[#allocation19_spill] sm:$0xff] %v15000_v55  ;;  %v4305_v3 = vshll.u32 %v4169_v58, 16  ;;  %v4261_v17 = vrot.slane %v4260_v42, 4  ;;  %v4297_v23 = vshll.u32 %v14995_v19, 16  ;;  %v4284_v58 = vor.u32 %v4283_v59, %v4280_v50  ;;  %v12225_v59 = vpop.f32.mrf.mxu0 }
 0x15f   : > { %12423 = vmatmul.mubr.msk.bf16.vlgmr.msra.gmra.mxu0 %vm1281_vm7, %v13039_v16  ;;  %v15016_v36 = vpop.f32.mrf.mxu1  ;;  %v11322_v16 = vcombine.low %v14970_v46, %v14988_v24  ;;  %v4315_v11 = vshrl.u32 %v15008_v9, 16  ;;  %v4175_v24 = vld [vmem:[#allocation2 + $0x60] sm:$0xf]  ;;  %v4304_v47 = vrot.slane %v4302_v62, 4  ;;  %v4321_v42 = vshll.u32 %v15013_v31, 16 }
 0x160   : > { %12426 = vmatprep.mubr.msk.bf16.mxu0 %vm1281_vm7, %v13040_v48  ;;  %18498 = vst [vmem:[#allocation20_spill] sm:$0xff] %v15016_v36  ;;  %12489 = vmatpush3.bf16.msra.mxu0 %v5158_v5  ;;  %v4271_v48 = vrot.slane %v4270_v12, 4  ;;  %v4311_v5 = vshll.u32 %v15008_v9, 16  ;;  %v4307_v53 = vrot.slane %v4305_v3, 5  ;;  %v4326_v50 = vshrl.u32 %v4172_v0, 16 }
 0x161   : > { %v12254_v32 = vpop.f32.mrf.mxu1  ;;  %v4317_v12 = vrot.slane %v4315_v11, 4  ;;  %v4266_v3 = vsel %vm13595_vm10, %v4261_v17, %v14980_v51  ;;  %v13043_v11 = vld [vmem:[#allocation2 + $0x54] sm:$0xff]   ;;  %vm5895_vm0 = vcmask 1043456  }
 0x162   : > { %12413 = vmatmul.mubr.msk.bf16.gmra.mxu1 %vm1281_vm7, %v11320_v15  ;;  %v15033_v46 = vadd.f32 %v12254_v32, %v14883_v41  ;;  %v4294_v15 = vor.u32 %v4293_v37, %v15011_v40  ;;  %v15037_v35 = vrot.slane %v4311_v5, 5  ;;  %v4252_v37 = vsel %vm13595_vm10, %v15018_v14, %v14976_v26  ;;  %vm16057_vm2 = vmand %vm5895_vm0, %vm679_vm6 }
 0x163   : > { %12416 = vmatprep.mubr.msk.bf16.mxu1 %vm1281_vm7, %v11321_v28  ;;  %v1660_v57 = vpop.f32.mrf.mxu1  ;;  %v4242_v28 = vsel %vm13595_vm10, %v15005_v13, %v14945_v49  ;;  %v15054_v32 = vrot.slane %v4297_v23, 5  ;;  %v4329_v5 = vshll.u32 %v4172_v0, 16  ;;  %v15056_v49 = vld [vmem:[#allocation2 + $0x64] sm:$0xf]  ;;  %v4276_v13 = vsel %vm13595_vm10, %v4271_v48, %v15022_v43  ;;  %v15071_v23 = vld [vmem:[#allocation2 + $0x5c] sm:$0x1] }
 0x164   : > { %v15045_v41 = vadd.f32 %v1660_v57, %v14909_v20  ;;  %v15065_v26 = vrot.slane %v4284_v58, 4  ;;  %v4335_v14 = vshll.u32 %v15029_v21, 16  ;;  %v15069_v17 = vrot.slane %v4294_v15, 4 }
 0x165   : > { %v12255_v62 = vpop.f32.mrf.mxu1  ;;  %v4308_v0 = vor.u32 %v4307_v53, %v4304_v47  ;;  %v4318_v43 = vor.u32 %v4317_v12, %v15037_v35  ;;  %v15078_v48 = vrot.slane %v4321_v42, 5  ;;  %v4328_v58 = vrot.slane %v4326_v50, 4  ;;  %v4178_v50 = vld [vmem:[#allocation2 + $0x6c] sm:$0xf] }
 0x166   : > { %v15060_v20 = vadd.f32 %v12255_v62, %v14935_v34  ;;  %v4350_v34 = vshrl.u32 %v4175_v24, 16  ;;  %v13044_v62 = vld [vmem:[#allocation2 + $0x60] sm:$0xff]   ;;  %v4331_v47 = vrot.slane %v4329_v5, 5  ;;  %v15081_v53 = vrot.slane %v4335_v14, 5 }
 0x167   : > { %12427 = vmatmul.mubr.msk.bf16.gmra.mxu0 %vm1281_vm7, %v13041_v2  ;;  %v1663_v51 = vpop.f32.mrf.mxu1  ;;  %v4339_v2 = vshrl.u32 %v15029_v21, 16  ;;  %v4353_v42 = vshll.u32 %v4175_v24, 16  ;;  %v4359_v12 = vshll.u32 %v15056_v49, 16  ;;  %v4309_v56 = vrot.slane %v4308_v0, 4 }
 0x168   : > { %12430 = vmatprep.mubr.msk.bf16.mxu0 %vm1281_vm7, %v13042_v61  ;;  %v15075_v57 = vadd.f32 %v1663_v51, %v14964_v1  ;;  %v1387_v61 = vpop.f32.mrf.mxu0  ;;  %v4352_v33 = vrot.slane %v4350_v34, 4  ;;  %v11374_v51 = vcombine.low %v4242_v28, %v4252_v37  ;;  %v4363_v5 = vshrl.u32 %v15056_v49, 16  ;;  %v15098_v37 = vld [vmem:[#allocation2 + $0x70] sm:$0xf] }
 0x169   : > { %v12258_v15 = vpop.f32.mrf.mxu1  ;;  %v4341_v39 = vrot.slane %v4339_v2, 4  ;;  %v4345_v2 = vshll.u32 %v15071_v23, 16  ;;  %v4355_v34 = vrot.slane %v4353_v42, 5  ;;  %v4319_v24 = vrot.slane %v4318_v43, 4 }
 0x16a   : > { %12417 = vmatmul.mubr.msk.bf16.gmra.mxu1 %vm1281_vm7, %v11322_v16  ;;  %v15087_v1 = vadd.f32 %v12258_v15, %v14998_v60  ;;  %v11375_v16 = vcombine.low %v4266_v3, %v4276_v13  ;;  %v4332_v55 = vor.u32 %v4331_v47, %v4328_v58  ;;  %v4365_v28 = vrot.slane %v4363_v5, 4  ;;  %v15114_v58 = vld [vmem:[#allocation2 + $0x74] sm:$0x1]  ;;  %v13046_v5 = vld [vmem:[#allocation2 + $0x78] sm:$0xff]  }
 0x16b   : > { %12456 = vmatprep.mubr.msk.bf16.mxu1 %vm1281_vm7, %v11373_v8  ;;  %v1676_v36 = vpop.f32.mrf.mxu1  ;;  %v15095_v8 = vrot.slane %v4359_v12, 5  ;;  %v4342_v38 = vor.u32 %v4341_v39, %v15081_v53  ;;  %v4356_v3 = vor.u32 %v4355_v34, %v4352_v33  ;;  %v4369_v13 = vshll.u32 %v15083_v6, 16  ;;  %v4181_v12 = vld [vmem:[#allocation2 + $0x78] sm:$0xf] }
 0x16c   : > { %v15092_v14 = vadd.f32 %v1676_v36, %v15025_v18  ;;  %v4290_v36 = vsel %vm13595_vm10, %v15065_v26, %v15011_v40  ;;  %v4300_v39 = vsel %vm13595_vm10, %v15069_v17, %v15054_v32  ;;  %v4374_v47 = vshrl.u32 %v4178_v50, 16 }
 0x16d   : > { %v12228_v60 = vpop.f32.mrf.mxu0  ;;  %v12259_v15 = vpop.f32.mrf.mxu1  ;;  %v4377_v40 = vshll.u32 %v4178_v50, 16  ;;  %v4314_v33 = vsel %vm13595_vm10, %v4309_v56, %v15037_v35  ;;  %v4383_v42 = vshll.u32 %v15098_v37, 16  ;;  %v4324_v32 = vsel %vm13595_vm10, %v4319_v24, %v15078_v48  ;;  %v15172_v35 = vld [vmem:[#allocation2 + $0x24] sm:$0xe] }
 0x16e   : > { %v15105_v18 = vadd.f32 %v12259_v15, %v12225_v59  ;;  %v13045_v59 = vld [vmem:[#allocation2 + $0x6c] sm:$0xff]   ;;  %v4333_v50 = vrot.slane %v4332_v55, 4  ;;  %v4343_v34 = vrot.slane %v4342_v38, 4  ;;  %v15127_v15 = vld [vmem:[#allocation2 + $0x7c] sm:$0xf]  ;;  %v11376_v56 = vcombine.low %v4290_v36, %v4300_v39 }
 0x16f   : > { %12431 = vmatmul.mubr.msk.bf16.gmra.mxu0 %vm1281_vm7, %v13043_v11  ;;  %v1400_v0 = vpop.f32.mrf.mxu0  ;;  %v1679_v43 = vpop.f32.mrf.mxu1  ;;  %v4366_v11 = vor.u32 %v4365_v28, %v15095_v8  ;;  %v4357_v28 = vrot.slane %v4356_v3, 4  ;;  %v4371_v44 = vrot.slane %v4369_v13, 5  ;;  %v4376_v48 = vrot.slane %v4374_v47, 4  ;;  %v15143_v13 = vld [vmem:[#allocation2 + $0x80] sm:$0x1] }
 0x170   : > { %12434 = vmatprep.mubr.msk.bf16.mxu0 %vm1281_vm7, %v13044_v62  ;;  %v15116_v26 = vadd.f32 %v1679_v43, %v1387_v61  ;;  %v4347_v62 = vrot.slane %v4345_v2, 5  ;;  %v4387_v61 = vshrl.u32 %v15098_v37, 16  ;;  %v4379_v24 = vrot.slane %v4377_v40, 5  ;;  %v4184_v47 = vld [vmem:[#allocation2 + $0x84] sm:$0xf] }
 0x171   : > { %v12262_v17 = vpop.f32.mrf.mxu1  ;;  %v4367_v54 = vrot.slane %v4366_v11, 4  ;;  %v11377_v55 = vcombine.low %v4314_v33, %v4324_v32  ;;  %v15135_v4 = vrot.slane %v4383_v42, 5  ;;  %v4393_v29 = vshll.u32 %v15114_v58, 16 }
 0x172   : > { %18499 = vst [vmem:[#allocation21_spill] sm:$0xff] %v15116_v26  ;;  %12457 = vmatmul.mubr.msk.bf16.vlgmr.msra.gmra.mxu1 %vm1281_vm7, %v11374_v51  ;;  %v15131_v2 = vadd.f32 %v12262_v17, %v12228_v60  ;;  %v12229_v51 = vpop.f32.mrf.mxu0  ;;  %v4338_v60 = vsel %vm13595_vm10, %v4333_v50, %v15081_v53  ;;  %v4348_v36 = vsel %vm13595_vm10, %v4343_v34, %v4347_v62  ;;  %v4389_v39 = vrot.slane %v4387_v61, 4  ;;  %v13047_v61 = vld [vmem:[#allocation2 + $0x84] sm:$0xff]  }
 0x173   : > { %12460 = vmatprep.mubr.msk.bf16.mxu1 %vm1281_vm7, %v11375_v16  ;;  %v1692_v43 = vpop.f32.mrf.mxu1  ;;  %v4883_v16 = vld [vmem:[#allocation2 + $0x18] sm:$0xe]  ;;  %v4398_v11 = vshrl.u32 %v4181_v12, 16  ;;  %v4362_v40 = vsel %vm13595_vm10, %v4357_v28, %v15095_v8  ;;  %v4401_v33 = vshll.u32 %v4181_v12, 16  ;;  %v4407_v53 = vshll.u32 %v15127_v15, 16 }
 0x174   : > { %18500 = vst [vmem:[#allocation22_spill] sm:$0xff] %v15131_v2  ;;  %v15133_v38 = vadd.f32 %v1692_v43, %v1400_v0  ;;  %v1403_v62 = vpop.f32.mrf.mxu0  ;;  %v4380_v32 = vor.u32 %v4379_v24, %v4376_v48  ;;  %v4949_v17 = vrot.slane %v14871_v25, 5  ;;  %v4411_v34 = vshrl.u32 %v15127_v15, 16  ;;  %v13051_v2 = vld [vmem:[#allocation2 + $0xb4] sm:$0xff]  }
 0x175   : > { %v12263_v3 = vpop.f32.mrf.mxu1  ;;  %v4400_v50 = vrot.slane %v4398_v11, 4  ;;  %v4372_v8 = vsel %vm13595_vm10, %v4367_v54, %v4371_v44  ;;  %v4403_v12 = vrot.slane %v4401_v33, 5  ;;  %v15161_v28 = vrot.slane %v4407_v53, 5 }
 0x176   : > { %18501 = vst [vmem:[#allocation23_spill] sm:$0xff] %v15133_v38  ;;  %v15146_v0 = vadd.f32 %v12263_v3, %v12229_v51  ;;  %v4390_v43 = vor.u32 %v4389_v39, %v15135_v4  ;;  %v15165_v25 = vrot.slane %v4393_v29, 5  ;;  %v11405_v48 = vrot.slane %v4883_v16, 9  ;;  %v15167_v3 = vld [vmem:[#allocation2 + $0x8c] sm:$0x1] }
 0x177   : > { %12435 = vmatmul.mubr.msk.bf16.gmra.mxu0 %vm1281_vm7, %v13045_v59  ;;  %v1695_v42 = vpop.f32.mrf.mxu1  ;;  %v15155_v59 = vld [vmem:[#allocation2 + $0x88] sm:$0xf]  ;;  %v4413_v24 = vrot.slane %v4411_v34, 4  ;;  %18505 = vst [vmem:[#allocation27_spill] sm:$0xff] %v15167_v3  ;;  %v11378_v11 = vcombine.low %v4338_v60, %v4348_v36  ;;  %v4417_v44 = vshll.u32 %v15143_v13, 16  ;;  %v4422_v54 = vshrl.u32 %v4184_v47, 16  ;;  %v12232_v33 = vpop.f32.mrf.mxu0 }
 0x178   : > { %18502 = vst [vmem:[#allocation24_spill] sm:$0xff] %v15146_v0  ;;  %12438 = vmatprep.mubr.msk.bf16.mxu0 %vm1281_vm7, %v13046_v5  ;;  %18503 = vst [vmem:[#allocation25_spill] sm:$0xff] %v15155_v59  ;;  %v15157_v51 = vadd.f32 %v1695_v42, %v1403_v62  ;;  %v13048_v5 = vld [vmem:[#allocation2 + $0x90] sm:$0xff]   ;;  %v4404_v62 = vor.u32 %v4403_v12, %v4400_v50  ;;  %v11379_v53 = vcombine.low %v4362_v40, %v4372_v8 }
 0x179   : > { %v4381_v42 = vrot.slane %v4380_v32, 4  ;;  %v4425_v29 = vshll.u32 %v4184_v47, 16  ;;  %v4187_v39 = vld [vmem:[#allocation2 + $0x90] sm:$0xf]  ;;  %v4951_v16 = vrot.slane %v4949_v17, 4  ;;  %v4952_v34 = vrot.slane %v14881_v22, 5 }
 0x17a   : > { %18504 = vst [vmem:[#allocation26_spill] sm:$0xff] %v15157_v51  ;;  %12461 = vmatmul.mubr.msk.bf16.gmra.mxu1 %vm1281_vm7, %v11376_v56  ;;  %v4414_v56 = vor.u32 %v4413_v24, %v15161_v28  ;;  %v4424_v51 = vrot.slane %v4422_v54, 4  ;;  %v4391_v60 = vrot.slane %v4390_v43, 4  ;;  %v15178_v36 = vsel %vm14041_vm15, %v11405_v48, %v4949_v17  ;;  %v15181_v32 = vld [vmem:[#allocation2 + $0x94] sm:$0xf]  ;;  %v1416_v43 = vpop.f32.mrf.mxu0 }
 0x17b   : > { %12464 = vmatprep.mubr.msk.bf16.mxu1 %vm1281_vm7, %v11377_v55  ;;  %v4431_v55 = vshll.u32 %v15155_v59, 16  ;;  %v4427_v50 = vrot.slane %v4425_v29, 5  ;;  %v4435_v40 = vshrl.u32 %v15155_v59, 16  ;;  %v4405_v47 = vrot.slane %v4404_v62, 4  ;;  %v13049_v29 = vld [vmem:[#allocation2 + $0x9c] sm:$0xff]  }
 0x17c   : > { %v4419_v8 = vrot.slane %v4417_v44, 5  ;;  %v4441_v22 = vshll.u32 %v15167_v3, 16  ;;  %v4386_v17 = vsel %vm13595_vm10, %v4381_v42, %v15135_v4  ;;  %v4415_v48 = vrot.slane %v4414_v56, 4  ;;  %v15202_v3 = vld [vmem:[#allocation2 + $0x98] sm:$0x1]  ;;  %v12233_v38 = vpop.f32.mrf.mxu0 }
 0x17d   : > { %v15184_v12 = vrot.slane %v4431_v55, 5  ;;  %v4428_v24 = vor.u32 %v4427_v50, %v4424_v51  ;;  %v4437_v54 = vrot.slane %v4435_v40, 4  ;;  %v18506_v44 = vrot.slane %v14897_v45, 5 }
 0x17e   : > { %v4446_v0 = vshrl.u32 %v4187_v39, 16  ;;  %v4396_v51 = vsel %vm13595_vm10, %v4391_v60, %v15165_v25  ;;  %v4455_v62 = vshll.u32 %v15181_v32, 16  ;;  %v4410_v25 = vsel %vm13595_vm10, %v4405_v47, %v15161_v28  ;;  %v15228_v47 = vld [vmem:[#allocation2 + $0xa4] sm:$0x1] }
 0x17f   : > { %12439 = vmatmul.mubr.msk.bf16.gmra.mxu0 %vm1281_vm7, %v13047_v61  ;;  %v15193_v61 = vsel %vm14041_vm15, %v4951_v16, %v4952_v34  ;;  %v15198_v55 = vrot.slane %v18506_v44, 4  ;;  %v15208_v42 = vrot.slane %v4428_v24, 4  ;;  %v4438_v56 = vor.u32 %v4437_v54, %v15184_v12  ;;  %v13050_v34 = vld [vmem:[#allocation2 + $0xa8] sm:$0xff]   ;;  %v15223_v54 = vld [vmem:[#allocation2 + $0xa0] sm:$0xf]  ;;  %18509 = vst [vmem:[#allocation30_spill] sm:$0xff] %v15228_v47 }
 0x180   : > { %12442 = vmatprep.mubr.msk.bf16.mxu0 %vm1281_vm7, %v13048_v5  ;;  %v15200_v5 = vld [vmem:[#allocation2 + $0x30] sm:$0xe]  ;;  %v12266_v4 = vpop.f32.mrf.mxu1  ;;  %v4443_v16 = vrot.slane %v4441_v22, 5  ;;  %v4448_v40 = vrot.slane %v4446_v0, 4  ;;  %v4449_v44 = vshll.u32 %v4187_v39, 16  ;;  %v4420_v60 = vsel %vm13595_vm10, %v4415_v48, %v4419_v8  ;;  %v1419_v48 = vpop.f32.mrf.mxu0 }
 0x181   : > { %v15212_v50 = vadd.f32 %v12266_v4, %v12232_v33  ;;  %v4439_v22 = vrot.slane %v4438_v56, 4  ;;  %v4459_v24 = vshrl.u32 %v15181_v32, 16  ;;  %v4457_v39 = vrot.slane %v4455_v62, 5 }
 0x182   : > { %12465 = vmatmul.mubr.msk.bf16.gmra.mxu1 %vm1281_vm7, %v11378_v11  ;;  %v4190_v11 = vld [vmem:[#allocation2 + $0x9c] sm:$0xf]  ;;  %v1708_v59 = vpop.f32.mrf.mxu1  ;;  %v4451_v0 = vrot.slane %v4449_v44, 5  ;;  %v4465_v28 = vshll.u32 %v15202_v3, 16 }
 0x183   : > { %12468 = vmatprep.mubr.msk.bf16.mxu1 %vm1281_vm7, %v11379_v53  ;;  %18507 = vst [vmem:[#allocation28_spill] sm:$0xff] %v15212_v50  ;;  %v11380_v53 = vcombine.low %v4386_v17, %v4396_v51  ;;  %v15221_v33 = vadd.f32 %v1708_v59, %v1416_v43  ;;  %v4461_v26 = vrot.slane %v4459_v24, 4  ;;  %v11381_v59 = vcombine.low %v4410_v25, %v4420_v60  ;;  %v15235_v44 = vld [vmem:[#allocation2 + $0x3c] sm:$0xe]  ;;  %v13052_v25 = vld [vmem:[#allocation2 + $0xc0] sm:$0xff]  }
 0x184   : > { %v12267_v4 = vpop.f32.mrf.mxu1  ;;  %v4452_v17 = vor.u32 %v4451_v0, %v4448_v40  ;;  %v4467_v56 = vrot.slane %v4465_v28, 5  ;;  %v4470_v24 = vshrl.u32 %v4190_v11, 16  ;;  %v4473_v50 = vshll.u32 %v4190_v11, 16 }
 0x185   : > { %18508 = vst [vmem:[#allocation29_spill] sm:$0xff] %v15221_v33  ;;  %v15231_v8 = vadd.f32 %v12267_v4, %v12233_v38  ;;  %v4462_v51 = vor.u32 %v4461_v26, %v4457_v39  ;;  %v4434_v38 = vsel %vm13595_vm10, %v15208_v42, %v15184_v12  ;;  %v4479_v11 = vshll.u32 %v15223_v54, 16  ;;  %v15247_v4 = vld [vmem:[#allocation2 + $0xac] sm:$0xf] }
 0x186   : > { %v1711_v62 = vpop.f32.mrf.mxu1  ;;  %v4453_v40 = vrot.slane %v4452_v17, 4  ;;  %v4472_v60 = vrot.slane %v4470_v24, 4  ;;  %v4475_v0 = vrot.slane %v4473_v50, 5  ;;  %v4483_v42 = vshrl.u32 %v15223_v54, 16 }
 0x187   : > { %12443 = vmatmul.mubr.msk.bf16.gmra.mxu0 %vm1281_vm7, %v13049_v29  ;;  %v15237_v33 = vadd.f32 %v1711_v62, %v1419_v48  ;;  %v4444_v29 = vsel %vm13595_vm10, %v4439_v22, %v4443_v16  ;;  %v4463_v26 = vrot.slane %v4462_v51, 4  ;;  %v4489_v16 = vshll.u32 %v15228_v47, 16 }
 0x188   : > { %12446 = vmatprep.mubr.msk.bf16.mxu0 %vm1281_vm7, %v13050_v34  ;;  %v4193_v34 = vld [vmem:[#allocation2 + $0xa8] sm:$0xf]  ;;  %v4458_v12 = vsel %vm13595_vm10, %v4453_v40, %v4457_v39  ;;  %v4970_v50 = vrot.slane %v14949_v52, 5  ;;  %v4481_v17 = vrot.slane %v4479_v11, 5  ;;  %v11382_v62 = vcombine.low %v4434_v38, %v4444_v29  ;;  %v15262_v39 = vld [vmem:[#allocation2 + $0xb0] sm:$0x1] }
 0x189   : > { %18510 = vst [vmem:[#allocation31_spill] sm:$0xff] %v15237_v33  ;;  %v4468_v22 = vsel %vm13595_vm10, %v4463_v26, %v4467_v56  ;;  %v18511_v51 = vrot.slane %v14933_v63, 5  ;;  %v4485_v28 = vrot.slane %v4483_v42, 4  ;;  %v4491_v33 = vrot.slane %v4489_v16, 5 }
 0x18a   : > { %12469 = vmatmul.mubr.msk.bf16.gmra.mxu1 %vm1281_vm7, %v11380_v53  ;;  %v4476_v53 = vor.u32 %v4475_v0, %v4472_v60  ;;  %v11383_v40 = vcombine.low %v4458_v12, %v4468_v22  ;;  %v4494_v47 = vshrl.u32 %v4193_v34, 16  ;;  %v4497_v26 = vshll.u32 %v4193_v34, 16  ;;  %v4196_v22 = vld [vmem:[#allocation2 + $0xb4] sm:$0xf] }
 0x18b   : > { %12472 = vmatprep.mubr.msk.bf16.mxu1 %vm1281_vm7, %v11381_v59  ;;  %v4965_v24 = vrot.slane %v18511_v51, 4  ;;  %v11408_v59 = vrot.slane %v15235_v44, 9  ;;  %v4486_v52 = vor.u32 %v4485_v28, %v4481_v17  ;;  %v4503_v60 = vshll.u32 %v15247_v4, 16 }
 0x18c   : > { %v12236_v48 = vpop.f32.mrf.mxu0  ;;  %v4477_v43 = vrot.slane %v4476_v53, 4  ;;  %v4507_v38 = vshrl.u32 %v15247_v4, 16  ;;  %v18512_v44 = vrot.slane %v14897_v45, 5  ;;  %v18513_v29 = vrot.slane %v15172_v35, 9  ;;  %v15283_v35 = vld [vmem:[#allocation2 + $0xb8] sm:$0xf] }
 0x18d   : > { %v18514_v11 = vrot.slane %v14906_v10, 5  ;;  %v4972_v34 = vrot.slane %v4970_v50, 4  ;;  %v4496_v28 = vrot.slane %v4494_v47, 4  ;;  %v4487_v42 = vrot.slane %v4486_v52, 4  ;;  %v13053_v53 = vld [vmem:[#allocation2 + $0xcc] sm:$0xff]  }
 0x18e   : > { %v1432_v56 = vpop.f32.mrf.mxu0  ;;  %v15274_v0 = vsel %vm14041_vm15, %v18513_v29, %v18512_v44  ;;  %v4505_v16 = vrot.slane %v4503_v60, 5  ;;  %v4509_v45 = vrot.slane %v4507_v38, 4  ;;  %v18515_v10 = vrot.slane %v14933_v63, 5  ;;  %v4887_v60 = vld [vmem:[#allocation2 + $0x48] sm:$0xe] }
 0x18f   : > { %12447 = vmatmul.mubr.msk.bf16.gmra.mxu0 %vm1281_vm7, %v13051_v2  ;;  %v15281_v2 = vsel %vm14041_vm15, %v15198_v55, %v18514_v11  ;;  %v18516_v44 = vrot.slane %v15200_v5, 9  ;;  %v18517_v47 = vrot.slane %v14952_v30, 5  ;;  %v15310_v5 = vsel %vm14041_vm15, %v11408_v59, %v4970_v50 }
 0x190   : > { %12450 = vmatprep.mubr.msk.bf16.mxu0 %vm1281_vm7, %v13052_v25  ;;  %v12237_v12 = vpop.f32.mrf.mxu0  ;;  %v4499_v25 = vrot.slane %v4497_v26, 5  ;;  %v4482_v26 = vsel %vm13595_vm10, %v4477_v43, %v4481_v17  ;;  %v4492_v30 = vsel %vm13595_vm10, %v4487_v42, %v4491_v33  ;;  %v18518_v43 = vrot.slane %v14995_v19, 5 }
 0x191   : > { %v15292_v55 = vsel %vm14041_vm15, %v18516_v44, %v18515_v10  ;;  %v15298_v52 = vsel %vm14041_vm15, %v4965_v24, %v18517_v47  ;;  %v4510_v11 = vor.u32 %v4509_v45, %v4505_v16  ;;  %v11384_v10 = vcombine.low %v4482_v26, %v4492_v30 }
 0x192   : > { %v12270_v51 = vpop.f32.mrf.mxu1  ;;  %12473 = vmatmul.mubr.msk.bf16.gmra.mxu1 %vm1281_vm7, %v11382_v62  ;;  %v4513_v62 = vshll.u32 %v15262_v39, 16  ;;  %v15303_v38 = vpop.f32.mrf.mxu0  ;;  %v4500_v24 = vor.u32 %v4499_v25, %v4496_v28  ;;  %v15318_v17 = vsel %vm14041_vm15, %v4972_v34, %v18518_v43  ;;  %v11409_v50 = vrot.slane %v4887_v60, 9  ;;  %v15330_v25 = vld [vmem:[#allocation2 + $0xbc] sm:$0x1] }
 0x193   : > { %v15305_v63 = vadd.f32 %v12270_v51, %v12236_v48  ;;  %12476 = vmatprep.mubr.msk.bf16.mxu1 %vm1281_vm7, %v11383_v40  ;;  %v4977_v48 = vrot.slane %v15008_v9, 5  ;;  %v4511_v47 = vrot.slane %v4510_v11, 4  ;;  %v4518_v33 = vshrl.u32 %v4196_v22, 16 }
 0x194   : > { %v1724_v29 = vpop.f32.mrf.mxu1  ;;  %v4515_v51 = vrot.slane %v4513_v62, 5  ;;  %v4501_v59 = vrot.slane %v4500_v24, 4  ;;  %v4521_v28 = vshll.u32 %v4196_v22, 16  ;;  %v4527_v42 = vshll.u32 %v15283_v35, 16  ;;  %v4199_v62 = vld [vmem:[#allocation2 + $0xc0] sm:$0xf] }
 0x195   : > { %v15321_v40 = vadd.f32 %v1724_v29, %v1432_v56  ;;  %v4980_v9 = vrot.slane %v15013_v31, 5  ;;  %v4531_v45 = vshrl.u32 %v15283_v35, 16  ;;  %v18519_v26 = vcombine.low %v15178_v36, %v15193_v61  ;;  %v15394_v61 = vld [vmem:[#allocation2 + $0xd0] sm:$0xf] }
 0x196   : > { %v12271_v44 = vpop.f32.mrf.mxu1  ;;  %v4506_v56 = vsel %vm13595_vm10, %v4501_v59, %v4505_v16  ;;  %v4979_v60 = vrot.slane %v4977_v48, 4  ;;  %v4523_v31 = vrot.slane %v4521_v28, 5  ;;  %v11423_v16 = vcombine.low %v15274_v0, %v15281_v2  ;;  %v4888_v2 = vld [vmem:[#allocation2 + $0x54] sm:$0xe] }
 0x197   : > { %v12240_v19 = vpop.f32.mrf.mxu0  ;;  %12451 = vmatmul.mubr.msk.bf16.gmra.mxu0 %vm1281_vm7, %v13053_v53  ;;  %v15325_v34 = vadd.f32 %v12271_v44, %v12237_v12  ;;  %v4516_v12 = vsel %vm13595_vm10, %v4511_v47, %v4515_v51  ;;  %v4520_v53 = vrot.slane %v4518_v33, 4  ;;  %v4529_v29 = vrot.slane %v4527_v42, 5 }
 0x198   : > { %12490 = vmatprep.mubr.msk.bf16.mxu0 %vm1281_vm7, %v18519_v26  ;;  %v15337_v22 = vpop.f32.mrf.mxu1  ;;  %v11385_v24 = vcombine.low %v4506_v56, %v4516_v12  ;;  %v4533_v43 = vrot.slane %v4531_v45, 4  ;;  %v11424_v36 = vcombine.low %v15292_v55, %v15298_v52  ;;  %v4537_v59 = vshll.u32 %v15330_v25, 16  ;;  %v15356_v52 = vld [vmem:[#allocation2 + $0xc4] sm:$0xf] }
 0x199   : > { %v1448_v30 = vpop.f32.mrf.mxu0  ;;  %v4524_v51 = vor.u32 %v4523_v31, %v4520_v53  ;;  %v15353_v0 = vsel %vm14041_vm15, %v11409_v50, %v4977_v48  ;;  %v4542_v33 = vshrl.u32 %v4199_v62, 16  ;;  %v4984_v42 = vrot.slane %v15029_v21, 5 }
 0x19a   : > { %v12274_v11 = vpop.f32.mrf.mxu1  ;;  %12477 = vmatmul.mubr.msk.bf16.gmra.mxu1 %vm1281_vm7, %v11384_v10  ;;  %v4534_v55 = vor.u32 %v4533_v43, %v4529_v29  ;;  %v15360_v10 = vsel %vm14041_vm15, %v4979_v60, %v4980_v9  ;;  %v4539_v56 = vrot.slane %v4537_v59, 5  ;;  %v4545_v12 = vshll.u32 %v4199_v62, 16  ;;  %v15369_v43 = vld [vmem:[#allocation2 + $0xc8] sm:$0x1]  ;;  %v4889_v62 = vld [vmem:[#allocation2 + $0x60] sm:$0xe] }
 0x19b   : > { %v12241_v44 = vpop.f32.mrf.mxu0  ;;  %v15349_v47 = vadd.f32 %v12274_v11, %v12240_v19  ;;  %12480 = vmatprep.mubr.msk.bf16.mxu1 %vm1281_vm7, %v11385_v24  ;;  %v4525_v19 = vrot.slane %v4524_v51, 4  ;;  %v4544_v26 = vrot.slane %v4542_v33, 4  ;;  %v11410_v31 = vrot.slane %v4888_v2, 9 }
 0x19c   : > { %v1740_v28 = vpop.f32.mrf.mxu1  ;;  %v4535_v50 = vrot.slane %v4534_v55, 4  ;;  %v4551_v9 = vshll.u32 %v15356_v52, 16  ;;  %v4555_v21 = vshrl.u32 %v15356_v52, 16  ;;  %v4991_v51 = vrot.slane %v15056_v49, 5 }
 0x19d   : > { %v15363_v45 = vpop.f32.mrf.mxu0  ;;  %v15365_v48 = vadd.f32 %v1740_v28, %v1448_v30  ;;  %v4530_v24 = vsel %vm13595_vm10, %v4525_v19, %v4529_v29  ;;  %v4547_v59 = vrot.slane %v4545_v12, 5  ;;  %v4986_v19 = vrot.slane %v4984_v42, 4 }
 0x19e   : > { %v12275_v53 = vpop.f32.mrf.mxu1  ;;  %v4540_v30 = vsel %vm13595_vm10, %v4535_v50, %v4539_v56  ;;  %v4553_v33 = vrot.slane %v4551_v9, 5  ;;  %v4557_v28 = vrot.slane %v4555_v21, 4  ;;  %v4561_v50 = vshll.u32 %v15369_v43, 16 }
 0x19f   : > { %v12288_v60 = vpop.f32.mrf.mxu0  ;;  %12491 = vmatmul.mubr.msk.bf16.vlgmr.msra.gmra.mxu0 %vm1281_vm7, %v11423_v16  ;;  %v15374_v11 = vadd.f32 %v12275_v53, %v12241_v44  ;;  %v11386_v55 = vcombine.low %v4530_v24, %v4540_v30  ;;  %v4202_v16 = vld [vmem:[#allocation2 + $0xcc] sm:$0xf]  ;;  %v4987_v53 = vrot.slane %v15071_v23, 5  ;;  %v4548_v56 = vor.u32 %v4547_v59, %v4544_v26 }
 0x1a0   : > { %v15380_v29 = vadd.f32 %v12288_v60, %v15033_v46  ;;  %12494 = vmatprep.mubr.msk.bf16.mxu0 %vm1281_vm7, %v11424_v36  ;;  %v15383_v2 = vpop.f32.mrf.mxu1  ;;  %v11411_v36 = vrot.slane %v4889_v62, 9  ;;  %v4994_v12 = vrot.slane %v15083_v6, 5  ;;  %v4558_v24 = vor.u32 %v4557_v28, %v4553_v33 }
 0x1a1   : > { %v2085_v44 = vpop.f32.mrf.mxu0  ;;  %v4993_v21 = vrot.slane %v4991_v51, 4  ;;  %v4549_v60 = vrot.slane %v4548_v56, 4  ;;  %v4563_v30 = vrot.slane %v4561_v50, 5  ;;  %v4566_v23 = vshrl.u32 %v4202_v16, 16  ;;  %v15409_v56 = vld [vmem:[#allocation2 + $0xd4] sm:$0x1] }
 0x1a2   : > { %v15388_v49 = vadd.f32 %v2085_v44, %v15045_v41  ;;  %v15390_v46 = vpop.f32.mrf.mxu1  ;;  %12481 = vmatmul.mubr.msk.bf16.gmra.mxu1 %vm1281_vm7, %v11386_v55  ;;  %v11426_v41 = vcombine.low %v15353_v0, %v15360_v10  ;;  %v4985_v59 = vsel %vm14041_vm15, %v11410_v31, %v4984_v42  ;;  %v4559_v6 = vrot.slane %v4558_v24, 4 }
 0x1a3   : > { %v12289_v9 = vpop.f32.mrf.mxu0  ;;  %v4988_v28 = vsel %vm14041_vm15, %v4986_v19, %v4987_v53  ;;  %v4554_v44 = vsel %vm13595_vm10, %v4549_v60, %v4553_v33  ;;  %v4569_v50 = vshll.u32 %v4202_v16, 16  ;;  %v4992_v10 = vsel %vm14041_vm15, %v11411_v36, %v4991_v51  ;;  %v4890_v60 = vld [vmem:[#allocation2 + $0x6c] sm:$0xe] }
 0x1a4   : > { %v15397_v26 = vadd.f32 %v12289_v9, %v15060_v20  ;;  %v15403_v62 = vpop.f32.mrf.mxu1  ;;  %v4568_v20 = vrot.slane %v4566_v23, 4  ;;  %v4564_v42 = vsel %vm13595_vm10, %v4559_v6, %v4563_v30  ;;  %v4575_v31 = vshll.u32 %v15394_v61, 16 }
 0x1a5   : > { %v2088_v55 = vpop.f32.mrf.mxu0  ;;  %v18521_v33 = vcombine.low %v15310_v5, %v15318_v17  ;;  %v11387_v16 = vcombine.low %v4554_v44, %v4564_v42  ;;  %v4998_v53 = vrot.slane %v15098_v37, 5  ;;  %v4571_v24 = vrot.slane %v4569_v50, 5 }
 0x1a6   : > { %v15412_v9 = vadd.f32 %v2088_v55, %v15075_v57  ;;  %v15414_v0 = vpop.f32.mrf.mxu1  ;;  %v4995_v57 = vsel %vm14041_vm15, %v4993_v21, %v4994_v12  ;;  %v4577_v30 = vrot.slane %v4575_v31, 5  ;;  %v4579_v5 = vshrl.u32 %v15394_v61, 16  ;;  %v4891_v55 = vld [vmem:[#allocation2 + $0x78] sm:$0xe] }
 0x1a7   : > { %v12292_v19 = vpop.f32.mrf.mxu0  ;;  %12495 = vmatmul.mubr.msk.bf16.gmra.mxu0 %vm1281_vm7, %v18521_v33  ;;  %v4585_v17 = vshll.u32 %v15409_v56, 16  ;;  %12484 = vmatprep.mubr.msk.bf16.mxu1 %vm1281_vm7, %v11387_v16  ;;  %v4572_v12 = vor.u32 %v4571_v24, %v4568_v20  ;;  %v5005_v37 = vrot.slane %v15127_v15, 5  ;;  %v11428_v50 = vcombine.low %v4992_v10, %v4995_v57 }
 0x1a8   : > { %18520 = vst [vmem:[#allocation32_spill] sm:$0xff] %v15412_v9  ;;  %v15429_v51 = vadd.f32 %v12292_v19, %v15087_v1  ;;  %12498 = vmatprep.mubr.msk.bf16.mxu0 %vm1281_vm7, %v11426_v41  ;;  %v15432_v36 = vpop.f32.mrf.mxu1  ;;  %v11427_v1 = vcombine.low %v4985_v59, %v4988_v28  ;;  %v4581_v41 = vrot.slane %v4579_v5, 4  ;;  %v11412_v42 = vrot.slane %v4890_v60, 9 }
 0x1a9   : > { %v2101_v23 = vpop.f32.mrf.mxu0  ;;  %v5001_v31 = vrot.slane %v15114_v58, 5  ;;  %v4573_v19 = vrot.slane %v4572_v12, 4  ;;  %v5000_v20 = vrot.slane %v4998_v53, 4  ;;  %v4587_v15 = vrot.slane %v4585_v17, 5  ;;  %v18523_v17 = vld [vmem:[#allocation22_spill] sm:$0xff] }
 0x1aa   : > { %v15439_v21 = vadd.f32 %v2101_v23, %v15092_v14  ;;  %v15441_v6 = vpop.f32.mrf.mxu1  ;;  %v4582_v16 = vor.u32 %v4581_v41, %v4577_v30  ;;  %v11413_v59 = vrot.slane %v4891_v55, 9  ;;  %v5007_v28 = vrot.slane %v5005_v37, 4  ;;  %v18522_v23 = vld [vmem:[#allocation21_spill] sm:$0xff]  ;;  %v4892_v55 = vld [vmem:[#allocation2 + $0x84] sm:$0xe] }
 0x1ab   : > { %v12293_v44 = vpop.f32.mrf.mxu0  ;;  %v5008_v5 = vrot.slane %v15143_v13, 5  ;;  %v4578_v58 = vsel %vm13595_vm10, %v4573_v19, %v4577_v30  ;;  %v4999_v60 = vsel %vm14041_vm15, %v11412_v42, %v4998_v53  ;;  %v5002_v13 = vsel %vm14041_vm15, %v5000_v20, %v5001_v31 }
 0x1ac   : > { %v15445_v33 = vadd.f32 %v12293_v44, %v15105_v18  ;;  %v15447_v24 = vpop.f32.mrf.mxu1  ;;  %v4583_v10 = vrot.slane %v4582_v16, 4  ;;  %v18524_v44 = vld [vmem:[#allocation25_spill] sm:$0xff]  ;;  %v5006_v53 = vsel %vm14041_vm15, %v11413_v59, %v5005_v37 }
 0x1ad   : > { %v2104_v14 = vpop.f32.mrf.mxu0  ;;  %v5012_v19 = vrot.slane %v18524_v44, 5  ;;  %v5009_v42 = vsel %vm14041_vm15, %v5007_v28, %v5008_v5  ;;  %v18527_v5 = vld [vmem:[#allocation27_spill] sm:$0xff] }
 0x1ae   : > { %v15451_v9 = vadd.f32 %v2104_v14, %v18522_v23  ;;  %v15455_v57 = vpop.f32.mrf.mxu1  ;;  %v4588_v30 = vsel %vm13595_vm10, %v4583_v10, %v4587_v15  ;;  %v18525_v14 = vld [vmem:[#allocation23_spill] sm:$0xff]  ;;  %v4893_v15 = vld [vmem:[#allocation2 + $0x90] sm:$0xe]  ;;  %v11429_v10 = vcombine.low %v4999_v60, %v5002_v13  ;;  %v11430_v59 = vcombine.low %v5006_v53, %v5009_v42  ;;  %v18530_v42 = vld [vmem:[#allocation28_spill] sm:$0xff] }
 0x1af   : > { %v12296_v18 = vpop.f32.mrf.mxu0  ;;  %12499 = vmatmul.mubr.msk.bf16.gmra.mxu0 %vm1281_vm7, %v11427_v1  ;;  %v11388_v16 = vcombine.low %v4578_v58, %v4588_v30  ;;  %v5014_v28 = vrot.slane %v5012_v19, 4  ;;  %v5022_v13 = vrot.slane %v15202_v3, 5 }
 0x1b0   : > { %v15461_v12 = vadd.f32 %v12296_v18, %v18523_v17  ;;  %12502 = vmatprep.mubr.msk.bf16.mxu0 %vm1281_vm7, %v11428_v50  ;;  %v15468_v41 = vpop.f32.mrf.mxu1  ;;  %v5019_v50 = vrot.slane %v15181_v32, 5  ;;  %v11414_v18 = vrot.slane %v4892_v55, 9  ;;  %v18526_v17 = vld [vmem:[#allocation24_spill] sm:$0xff]  ;;  %v5015_v32 = vrot.slane %v18527_v5, 5  ;;  %v18528_v55 = vld [vmem:[#allocation26_spill] sm:$0xff] }
 0x1b1   : > { %v2117_v1 = vpop.f32.mrf.mxu0  ;;  %12485 = vmatmul.mubr.msk.bf16.gmra.mxu1 %vm1281_vm7, %v11388_v16  ;;  %v5026_v5 = vrot.slane %v15223_v54, 5 }
 0x1b2   : > { %v15477_v31 = vadd.f32 %v2117_v1, %v18525_v14  ;;  %v12322_v20 = vpop.f32.mrf.mxu1  ;;  %v11415_v14 = vrot.slane %v4893_v15, 9  ;;  %v5021_v60 = vrot.slane %v5019_v50, 4  ;;  %v5016_v3 = vsel %vm14041_vm15, %v5014_v28, %v5015_v32 }
 0x1b3   : > { %v12297_v23 = vpop.f32.mrf.mxu0  ;;  %v15481_v58 = vadd.f32 %v12322_v20, %v15380_v29 }
 0x1b4   : > { %v15484_v37 = vadd.f32 %v12297_v23, %v18526_v17  ;;  %v2443_v30 = vpop.f32.mrf.mxu1  ;;  %v4894_v17 = vld [vmem:[#allocation2 + $0x9c] sm:$0xe] }
 0x1b5   : > { %v2120_v44 = vpop.f32.mrf.mxu0  ;;  %v15488_v1 = vadd.f32 %v2443_v30, %v15388_v49  ;;  %v5013_v49 = vsel %vm14041_vm15, %v11414_v18, %v5012_v19  ;;  %v5023_v30 = vsel %vm14041_vm15, %v5021_v60, %v5022_v13  ;;  %v4895_v18 = vld [vmem:[#allocation2 + $0xa8] sm:$0xe] }
 0x1b6   : > { %v15492_v16 = vadd.f32 %v2120_v44, %v18528_v55  ;;  %v12323_v29 = vpop.f32.mrf.mxu1  ;;  %v18531_v44 = vld [vmem:[#allocation29_spill] sm:$0xff]  ;;  %v11431_v32 = vcombine.low %v5013_v49, %v5016_v3  ;;  %v5036_v49 = vrot.slane %v15262_v39, 5  ;;  %v18533_v3 = vld [vmem:[#allocation31_spill] sm:$0xff] }
 0x1b7   : > { %v12300_v20 = vpop.f32.mrf.mxu0  ;;  %12503 = vmatmul.mubr.msk.bf16.gmra.mxu0 %vm1281_vm7, %v11429_v10  ;;  %v15496_v53 = vadd.f32 %v12323_v29, %v15397_v26  ;;  %v5020_v26 = vsel %vm14041_vm15, %v11415_v14, %v5019_v50  ;;  %v11416_v29 = vrot.slane %v4894_v17, 9  ;;  %v5028_v14 = vrot.slane %v5026_v5, 4 }
 0x1b8   : > { %18529 = vst [vmem:[#allocation21_spill] sm:$0xff] %v15492_v16  ;;  %v15499_v23 = vadd.f32 %v12300_v20, %v18530_v42  ;;  %12506 = vmatprep.mubr.msk.bf16.mxu0 %vm1281_vm7, %v11430_v59  ;;  %v15506_v15 = vpop.f32.mrf.mxu1  ;;  %v5033_v59 = vrot.slane %v15247_v4, 5  ;;  %v11432_v50 = vcombine.low %v5020_v26, %v5023_v30  ;;  %v18532_v42 = vld [vmem:[#allocation30_spill] sm:$0xff] }
 0x1b9   : > { %v2133_v10 = vpop.f32.mrf.mxu0  ;;  %v5029_v60 = vrot.slane %v18532_v42, 5 }
 0x1ba   : > { %v15515_v55 = vadd.f32 %v2133_v10, %v18531_v44  ;;  %v12326_v19 = vpop.f32.mrf.mxu1  ;;  %v11417_v44 = vrot.slane %v4895_v18, 9  ;;  %v5035_v16 = vrot.slane %v5033_v59, 4  ;;  %v4896_v18 = vld [vmem:[#allocation2 + $0xb4] sm:$0xe] }
 0x1bb   : > { %v12301_v28 = vpop.f32.mrf.mxu0  ;;  %v15518_v20 = vadd.f32 %v12326_v19, %v15429_v51  ;;  %v5030_v39 = vsel %vm14041_vm15, %v5028_v14, %v5029_v60 }
 0x1bc   : > { %v15521_v54 = vadd.f32 %v12301_v28, %v15231_v8  ;;  %v2459_v13 = vpop.f32.mrf.mxu1  ;;  %v5040_v28 = vrot.slane %v15283_v35, 5 }
 0x1bd   : > { %v2136_v4 = vpop.f32.mrf.mxu0  ;;  %v15525_v10 = vadd.f32 %v2459_v13, %v15439_v21  ;;  %v5027_v21 = vsel %vm14041_vm15, %v11416_v29, %v5026_v5  ;;  %v4897_v29 = vld [vmem:[#allocation2 + $0xc0] sm:$0xe]  ;;  %v11418_v13 = vrot.slane %v4896_v18, 9 }
 0x1be   : > { %v15529_v17 = vadd.f32 %v2136_v4, %v18533_v3  ;;  %v12327_v51 = vpop.f32.mrf.mxu1  ;;  %v11433_v60 = vcombine.low %v5027_v21, %v5030_v39  ;;  %v11419_v3 = vrot.slane %v4897_v29, 9 }
 0x1bf   : > { %v12304_v19 = vpop.f32.mrf.mxu0  ;;  %12507 = vmatmul.mubr.msk.bf16.gmra.mxu0 %vm1281_vm7, %v11431_v32  ;;  %v15533_v8 = vadd.f32 %v12327_v51, %v15445_v33  ;;  %v5034_v33 = vsel %vm14041_vm15, %v11417_v44, %v5033_v59  ;;  %v5042_v44 = vrot.slane %v5040_v28, 4 }
 0x1c0   : > { %v15536_v26 = vadd.f32 %v12304_v19, %v15305_v63  ;;  %12510 = vmatprep.mubr.msk.bf16.mxu0 %vm1281_vm7, %v11432_v50  ;;  %v15543_v30 = vpop.f32.mrf.mxu1  ;;  %v5037_v63 = vsel %vm14041_vm15, %v5035_v16, %v5036_v49  ;;  %v5047_v50 = vrot.slane %v15356_v52, 5  ;;  %v5043_v16 = vrot.slane %v15330_v25, 5 }
 0x1c1   : > { %v2149_v32 = vpop.f32.mrf.mxu0  ;;  %v11434_v59 = vcombine.low %v5034_v33, %v5037_v63  ;;  %v5050_v19 = vrot.slane %v15369_v43, 5  ;;  %v5041_v25 = vsel %vm14041_vm15, %v11418_v13, %v5040_v28  ;;  %v4898_v43 = vld [vmem:[#allocation2 + $0xcc] sm:$0xe] }
 0x1c2   : > { %v15552_v42 = vadd.f32 %v2149_v32, %v15321_v40  ;;  %v12330_v5 = vpop.f32.mrf.mxu1  ;;  %v5049_v51 = vrot.slane %v5047_v50, 4  ;;  %v5054_v32 = vrot.slane %v15394_v61, 5 }
 0x1c3   : > { %v12305_v14 = vpop.f32.mrf.mxu0  ;;  %v15555_v4 = vadd.f32 %v12330_v5, %v15461_v12 }
 0x1c4   : > { %v15558_v35 = vadd.f32 %v12305_v14, %v15325_v34  ;;  %v2475_v49 = vpop.f32.mrf.mxu1  ;;  %v11420_v14 = vrot.slane %v4898_v43, 9  ;;  %v5056_v61 = vrot.slane %v5054_v32, 4 }
 0x1c5   : > { %v15561_v52 = vpop.f32.mrf.mxu0  ;;  %v15564_v40 = vadd.f32 %v2475_v49, %v15477_v31  ;;  %v5044_v31 = vsel %vm14041_vm15, %v5042_v44, %v5043_v16  ;;  %v5057_v44 = vrot.slane %v15409_v56, 5 }
 0x1c6   : > { %v12331_v21 = vpop.f32.mrf.mxu1  ;;  %v11435_v28 = vcombine.low %v5041_v25, %v5044_v31  ;;  %v18536_v31 = vld [vmem:[#allocation15_spill] sm:$0xff] }
 0x1c7   : > { %v12308_v12 = vpop.f32.mrf.mxu0  ;;  %12511 = vmatmul.mubr.msk.bf16.gmra.mxu0 %vm1281_vm7, %v11433_v60  ;;  %v15569_v34 = vadd.f32 %v12331_v21, %v15484_v37  ;;  %v5048_v37 = vsel %vm14041_vm15, %v11419_v3, %v5047_v50  ;;  %v1768_v43 = vadd.f32 %v15414_v0, %v18536_v31 }
 0x1c8   : > { %v2234_v39 = vadd.f32 %v12308_v12, %v15349_v47  ;;  %12514 = vmatprep.mubr.msk.bf16.mxu0 %vm1281_vm7, %v11434_v59  ;;  %v15577_v18 = vpop.f32.mrf.mxu1  ;;  %v5051_v47 = vsel %vm14041_vm15, %v5049_v51, %v5050_v19  ;;  %v5058_v12 = vsel %vm14041_vm15, %v5056_v61, %v5057_v44 }
 0x1c9   : > { %v2165_v33 = vpop.f32.mrf.mxu0  ;;  %v11436_v59 = vcombine.low %v5048_v37, %v5051_v47 }
 0x1ca   : > { %v2232_v63 = vadd.f32 %v2165_v33, %v15365_v48  ;;  %v12334_v5 = vpop.f32.mrf.mxu1  ;;  %v18534_v48 = vld [vmem:[#allocation13_spill] sm:$0xff] }
 0x1cb   : > { %v12309_v29 = vpop.f32.mrf.mxu0  ;;  %v15586_v60 = vadd.f32 %v12334_v5, %v15499_v23  ;;  %v1765_v3 = vadd.f32 %v15390_v46, %v18534_v48 }
 0x1cc   : > { %v2235_v13 = vadd.f32 %v12309_v29, %v15374_v11  ;;  %v2491_v16 = vpop.f32.mrf.mxu1  ;;  %v18535_v11 = vld [vmem:[#allocation14_spill] sm:$0xff] }
 0x1cd   : > { %v15590_v50 = vpop.f32.mrf.mxu0  ;;  %v15593_v49 = vadd.f32 %v2491_v16, %v15515_v55  ;;  %v1757_v21 = vadd.f32 %v15403_v62, %v18535_v11  ;;  %v5055_v55 = vsel %vm14041_vm15, %v11420_v14, %v5054_v32  ;;  %v18537_v14 = vld [vmem:[#allocation17_spill] sm:$0xff]  ;;  %v18538_v16 = vld [vmem:[#allocation18_spill] sm:$0xff] }
 0x1ce   : > { %v12335_v51 = vpop.f32.mrf.mxu1  ;;  %v11437_v47 = vcombine.low %v5055_v55, %v5058_v12 }
 0x1cf   : > { %v12312_v19 = vpop.f32.mrf.mxu0  ;;  %12515 = vmatmul.mubr.msk.bf16.gmra.mxu0 %vm1281_vm7, %v11435_v28  ;;  %v15599_v23 = vadd.f32 %v12335_v51, %v15521_v54 }
 0x1d0   : > { %v2238_v56 = vadd.f32 %v12312_v19, %v1765_v3  ;;  %12518 = vmatprep.mubr.msk.bf16.mxu0 %vm1281_vm7, %v11436_v59  ;;  %v15608_v46 = vpop.f32.mrf.mxu1  ;;  %v1781_v59 = vadd.f32 %v15441_v6, %v18537_v14  ;;  %v18539_v19 = vld [vmem:[#allocation19_spill] sm:$0xff] }
 0x1d1   : > { %v2181_v25 = vpop.f32.mrf.mxu0 }
 0x1d2   : > { %v2236_v54 = vadd.f32 %v2181_v25, %v1757_v21  ;;  %v12338_v33 = vpop.f32.mrf.mxu1 }
 0x1d3   : > { %v12313_v37 = vpop.f32.mrf.mxu0  ;;  %v15613_v62 = vadd.f32 %v12338_v33, %v15536_v26  ;;  %v1773_v26 = vadd.f32 %v15447_v24, %v18538_v16 }
 0x1d4   : > { %v2239_v5 = vadd.f32 %v12313_v37, %v1768_v43  ;;  %v2507_v29 = vpop.f32.mrf.mxu1  ;;  %v13054_v43 = vld [vmem:[#allocation4 + $0x38] sm:$0xff]  }
 0x1d5   : > { %v15615_v28 = vpop.f32.mrf.mxu0  ;;  %v15618_v32 = vadd.f32 %v2507_v29, %v15552_v42  ;;  %v1784_v42 = vadd.f32 %v15455_v57, %v18539_v19  ;;  %12570 = vmatprep.subr.bf16.mxu0 %v13054_v43 }
 0x1d6   : > { %v12339_v61 = vpop.f32.mrf.mxu1  ;;  %12571 = vmatpush3.bf16.msra.mxu0 %v13054_v43 }
 0x1d7   : > { %v12316_v44 = vpop.f32.mrf.mxu0  ;;  %12519 = vmatmul.mubr.msk.bf16.gmra.mxu0 %vm1281_vm7, %v11437_v47  ;;  %v15624_v0 = vadd.f32 %v12339_v61, %v15558_v35 }
 0x1d8   : > { %v2242_v48 = vadd.f32 %v12316_v44, %v1781_v59  ;;  %v15628_v3 = vpop.f32.mrf.mxu1  ;;  %v13055_v59 = vld [vmem:[#allocation4 + $0x30] sm:$0xff]  }
 0x1d9   : > { %v2197_v51 = vpop.f32.mrf.mxu0  ;;  %12572 = vmatprep.subr.bf16.mxu0 %v13055_v59 }
 0x1da   : > { %v2240_v11 = vadd.f32 %v2197_v51, %v1773_v26  ;;  %v12342_v21 = vpop.f32.mrf.mxu1  ;;  %12573 = vmatpush3.bf16.msra.mxu0 %v13055_v59  ;;  %v13056_v51 = vld [vmem:[#allocation4 + $0x28] sm:$0xff]   ;;  %v13059_v59 = vld [vmem:[#allocation4 + $0x70] sm:$0xff]  }
 0x1db   : > { %v12317_v6 = vpop.f32.mrf.mxu0  ;;  %v15632_v55 = vadd.f32 %v12342_v21, %v2234_v39  ;;  %12574 = vmatprep.subr.bf16.mxu0 %v13056_v51 }
 0x1dc   : > { %v2243_v12 = vadd.f32 %v12317_v6, %v1784_v42  ;;  %v2523_v25 = vpop.f32.mrf.mxu1  ;;  %v13057_v42 = vld [vmem:[#allocation4 + $0x78] sm:$0xff]  }
 0x1dd   : > { %v15634_v31 = vpop.f32.mrf.mxu0  ;;  %v15636_v35 = vadd.f32 %v2523_v25, %v2232_v63  ;;  %12522 = vmatprep.subr.bf16.mxu1 %v13057_v42 }
 0x1de   : > { %v12343_v24 = vpop.f32.mrf.mxu1  ;;  %12575 = vmatpush3.bf16.msra.mxu0 %v13056_v51  ;;  %12523 = vmatpush3.bf16.msra.mxu1 %v13057_v42  ;;  %v13061_v42 = vld [vmem:[#allocation4 + $0x68] sm:$0xff]  }
 0x1df   : > { %v12356_v33 = vpop.f32.mrf.mxu0  ;;  %v15638_v37 = vadd.f32 %v12343_v24, %v2235_v13  ;;  %12524 = vmatprep.subr.bf16.mxu1 %v13059_v59 }
 0x1e0   : > { %v15641_v47 = vadd.f32 %v12356_v33, %v15481_v58  ;;  %v15643_v57 = vpop.f32.mrf.mxu1 }
 0x1e1   : > { %v3169_v39 = vpop.f32.mrf.mxu0 }
 0x1e2   : > { %v15646_v29 = vadd.f32 %v3169_v39, %v15488_v1  ;;  %v12346_v14 = vpop.f32.mrf.mxu1  ;;  %v13058_v39 = vld [vmem:[#allocation4 + $0x20] sm:$0xff]   ;;  %12525 = vmatpush3.bf16.msra.mxu1 %v13059_v59 }
 0x1e3   : > { %v12357_v63 = vpop.f32.mrf.mxu0  ;;  %v15648_v61 = vadd.f32 %v12346_v14, %v2238_v56  ;;  %12576 = vmatprep.subr.bf16.mxu0 %v13058_v39  ;;  %12526 = vmatprep.subr.bf16.mxu1 %v13061_v42 }
 0x1e4   : > { %18540 = vst [vmem:[#allocation22_spill] sm:$0xff] %v15646_v29  ;;  %v15651_v44 = vadd.f32 %v12357_v63, %v15496_v53  ;;  %v2539_v13 = vpop.f32.mrf.mxu1  ;;  %12577 = vmatpush3.bf16.msra.mxu0 %v13058_v39  ;;  %v6059_v29 = vld [vmem:[#allocation3 + $0x8] sm:$0x1] }
 0x1e5   : > { %v15653_v16 = vpop.f32.mrf.mxu0  ;;  %v15655_v58 = vadd.f32 %v2539_v13, %v2236_v54 }
 0x1e6   : > { %18541 = vst [vmem:[#allocation25_spill] sm:$0xff] %v15651_v44  ;;  %v12347_v26 = vpop.f32.mrf.mxu1  ;;  %12527 = vmatpush3.bf16.msra.mxu1 %v13061_v42 }
 0x1e7   : > { %v12360_v19 = vpop.f32.mrf.mxu0  ;;  %v15657_v1 = vadd.f32 %v12347_v26, %v2239_v5 }
 0x1e8   : > { %v15660_v21 = vadd.f32 %v12360_v19, %v15518_v20  ;;  %v15662_v56 = vpop.f32.mrf.mxu1 }
 0x1e9   : > { %v3185_v53 = vpop.f32.mrf.mxu0 }
 0x1ea   : > { %18542 = vst [vmem:[#allocation23_spill] sm:$0xff] %v15660_v21  ;;  %v15665_v6 = vadd.f32 %v3185_v53, %v15525_v10  ;;  %v12350_v54 = vpop.f32.mrf.mxu1 }
 0x1eb   : > { %v12361_v25 = vpop.f32.mrf.mxu0  ;;  %v15667_v43 = vadd.f32 %v12350_v54, %v2242_v48 }
 0x1ec   : > { %18543 = vst [vmem:[#allocation24_spill] sm:$0xff] %v15665_v6  ;;  %v3303_v5 = vadd.f32 %v12361_v25, %v15533_v8  ;;  %v2555_v24 = vpop.f32.mrf.mxu1 }
 0x1ed   : > { %v15670_v33 = vpop.f32.mrf.mxu0  ;;  %v15672_v20 = vadd.f32 %v2555_v24, %v2240_v11  ;;  %v13060_v11 = vld [vmem:[#allocation4 + $0x18] sm:$0xff]   ;;  %v13062_v24 = vld [vmem:[#allocation4 + $0x10] sm:$0xff]  }
 0x1ee   : > { %v12351_v14 = vpop.f32.mrf.mxu1  ;;  %12578 = vmatprep.subr.bf16.mxu0 %v13060_v11 }
 0x1ef   : > { %v12364_v63 = vpop.f32.mrf.mxu0  ;;  %v15674_v13 = vadd.f32 %v12351_v14, %v2243_v12  ;;  %12579 = vmatpush3.bf16.msra.mxu0 %v13060_v11  ;;  %v13063_v14 = vld [vmem:[#allocation4 + $0x60] sm:$0xff]  }
 0x1f0   : > { %v3306_v10 = vadd.f32 %v12364_v63, %v15555_v4  ;;  %v15677_v26 = vpop.f32.mrf.mxu1  ;;  %12580 = vmatprep.subr.bf16.mxu0 %v13062_v24  ;;  %12528 = vmatprep.subr.bf16.mxu1 %v13063_v14 }
 0x1f1   : > { %v3201_v48 = vpop.f32.mrf.mxu0  ;;  %12529 = vmatpush3.bf16.msra.mxu1 %v13063_v14 }
 0x1f2   : > { %v3304_v8 = vadd.f32 %v3201_v48, %v15564_v40  ;;  %v15680_v51 = vpop.f32.mrf.mxu1 }
 0x1f3   : > { %18544 = vst [vmem:[#allocation27_spill] sm:$0xff] %v15680_v51  ;;  %v12365_v19 = vpop.f32.mrf.mxu0  ;;  %12581 = vmatpush3.bf16.msra.mxu0 %v13062_v24 }
 0x1f4   : > { %v3307_v53 = vadd.f32 %v12365_v19, %v15569_v34  ;;  %v15683_v12 = vpop.f32.mrf.mxu1 }
 0x1f5   : > { %18545 = vst [vmem:[#allocation26_spill] sm:$0xff] %v15683_v12  ;;  %v15685_v54 = vpop.f32.mrf.mxu0 }
 0x1f6   : > { %18546 = vst [vmem:[#allocation28_spill] sm:$0xff] %v15685_v54  ;;  %v15687_v4 = vpop.f32.mrf.mxu1 }
 0x1f7   : > { %18547 = vst [vmem:[#allocation29_spill] sm:$0xff] %v15687_v4  ;;  %v12368_v25 = vpop.f32.mrf.mxu0 }
 0x1f8   : > { %v3310_v40 = vadd.f32 %v12368_v25, %v15586_v60  ;;  %v15690_v39 = vpop.f32.mrf.mxu1  ;;  %v13064_v25 = vld [vmem:[#allocation4 + $0x8] sm:$0xff]  }
 0x1f9   : > { %18548 = vst [vmem:[#allocation30_spill] sm:$0xff] %v15690_v39  ;;  %v3217_v59 = vpop.f32.mrf.mxu0  ;;  %12582 = vmatprep.subr.bf16.mxu0 %v13064_v25  ;;  %v13067_v39 = vld [vmem:[#allocation4 + $0x50] sm:$0xff]  }
 0x1fa   : > { %v3308_v34 = vadd.f32 %v3217_v59, %v15593_v49  ;;  %v15693_v63 = vpop.f32.mrf.mxu1  ;;  %v13065_v59 = vld [vmem:[#allocation4 + $0x58] sm:$0xff]   ;;  %12583 = vmatpush3.bf16.msra.mxu0 %v13064_v25 }
 0x1fb   : > { %18549 = vst [vmem:[#allocation31_spill] sm:$0xff] %v15693_v63  ;;  %v12369_v48 = vpop.f32.mrf.mxu0  ;;  %12530 = vmatprep.subr.bf16.mxu1 %v13065_v59 }
 0x1fc   : > { %v3311_v11 = vadd.f32 %v12369_v48, %v15599_v23  ;;  %v15696_v19 = vpop.f32.mrf.mxu1  ;;  %12531 = vmatpush3.bf16.msra.mxu1 %v13065_v59 }
 0x1fd   : > { %18550 = vst [vmem:[#allocation13_spill] sm:$0xff] %v15696_v19  ;;  %v15698_v42 = vpop.f32.mrf.mxu0  ;;  %12532 = vmatprep.subr.bf16.mxu1 %v13067_v39 }
 0x1fe   : > { %18551 = vst [vmem:[#allocation14_spill] sm:$0xff] %v15698_v42  ;;  %v12395_v60 = vpop.f32.mrf.mxu1 }
 0x1ff   : > { %v12372_v7 = vpop.f32.mrf.mxu0  ;;  %v15700_v6 = vadd.f32 %v12395_v60, %v3303_v5 }
 0x200   : > { %v3314_v21 = vadd.f32 %v12372_v7, %v15613_v62  ;;  %v15703_v49 = vpop.f32.mrf.mxu1  ;;  %v13066_v62 = vld [vmem:[#allocation4] sm:$0xff]   ;;  %12533 = vmatpush3.bf16.msra.mxu1 %v13067_v39  ;;  %v13070_v39 = vld [vmem:[#allocation4 + $0x48] sm:$0xff]  }
 0x201   : > { %18552 = vst [vmem:[#allocation15_spill] sm:$0xff] %v15703_v49  ;;  %v3233_v24 = vpop.f32.mrf.mxu0  ;;  %12584 = vmatprep.subr.bf16.mxu0 %v13066_v62  ;;  %12534 = vmatprep.subr.bf16.mxu1 %v13070_v39 }
 0x202   : > { %v3312_v14 = vadd.f32 %v3233_v24, %v15618_v32  ;;  %v12398_v23 = vpop.f32.mrf.mxu1  ;;  %v6011_v32 = vld [vmem:[#allocation3] sm:$0xf]  ;;  %v6012_v24 = vld [vmem:[#allocation3 + $0x4] sm:$0xf]  ;;  %12585 = vmatpush3.bf16.msra.mxu0 %v13066_v62 }
 0x203   : > { %v12373_v48 = vpop.f32.mrf.mxu0  ;;  %v15706_v19 = vadd.f32 %v12398_v23, %v3306_v10  ;;  %v11511_v59 = vcombine.low %v6011_v32, %v6012_v24 }
 0x204   : > { %v3315_v63 = vadd.f32 %v12373_v48, %v15624_v0  ;;  %v3671_v5 = vpop.f32.mrf.mxu1  ;;  %12535 = vmatpush3.bf16.msra.mxu1 %v13070_v39 }
 0x205   : > { %v15709_v60 = vpop.f32.mrf.mxu0  ;;  %v15711_v7 = vadd.f32 %v3671_v5, %v3304_v8  ;;  %12586 = vmatprep.mubr.bf16.mxu0 %v11511_v59 }
 0x206   : > { %18553 = vst [vmem:[#allocation17_spill] sm:$0xff] %v15709_v60  ;;  %v12399_v49 = vpop.f32.mrf.mxu1 }
 0x207   : > { %v12376_v4 = vpop.f32.mrf.mxu0  ;;  %v15713_v25 = vadd.f32 %v12399_v49, %v3307_v53 }
 0x208   : > { %v3318_v10 = vadd.f32 %v12376_v4, %v15632_v55  ;;  %v15716_v23 = vpop.f32.mrf.mxu1 }
 0x209   : > { %18554 = vst [vmem:[#allocation18_spill] sm:$0xff] %v15716_v23  ;;  %v3249_v0 = vpop.f32.mrf.mxu0 }
 0x20a   : > { %v3316_v8 = vadd.f32 %v3249_v0, %v15636_v35  ;;  %v12402_v48 = vpop.f32.mrf.mxu1 }
 0x20b   : > { %v12377_v5 = vpop.f32.mrf.mxu0  ;;  %v15719_v60 = vadd.f32 %v12402_v48, %v3310_v40 }
 0x20c   : > { %v3319_v53 = vadd.f32 %v12377_v5, %v15638_v37  ;;  %v3687_v49 = vpop.f32.mrf.mxu1 }
 0x20d   : > { %v15722_v44 = vpop.f32.mrf.mxu0  ;;  %v15724_v55 = vadd.f32 %v3687_v49, %v3308_v34  ;;  %v6076_v49 = vshrl.u32 %v6011_v32, 16 }
 0x20e   : > { %18555 = vst [vmem:[#allocation19_spill] sm:$0xff] %v15722_v44  ;;  %v12403_v4 = vpop.f32.mrf.mxu1 }
 0x20f   : > { %v12380_v23 = vpop.f32.mrf.mxu0  ;;  %v15726_v62 = vadd.f32 %v12403_v4, %v3311_v11  ;;  %v6079_v11 = vshll.u32 %v6011_v32, 16 }
 0x210   : > { %v3322_v42 = vadd.f32 %v12380_v23, %v15648_v61  ;;  %v15729_v35 = vpop.f32.mrf.mxu1  ;;  %v6089_v23 = vshrl.u32 %v6012_v24, 16 }
 0x211   : > { %18556 = vst [vmem:[#allocation33_spill] sm:$0xff] %v15729_v35  ;;  %v3265_v0 = vpop.f32.mrf.mxu0 }
 0x212   : > { %v3320_v40 = vadd.f32 %v3265_v0, %v15655_v58  ;;  %v12406_v59 = vpop.f32.mrf.mxu1  ;;  %v6081_v0 = vrot.slane %v6079_v11, 5  ;;  %v13072_v11 = vld [vmem:[#allocation4 + $0x40] sm:$0xff]  }
 0x213   : > { %v12381_v37 = vpop.f32.mrf.mxu0  ;;  %v15732_v48 = vadd.f32 %v12406_v59, %v3314_v21  ;;  %v6078_v21 = vrot.slane %v6076_v49, 4  ;;  %v6085_v59 = vshll.u32 %v6012_v24, 16  ;;  %12536 = vmatprep.subr.bf16.mxu1 %v13072_v11 }
 0x214   : > { %v3323_v34 = vadd.f32 %v12381_v37, %v15657_v1  ;;  %v3703_v5 = vpop.f32.mrf.mxu1  ;;  %12537 = vmatpush3.bf16.msra.mxu1 %v13072_v11 }
 0x215   : > { %v15735_v4 = vpop.f32.mrf.mxu0  ;;  %v15737_v44 = vadd.f32 %v3703_v5, %v3312_v14  ;;  %v6087_v12 = vrot.slane %v6085_v59, 5  ;;  %v6082_v51 = vor.u32 %v6081_v0, %v6078_v21 }
 0x216   : > { %18557 = vst [vmem:[#allocation34_spill] sm:$0xff] %v15735_v4  ;;  %v12407_v61 = vpop.f32.mrf.mxu1  ;;  %v6091_v4 = vrot.slane %v6089_v23, 4 }
 0x217   : > { %v12384_v35 = vpop.f32.mrf.mxu0  ;;  %v15739_v54 = vadd.f32 %v12407_v61, %v3315_v63 }
 0x218   : > { %v3326_v58 = vadd.f32 %v12384_v35, %v15667_v43  ;;  %v15742_v39 = vpop.f32.mrf.mxu1  ;;  %v6092_v43 = vor.u32 %v6091_v4, %v6087_v12  ;;  %v6095_v35 = vshll.u32 %v6059_v29, 16 }
 0x219   : > { %18558 = vst [vmem:[#allocation35_spill] sm:$0xff] %v15742_v39  ;;  %v3281_v1 = vpop.f32.mrf.mxu0 }
 0x21a   : > { %v3324_v37 = vadd.f32 %v3281_v1, %v15672_v20  ;;  %v12410_v32 = vpop.f32.mrf.mxu1  ;;  %v6083_v20 = vrot.slane %v6082_v51, 4  ;;  %v6093_v1 = vrot.slane %v6092_v43, 4  ;;  %v6097_v59 = vrot.slane %v6095_v35, 5 }
 0x21b   : > { %v12385_v14 = vpop.f32.mrf.mxu0  ;;  %v15745_v5 = vadd.f32 %v12410_v32, %v3318_v10 }
 0x21c   : > { %v3327_v63 = vadd.f32 %v12385_v14, %v15674_v13  ;;  %v3719_v61 = vpop.f32.mrf.mxu1  ;;  %v6088_v13 = vsel %vm13595_vm10, %v6083_v20, %v6087_v12  ;;  %v6098_v29 = vsel %vm13595_vm10, %v6093_v1, %v6097_v59 }
 0x21d   : > { %v15748_v39 = vpop.f32.mrf.mxu0  ;;  %v15750_v49 = vadd.f32 %v3719_v61, %v3316_v8  ;;  %v11487_v4 = vcombine.low %v6088_v13, %v6098_v29 }
 0x21e   : > { %v12411_v24 = vpop.f32.mrf.mxu1 }
 0x21f   : > { %v15752_v23 = vpop.f32.mrf.mxu0  ;;  %v15754_v10 = vadd.f32 %v12411_v24, %v3319_v53  ;;  %12538 = vmatprep.mubr.bf16.mxu1 %v11487_v4 }
 0x220   : > { %v15756_v32 = vpop.f32.mrf.mxu1 }
 0x221   : > { %v15762_v8 = vpop.f32.mrf.mxu0 }
 0x222   : > { %v12414_v51 = vpop.f32.mrf.mxu1 }
 0x223   : > { %v15764_v21 = vpop.f32.mrf.mxu0  ;;  %v15766_v0 = vadd.f32 %v12414_v51, %v3322_v42 }
 0x224   : > { %v3735_v53 = vpop.f32.mrf.mxu1 }
 0x225   : > { %v15768_v14 = vpop.f32.mrf.mxu0  ;;  %v15770_v61 = vadd.f32 %v3735_v53, %v3320_v40 }
 0x226   : > { %v12415_v43 = vpop.f32.mrf.mxu1 }
 0x227   : > { %v15772_v12 = vpop.f32.mrf.mxu0  ;;  %v15774_v35 = vadd.f32 %v12415_v43, %v3323_v34 }
 0x228   : > { %v15776_v24 = vpop.f32.mrf.mxu1 }
 0x229   : > { %v15778_v11 = vpop.f32.mrf.mxu0 }
 0x22a   : > { %v12418_v20 = vpop.f32.mrf.mxu1 }
 0x22b   : > { %v12429_v1 = vpop.f32.mrf.mxu0  ;;  %v15780_v59 = vadd.f32 %v12418_v20, %v3326_v58 }
 0x22c   : > { %v15783_v42 = vadd.f32 %v12429_v1, %v15700_v6  ;;  %v3751_v13 = vpop.f32.mrf.mxu1 }
 0x22d   : > { %v15785_v29 = vpop.f32.mrf.mxu0  ;;  %v15787_v40 = vadd.f32 %v3751_v13, %v3324_v37 }
 0x22e   : > { %18559 = vst [vmem:[#allocation36_spill] sm:$0xff] %v15783_v42  ;;  %v12419_v4 = vpop.f32.mrf.mxu1 }
 0x22f   : > { %v12432_v51 = vpop.f32.mrf.mxu0  ;;  %v15789_v34 = vadd.f32 %v12419_v4, %v3327_v63 }
 0x230   : > { %v15792_v53 = vadd.f32 %v12432_v51, %v15706_v19  ;;  %v15794_v43 = vpop.f32.mrf.mxu1 }
 0x231   : > { %v4030_v27 = vpop.f32.mrf.mxu0 }
 0x232   : > { %18560 = vst [vmem:[#allocation37_spill] sm:$0xff] %v15792_v53  ;;  %v15797_v58 = vadd.f32 %v4030_v27, %v15711_v7  ;;  %v15799_v6 = vpop.f32.mrf.mxu1 }
 0x233   : > { %v12433_v20 = vpop.f32.mrf.mxu0 }
 0x234   : > { %18561 = vst [vmem:[#allocation38_spill] sm:$0xff] %v15797_v58  ;;  %v15802_v1 = vadd.f32 %v12433_v20, %v15713_v25  ;;  %v15804_v37 = vpop.f32.mrf.mxu1 }
 0x235   : > { %v15806_v13 = vpop.f32.mrf.mxu0 }
 0x236   : > { %18562 = vst [vmem:[#allocation39_spill] sm:$0xff] %v15802_v1  ;;  %v15808_v63 = vpop.f32.mrf.mxu1 }
 0x237   : > { %v12436_v19 = vpop.f32.mrf.mxu0 }
 0x238   : > { %v15811_v4 = vadd.f32 %v12436_v19, %v15719_v60  ;;  %v15813_v51 = vpop.f32.mrf.mxu1 }
 0x239   : > { %v4046_v27 = vpop.f32.mrf.mxu0 }
 0x23a   : > { %18563 = vst [vmem:[#allocation40_spill] sm:$0xff] %v15811_v4  ;;  %v15816_v7 = vadd.f32 %v4046_v27, %v15724_v55  ;;  %v15818_v58 = vpop.f32.mrf.mxu1 }
 0x23b   : > { %v12437_v25 = vpop.f32.mrf.mxu0 }
 0x23c   : > { %18564 = vst [vmem:[#allocation41_spill] sm:$0xff] %v15816_v7  ;;  %v15821_v20 = vadd.f32 %v12437_v25, %v15726_v62  ;;  %v15823_v1 = vpop.f32.mrf.mxu1 }
 0x23d   : > { %18566 = vst [vmem:[#allocation43_spill] sm:$0xff] %v15823_v1  ;;  %v15825_v53 = vpop.f32.mrf.mxu0 }
 0x23e   : > { %18565 = vst [vmem:[#allocation42_spill] sm:$0xff] %v15821_v20  ;;  %v15827_v42 = vpop.f32.mrf.mxu1 }
 0x23f   : > { %18567 = vst [vmem:[#allocation44_spill] sm:$0xff] %v15827_v42  ;;  %v12440_v60 = vpop.f32.mrf.mxu0 }
 0x240   : > { %v15830_v19 = vadd.f32 %v12440_v60, %v15732_v48  ;;  %v15832_v4 = vpop.f32.mrf.mxu1 }
 0x241   : > { %v4062_v55 = vpop.f32.mrf.mxu0 }
 0x242   : > { %18568 = vst [vmem:[#allocation45_spill] sm:$0xff] %v15830_v19  ;;  %v15835_v27 = vadd.f32 %v4062_v55, %v15737_v44  ;;  %v15837_v7 = vpop.f32.mrf.mxu1 }
 0x243   : > { %v12441_v62 = vpop.f32.mrf.mxu0 }
 0x244   : > { %18569 = vst [vmem:[#allocation46_spill] sm:$0xff] %v15835_v27  ;;  %v15840_v25 = vadd.f32 %v12441_v62, %v15739_v54  ;;  %v15842_v20 = vpop.f32.mrf.mxu1 }
 0x245   : > { %v15844_v1 = vpop.f32.mrf.mxu0 }
 0x246   : > { %18570 = vst [vmem:[#allocation47_spill] sm:$0xff] %v15840_v25  ;;  %18571 = vst [vmem:[#allocation48_spill] sm:$0xff] %v15844_v1  ;;  %v15846_v42 = vpop.f32.mrf.mxu1 }
 0x247   : > { %18572 = vst [vmem:[#allocation49_spill] sm:$0xff] %v15846_v42  ;;  %v12444_v48 = vpop.f32.mrf.mxu0 }
 0x248   : > { %v15849_v60 = vadd.f32 %v12444_v48, %v15745_v5  ;;  %v15851_v19 = vpop.f32.mrf.mxu1 }
 0x249   : > { %v4078_v44 = vpop.f32.mrf.mxu0 }
 0x24a   : > { %18573 = vst [vmem:[#allocation50_spill] sm:$0xff] %v15849_v60  ;;  %v15854_v55 = vadd.f32 %v4078_v44, %v15750_v49  ;;  %v15856_v27 = vpop.f32.mrf.mxu1  ;;  %v1728_v49 = vadd.f32 %v15337_v22, %v15303_v38  ;;  %v1744_v44 = vadd.f32 %v15383_v2, %v15363_v45  ;;  %v2575_v45 = vadd.f32 %v15543_v30, %v15451_v9 }
 0x24b   : > { %v12445_v54 = vpop.f32.mrf.mxu0 }
 0x24c   : > { %18574 = vst [vmem:[#allocation51_spill] sm:$0xff] %v15854_v55  ;;  %v15859_v62 = vadd.f32 %v12445_v54, %v15754_v10  ;;  %v15861_v25 = vpop.f32.mrf.mxu1  ;;  %v18579_v10 = vld [vmem:[#allocation16_spill] sm:$0xff]  ;;  %v2229_v38 = vadd.f32 %v15561_v52, %v1728_v49  ;;  %v2233_v22 = vadd.f32 %v15590_v50, %v1744_v44  ;;  %v18589_v44 = vld [vmem:[#allocation25_spill] sm:$0xff] }
 0x24d   : > { %18576 = vst [vmem:[#allocation53_spill] sm:$0xff] %v15861_v25  ;;  %v15863_v1 = vpop.f32.mrf.mxu0  ;;  %v1760_v54 = vadd.f32 %v15432_v36, %v18579_v10  ;;  %v18580_v55 = vld [vmem:[#allocation20_spill] sm:$0xff]  ;;  %v18582_v10 = vld [vmem:[#allocation21_spill] sm:$0xff] }
 0x24e   : > { %18575 = vst [vmem:[#allocation52_spill] sm:$0xff] %v15859_v62  ;;  %18577 = vst [vmem:[#allocation54_spill] sm:$0xff] %v15863_v1  ;;  %v15865_v42 = vpop.f32.mrf.mxu1  ;;  %v1776_v25 = vadd.f32 %v15468_v41, %v18580_v55  ;;  %v2579_v41 = vadd.f32 %v15577_v18, %v18582_v10  ;;  %v2587_v9 = vadd.f32 %v15628_v3, %v2229_v38  ;;  %v18591_v38 = vld [vmem:[#allocation30_spill] sm:$0xff]  ;;  %v18595_v10 = vld [vmem:[#allocation24_spill] sm:$0xff] }
 0x24f   : > { %18578 = vst [vmem:[#allocation55_spill] sm:$0xff] %v15865_v42  ;;  %v12448_v5 = vpop.f32.mrf.mxu0  ;;  %v18581_v42 = vld [vmem:[#allocation32_spill] sm:$0xff]  ;;  %v2237_v2 = vadd.f32 %v15615_v28, %v1760_v54  ;;  %v2591_v30 = vadd.f32 %v15643_v57, %v2233_v22  ;;  %v3301_v18 = vadd.f32 %v15670_v33, %v2575_v45  ;;  %v18592_v45 = vld [vmem:[#allocation17_spill] sm:$0xff] }
 0x250   : > { %v15868_v48 = vadd.f32 %v12448_v5, %v15766_v0  ;;  %v15870_v60 = vpop.f32.mrf.mxu1  ;;  %v2571_v1 = vadd.f32 %v15506_v15, %v18581_v42  ;;  %v2241_v15 = vadd.f32 %v15634_v31, %v1776_v25  ;;  %v18586_v25 = vld [vmem:[#allocation26_spill] sm:$0xff] }
 0x251   : > { %v4094_v62 = vpop.f32.mrf.mxu0  ;;  %v2595_v28 = vadd.f32 %v15662_v56, %v2237_v2  ;;  %v18590_v56 = vld [vmem:[#allocation29_spill] sm:$0xff]  ;;  %v18593_v2 = vld [vmem:[#allocation23_spill] sm:$0xff] }
 0x252   : > { %v15883_v0 = vadd.f32 %v4094_v62, %v15770_v61  ;;  %v15885_v5 = vpop.f32.mrf.mxu1  ;;  %v2583_v61 = vadd.f32 %v15608_v46, %v15529_v17  ;;  %v3297_v50 = vadd.f32 %v15653_v16, %v2571_v1  ;;  %v2599_v31 = vadd.f32 %v15677_v26, %v2241_v15  ;;  %v18584_v17 = vld [vmem:[#allocation27_spill] sm:$0xff]  ;;  %v18587_v16 = vld [vmem:[#allocation28_spill] sm:$0xff]  ;;  %v18588_v1 = vld [vmem:[#allocation14_spill] sm:$0xff] }
 0x253   : > { %v12449_v36 = vpop.f32.mrf.mxu0  ;;  %v3768_v46 = vadd.f32 %v18584_v17, %v15641_v47  ;;  %v3305_v3 = vadd.f32 %v18587_v16, %v2579_v41  ;;  %v3769_v54 = vadd.f32 %v18590_v56, %v18589_v44  ;;  %v3313_v26 = vadd.f32 %v18592_v45, %v2587_v9  ;;  %v18596_v15 = vld [vmem:[#allocation13_spill] sm:$0xff]  ;;  %v18598_v16 = vld [vmem:[#allocation15_spill] sm:$0xff]  ;;  %v18599_v44 = vld [vmem:[#allocation18_spill] sm:$0xff] }
 0x254   : > { %v15898_v42 = vadd.f32 %v12449_v36, %v15774_v35  ;;  %v15900_v52 = vpop.f32.mrf.mxu1  ;;  %v18585_v35 = vld [vmem:[#allocation22_spill] sm:$0xff]  ;;  %v3309_v57 = vadd.f32 %v18588_v1, %v2583_v61  ;;  %v3767_v22 = vadd.f32 %v18591_v38, %v3297_v50  ;;  %v18594_v36 = vld [vmem:[#allocation31_spill] sm:$0xff]  ;;  %v3770_v17 = vadd.f32 %v18596_v15, %v18595_v10  ;;  %v18600_v56 = vld [vmem:[#allocation33_spill] sm:$0xff] }
 0x255   : > { %v15906_v55 = vpop.f32.mrf.mxu0  ;;  %v3766_v62 = vadd.f32 %v18586_v25, %v18585_v35  ;;  %v3772_v47 = vadd.f32 %v18594_v36, %v18593_v2  ;;  %v18597_v61 = vld [vmem:[#allocation19_spill] sm:$0xff]  ;;  %v3771_v1 = vadd.f32 %v18598_v16, %v3301_v18  ;;  %v3775_v50 = vadd.f32 %v18599_v44, %v3305_v3  ;;  %v18601_v45 = vld [vmem:[#allocation34_spill] sm:$0xff]  ;;  %v18608_v16 = vld [vmem:[#allocation48_spill] sm:$0xff] }
 0x256   : > { %18583 = vst [vmem:[#allocation16_spill] sm:$0xff] %v15898_v42  ;;  %v15914_v49 = vpop.f32.mrf.mxu1  ;;  %v3317_v25 = vadd.f32 %v18597_v61, %v2591_v30  ;;  %v3779_v38 = vadd.f32 %v18600_v56, %v3309_v57  ;;  %v3321_v42 = vadd.f32 %v18601_v45, %v2595_v28  ;;  %v3325_v2 = vadd.f32 %v15748_v39, %v2599_v31  ;;  %v18602_v36 = vld [vmem:[#allocation35_spill] sm:$0xff] }
 0x257   : > { %v12452_v33 = vpop.f32.mrf.mxu0  ;;  %v3783_v10 = vadd.f32 %v18602_v36, %v3313_v26  ;;  %v4127_v15 = vadd.f32 %v15752_v23, %v3768_v46  ;;  %v4125_v30 = vadd.f32 %v15762_v8, %v3766_v62  ;;  %v4128_v18 = vadd.f32 %v15764_v21, %v3769_v54  ;;  %v18603_v62 = vld [vmem:[#allocation43_spill] sm:$0xff]  ;;  %v18605_v54 = vld [vmem:[#allocation44_spill] sm:$0xff]  ;;  %v18614_v36 = vld [vmem:[#allocation53_spill] sm:$0xff] }
 0x258   : > { %v15927_v35 = vadd.f32 %v12452_v33, %v15780_v59  ;;  %v15929_v41 = vpop.f32.mrf.mxu1  ;;  %v3787_v3 = vadd.f32 %v15756_v32, %v3317_v25  ;;  %v4126_v61 = vadd.f32 %v15768_v14, %v3767_v22  ;;  %v4131_v28 = vadd.f32 %v15772_v12, %v3772_v47  ;;  %v18609_v44 = vld [vmem:[#allocation39_spill] sm:$0xff] }
 0x259   : > { %v4110_v9 = vpop.f32.mrf.mxu0  ;;  %v3791_v39 = vadd.f32 %v15776_v24, %v3321_v42  ;;  %v4129_v26 = vadd.f32 %v15778_v11, %v3770_v17  ;;  %v4130_v23 = vadd.f32 %v15785_v29, %v3771_v1  ;;  %v3795_v8 = vadd.f32 %v15794_v43, %v3325_v2  ;;  %v18604_v43 = vld [vmem:[#allocation36_spill] sm:$0xff]  ;;  %v18613_v2 = vld [vmem:[#allocation41_spill] sm:$0xff] }
 0x25a   : > { %v15939_v59 = vadd.f32 %v4110_v9, %v15787_v40  ;;  %v12478_v33 = vpop.f32.mrf.mxu1  ;;  %v4853_v21 = vadd.f32 %v15799_v6, %v4127_v15  ;;  %v4134_v46 = vadd.f32 %v15806_v13, %v3775_v50  ;;  %v4851_v14 = vadd.f32 %v15804_v37, %v4125_v30  ;;  %v15971_v37 = vld [vmem:[%s18438_s2] ss:$0 sm:$0xff]  ;;  %v15973_v13 = vld [vmem:[#allocation4 + $0xf8] sm:$0xff]  }
 0x25b   : > { %v12453_v57 = vpop.f32.mrf.mxu0  ;;  %v4854_v12 = vadd.f32 %v15808_v63, %v4128_v18  ;;  %v4852_v24 = vadd.f32 %v15813_v51, %v4126_v61  ;;  %v4138_v42 = vadd.f32 %v15825_v53, %v3779_v38  ;;  %v4857_v11 = vadd.f32 %v15818_v58, %v4131_v28  ;;  %v18606_v53 = vld [vmem:[#allocation37_spill] sm:$0xff]  ;;  %v18607_v51 = vld [vmem:[#allocation38_spill] sm:$0xff]  ;;  %v18611_v38 = vld [vmem:[#allocation40_spill] sm:$0xff]  ;;  %12666 = vmatprep.subr.bf16.mxu0 %v15973_v13 }
 0x25c   : > { %v15949_v31 = vadd.f32 %v12453_v57, %v15789_v34  ;;  %v4804_v40 = vpop.f32.mrf.mxu1  ;;  %v15962_v29 = vadd.f32 %v18603_v62, %v4129_v26  ;;  %v15966_v6 = vadd.f32 %v18605_v54, %v18604_v43  ;;  %v15976_v63 = vadd.f32 %v15832_v4, %v4130_v23  ;;  %v18610_v50 = vld [vmem:[#allocation49_spill] sm:$0xff]  ;;  %v18615_v57 = vld [vmem:[#allocation42_spill] sm:$0xff] }
 0x25d   : > { %v4113_v32 = vpop.f32.mrf.mxu0  ;;  %v15980_v58 = vadd.f32 %v15837_v7, %v18606_v53  ;;  %v15984_v47 = vadd.f32 %v15842_v20, %v18607_v51  ;;  %v4142_v1 = vadd.f32 %v18608_v16, %v3783_v10  ;;  %v15989_v56 = vadd.f32 %v18610_v50, %v18609_v44  ;;  %v18612_v20 = vld [vmem:[#allocation54_spill] sm:$0xff]  ;;  %v18617_v28 = vld [vmem:[#allocation45_spill] sm:$0xff]  ;;  %v18621_v51 = vld [vmem:[#allocation51_spill] sm:$0xff] }
 0x25e   : > { %v12479_v34 = vpop.f32.mrf.mxu1  ;;  %v15992_v4 = vadd.f32 %v15851_v19, %v4134_v46  ;;  %v15996_v7 = vadd.f32 %v15856_v27, %v18611_v38  ;;  %v4146_v45 = vadd.f32 %v18612_v20, %v3787_v3  ;;  %v16002_v15 = vadd.f32 %v18614_v36, %v18613_v2  ;;  %v18616_v19 = vld [vmem:[#allocation55_spill] sm:$0xff]  ;;  %v18618_v3 = vld [vmem:[#allocation46_spill] sm:$0xff]  ;;  %v18622_v38 = vld [vmem:[#allocation52_spill] sm:$0xff] }
 0x25f   : > { %v12492_v22 = vpop.f32.mrf.mxu0  ;;  %v16007_v61 = vadd.f32 %v18616_v19, %v18615_v57  ;;  %v16010_v27 = vadd.f32 %v15870_v60, %v4138_v42  ;;  %v16014_v26 = vadd.f32 %v15885_v5, %v18617_v28  ;;  %v16018_v23 = vadd.f32 %v15900_v52, %v18618_v3  ;;  %v18620_v53 = vld [vmem:[#allocation50_spill] sm:$0xff] }
 0x260   : > { %v5323_v17 = vadd.f32 %v12492_v22, %v4853_v21  ;;  %v4807_v25 = vpop.f32.mrf.mxu1  ;;  %v4150_v46 = vadd.f32 %v15906_v55, %v3791_v39  ;;  %v18619_v22 = vld [vmem:[#allocation47_spill] sm:$0xff]  ;;  %v16027_v5 = vadd.f32 %v15929_v41, %v4142_v1  ;;  %v16030_v52 = vadd.f32 %v12478_v33, %v18620_v53 }
 0x261   : > { %v5194_v9 = vpop.f32.mrf.mxu0  ;;  %v16024_v60 = vadd.f32 %v15914_v49, %v18619_v22  ;;  %v16036_v50 = vadd.f32 %v4113_v32, %v3795_v8  ;;  %v16041_v41 = vadd.f32 %v4807_v25, %v4146_v45 }
 0x262   : > { %v5362_v10 = vadd.f32 %v15971_v37, %v5323_v17  ;;  %v5321_v30 = vadd.f32 %v5194_v9, %v4851_v14  ;;  %v12482_v18 = vpop.f32.mrf.mxu1  ;;  %v16033_v17 = vadd.f32 %v4804_v40, %v18621_v51  ;;  %v16039_v9 = vadd.f32 %v12479_v34, %v18622_v38  ;;  %v5910_v38 = vld [vmem:[#allocation3 + $0x20] sm:$0x1] }
 0x263   : > { %v12493_v21 = vpop.f32.mrf.mxu0  ;;  %v16044_v33 = vadd.f32 %v12482_v18, %v15868_v48 }
 0x264   : > { %v5394_v14 = vmax.f32 %v5362_v10, 0.0  ;;  %v5360_v62 = vadd.f32 %v15971_v37, %v5321_v30  ;;  %v5324_v43 = vadd.f32 %v12493_v21, %v4854_v12  ;;  %v4820_v54 = vpop.f32.mrf.mxu1  ;;  %v18623_v30 = vld [vmem:[#allocation16_spill] sm:$0xff] }
 0x265   : > { %v5197_v42 = vpop.f32.mrf.mxu0  ;;  %v16047_v2 = vadd.f32 %v4820_v54, %v15883_v0  ;;  %v5906_v0 = vld [vmem:[#allocation3 + $0x18] sm:$0xf] }
 0x266   : > { %v11760_v55 = vpack.c.bf16 %v5394_v14, %v5394_v14  ;;  %v5392_v39 = vmax.f32 %v5360_v62, 0.0  ;;  %v5363_v12 = vadd.f32 %v15971_v37, %v5324_v43  ;;  %v5322_v16 = vadd.f32 %v5197_v42, %v4852_v24  ;;  %v12483_v44 = vpop.f32.mrf.mxu1 }
 0x267   : > { %v12496_v49 = vpop.f32.mrf.mxu0  ;;  %v16051_v34 = vadd.f32 %v12483_v44, %v18623_v30 }
 0x268   : > { %v5592_v1 = vshrl.u32 %v11760_v55, 16  ;;  %v11758_v40 = vpack.c.bf16 %v5392_v39, %v5392_v39  ;;  %v5395_v20 = vmax.f32 %v5363_v12, 0.0  ;;  %v4823_v36 = vpop.f32.mrf.mxu1  ;;  %v5595_v24 = vshll.u32 %v11760_v55, 16  ;;  %v16064_v39 = vld [vmem:[#allocation4 + $0xb8] sm:$0xff]  }
 0x269   : > { %v5361_v8 = vadd.f32 %v15971_v37, %v5322_v16  ;;  %v5327_v32 = vadd.f32 %v12496_v49, %v4857_v11  ;;  %v5210_v10 = vpop.f32.mrf.mxu0  ;;  %v16053_v48 = vadd.f32 %v4823_v36, %v4150_v46  ;;  %v5897_v46 = vld [vmem:[#allocation3 + $0xc] sm:$0xf]  ;;  %12618 = vmatprep.subr.bf16.mxu1 %v16064_v39 }
 0x26a   : > { %v5594_v25 = vrot.slane %v5592_v1, 7  ;;  %v5575_v45 = vshrl.u32 %v11758_v40, 16  ;;  %v11761_v57 = vpack.c.bf16 %v5395_v20, %v5395_v20  ;;  %v5578_v19 = vshll.u32 %v11758_v40, 16 }
 0x26b   : > { %v5393_v28 = vmax.f32 %v5361_v8, 0.0  ;;  %v5366_v11 = vadd.f32 %v15971_v37, %v5327_v32  ;;  %v5325_v3 = vadd.f32 %v5210_v10, %v15962_v29  ;;  %v12497_v21 = vpop.f32.mrf.mxu0 }
 0x26c   : > { %v5597_v14 = vor.u32 %v5595_v24, %v5594_v25  ;;  %v5598_v62 = vrot.slane %v5594_v25, 4  ;;  %v5577_v43 = vrot.slane %v5575_v45, 7  ;;  %v5600_v54 = vshrl.u32 %v11761_v57, 16 }
 0x26d   : > { %v5603_v22 = vshll.u32 %v11761_v57, 16  ;;  %v11759_v42 = vpack.c.bf16 %v5393_v28, %v5393_v28  ;;  %v5398_v53 = vmax.f32 %v5366_v11, 0.0  ;;  %v5364_v51 = vadd.f32 %v15971_v37, %v5325_v3  ;;  %v5213_v55 = vpop.f32.mrf.mxu0 }
 0x26e   : > { %v5907_v12 = vsel %vm16057_vm2, %v5597_v14, %v5906_v0  ;;  %v5580_v16 = vor.u32 %v5578_v19, %v5577_v43  ;;  %v5581_v44 = vrot.slane %v5577_v43, 4  ;;  %v5602_v29 = vrot.slane %v5600_v54, 7  ;;  %v5903_v14 = vld [vmem:[#allocation3 + $0x14] sm:$0x1] }
 0x26f   : > { %5908 = vst [vmem:[#allocation3 + $0x18] sm:$0xf] %v5907_v12  ;;  %v5583_v1 = vshrl.u32 %v11759_v42, 16  ;;  %v5586_v40 = vshll.u32 %v11759_v42, 16  ;;  %v11764_v20 = vpack.c.bf16 %v5398_v53, %v5398_v53  ;;  %v5396_v36 = vmax.f32 %v5364_v51, 0.0  ;;  %v12500_v24 = vpop.f32.mrf.mxu0 }
 0x270   : > { %v5898_v8 = vsel %vm16057_vm2, %v5580_v16, %v5897_v46  ;;  %v5605_v32 = vor.u32 %v5603_v22, %v5602_v29  ;;  %v5607_v10 = vrot.slane %v5602_v29, 4  ;;  %v5328_v30 = vadd.f32 %v12497_v21, %v15966_v6  ;;  %v5920_v53 = vld [vmem:[#allocation3 + $0x30] sm:$0xf] }
 0x271   : > { %5899 = vst [vmem:[#allocation3 + $0xc] sm:$0xf] %v5898_v8  ;;  %v5585_v25 = vrot.slane %v5583_v1, 7  ;;  %v5626_v45 = vshrl.u32 %v11764_v20, 16  ;;  %v5629_v57 = vshll.u32 %v11764_v20, 16  ;;  %v11762_v0 = vpack.c.bf16 %v5396_v36, %v5396_v36  ;;  %v5226_v19 = vpop.f32.mrf.mxu0 }
 0x272   : > { %v5606_v11 = vsel %vm13602_vm11, %v5598_v62, %v5605_v32  ;;  %v5911_v3 = vsel %vm16070_vm3, %v5607_v10, %v5910_v38  ;;  %v5367_v43 = vadd.f32 %v15971_v37, %v5328_v30  ;;  %v5326_v54 = vadd.f32 %v5213_v55, %v15976_v63 }
 0x273   : > { %5909 = vst [vmem:[#allocation3 + $0x1c] sm:$0xf] %v5606_v11  ;;  %5912 = vst [vmem:[#allocation3 + $0x20] sm:$0x1] %v5911_v3  ;;  %v5588_v6 = vor.u32 %v5586_v40, %v5585_v25  ;;  %v5590_v21 = vrot.slane %v5585_v25, 4  ;;  %v5628_v46 = vrot.slane %v5626_v45, 7  ;;  %v12501_v42 = vpop.f32.mrf.mxu0  ;;  %v5331_v16 = vadd.f32 %v12500_v24, %v15980_v58 }
 0x274   : > { %v5609_v22 = vshrl.u32 %v11762_v0, 16  ;;  %v5612_v51 = vshll.u32 %v11762_v0, 16  ;;  %v5399_v12 = vmax.f32 %v5367_v43, 0.0  ;;  %v5365_v62 = vadd.f32 %v15971_v37, %v5326_v54  ;;  %v5913_v58 = vld [vmem:[#allocation3 + $0x24] sm:$0xf]  ;;  %v12486_v54 = vpop.f32.mrf.mxu1 }
 0x275   : > { %v5589_v29 = vsel %vm13602_vm11, %v5581_v44, %v5588_v6  ;;  %v5904_v63 = vsel %vm16070_vm3, %v5590_v21, %v5903_v14  ;;  %v5631_v55 = vor.u32 %v5629_v57, %v5628_v46  ;;  %v5632_v38 = vrot.slane %v5628_v46, 4  ;;  %v5229_v1 = vpop.f32.mrf.mxu0 }
 0x276   : > { %5900 = vst [vmem:[#allocation3 + $0x10] sm:$0xf] %v5589_v29  ;;  %5905 = vst [vmem:[#allocation3 + $0x14] sm:$0x1] %v5904_v63  ;;  %v5611_v40 = vrot.slane %v5609_v22, 7  ;;  %v11765_v20 = vpack.c.bf16 %v5399_v12, %v5399_v12  ;;  %v5397_v36 = vmax.f32 %v5365_v62, 0.0  ;;  %v5370_v8 = vadd.f32 %v15971_v37, %v5331_v16 }
 0x277   : > { %v5921_v32 = vsel %vm16057_vm2, %v5631_v55, %v5920_v53  ;;  %v5329_v24 = vadd.f32 %v5226_v19, %v15984_v47  ;;  %v5332_v44 = vadd.f32 %v12501_v42, %v15989_v56  ;;  %v5330_v10 = vadd.f32 %v5229_v1, %v15992_v4  ;;  %v12504_v30 = vpop.f32.mrf.mxu0  ;;  %v5924_v19 = vld [vmem:[#allocation3 + $0x38] sm:$0x1] }
 0x278   : > { %5922 = vst [vmem:[#allocation3 + $0x30] sm:$0xf] %v5921_v32  ;;  %v5614_v25 = vor.u32 %v5612_v51, %v5611_v40  ;;  %v5615_v45 = vrot.slane %v5611_v40, 4  ;;  %v5634_v57 = vshrl.u32 %v11765_v20, 16  ;;  %v5637_v0 = vshll.u32 %v11765_v20, 16  ;;  %v4836_v40 = vpop.f32.mrf.mxu1 }
 0x279   : > { %v11763_v11 = vpack.c.bf16 %v5397_v36, %v5397_v36  ;;  %v5402_v3 = vmax.f32 %v5370_v8, 0.0  ;;  %v5368_v14 = vadd.f32 %v15971_v37, %v5329_v24  ;;  %v5371_v43 = vadd.f32 %v15971_v37, %v5332_v44  ;;  %v5242_v6 = vpop.f32.mrf.mxu0  ;;  %v5917_v8 = vld [vmem:[#allocation3 + $0x2c] sm:$0x1] }
 0x27a   : > { %v5914_v47 = vsel %vm16057_vm2, %v5614_v25, %v5913_v58  ;;  %v5636_v56 = vrot.slane %v5634_v57, 7  ;;  %v5369_v4 = vadd.f32 %v15971_v37, %v5330_v10  ;;  %v5335_v21 = vadd.f32 %v12504_v30, %v15996_v7  ;;  %v5934_v30 = vld [vmem:[#allocation3 + $0x48] sm:$0xf] }
 0x27b   : > { %5915 = vst [vmem:[#allocation3 + $0x24] sm:$0xf] %v5914_v47  ;;  %v5617_v46 = vshrl.u32 %v11763_v11, 16  ;;  %v5620_v22 = vshll.u32 %v11763_v11, 16  ;;  %v11768_v42 = vpack.c.bf16 %v5402_v3, %v5402_v3  ;;  %v5400_v53 = vmax.f32 %v5368_v14, 0.0  ;;  %v12505_v20 = vpop.f32.mrf.mxu0 }
 0x27c   : > { %v5639_v51 = vor.u32 %v5637_v0, %v5636_v56  ;;  %v5641_v12 = vrot.slane %v5636_v56, 4  ;;  %v5403_v62 = vmax.f32 %v5371_v43, 0.0  ;;  %v5401_v16 = vmax.f32 %v5369_v4, 0.0  ;;  %v12487_v56 = vpop.f32.mrf.mxu1 }
 0x27d   : > { %v5619_v29 = vrot.slane %v5617_v46, 7  ;;  %v5660_v63 = vshrl.u32 %v11768_v42, 16  ;;  %v5663_v55 = vshll.u32 %v11768_v42, 16  ;;  %v11766_v1 = vpack.c.bf16 %v5400_v53, %v5400_v53 }
 0x27e   : > { %v5640_v36 = vsel %vm13602_vm11, %v5632_v38, %v5639_v51  ;;  %v5925_v7 = vsel %vm16070_vm3, %v5641_v12, %v5924_v19  ;;  %v11769_v32 = vpack.c.bf16 %v5403_v62, %v5403_v62  ;;  %v11767_v58 = vpack.c.bf16 %v5401_v16, %v5401_v16  ;;  %v5245_v19 = vpop.f32.mrf.mxu0  ;;  %v5927_v51 = vld [vmem:[#allocation3 + $0x3c] sm:$0xf]  ;;  %v5938_v12 = vld [vmem:[#allocation3 + $0x50] sm:$0x1] }
 0x27f   : > { %5923 = vst [vmem:[#allocation3 + $0x34] sm:$0xf] %v5640_v36  ;;  %5926 = vst [vmem:[#allocation3 + $0x38] sm:$0x1] %v5925_v7  ;;  %v5622_v24 = vor.u32 %v5620_v22, %v5619_v29  ;;  %v5624_v44 = vrot.slane %v5619_v29, 4  ;;  %v5662_v10 = vrot.slane %v5660_v63, 7  ;;  %v16114_v62 = vadd.f32 %v12486_v54, %v15927_v35 }
 0x280   : > { %v5643_v25 = vshrl.u32 %v11766_v1, 16  ;;  %v5646_v57 = vshll.u32 %v11766_v1, 16  ;;  %v5668_v0 = vshrl.u32 %v11769_v32, 16  ;;  %v5671_v11 = vshll.u32 %v11769_v32, 16  ;;  %v5931_v36 = vld [vmem:[#allocation3 + $0x44] sm:$0x1] }
 0x281   : > { %v5651_v3 = vshrl.u32 %v11767_v58, 16  ;;  %v5623_v38 = vsel %vm13602_vm11, %v5615_v45, %v5622_v24  ;;  %v5918_v14 = vsel %vm16070_vm3, %v5624_v44, %v5917_v8  ;;  %v5665_v43 = vor.u32 %v5663_v55, %v5662_v10  ;;  %v4839_v24 = vpop.f32.mrf.mxu1  ;;  %v12508_v44 = vpop.f32.mrf.mxu0 }
 0x282   : > { %v5666_v47 = vrot.slane %v5662_v10, 4  ;;  %5916 = vst [vmem:[#allocation3 + $0x28] sm:$0xf] %v5623_v38  ;;  %5919 = vst [vmem:[#allocation3 + $0x2c] sm:$0x1] %v5918_v14  ;;  %v5645_v4 = vrot.slane %v5643_v25, 7  ;;  %v5374_v45 = vadd.f32 %v15971_v37, %v5335_v21  ;;  %v5333_v16 = vadd.f32 %v5242_v6, %v16002_v15 }
 0x283   : > { %v5670_v46 = vrot.slane %v5668_v0, 7  ;;  %v5653_v22 = vrot.slane %v5651_v3, 7  ;;  %v5654_v42 = vshll.u32 %v11767_v58, 16  ;;  %v5935_v53 = vsel %vm16057_vm2, %v5665_v43, %v5934_v30 }
 0x284   : > { %5936 = vst [vmem:[#allocation3 + $0x48] sm:$0xf] %v5935_v53  ;;  %v5648_v29 = vor.u32 %v5646_v57, %v5645_v4  ;;  %v5649_v63 = vrot.slane %v5645_v4, 4  ;;  %v5406_v32 = vmax.f32 %v5374_v45, 0.0  ;;  %v5372_v58 = vadd.f32 %v15971_v37, %v5333_v16  ;;  %v6013_v57 = vld [vmem:[#allocation3 + $0xc] sm:$0xf] }
 0x285   : > { %v5673_v55 = vor.u32 %v5671_v11, %v5670_v46  ;;  %v5675_v1 = vrot.slane %v5670_v46, 4  ;;  %v5656_v7 = vor.u32 %v5654_v42, %v5653_v22  ;;  %v5658_v8 = vrot.slane %v5653_v22, 4  ;;  %v5948_v4 = vld [vmem:[#allocation3 + $0x60] sm:$0xf] }
 0x286   : > { %v5928_v21 = vsel %vm16057_vm2, %v5648_v29, %v5927_v51  ;;  %v16125_v54 = vadd.f32 %v4836_v40, %v15939_v59  ;;  %v11772_v30 = vpack.c.bf16 %v5406_v32, %v5406_v32  ;;  %v5404_v25 = vmax.f32 %v5372_v58, 0.0  ;;  %v6015_v32 = vld [vmem:[#allocation3 + $0x18] sm:$0xf]  ;;  %v13082_v58 = vld [vmem:[#allocation4 + $0xf0] sm:$0xff]  }
 0x287   : > { %v5674_v35 = vsel %vm13602_vm11, %v5666_v47, %v5673_v55  ;;  %v5939_v15 = vsel %vm16070_vm3, %v5675_v1, %v5938_v12  ;;  %5929 = vst [vmem:[#allocation3 + $0x3c] sm:$0xf] %v5928_v21  ;;  %v5657_v6 = vsel %vm13602_vm11, %v5649_v63, %v5656_v7  ;;  %v5932_v10 = vsel %vm16070_vm3, %v5658_v8, %v5931_v36  ;;  %v5258_v47 = vpop.f32.mrf.mxu0  ;;  %v5941_v55 = vld [vmem:[#allocation3 + $0x54] sm:$0xf] }
 0x288   : > { %5937 = vst [vmem:[#allocation3 + $0x4c] sm:$0xf] %v5674_v35  ;;  %5940 = vst [vmem:[#allocation3 + $0x50] sm:$0x1] %v5939_v15  ;;  %v5336_v0 = vadd.f32 %v12505_v20, %v16007_v61  ;;  %v16133_v11 = vadd.f32 %v12487_v56, %v15949_v31  ;;  %v5334_v59 = vadd.f32 %v5245_v19, %v16010_v27  ;;  %v5694_v3 = vshrl.u32 %v11772_v30, 16 }
 0x289   : > { %5930 = vst [vmem:[#allocation3 + $0x40] sm:$0xf] %v5657_v6  ;;  %5933 = vst [vmem:[#allocation3 + $0x44] sm:$0x1] %v5932_v10  ;;  %v16137_v40 = vadd.f32 %v4839_v24, %v16036_v50  ;;  %v5697_v38 = vshll.u32 %v11772_v30, 16  ;;  %v11770_v14 = vpack.c.bf16 %v5404_v25, %v5404_v25  ;;  %v5339_v43 = vadd.f32 %v12508_v44, %v16014_v26  ;;  %v16153_v63 = vpop.f32.mrf.mxu0 }
 0x28a   : > { %v5375_v46 = vadd.f32 %v15971_v37, %v5336_v0  ;;  %v5373_v22 = vadd.f32 %v15971_v37, %v5334_v59  ;;  %v6100_v61 = vshrl.u32 %v6013_v57, 16  ;;  %v6103_v20 = vshll.u32 %v6013_v57, 16  ;;  %v16145_v19 = vld [vmem:[#allocation3 + $0x10] sm:$0xf]  ;;  %v16159_v15 = vld [vmem:[#allocation3 + $0x1c] sm:$0xf] }
 0x28b   : > { %v16142_v31 = vrot.slane %v5694_v3, 7  ;;  %v5677_v56 = vshrl.u32 %v11770_v14, 16  ;;  %v5680_v27 = vshll.u32 %v11770_v14, 16  ;;  %v5378_v50 = vadd.f32 %v15971_v37, %v5339_v43  ;;  %v5945_v59 = vld [vmem:[#allocation3 + $0x5c] sm:$0x1]  ;;  %v5261_v43 = vpop.f32.mrf.mxu0 }
 0x28c   : > { %v5407_v42 = vmax.f32 %v5375_v46, 0.0  ;;  %v5405_v53 = vmax.f32 %v5373_v22, 0.0  ;;  %v16147_v51 = vrot.slane %v6100_v61, 4  ;;  %v16149_v26 = vrot.slane %v6103_v20, 5 }
 0x28d   : > { %v5699_v12 = vor.u32 %v5697_v38, %v16142_v31  ;;  %v5700_v45 = vrot.slane %v16142_v31, 4  ;;  %v5679_v16 = vrot.slane %v5677_v56, 7  ;;  %v5410_v29 = vmax.f32 %v5378_v50, 0.0  ;;  %v5962_v56 = vld [vmem:[#allocation3 + $0x78] sm:$0xf] }
 0x28e   : > { %v11773_v1 = vpack.c.bf16 %v5407_v42, %v5407_v42  ;;  %v11771_v36 = vpack.c.bf16 %v5405_v53, %v5405_v53  ;;  %v6113_v7 = vshrl.u32 %v16145_v19, 16  ;;  %v11512_v8 = vcombine.low %v6013_v57, %v16145_v19  ;;  %v5952_v57 = vld [vmem:[#allocation3 + $0x68] sm:$0x1] }
 0x28f   : > { %v5949_v24 = vsel %vm16057_vm2, %v5699_v12, %v5948_v4  ;;  %v5682_v44 = vor.u32 %v5680_v27, %v5679_v16  ;;  %v5683_v21 = vrot.slane %v5679_v16, 4  ;;  %v11776_v35 = vpack.c.bf16 %v5410_v29, %v5410_v29  ;;  %v13084_v4 = vld [vmem:[#allocation4 + $0xe8] sm:$0xff]  }
 0x290   : > { %5950 = vst [vmem:[#allocation3 + $0x60] sm:$0xf] %v5949_v24  ;;  %v5702_v6 = vshrl.u32 %v11773_v1, 16  ;;  %v5705_v10 = vshll.u32 %v11773_v1, 16  ;;  %v5685_v30 = vshrl.u32 %v11771_v36, 16  ;;  %v5688_v25 = vshll.u32 %v11771_v36, 16  ;;  %12587 = vmatmul.mubr.bf16.vlgmr.msra.gmra.mxu0 %v11512_v8 }
 0x291   : > { %v5942_v0 = vsel %vm16057_vm2, %v5682_v44, %v5941_v55  ;;  %v5728_v3 = vshrl.u32 %v11776_v35, 16  ;;  %v5731_v38 = vshll.u32 %v11776_v35, 16  ;;  %v6124_v14 = vshrl.u32 %v6015_v32, 16  ;;  %12667 = vmatpush3.bf16.msra.mxu0 %v15973_v13  ;;  %v6017_v29 = vld [vmem:[#allocation3 + $0x24] sm:$0xf]  ;;  %v12512_v44 = vpop.f32.mrf.mxu0 }
 0x292   : > { %5943 = vst [vmem:[#allocation3 + $0x54] sm:$0xf] %v5942_v0  ;;  %v5704_v46 = vrot.slane %v5702_v6, 7  ;;  %v5687_v22 = vrot.slane %v5685_v30, 7  ;;  %v6127_v61 = vshll.u32 %v6015_v32, 16  ;;  %v6137_v20 = vshrl.u32 %v16159_v15, 16  ;;  %12668 = vmatprep.subr.bf16.mxu0 %v13082_v58 }
 0x293   : > { %v16165_v31 = vrot.slane %v5728_v3, 7  ;;  %v16167_v27 = vrot.slane %v6124_v14, 4  ;;  %v11513_v50 = vcombine.low %v6015_v32, %v16159_v15  ;;  %v5337_v42 = vadd.f32 %v5258_v47, %v16018_v23  ;;  %v16171_v55 = vld [vmem:[#allocation3 + $0x28] sm:$0xf]  ;;  %v13087_v6 = vld [vmem:[#allocation4 + $0xe0] sm:$0xff]  }
 0x294   : > { %v5707_v53 = vor.u32 %v5705_v10, %v5704_v46  ;;  %v5709_v12 = vrot.slane %v5704_v46, 4  ;;  %v5690_v13 = vor.u32 %v5688_v25, %v5687_v22  ;;  %v5692_v16 = vrot.slane %v5687_v22, 4  ;;  %v6060_v46 = vld [vmem:[#allocation3 + $0x14] sm:$0x1] }
 0x295   : > { %v5733_v1 = vor.u32 %v5731_v38, %v16165_v31  ;;  %v5734_v36 = vrot.slane %v16165_v31, 4  ;;  %v16175_v8 = vrot.slane %v6127_v61, 5  ;;  %12590 = vmatprep.mubr.bf16.mxu0 %v11513_v50  ;;  %v5376_v24 = vadd.f32 %v15971_v37, %v5337_v42  ;;  %12669 = vmatpush3.bf16.msra.mxu0 %v13082_v58  ;;  %v13090_v22 = vld [vmem:[#allocation4 + $0xd8] sm:$0xff]   ;;  %v16205_v61 = vpop.f32.mrf.mxu0 }
 0x296   : > { %v5708_v23 = vsel %vm13602_vm11, %v5700_v45, %v5707_v53  ;;  %v5953_v47 = vsel %vm16070_vm3, %v5709_v12, %v5952_v57  ;;  %v5691_v32 = vsel %vm13602_vm11, %v5683_v21, %v5690_v13  ;;  %v5946_v35 = vsel %vm16070_vm3, %v5692_v16, %v5945_v59  ;;  %12670 = vmatprep.subr.bf16.mxu0 %v13084_v4 }
 0x297   : > { %5951 = vst [vmem:[#allocation3 + $0x64] sm:$0xf] %v5708_v23  ;;  %5954 = vst [vmem:[#allocation3 + $0x68] sm:$0x1] %v5953_v47  ;;  %v5963_v58 = vsel %vm16057_vm2, %v5733_v1, %v5962_v56  ;;  %v5408_v10 = vmax.f32 %v5376_v24, 0.0  ;;  %v5340_v45 = vadd.f32 %v16153_v63, %v16024_v60  ;;  %v5338_v30 = vadd.f32 %v5261_v43, %v16027_v5 }
 0x298   : > { %5944 = vst [vmem:[#allocation3 + $0x58] sm:$0xf] %v5691_v32  ;;  %5947 = vst [vmem:[#allocation3 + $0x5c] sm:$0x1] %v5946_v35  ;;  %v5343_v21 = vadd.f32 %v12512_v44, %v16030_v52  ;;  %v6148_v25 = vshrl.u32 %v6017_v29, 16  ;;  %v6151_v0 = vshll.u32 %v6017_v29, 16  ;;  %v11514_v14 = vcombine.low %v6017_v29, %v16171_v55  ;;  %v16212_v35 = vpop.f32.mrf.mxu0 }
 0x299   : > { %5964 = vst [vmem:[#allocation3 + $0x78] sm:$0xf] %v5963_v58  ;;  %v6161_v57 = vshrl.u32 %v16171_v55, 16  ;;  %v11774_v59 = vpack.c.bf16 %v5408_v10, %v5408_v10  ;;  %v5379_v3 = vadd.f32 %v15971_v37, %v5340_v45  ;;  %v5377_v38 = vadd.f32 %v15971_v37, %v5338_v30  ;;  %12671 = vmatpush3.bf16.msra.mxu0 %v13084_v4  ;;  %v16203_v43 = vld [vmem:[#allocation3 + $0x30] sm:$0xf]  ;;  %v13093_v58 = vld [vmem:[#allocation4 + $0xd0] sm:$0xff]  }
 0x29a   : > { %v5382_v60 = vadd.f32 %v15971_v37, %v5343_v21  ;;  %v16197_v5 = vrot.slane %v6148_v25, 4  ;;  %v16199_v63 = vrot.slane %v6151_v0, 5  ;;  %v6106_v52 = vor.u32 %v16149_v26, %v16147_v51  ;;  %12672 = vmatprep.subr.bf16.mxu0 %v13087_v6  ;;  %12591 = vmatmul.mubr.bf16.gmra.mxu0 %v11514_v14  ;;  %v5955_v24 = vld [vmem:[#allocation3 + $0x6c] sm:$0xf]  ;;  %v5966_v30 = vld [vmem:[#allocation3 + $0x80] sm:$0x1] }
 0x29b   : > { %v5711_v56 = vshrl.u32 %v11774_v59, 16  ;;  %v5714_v50 = vshll.u32 %v11774_v59, 16  ;;  %v5411_v42 = vmax.f32 %v5379_v3, 0.0  ;;  %v5409_v53 = vmax.f32 %v5377_v38, 0.0  ;;  %v5959_v38 = vld [vmem:[#allocation3 + $0x74] sm:$0x1] }
 0x29c   : > { %v5414_v4 = vmax.f32 %v5382_v60, 0.0  ;;  %v6107_v12 = vrot.slane %v6106_v52, 4  ;;  %v6109_v13 = vshll.u32 %v16145_v19, 16  ;;  %v6115_v16 = vrot.slane %v6113_v7, 4  ;;  %v5976_v14 = vld [vmem:[#allocation3 + $0x90] sm:$0xf] }
 0x29d   : > { %v5713_v29 = vrot.slane %v5711_v56, 7  ;;  %v11777_v1 = vpack.c.bf16 %v5411_v42, %v5411_v42  ;;  %v11775_v51 = vpack.c.bf16 %v5409_v53, %v5409_v53  ;;  %v6119_v26 = vshll.u32 %v6060_v46, 16  ;;  %12673 = vmatpush3.bf16.msra.mxu0 %v13087_v6  ;;  %v16218_v56 = vld [vmem:[#allocation3 + $0x34] sm:$0xf] }
 0x29e   : > { %v11780_v44 = vpack.c.bf16 %v5414_v4, %v5414_v4  ;;  %v6111_v23 = vrot.slane %v6109_v13, 5  ;;  %v6172_v47 = vshrl.u32 %v16203_v43, 16  ;;  %v6175_v32 = vshll.u32 %v16203_v43, 16  ;;  %12674 = vmatprep.subr.bf16.mxu0 %v13090_v22 }
 0x29f   : > { %v5716_v10 = vor.u32 %v5714_v50, %v5713_v29  ;;  %v5717_v45 = vrot.slane %v5713_v29, 4  ;;  %v5736_v19 = vshrl.u32 %v11777_v1, 16  ;;  %v5739_v7 = vshll.u32 %v11777_v1, 16  ;;  %v13096_v50 = vld [vmem:[#allocation4 + $0xc8] sm:$0xff]   ;;  %v5277_v29 = vpop.f32.mrf.mxu0 }
 0x2a0   : > { %v5719_v21 = vshrl.u32 %v11775_v51, 16  ;;  %v5722_v25 = vshll.u32 %v11775_v51, 16  ;;  %v5762_v0 = vshrl.u32 %v11780_v44, 16  ;;  %v5765_v6 = vshll.u32 %v11780_v44, 16 }
 0x2a1   : > { %v5956_v59 = vsel %vm16057_vm2, %v5716_v10, %v5955_v24  ;;  %v5738_v3 = vrot.slane %v5736_v19, 7  ;;  %v6112_v60 = vsel %vm13595_vm10, %v6107_v12, %v6111_v23  ;;  %v6116_v52 = vor.u32 %v6115_v16, %v6111_v23  ;;  %12675 = vmatpush3.bf16.msra.mxu0 %v13090_v22  ;;  %v6061_v19 = vld [vmem:[#allocation3 + $0x20] sm:$0x1] }
 0x2a2   : > { %5957 = vst [vmem:[#allocation3 + $0x6c] sm:$0xf] %v5956_v59  ;;  %v5721_v42 = vrot.slane %v5719_v21, 7  ;;  %v16220_v53 = vrot.slane %v5762_v0, 7  ;;  %v6121_v4 = vrot.slane %v6119_v26, 5  ;;  %v16222_v13 = vrot.slane %v6172_v47, 4  ;;  %12676 = vmatprep.subr.bf16.mxu0 %v13093_v58 }
 0x2a3   : > { %v5741_v1 = vor.u32 %v5739_v7, %v5738_v3  ;;  %v5743_v51 = vrot.slane %v5738_v3, 4  ;;  %v6117_v24 = vrot.slane %v6116_v52, 4  ;;  %v16224_v44 = vrot.slane %v6175_v32, 5  ;;  %v13088_v0 = vld [vmem:[#allocation4 + $0xb0] sm:$0xff]   ;;  %v13099_v3 = vld [vmem:[#allocation4 + $0xc0] sm:$0xff]  }
 0x2a4   : > { %v5724_v12 = vor.u32 %v5722_v25, %v5721_v42  ;;  %v5726_v16 = vrot.slane %v5721_v42, 4  ;;  %v5767_v23 = vor.u32 %v5765_v6, %v16220_v53  ;;  %v5768_v22 = vrot.slane %v16220_v53, 4  ;;  %v16243_v25 = vld [vmem:[#allocation3 + $0x3c] sm:$0xf] }
 0x2a5   : > { %v5742_v26 = vsel %vm13602_vm11, %v5734_v36, %v5741_v1  ;;  %v5967_v47 = vsel %vm16070_vm3, %v5743_v51, %v5966_v30  ;;  %v6122_v10 = vsel %vm13595_vm10, %v6117_v24, %v6121_v4  ;;  %v6185_v32 = vshrl.u32 %v16218_v56, 16  ;;  %12677 = vmatpush3.bf16.msra.mxu0 %v13093_v58  ;;  %v12516_v30 = vpop.f32.mrf.mxu0 }
 0x2a6   : > { %5965 = vst [vmem:[#allocation3 + $0x7c] sm:$0xf] %v5742_v26  ;;  %5968 = vst [vmem:[#allocation3 + $0x80] sm:$0x1] %v5967_v47  ;;  %v5725_v7 = vsel %vm13602_vm11, %v5717_v45, %v5724_v12  ;;  %v5960_v31 = vsel %vm16070_vm3, %v5726_v16, %v5959_v38  ;;  %v5977_v36 = vsel %vm16057_vm2, %v5767_v23, %v5976_v14  ;;  %12678 = vmatprep.subr.bf16.mxu0 %v13096_v50 }
 0x2a7   : > { %v11488_v21 = vcombine.low %v6112_v60, %v6122_v10  ;;  %5958 = vst [vmem:[#allocation3 + $0x70] sm:$0xf] %v5725_v7  ;;  %5961 = vst [vmem:[#allocation3 + $0x74] sm:$0x1] %v5960_v31  ;;  %v11515_v58 = vcombine.low %v16203_v43, %v16218_v56  ;;  %v5341_v45 = vadd.f32 %v16205_v61, %v16033_v17  ;;  %v6133_v59 = vshll.u32 %v16159_v15, 16  ;;  %v16278_v7 = vpop.f32.mrf.mxu0  ;;  %v13094_v31 = vld [vmem:[#allocation4 + $0xa0] sm:$0xff]  }
 0x2a8   : > { %5978 = vst [vmem:[#allocation3 + $0x90] sm:$0xf] %v5977_v36  ;;  %v6130_v6 = vor.u32 %v16175_v8, %v16167_v27  ;;  %v6139_v38 = vrot.slane %v6137_v20, 4  ;;  %v6143_v14 = vshll.u32 %v6061_v19, 16  ;;  %v5344_v60 = vadd.f32 %v16212_v35, %v16039_v9  ;;  %v16262_v20 = vld [vmem:[#allocation3 + $0x40] sm:$0xf] }
 0x2a9   : > { %12539 = vmatmul.mubr.bf16.vlgmr.msra.gmra.mxu1 %v11488_v21  ;;  %v5342_v52 = vadd.f32 %v5277_v29, %v16041_v41  ;;  %12594 = vmatprep.mubr.bf16.mxu0 %v11515_v58  ;;  %v5380_v43 = vadd.f32 %v15971_v37, %v5341_v45  ;;  %v6135_v61 = vrot.slane %v6133_v59, 5  ;;  %v5347_v27 = vadd.f32 %v12516_v30, %v16044_v33  ;;  %v13092_v41 = vld [vmem:[#allocation4 + $0xa8] sm:$0xff]  }
 0x2aa   : > { %v6131_v17 = vrot.slane %v6130_v6, 4  ;;  %12619 = vmatpush3.bf16.msra.mxu1 %v16064_v39  ;;  %v6145_v8 = vrot.slane %v6143_v14, 5  ;;  %v5383_v42 = vadd.f32 %v15971_v37, %v5344_v60  ;;  %v6196_v9 = vshrl.u32 %v16243_v25, 16  ;;  %12679 = vmatpush3.bf16.msra.mxu0 %v13096_v50  ;;  %v16268_v39 = vld [vmem:[#allocation4 + $0x178] sm:$0xff]   ;;  %v5980_v14 = vld [vmem:[#allocation3 + $0x98] sm:$0x1] }
 0x2ab   : > { %v5381_v15 = vadd.f32 %v15971_v37, %v5342_v52  ;;  %12620 = vmatprep.subr.bf16.mxu1 %v13088_v0  ;;  %v5412_v35 = vmax.f32 %v5380_v43, 0.0  ;;  %v6140_v29 = vor.u32 %v6139_v38, %v6135_v61  ;;  %v5386_v33 = vadd.f32 %v15971_v37, %v5347_v27  ;;  %12680 = vmatprep.subr.bf16.mxu0 %v13099_v3  ;;  %v5973_v52 = vld [vmem:[#allocation3 + $0x8c] sm:$0x1] }
 0x2ac   : > { %v6136_v4 = vsel %vm13595_vm10, %v6131_v17, %v6135_v61  ;;  %v5415_v1 = vmax.f32 %v5383_v42, 0.0  ;;  %v16270_v24 = vrot.slane %v6196_v9, 4  ;;  %v6199_v12 = vshll.u32 %v16243_v25, 16  ;;  %v12517_v42 = vpop.f32.mrf.mxu0 }
 0x2ad   : > { %v5413_v51 = vmax.f32 %v5381_v15, 0.0  ;;  %v11778_v16 = vpack.c.bf16 %v5412_v35, %v5412_v35  ;;  %v6141_v23 = vrot.slane %v6140_v29, 4  ;;  %v5418_v26 = vmax.f32 %v5386_v33, 0.0  ;;  %v13097_v15 = vld [vmem:[#allocation4 + $0x98] sm:$0xff]   ;;  %v5990_v29 = vld [vmem:[#allocation3 + $0xa8] sm:$0xf] }
 0x2ae   : > { %v6209_v50 = vshrl.u32 %v16262_v20, 16  ;;  %12621 = vmatpush3.bf16.msra.mxu1 %v13088_v0  ;;  %v11781_v47 = vpack.c.bf16 %v5415_v1, %v5415_v1  ;;  %v16274_v19 = vrot.slane %v6199_v12, 5  ;;  %v11516_v37 = vcombine.low %v16243_v25, %v16262_v20  ;;  %12681 = vmatpush3.bf16.msra.mxu0 %v13099_v3  ;;  %v5969_v0 = vld [vmem:[#allocation3 + $0x84] sm:$0xf] }
 0x2af   : > { %v11779_v10 = vpack.c.bf16 %v5413_v51, %v5413_v51  ;;  %12622 = vmatprep.subr.bf16.mxu1 %v13092_v41  ;;  %v5745_v36 = vshrl.u32 %v11778_v16, 16  ;;  %v5748_v21 = vshll.u32 %v11778_v16, 16  ;;  %v6146_v30 = vsel %vm13595_vm10, %v6141_v23, %v6145_v8  ;;  %12762 = vmatprep.subr.bf16.mxu0 %v16268_v39  ;;  %v16290_v16 = vld [vmem:[#allocation3 + $0x2c] sm:$0x1] }
 0x2b0   : > { %v11784_v58 = vpack.c.bf16 %v5418_v26, %v5418_v26  ;;  %v11489_v45 = vcombine.low %v6136_v4, %v6146_v30  ;;  %v5770_v6 = vshrl.u32 %v11781_v47, 16  ;;  %v5773_v59 = vshll.u32 %v11781_v47, 16  ;;  %12595 = vmatmul.mubr.bf16.gmra.mxu0 %v11516_v37  ;;  %v13100_v30 = vld [vmem:[#allocation4 + $0x90] sm:$0xff]  }
 0x2b1   : > { %v5753_v38 = vshrl.u32 %v11779_v10, 16  ;;  %v5747_v25 = vrot.slane %v5745_v36, 7  ;;  %v5756_v60 = vshll.u32 %v11779_v10, 16  ;;  %v6154_v27 = vor.u32 %v16199_v63, %v16197_v5  ;;  %v6023_v5 = vld [vmem:[#allocation3 + $0x48] sm:$0xf] }
 0x2b2   : > { %v5796_v43 = vshrl.u32 %v11784_v58, 16  ;;  %v5799_v3 = vshll.u32 %v11784_v58, 16  ;;  %12623 = vmatpush3.bf16.msra.mxu1 %v13092_v41  ;;  %12542 = vmatprep.mubr.bf16.mxu1 %v11489_v45  ;;  %v5772_v17 = vrot.slane %v5770_v6, 7  ;;  %v6157_v8 = vshll.u32 %v16171_v55, 16  ;;  %v16296_v10 = vld [vmem:[#allocation3 + $0x4c] sm:$0xf] }
 0x2b3   : > { %v5755_v61 = vrot.slane %v5753_v38, 7  ;;  %12624 = vmatprep.subr.bf16.mxu1 %v13094_v31  ;;  %v5750_v9 = vor.u32 %v5748_v21, %v5747_v25  ;;  %v5751_v35 = vrot.slane %v5747_v25, 4  ;;  %v6163_v33 = vrot.slane %v6161_v57, 4  ;;  %v5293_v21 = vpop.f32.mrf.mxu0  ;;  %v16315_v38 = vld [vmem:[#allocation3 + $0x38] sm:$0x1] }
 0x2b4   : > { %v16286_v4 = vrot.slane %v5796_v43, 7  ;;  %v5775_v41 = vor.u32 %v5773_v59, %v5772_v17  ;;  %v5777_v1 = vrot.slane %v5772_v17, 4  ;;  %v6155_v47 = vrot.slane %v6154_v27, 4  ;;  %v13102_v27 = vld [vmem:[#allocation4 + $0x88] sm:$0xff]  }
 0x2b5   : > { %v5758_v51 = vor.u32 %v5756_v60, %v5755_v61  ;;  %v5760_v12 = vrot.slane %v5755_v61, 4  ;;  %v5970_v63 = vsel %vm16057_vm2, %v5750_v9, %v5969_v0  ;;  %v6220_v58 = vshrl.u32 %v6023_v5, 16  ;;  %v12520_v61 = vpop.f32.mrf.mxu0 }
 0x2b6   : > { %v5801_v23 = vor.u32 %v5799_v3, %v16286_v4  ;;  %v5802_v26 = vrot.slane %v16286_v4, 4  ;;  %12625 = vmatpush3.bf16.msra.mxu1 %v13094_v31  ;;  %5971 = vst [vmem:[#allocation3 + $0x84] sm:$0xf] %v5970_v63  ;;  %v5776_v55 = vsel %vm13602_vm11, %v5768_v22, %v5775_v41  ;;  %v5981_v57 = vsel %vm16070_vm3, %v5777_v1, %v5980_v14  ;;  %v16326_v3 = vld [vmem:[%s18438_s2] ss:$0 sm:$0xff]  ;;  %v13104_v63 = vld [vmem:[#allocation4 + $0x80] sm:$0xff]  }
 0x2b7   : > { %v5759_v37 = vsel %vm13602_vm11, %v5751_v35, %v5758_v51  ;;  %v5974_v36 = vsel %vm16070_vm3, %v5760_v12, %v5973_v52  ;;  %12626 = vmatprep.subr.bf16.mxu1 %v13097_v15  ;;  %5979 = vst [vmem:[#allocation3 + $0x94] sm:$0xf] %v5776_v55  ;;  %5982 = vst [vmem:[#allocation3 + $0x98] sm:$0x1] %v5981_v57  ;;  %v6159_v22 = vrot.slane %v6157_v8, 5  ;;  %v6167_v31 = vshll.u32 %v16290_v16, 16 }
 0x2b8   : > { %5972 = vst [vmem:[#allocation3 + $0x88] sm:$0xf] %v5759_v37  ;;  %5975 = vst [vmem:[#allocation3 + $0x8c] sm:$0x1] %v5974_v36  ;;  %v5991_v53 = vsel %vm16057_vm2, %v5801_v23, %v5990_v29  ;;  %v6223_v0 = vshll.u32 %v6023_v5, 16  ;;  %v6233_v45 = vshrl.u32 %v16296_v10, 16  ;;  %v11517_v6 = vcombine.low %v6023_v5, %v16296_v10 }
 0x2b9   : > { %5992 = vst [vmem:[#allocation3 + $0xa8] sm:$0xf] %v5991_v53  ;;  %v5345_v59 = vadd.f32 %v16278_v7, %v16047_v2  ;;  %v6160_v25 = vsel %vm13595_vm10, %v6155_v47, %v6159_v22  ;;  %v6164_v14 = vor.u32 %v6163_v33, %v6159_v22  ;;  %v6169_v60 = vrot.slane %v6167_v31, 5  ;;  %v6025_v51 = vld [vmem:[#allocation3 + $0x54] sm:$0xf] }
 0x2ba   : > { %v16319_v52 = vrot.slane %v6220_v58, 4  ;;  %12627 = vmatpush3.bf16.msra.mxu1 %v13097_v15  ;;  %v16321_v43 = vrot.slane %v6223_v0, 5  ;;  %12598 = vmatprep.mubr.bf16.mxu0 %v11517_v6  ;;  %v6178_v7 = vor.u32 %v16224_v44, %v16222_v13  ;;  %v6181_v17 = vshll.u32 %v16218_v56, 16  ;;  %v16345_v55 = vld [vmem:[#allocation3 + $0x58] sm:$0xf] }
 0x2bb   : > { %v5384_v2 = vadd.f32 %v16326_v3, %v5345_v59  ;;  %12628 = vmatprep.subr.bf16.mxu1 %v13100_v30  ;;  %v6165_v8 = vrot.slane %v6164_v14, 4  ;;  %v6187_v15 = vrot.slane %v6185_v32, 4  ;;  %v6191_v9 = vshll.u32 %v16315_v38, 16  ;;  %v5983_v14 = vld [vmem:[#allocation3 + $0x9c] sm:$0xf] }
 0x2bc   : > { %v5348_v35 = vadd.f32 %v12517_v42, %v16051_v34  ;;  %v6179_v33 = vrot.slane %v6178_v7, 4  ;;  %v6183_v41 = vrot.slane %v6181_v17, 5  ;;  %v5346_v1 = vadd.f32 %v5293_v21, %v16053_v48 }
 0x2bd   : > { %v5416_v29 = vmax.f32 %v5384_v2, 0.0  ;;  %v6170_v13 = vsel %vm13595_vm10, %v6165_v8, %v6169_v60  ;;  %v6193_v44 = vrot.slane %v6191_v9, 5  ;;  %v5351_v5 = vadd.f32 %v12520_v61, %v16114_v62 }
 0x2be   : > { %v5387_v12 = vadd.f32 %v16326_v3, %v5348_v35  ;;  %12629 = vmatpush3.bf16.msra.mxu1 %v13100_v30  ;;  %v11490_v56 = vcombine.low %v6160_v25, %v6170_v13  ;;  %v6184_v34 = vsel %vm13595_vm10, %v6179_v33, %v6183_v41  ;;  %v6188_v42 = vor.u32 %v6187_v15, %v6183_v41  ;;  %v16354_v25 = vld [vmem:[#allocation4 + $0x138] sm:$0xff]   ;;  %v16357_v33 = vld [vmem:[#allocation3 + $0x44] sm:$0x1] }
 0x2bf   : > { %v11782_v32 = vpack.c.bf16 %v5416_v29, %v5416_v29  ;;  %12630 = vmatprep.subr.bf16.mxu1 %v13102_v27  ;;  %v5385_v48 = vadd.f32 %v16326_v3, %v5346_v1  ;;  %v5390_v47 = vadd.f32 %v16326_v3, %v5351_v5  ;;  %v6244_v57 = vshrl.u32 %v6025_v51, 16  ;;  %v5306_v1 = vpop.f32.mrf.mxu0 }
 0x2c0   : > { %v5419_v23 = vmax.f32 %v5387_v12, 0.0  ;;  %12543 = vmatmul.mubr.bf16.gmra.mxu1 %v11490_v56  ;;  %v6189_v36 = vrot.slane %v6188_v42, 4  ;;  %v6247_v21 = vshll.u32 %v6025_v51, 16  ;;  %v6257_v59 = vshrl.u32 %v16345_v55, 16  ;;  %v5987_v42 = vld [vmem:[#allocation3 + $0xa4] sm:$0x1] }
 0x2c1   : > { %v5779_v37 = vshrl.u32 %v11782_v32, 16  ;;  %v5782_v62 = vshll.u32 %v11782_v32, 16  ;;  %v5417_v53 = vmax.f32 %v5385_v48, 0.0  ;;  %v5422_v22 = vmax.f32 %v5390_v47, 0.0  ;;  %v6027_v47 = vld [vmem:[#allocation3 + $0x60] sm:$0xf] }
 0x2c2   : > { %v11785_v30 = vpack.c.bf16 %v5419_v23, %v5419_v23  ;;  %v16347_v31 = vrot.slane %v6244_v57, 4  ;;  %12631 = vmatpush3.bf16.msra.mxu1 %v13102_v27  ;;  %v6194_v0 = vsel %vm13595_vm10, %v6189_v36, %v6193_v44  ;;  %v16351_v6 = vrot.slane %v6247_v21, 5  ;;  %v5994_v44 = vld [vmem:[#allocation3 + $0xb0] sm:$0x1]  ;;  %v6004_v21 = vld [vmem:[#allocation3 + $0xc0] sm:$0xf] }
 0x2c3   : > { %v5781_v58 = vrot.slane %v5779_v37, 7  ;;  %12632 = vmatprep.subr.bf16.mxu1 %v13104_v63  ;;  %v11491_v60 = vcombine.low %v6184_v34, %v6194_v0  ;;  %v11783_v17 = vpack.c.bf16 %v5417_v53, %v5417_v53  ;;  %v11788_v15 = vpack.c.bf16 %v5422_v22, %v5422_v22  ;;  %v12521_v53 = vpop.f32.mrf.mxu0 }
 0x2c4   : > { %v5804_v2 = vshrl.u32 %v11785_v30, 16  ;;  %v5807_v7 = vshll.u32 %v11785_v30, 16  ;;  %v11518_v27 = vcombine.low %v6025_v51, %v16345_v55  ;;  %v6202_v41 = vor.u32 %v16274_v19, %v16270_v24  ;;  %v16376_v30 = vld [vmem:[#allocation3 + $0x64] sm:$0xf] }
 0x2c5   : > { %v5784_v61 = vor.u32 %v5782_v62, %v5781_v58  ;;  %v5785_v8 = vrot.slane %v5781_v58, 4  ;;  %12546 = vmatprep.mubr.bf16.mxu1 %v11491_v60  ;;  %v5787_v35 = vshrl.u32 %v11783_v17, 16  ;;  %v5790_v29 = vshll.u32 %v11783_v17, 16 }
 0x2c6   : > { %v5806_v9 = vrot.slane %v5804_v2, 7  ;;  %12633 = vmatpush3.bf16.msra.mxu1 %v13104_v63  ;;  %v5830_v12 = vshrl.u32 %v11788_v15, 16  ;;  %v5833_v5 = vshll.u32 %v11788_v15, 16  ;;  %12599 = vmatmul.mubr.bf16.gmra.mxu0 %v11518_v27  ;;  %v6205_v51 = vshll.u32 %v16262_v20, 16 }
 0x2c7   : > { %v5984_v13 = vsel %vm16057_vm2, %v5784_v61, %v5983_v14  ;;  %12714 = vmatprep.subr.bf16.mxu1 %v16354_v25  ;;  %v5789_v34 = vrot.slane %v5787_v35, 7  ;;  %v6203_v23 = vrot.slane %v6202_v41, 4  ;;  %v6211_v63 = vrot.slane %v6209_v50, 4  ;;  %v16389_v61 = vld [vmem:[#allocation3 + $0x50] sm:$0x1]  ;;  %v5309_v35 = vpop.f32.mrf.mxu0 }
 0x2c8   : > { %5985 = vst [vmem:[#allocation3 + $0x9c] sm:$0xf] %v5984_v13  ;;  %v5809_v56 = vor.u32 %v5807_v7, %v5806_v9  ;;  %v5811_v32 = vrot.slane %v5806_v9, 4  ;;  %v16365_v24 = vrot.slane %v5830_v12, 7  ;;  %v6207_v19 = vrot.slane %v6205_v51, 5 }
 0x2c9   : > { %v6215_v48 = vshll.u32 %v16357_v33, 16  ;;  %v5792_v62 = vor.u32 %v5790_v29, %v5789_v34  ;;  %v5794_v36 = vrot.slane %v5789_v34, 4  ;;  %v6268_v14 = vshrl.u32 %v6027_v47, 16  ;;  %v6029_v29 = vld [vmem:[#allocation3 + $0x6c] sm:$0xf] }
 0x2ca   : > { %v5810_v57 = vsel %vm13602_vm11, %v5802_v26, %v5809_v56  ;;  %v5995_v37 = vsel %vm16070_vm3, %v5811_v32, %v5994_v44  ;;  %v5835_v20 = vor.u32 %v5833_v5, %v16365_v24  ;;  %v5836_v50 = vrot.slane %v16365_v24, 4  ;;  %v16404_v5 = vld [vmem:[#allocation3 + $0x70] sm:$0xf] }
 0x2cb   : > { %5993 = vst [vmem:[#allocation3 + $0xac] sm:$0xf] %v5810_v57  ;;  %5996 = vst [vmem:[#allocation3 + $0xb0] sm:$0x1] %v5995_v37  ;;  %v6208_v4 = vsel %vm13595_vm10, %v6203_v23, %v6207_v19  ;;  %v6212_v22 = vor.u32 %v6211_v63, %v6207_v19  ;;  %v5793_v26 = vsel %vm13602_vm11, %v5785_v8, %v5792_v62  ;;  %v6217_v0 = vrot.slane %v6215_v48, 5 }
 0x2cc   : > { %v5988_v58 = vsel %vm16070_vm3, %v5794_v36, %v5987_v42  ;;  %5986 = vst [vmem:[#allocation3 + $0xa0] sm:$0xf] %v5793_v26  ;;  %v6005_v60 = vsel %vm16057_vm2, %v5835_v20, %v6004_v21  ;;  %v6271_v7 = vshll.u32 %v6027_v47, 16  ;;  %v6281_v17 = vshrl.u32 %v16376_v30, 16  ;;  %v16420_v36 = vld [vmem:[#allocation3 + $0x5c] sm:$0x1] }
 0x2cd   : > { %5989 = vst [vmem:[#allocation3 + $0xa4] sm:$0x1] %v5988_v58  ;;  %v6213_v2 = vrot.slane %v6212_v22, 4  ;;  %6006 = vst [vmem:[#allocation3 + $0xc0] sm:$0xf] %v6005_v60  ;;  %v16391_v15 = vrot.slane %v6268_v14, 4  ;;  %v11519_v8 = vcombine.low %v6027_v47, %v16376_v30  ;;  %v5349_v27 = vadd.f32 %v5306_v1, %v16125_v54 }
 0x2ce   : > { %v6226_v9 = vor.u32 %v16321_v43, %v16319_v52  ;;  %v16399_v13 = vrot.slane %v6271_v7, 5  ;;  %v6229_v44 = vshll.u32 %v16296_v10, 16  ;;  %v6235_v12 = vrot.slane %v6233_v45, 4 }
 0x2cf   : > { %v6218_v41 = vsel %vm13595_vm10, %v6213_v2, %v6217_v0  ;;  %12602 = vmatprep.mubr.bf16.mxu0 %v11519_v8  ;;  %v5388_v54 = vadd.f32 %v16326_v3, %v5349_v27  ;;  %v6239_v52 = vshll.u32 %v16389_v61, 16  ;;  %v5352_v56 = vadd.f32 %v12521_v53, %v16133_v11  ;;  %v5997_v0 = vld [vmem:[#allocation3 + $0xb4] sm:$0xf] }
 0x2d0   : > { %v11492_v51 = vcombine.low %v6208_v4, %v6218_v41  ;;  %v6227_v1 = vrot.slane %v6226_v9, 4  ;;  %v6231_v43 = vrot.slane %v6229_v44, 5  ;;  %v5350_v32 = vadd.f32 %v5309_v35, %v16137_v40 }
 0x2d1   : > { %v6292_v34 = vshrl.u32 %v6029_v29, 16  ;;  %v5420_v42 = vmax.f32 %v5388_v54, 0.0  ;;  %v6241_v23 = vrot.slane %v6239_v52, 5  ;;  %v6295_v19 = vshll.u32 %v6029_v29, 16  ;;  %v6008_v54 = vld [vmem:[#allocation3 + $0xc8] sm:$0x1] }
 0x2d2   : > { %12547 = vmatmul.mubr.bf16.gmra.mxu1 %v11492_v51  ;;  %v6305_v45 = vshrl.u32 %v16404_v5, 16  ;;  %v6232_v63 = vsel %vm13595_vm10, %v6227_v1, %v6231_v43  ;;  %v6236_v48 = vor.u32 %v6235_v12, %v6231_v43  ;;  %v5391_v47 = vadd.f32 %v16326_v3, %v5352_v56  ;;  %v16430_v12 = vld [vmem:[#allocation3 + $0x7c] sm:$0xf] }
 0x2d3   : > { %v5389_v57 = vadd.f32 %v16326_v3, %v5350_v32  ;;  %v11786_v37 = vpack.c.bf16 %v5420_v42, %v5420_v42  ;;  %v16415_v62 = vrot.slane %v6292_v34, 4  ;;  %v16417_v11 = vrot.slane %v6295_v19, 5 }
 0x2d4   : > { %v11520_v40 = vcombine.low %v6029_v29, %v16404_v5  ;;  %v6237_v21 = vrot.slane %v6236_v48, 4  ;;  %v5423_v53 = vmax.f32 %v5391_v47, 0.0  ;;  %v6250_v4 = vor.u32 %v16351_v6, %v16347_v31  ;;  %v6031_v6 = vld [vmem:[#allocation3 + $0x78] sm:$0xf] }
 0x2d5   : > { %v5421_v20 = vmax.f32 %v5389_v57, 0.0  ;;  %v5813_v22 = vshrl.u32 %v11786_v37, 16  ;;  %v5816_v26 = vshll.u32 %v11786_v37, 16  ;;  %v6253_v3 = vshll.u32 %v16345_v55, 16 }
 0x2d6   : > { %12603 = vmatmul.mubr.bf16.gmra.mxu0 %v11520_v40  ;;  %v6259_v58 = vrot.slane %v6257_v59, 4  ;;  %v6242_v14 = vsel %vm13595_vm10, %v6237_v21, %v6241_v23  ;;  %v11789_v60 = vpack.c.bf16 %v5423_v53, %v5423_v53  ;;  %v6251_v7 = vrot.slane %v6250_v4, 4  ;;  %v6001_v23 = vld [vmem:[#allocation3 + $0xbc] sm:$0x1]  ;;  %v16437_v21 = vld [vmem:[#allocation3 + $0x68] sm:$0x1] }
 0x2d7   : > { %v11787_v2 = vpack.c.bf16 %v5421_v20, %v5421_v20  ;;  %v5815_v8 = vrot.slane %v5813_v22, 7  ;;  %v11493_v27 = vcombine.low %v6232_v63, %v6242_v14  ;;  %v6255_v9 = vrot.slane %v6253_v3, 5  ;;  %v6033_v22 = vld [vmem:[#allocation3 + $0x84] sm:$0xf] }
 0x2d8   : > { %v6263_v31 = vshll.u32 %v16420_v36, 16  ;;  %v5838_v35 = vshrl.u32 %v11789_v60, 16  ;;  %v5841_v29 = vshll.u32 %v11789_v60, 16  ;;  %v6316_v34 = vshrl.u32 %v6031_v6, 16 }
 0x2d9   : > { %v5821_v41 = vshrl.u32 %v11787_v2, 16  ;;  %v5824_v44 = vshll.u32 %v11787_v2, 16  ;;  %v5818_v59 = vor.u32 %v5816_v26, %v5815_v8  ;;  %v5819_v51 = vrot.slane %v5815_v8, 4  ;;  %12550 = vmatprep.mubr.bf16.mxu1 %v11493_v27  ;;  %v16442_v26 = vld [vmem:[#allocation3 + $0x88] sm:$0xf] }
 0x2da   : > { %v6256_v1 = vsel %vm13595_vm10, %v6251_v7, %v6255_v9  ;;  %v6260_v52 = vor.u32 %v6259_v58, %v6255_v9  ;;  %v5840_v43 = vrot.slane %v5838_v35, 7  ;;  %v6265_v32 = vrot.slane %v6263_v31, 5  ;;  %v16459_v7 = vld [vmem:[#allocation3 + $0x74] sm:$0x1]  ;;  %v6035_v9 = vld [vmem:[#allocation3 + $0x90] sm:$0xf] }
 0x2db   : > { %v5823_v56 = vrot.slane %v5821_v41, 7  ;;  %v5998_v42 = vsel %vm16057_vm2, %v5818_v59, %v5997_v0  ;;  %v6319_v63 = vshll.u32 %v6031_v6, 16  ;;  %v6329_v48 = vshrl.u32 %v16430_v12, 16 }
 0x2dc   : > { %v6261_v19 = vrot.slane %v6260_v52, 4  ;;  %5999 = vst [vmem:[#allocation3 + $0xb4] sm:$0xf] %v5998_v42  ;;  %v5843_v47 = vor.u32 %v5841_v29, %v5840_v43  ;;  %v5845_v57 = vrot.slane %v5840_v43, 4  ;;  %v6318_v20 = vrot.slane %v6316_v34, 4 }
 0x2dd   : > { %v5826_v37 = vor.u32 %v5824_v44, %v5823_v56  ;;  %v5828_v40 = vrot.slane %v5823_v56, 4  ;;  %v6321_v4 = vrot.slane %v6319_v63, 5  ;;  %v11521_v18 = vcombine.low %v6031_v6, %v16430_v12  ;;  %v16467_v44 = vld [vmem:[#allocation3 + $0x94] sm:$0xf]  ;;  %v16476_v42 = vld [vmem:[#allocation3 + $0x80] sm:$0x1] }
 0x2de   : > { %v6266_v53 = vsel %vm13595_vm10, %v6261_v19, %v6265_v32  ;;  %v5844_v3 = vsel %vm13602_vm11, %v5836_v50, %v5843_v47  ;;  %v6009_v58 = vsel %vm16070_vm3, %v5845_v57, %v6008_v54  ;;  %v6274_v24 = vor.u32 %v16399_v13, %v16391_v15 }
 0x2df   : > { %v5827_v0 = vsel %vm13602_vm11, %v5819_v51, %v5826_v37  ;;  %v6002_v14 = vsel %vm16070_vm3, %v5828_v40, %v6001_v23  ;;  %6007 = vst [vmem:[#allocation3 + $0xc4] sm:$0xf] %v5844_v3  ;;  %6010 = vst [vmem:[#allocation3 + $0xc8] sm:$0x1] %v6009_v58  ;;  %v11494_v60 = vcombine.low %v6256_v1, %v6266_v53  ;;  %12606 = vmatprep.mubr.bf16.mxu0 %v11521_v18  ;;  %v16480_v37 = vld [vmem:[#allocation3 + $0xa0] sm:$0xf] }
 0x2e0   : > { %6000 = vst [vmem:[#allocation3 + $0xb8] sm:$0xf] %v5827_v0  ;;  %6003 = vst [vmem:[#allocation3 + $0xbc] sm:$0x1] %v6002_v14  ;;  %v6277_v50 = vshll.u32 %v16376_v30, 16  ;;  %v6283_v2 = vrot.slane %v6281_v17, 4  ;;  %v11522_v35 = vcombine.low %v6033_v22, %v16442_v26  ;;  %v6298_v15 = vor.u32 %v16417_v11, %v16415_v62 }
 0x2e1   : > { %v6287_v28 = vshll.u32 %v16437_v21, 16  ;;  %v6340_v49 = vshrl.u32 %v6033_v22, 16  ;;  %v6343_v8 = vshll.u32 %v6033_v22, 16  ;;  %v6353_v27 = vshrl.u32 %v16442_v26, 16  ;;  %12551 = vmatmul.mubr.bf16.gmra.mxu1 %v11494_v60 }
 0x2e2   : > { %v6275_v31 = vrot.slane %v6274_v24, 4  ;;  %v6279_v6 = vrot.slane %v6277_v50, 5  ;;  %v6301_v41 = vshll.u32 %v16404_v5, 16  ;;  %12607 = vmatmul.mubr.bf16.gmra.mxu0 %v11522_v35  ;;  %v6299_v54 = vrot.slane %v6298_v15, 4  ;;  %v16496_v15 = vld [vmem:[#allocation3 + $0xac] sm:$0xf] }
 0x2e3   : > { %v6289_v13 = vrot.slane %v6287_v28, 5  ;;  %v6342_v29 = vrot.slane %v6340_v49, 4  ;;  %v6345_v17 = vrot.slane %v6343_v8, 5  ;;  %v6307_v1 = vrot.slane %v6305_v45, 4  ;;  %v6037_v45 = vld [vmem:[#allocation3 + $0x9c] sm:$0xf] }
 0x2e4   : > { %v6280_v59 = vsel %vm13595_vm10, %v6275_v31, %v6279_v6  ;;  %v6284_v51 = vor.u32 %v6283_v2, %v6279_v6  ;;  %v6303_v52 = vrot.slane %v6301_v41, 5  ;;  %v6311_v43 = vshll.u32 %v16459_v7, 16  ;;  %v16492_v49 = vld [vmem:[#allocation3 + $0x8c] sm:$0x1] }
 0x2e5   : > { %v6364_v62 = vshrl.u32 %v6035_v9, 16  ;;  %v6367_v11 = vshll.u32 %v6035_v9, 16  ;;  %v6377_v32 = vshrl.u32 %v16467_v44, 16  ;;  %v11523_v34 = vcombine.low %v6035_v9, %v16467_v44  ;;  %v6039_v9 = vld [vmem:[#allocation3 + $0xa8] sm:$0xf] }
 0x2e6   : > { %v6285_v56 = vrot.slane %v6284_v51, 4  ;;  %v6322_v23 = vor.u32 %v6321_v4, %v6318_v20  ;;  %v6304_v19 = vsel %vm13595_vm10, %v6299_v54, %v6303_v52  ;;  %v6308_v63 = vor.u32 %v6307_v1, %v6303_v52  ;;  %v16499_v54 = vld [vmem:[#allocation3 + $0x98] sm:$0x1] }
 0x2e7   : > { %v6313_v47 = vrot.slane %v6311_v43, 5  ;;  %v6366_v57 = vrot.slane %v6364_v62, 4  ;;  %v6369_v53 = vrot.slane %v6367_v11, 5  ;;  %12610 = vmatprep.mubr.bf16.mxu0 %v11523_v34  ;;  %v6325_v22 = vshll.u32 %v16430_v12, 16  ;;  %v6041_v43 = vld [vmem:[#allocation3 + $0xb4] sm:$0xf] }
 0x2e8   : > { %v6290_v40 = vsel %vm13595_vm10, %v6285_v56, %v6289_v13  ;;  %v6323_v18 = vrot.slane %v6322_v23, 4  ;;  %v6309_v58 = vrot.slane %v6308_v63, 4  ;;  %v6331_v20 = vrot.slane %v6329_v48, 4 }
 0x2e9   : > { %v11495_v3 = vcombine.low %v6280_v59, %v6290_v40  ;;  %v6335_v4 = vshll.u32 %v16476_v42, 16  ;;  %v6327_v0 = vrot.slane %v6325_v22, 5  ;;  %v6388_v14 = vshrl.u32 %v6037_v45, 16 }
 0x2ea   : > { %v6391_v60 = vshll.u32 %v6037_v45, 16  ;;  %v6401_v24 = vshrl.u32 %v16480_v37, 16  ;;  %v6314_v50 = vsel %vm13595_vm10, %v6309_v58, %v6313_v47  ;;  %v11524_v28 = vcombine.low %v6037_v45, %v16480_v37  ;;  %v16506_v47 = vld [vmem:[#allocation3 + $0xb8] sm:$0xf] }
 0x2eb   : > { %12554 = vmatprep.mubr.bf16.mxu1 %v11495_v3  ;;  %v6337_v2 = vrot.slane %v6335_v4, 5  ;;  %v6346_v8 = vor.u32 %v6345_v17, %v6342_v29  ;;  %v11496_v31 = vcombine.low %v6304_v19, %v6314_v50  ;;  %v6328_v48 = vsel %vm13595_vm10, %v6323_v18, %v6327_v0 }
 0x2ec   : > { %v6332_v6 = vor.u32 %v6331_v20, %v6327_v0  ;;  %v6390_v35 = vrot.slane %v6388_v14, 4  ;;  %v6393_v13 = vrot.slane %v6391_v60, 5  ;;  %12611 = vmatmul.mubr.bf16.gmra.mxu0 %v11524_v28  ;;  %v6349_v59 = vshll.u32 %v16442_v26, 16  ;;  %v16514_v28 = vld [vmem:[#allocation3 + $0xa4] sm:$0x1] }
 0x2ed   : > { %v6347_v41 = vrot.slane %v6346_v8, 4  ;;  %v6355_v51 = vrot.slane %v6353_v27, 4  ;;  %12555 = vmatmul.mubr.bf16.gmra.mxu1 %v11496_v31  ;;  %v6359_v29 = vshll.u32 %v16492_v49, 16  ;;  %v6412_v17 = vshrl.u32 %v6039_v9, 16 }
 0x2ee   : > { %v6333_v1 = vrot.slane %v6332_v6, 4  ;;  %v6415_v52 = vshll.u32 %v6039_v9, 16  ;;  %v6351_v62 = vrot.slane %v6349_v59, 5  ;;  %v6425_v11 = vshrl.u32 %v16496_v15, 16 }
 0x2ef   : > { %v11525_v56 = vcombine.low %v6039_v9, %v16496_v15  ;;  %v6370_v34 = vor.u32 %v6369_v53, %v6366_v57  ;;  %v6361_v19 = vrot.slane %v6359_v29, 5  ;;  %v6414_v27 = vrot.slane %v6412_v17, 4  ;;  %v13098_v9 = vld [vmem:[#allocation3 + $0xc] sm:$0xff]  }
 0x2f0   : > { %v6338_v23 = vsel %vm13595_vm10, %v6333_v1, %v6337_v2  ;;  %v6417_v63 = vrot.slane %v6415_v52, 5  ;;  %v6352_v40 = vsel %vm13595_vm10, %v6347_v41, %v6351_v62  ;;  %v6356_v18 = vor.u32 %v6355_v51, %v6351_v62  ;;  %v16519_v41 = vld [vmem:[#allocation3 + $0xb0] sm:$0x1] }
 0x2f1   : > { %v11497_v45 = vcombine.low %v6328_v48, %v6338_v23  ;;  %12614 = vmatprep.mubr.bf16.mxu0 %v11525_v56  ;;  %v6371_v22 = vrot.slane %v6370_v34, 4  ;;  %v6373_v3 = vshll.u32 %v16467_v44, 16  ;;  %v6379_v58 = vrot.slane %v6377_v32, 4 }
 0x2f2   : > { %v6383_v57 = vshll.u32 %v16499_v54, 16  ;;  %v6436_v53 = vshrl.u32 %v6041_v43, 16  ;;  %v6357_v20 = vrot.slane %v6356_v18, 4  ;;  %v6439_v4 = vshll.u32 %v6041_v43, 16  ;;  %v7054_v18 = vld [vmem:[#allocation3] sm:$0xe] }
 0x2f3   : > { %12558 = vmatprep.mubr.bf16.mxu1 %v11497_v45  ;;  %v6449_v0 = vshrl.u32 %v16506_v47, 16  ;;  %v11526_v14 = vcombine.low %v6041_v43, %v16506_v47  ;;  %v6375_v60 = vrot.slane %v6373_v3, 5  ;;  %v6394_v8 = vor.u32 %v6393_v13, %v6390_v35 }
 0x2f4   : > { %v6385_v50 = vrot.slane %v6383_v57, 5  ;;  %v6438_v2 = vrot.slane %v6436_v53, 4  ;;  %v6362_v32 = vsel %vm13595_vm10, %v6357_v20, %v6361_v19  ;;  %v6441_v31 = vrot.slane %v6439_v4, 5  ;;  %v13101_v53 = vld [vmem:[#allocation3 + $0x18] sm:$0xff]  }
 0x2f5   : > { %12615 = vmatmul.mubr.bf16.gmra.mxu0 %v11526_v14  ;;  %v6397_v48 = vshll.u32 %v16480_v37, 16  ;;  %v6403_v6 = vrot.slane %v6401_v24, 4  ;;  %v11498_v59 = vcombine.low %v6352_v40, %v6362_v32  ;;  %v6376_v51 = vsel %vm13595_vm10, %v6371_v22, %v6375_v60  ;;  %v16528_v40 = vld [vmem:[#allocation3 + $0xbc] sm:$0x1]  ;;  %v13114_v14 = vld [vmem:[#allocation4 + $0x170] sm:$0xff]  }
 0x2f6   : > { %v6380_v1 = vor.u32 %v6379_v58, %v6375_v60  ;;  %v6395_v29 = vrot.slane %v6394_v8, 4  ;;  %12682 = vmatprep.mubr.bf16.mxu0 %v13098_v9  ;;  %v6407_v35 = vshll.u32 %v16514_v28, 16  ;;  %v6418_v13 = vor.u32 %v6417_v63, %v6414_v27  ;;  %v13103_v9 = vld [vmem:[#allocation3 + $0x24] sm:$0xff]  }
 0x2f7   : > { %v6399_v17 = vrot.slane %v6397_v48, 5  ;;  %v6421_v52 = vshll.u32 %v16496_v15, 16  ;;  %12559 = vmatmul.mubr.bf16.gmra.mxu1 %v11498_v59  ;;  %v6427_v62 = vrot.slane %v6425_v11, 4  ;;  %v6431_v24 = vshll.u32 %v16519_v41, 16  ;;  %v7055_v11 = vld [vmem:[#allocation3 + $0xc] sm:$0xe] }
 0x2f8   : > { %v6381_v43 = vrot.slane %v6380_v1, 4  ;;  %v6442_v56 = vor.u32 %v6441_v31, %v6438_v2  ;;  %v6409_v19 = vrot.slane %v6407_v35, 5  ;;  %v6419_v45 = vrot.slane %v6418_v13, 4  ;;  %v13189_v48 = vld [vmem:[#allocation3 + $0x4] sm:$0xf] }
 0x2f9   : > { %v6400_v34 = vsel %vm13595_vm10, %v6395_v29, %v6399_v17  ;;  %v6404_v23 = vor.u32 %v6403_v6, %v6399_v17  ;;  %v6423_v63 = vrot.slane %v6421_v52, 5  ;;  %v6433_v22 = vrot.slane %v6431_v24, 5  ;;  %v13190_v59 = vld [vmem:[#allocation3 + $0x8] sm:$0x1] }
 0x2fa   : > { %v6386_v27 = vsel %vm13595_vm10, %v6381_v43, %v6385_v50  ;;  %v16532_v3 = vrot.slane %v6442_v56, 4  ;;  %v6445_v20 = vshll.u32 %v16506_v47, 16  ;;  %v6451_v4 = vrot.slane %v6449_v0, 4  ;;  %v7056_v0 = vld [vmem:[#allocation3 + $0x18] sm:$0xe]  ;;  %v13116_v56 = vld [vmem:[#allocation4 + $0x168] sm:$0xff]  }
 0x2fb   : > { %v11499_v58 = vcombine.low %v6376_v51, %v6386_v27  ;;  %v6405_v57 = vrot.slane %v6404_v23, 4  ;;  %v6424_v60 = vsel %vm13595_vm10, %v6419_v45, %v6423_v63  ;;  %v6428_v2 = vor.u32 %v6427_v62, %v6423_v63  ;;  %v13191_v23 = vld [vmem:[#allocation3 + $0x10] sm:$0xf]  ;;  %v13192_v45 = vld [vmem:[#allocation3 + $0x14] sm:$0x1] }
 0x2fc   : > { %v6455_v8 = vshll.u32 %v16528_v40, 16  ;;  %v11535_v50 = vrot.slane %v7054_v18, 9  ;;  %v6447_v31 = vrot.slane %v6445_v20, 5  ;;  %v7104_v6 = vrot.slane %v13189_v48, 5  ;;  %v7057_v27 = vld [vmem:[#allocation3 + $0x24] sm:$0xe] }
 0x2fd   : > { %12562 = vmatprep.mubr.bf16.mxu1 %v11499_v58  ;;  %v6410_v32 = vsel %vm13595_vm10, %v6405_v57, %v6409_v19  ;;  %12683 = vmatmul.mubr.bf16.vlgmr.msra.gmra.mxu0 %v13101_v53  ;;  %v7107_v51 = vrot.slane %v13190_v59, 5  ;;  %v6429_v29 = vrot.slane %v6428_v2, 4  ;;  %v11536_v35 = vrot.slane %v7055_v11, 9  ;;  %v13193_v58 = vld [vmem:[#allocation3 + $0x1c] sm:$0xf] }
 0x2fe   : > { %v11500_v1 = vcombine.low %v6400_v34, %v6410_v32  ;;  %v6457_v17 = vrot.slane %v6455_v8, 5  ;;  %12686 = vmatprep.mubr.bf16.mxu0 %v13103_v9  ;;  %12763 = vmatpush3.bf16.msra.mxu0 %v16268_v39  ;;  %v6448_v13 = vsel %vm13595_vm10, %v16532_v3, %v6447_v31  ;;  %v6452_v52 = vor.u32 %v6451_v4, %v6447_v31  ;;  %v13194_v4 = vld [vmem:[#allocation3 + $0x20] sm:$0x1]  ;;  %v7058_v8 = vld [vmem:[#allocation3 + $0x30] sm:$0xe]  ;;  %v13119_v48 = vld [vmem:[#allocation4 + $0x160] sm:$0xff]  }
 0x2ff   : > { %v16546_v62 = vsel %vm14041_vm15, %v11535_v50, %v7104_v6  ;;  %v7106_v24 = vrot.slane %v7104_v6, 4  ;;  %12764 = vmatprep.subr.bf16.mxu0 %v13114_v14  ;;  %v6434_v34 = vsel %vm13595_vm10, %v6429_v29, %v6433_v22  ;;  %v7111_v19 = vrot.slane %v13191_v23, 5  ;;  %v13105_v9 = vld [vmem:[#allocation3 + $0x30] sm:$0xff]   ;;  %v7059_v29 = vld [vmem:[#allocation3 + $0x3c] sm:$0xe] }
 0x300   : > { %12563 = vmatmul.mubr.bf16.gmra.mxu1 %v11500_v1  ;;  %v7114_v39 = vrot.slane %v13192_v45, 5  ;;  %v11537_v18 = vrot.slane %v7056_v0, 9  ;;  %v11501_v63 = vcombine.low %v6424_v60, %v6434_v34  ;;  %v6453_v3 = vrot.slane %v6452_v52, 4 }
 0x301   : > { %v7108_v11 = vsel %vm14041_vm15, %v7106_v24, %v7107_v51  ;;  %v7118_v57 = vrot.slane %v13193_v58, 5  ;;  %v16555_v20 = vsel %vm14041_vm15, %v11536_v35, %v7111_v19  ;;  %v7113_v22 = vrot.slane %v7111_v19, 4  ;;  %v13106_v51 = vld [vmem:[#allocation3 + $0x3c] sm:$0xff]   ;;  %v7060_v24 = vld [vmem:[#allocation3 + $0x48] sm:$0xe] }
 0x302   : > { %v11551_v53 = vcombine.low %v16546_v62, %v7108_v11  ;;  %v7121_v2 = vrot.slane %v13194_v4, 5  ;;  %12765 = vmatpush3.bf16.msra.mxu0 %v13114_v14  ;;  %12566 = vmatprep.mubr.bf16.mxu1 %v11501_v63  ;;  %v6458_v60 = vsel %vm13595_vm10, %v6453_v3, %v6457_v17  ;;  %v11538_v31 = vrot.slane %v7057_v27, 9  ;;  %v13195_v14 = vld [vmem:[#allocation3 + $0x28] sm:$0xf]  ;;  %v13197_v27 = vld [vmem:[#allocation3 + $0x40] sm:$0xf] }
 0x303   : > { %v16561_v50 = vsel %vm14041_vm15, %v11537_v18, %v7118_v57  ;;  %v7120_v32 = vrot.slane %v7118_v57, 4  ;;  %12766 = vmatprep.subr.bf16.mxu0 %v13116_v56  ;;  %v11502_v6 = vcombine.low %v6448_v13, %v6458_v60  ;;  %v16565_v59 = vsel %vm14041_vm15, %v7113_v22, %v7114_v39  ;;  %v13196_v13 = vld [vmem:[#allocation3 + $0x34] sm:$0xf]  ;;  %v7062_v60 = vld [vmem:[#allocation3 + $0x60] sm:$0xe] }
 0x304   : > { %v7125_v0 = vrot.slane %v13195_v14, 5  ;;  %v7128_v1 = vrot.slane %v16290_v16, 5  ;;  %v11552_v17 = vcombine.low %v16555_v20, %v16565_v59  ;;  %v11539_v52 = vrot.slane %v7058_v8, 9  ;;  %v13122_v3 = vld [vmem:[#allocation4 + $0x158] sm:$0xff]  }
 0x305   : > { %12687 = vmatmul.mubr.bf16.gmra.mxu0 %v13105_v9  ;;  %v16572_v35 = vsel %vm14041_vm15, %v7120_v32, %v7121_v2  ;;  %v7132_v62 = vrot.slane %v13196_v13, 5  ;;  %v7135_v19 = vrot.slane %v16315_v38, 5  ;;  %v11540_v18 = vrot.slane %v7059_v29, 9  ;;  %v13107_v9 = vld [vmem:[#allocation3 + $0x48] sm:$0xff]   ;;  %v13108_v29 = vld [vmem:[#allocation3 + $0x54] sm:$0xff]  }
 0x306   : > { %12690 = vmatprep.mubr.bf16.mxu0 %v13106_v51  ;;  %v11553_v34 = vcombine.low %v16561_v50, %v16572_v35  ;;  %v16578_v16 = vsel %vm14041_vm15, %v11538_v31, %v7125_v0  ;;  %v7127_v23 = vrot.slane %v7125_v0, 4  ;;  %12767 = vmatpush3.bf16.msra.mxu0 %v13116_v56  ;;  %v7139_v63 = vrot.slane %v13197_v27, 5  ;;  %v7061_v56 = vld [vmem:[#allocation3 + $0x54] sm:$0xe]  ;;  %v7063_v0 = vld [vmem:[#allocation3 + $0x6c] sm:$0xe] }
 0x307   : > { %v16583_v45 = vsel %vm14041_vm15, %v11539_v52, %v7132_v62  ;;  %v7134_v39 = vrot.slane %v7132_v62, 4  ;;  %12768 = vmatprep.subr.bf16.mxu0 %v13119_v48  ;;  %v7142_v58 = vrot.slane %v16357_v33, 5  ;;  %v11541_v57 = vrot.slane %v7060_v24, 9  ;;  %v7064_v62 = vld [vmem:[#allocation3 + $0x78] sm:$0xe]  ;;  %v13120_v27 = vld [vmem:[#allocation4 + $0x130] sm:$0xff]  }
 0x308   : > { %12567 = vmatmul.mubr.bf16.gmra.mxu1 %v11502_v6  ;;  %v16587_v11 = vsel %vm14041_vm15, %v7127_v23, %v7128_v1  ;;  %v7146_v38 = vrot.slane %v16296_v10, 5  ;;  %v16599_v2 = vsel %vm14041_vm15, %v11540_v18, %v7139_v63  ;;  %v7141_v8 = vrot.slane %v7139_v63, 4  ;;  %v13125_v1 = vld [vmem:[#allocation4 + $0x150] sm:$0xff]  }
 0x309   : > { %12634 = vmatprep.mubr.bf16.mxu1 %v11551_v53  ;;  %v11554_v22 = vcombine.low %v16578_v16, %v16587_v11  ;;  %v16595_v4 = vsel %vm14041_vm15, %v7134_v39, %v7135_v19  ;;  %v7149_v32 = vrot.slane %v16389_v61, 5  ;;  %v11542_v6 = vrot.slane %v7061_v56, 9  ;;  %v13128_v56 = vld [vmem:[#allocation4 + $0x148] sm:$0xff]  }
 0x30a   : > { %v11555_v33 = vcombine.low %v16583_v45, %v16595_v4  ;;  %v16605_v10 = vsel %vm14041_vm15, %v11541_v57, %v7146_v38  ;;  %v7148_v53 = vrot.slane %v7146_v38, 4  ;;  %12769 = vmatpush3.bf16.msra.mxu0 %v13119_v48  ;;  %v16610_v31 = vsel %vm14041_vm15, %v7141_v8, %v7142_v58  ;;  %v7065_v38 = vld [vmem:[#allocation3 + $0x84] sm:$0xe] }
 0x30b   : > { %v7153_v51 = vrot.slane %v16345_v55, 5  ;;  %v7156_v14 = vrot.slane %v16420_v36, 5  ;;  %12770 = vmatprep.subr.bf16.mxu0 %v13122_v3  ;;  %v11556_v52 = vcombine.low %v16599_v2, %v16610_v31  ;;  %v11543_v48 = vrot.slane %v7062_v60, 9 }
 0x30c   : > { %v16618_v61 = vsel %vm14041_vm15, %v7148_v53, %v7149_v32  ;;  %v7160_v13 = vrot.slane %v16376_v30, 5  ;;  %v7163_v23 = vrot.slane %v16437_v21, 5  ;;  %v11544_v18 = vrot.slane %v7063_v0, 9  ;;  %v13124_v32 = vld [vmem:[#allocation4 + $0x128] sm:$0xff]  }
 0x30d   : > { %12691 = vmatmul.mubr.bf16.gmra.mxu0 %v13107_v9  ;;  %v11557_v55 = vcombine.low %v16605_v10, %v16618_v61  ;;  %v16625_v36 = vsel %vm14041_vm15, %v11542_v6, %v7153_v51  ;;  %v7155_v24 = vrot.slane %v7153_v51, 4  ;;  %v7167_v30 = vrot.slane %v16404_v5, 5  ;;  %v8676_v9 = vld [vmem:[#allocation3 + $0xc] sm:$0xe]  ;;  %v7067_v6 = vld [vmem:[#allocation3 + $0x9c] sm:$0xe] }
 0x30e   : > { %12694 = vmatprep.mubr.bf16.mxu0 %v13108_v29  ;;  %v16630_v19 = vsel %vm14041_vm15, %v11543_v48, %v7160_v13  ;;  %v7162_v39 = vrot.slane %v7160_v13, 4  ;;  %12771 = vmatpush3.bf16.msra.mxu0 %v13122_v3  ;;  %v7170_v58 = vrot.slane %v16459_v7, 5  ;;  %v11545_v57 = vrot.slane %v7064_v62, 9  ;;  %v13109_v51 = vld [vmem:[#allocation3 + $0x60] sm:$0xff]   ;;  %v16676_v29 = vld [vmem:[#allocation3 + $0x10] sm:$0xf] }
 0x30f   : > { %v16635_v63 = vsel %vm14041_vm15, %v7155_v24, %v7156_v14  ;;  %v7174_v21 = vrot.slane %v16430_v12, 5  ;;  %12772 = vmatprep.subr.bf16.mxu0 %v13125_v1  ;;  %v16650_v7 = vsel %vm14041_vm15, %v11544_v18, %v7167_v30  ;;  %v7169_v8 = vrot.slane %v7167_v30, 4  ;;  %v7066_v12 = vld [vmem:[#allocation3 + $0x90] sm:$0xe]  ;;  %v16685_v62 = vld [vmem:[#allocation3 + $0x14] sm:$0x1] }
 0x310   : > { %12635 = vmatmul.mubr.bf16.vlgmr.msra.gmra.mxu1 %v11552_v17  ;;  %v11558_v5 = vcombine.low %v16625_v36, %v16635_v63  ;;  %v16646_v3 = vsel %vm14041_vm15, %v7162_v39, %v7163_v23  ;;  %v7177_v60 = vrot.slane %v16476_v42, 5  ;;  %v11546_v50 = vrot.slane %v7065_v38, 9  ;;  %v13130_v24 = vld [vmem:[#allocation4 + $0x140] sm:$0xff]   ;;  %v7068_v38 = vld [vmem:[#allocation3 + $0xa8] sm:$0xe] }
 0x311   : > { %12638 = vmatprep.mubr.bf16.mxu1 %v11553_v34  ;;  %v11559_v20 = vcombine.low %v16630_v19, %v16646_v3  ;;  %v16659_v59 = vsel %vm14041_vm15, %v11545_v57, %v7174_v21  ;;  %v7176_v17 = vrot.slane %v7174_v21, 4  ;;  %12715 = vmatpush3.bf16.msra.mxu1 %v16354_v25  ;;  %v16665_v53 = vsel %vm14041_vm15, %v7169_v8, %v7170_v58  ;;  %v8677_v30 = vld [vmem:[#allocation3 + $0x18] sm:$0xe] }
 0x312   : > { %12716 = vmatprep.subr.bf16.mxu1 %v13120_v27  ;;  %v7181_v35 = vrot.slane %v16442_v26, 5  ;;  %v7184_v34 = vrot.slane %v16492_v49, 5  ;;  %12773 = vmatpush3.bf16.msra.mxu0 %v13125_v1  ;;  %v11560_v42 = vcombine.low %v16650_v7, %v16665_v53  ;;  %v11547_v14 = vrot.slane %v7066_v12, 9  ;;  %v13110_v26 = vld [vmem:[#allocation3 + $0x6c] sm:$0xff]  }
 0x313   : > { %v16673_v25 = vsel %vm14041_vm15, %v7176_v17, %v7177_v60  ;;  %v7188_v0 = vrot.slane %v16467_v44, 5  ;;  %12774 = vmatprep.subr.bf16.mxu0 %v13128_v56  ;;  %v7191_v13 = vrot.slane %v16499_v54, 5  ;;  %v11548_v39 = vrot.slane %v7067_v6, 9  ;;  %v13126_v54 = vld [vmem:[#allocation4 + $0x120] sm:$0xff]   ;;  %v16722_v6 = vld [vmem:[#allocation4 + $0x1f8] sm:$0xff]  }
 0x314   : > { %v11561_v49 = vcombine.low %v16659_v59, %v16673_v25  ;;  %v16682_v1 = vsel %vm14041_vm15, %v11546_v50, %v7181_v35  ;;  %v7183_v48 = vrot.slane %v7181_v35, 4  ;;  %v7195_v18 = vrot.slane %v16480_v37, 5  ;;  %v16708_v60 = vld [vmem:[#allocation3 + $0x1c] sm:$0xf] }
 0x315   : > { %12695 = vmatmul.mubr.bf16.gmra.mxu0 %v13109_v51  ;;  %12717 = vmatpush3.bf16.msra.mxu1 %v13120_v27  ;;  %v16689_v44 = vsel %vm14041_vm15, %v11547_v14, %v7188_v0  ;;  %v7190_v23 = vrot.slane %v7188_v0, 4  ;;  %v7198_v57 = vrot.slane %v16514_v28, 5  ;;  %v11623_v21 = vrot.slane %v8676_v9, 9  ;;  %v16710_v28 = vld [vmem:[#allocation3 + $0x20] sm:$0x1] }
 0x316   : > { %12698 = vmatprep.mubr.bf16.mxu0 %v13110_v26  ;;  %v16694_v58 = vsel %vm14041_vm15, %v7183_v48, %v7184_v34  ;;  %12718 = vmatprep.subr.bf16.mxu1 %v13124_v32  ;;  %v8742_v27 = vrot.slane %v16676_v29, 5  ;;  %v16706_v12 = vsel %vm14041_vm15, %v11548_v39, %v7195_v18  ;;  %v7197_v17 = vrot.slane %v7195_v18, 4  ;;  %v7069_v14 = vld [vmem:[#allocation3 + $0xb4] sm:$0xe]  ;;  %v13111_v48 = vld [vmem:[#allocation3 + $0x78] sm:$0xff]   ;;  %v13113_v39 = vld [vmem:[#allocation3 + $0x84] sm:$0xff]  }
 0x317   : > { %v11562_v8 = vcombine.low %v16682_v1, %v16694_v58  ;;  %v16702_v37 = vsel %vm14041_vm15, %v7190_v23, %v7191_v13  ;;  %12775 = vmatpush3.bf16.msra.mxu0 %v13128_v56  ;;  %v8745_v34 = vrot.slane %v16685_v62, 5  ;;  %v8678_v56 = vld [vmem:[#allocation3 + $0x24] sm:$0xe]  ;;  %v11549_v11 = vrot.slane %v7068_v38, 9  ;;  %v13129_v26 = vld [vmem:[#allocation4 + $0x118] sm:$0xff]  }
 0x318   : > { %12639 = vmatmul.mubr.bf16.gmra.mxu1 %v11554_v22  ;;  %v11563_v9 = vcombine.low %v16689_v44, %v16702_v37  ;;  %v16719_v50 = vsel %vm14041_vm15, %v11623_v21, %v8742_v27  ;;  %v8744_v35 = vrot.slane %v8742_v27, 4  ;;  %12776 = vmatprep.subr.bf16.mxu0 %v13130_v24  ;;  %v16729_v16 = vsel %vm14041_vm15, %v7197_v17, %v7198_v57  ;;  %v16754_v27 = vld [vmem:[#allocation3 + $0x2c] sm:$0x1] }
 0x319   : > { %12642 = vmatprep.mubr.bf16.mxu1 %v11555_v33  ;;  %12719 = vmatpush3.bf16.msra.mxu1 %v13124_v32  ;;  %v7202_v22 = vrot.slane %v16496_v15, 5  ;;  %v7205_v51 = vrot.slane %v16519_v41, 5  ;;  %v11624_v4 = vrot.slane %v8677_v30, 9  ;;  %v8749_v33 = vrot.slane %v16708_v60, 5  ;;  %v16740_v32 = vld [vmem:[#allocation3 + $0x28] sm:$0xf] }
 0x31a   : > { %12720 = vmatprep.subr.bf16.mxu1 %v13126_v54  ;;  %v16737_v45 = vsel %vm14041_vm15, %v8744_v35, %v8745_v34  ;;  %v8752_v23 = vrot.slane %v16710_v28, 5  ;;  %v11550_v57 = vrot.slane %v7069_v14, 9  ;;  %v7209_v21 = vrot.slane %v16506_v47, 5  ;;  %v7922_v34 = vld [vmem:[#allocation3 + $0xc] sm:$0xf] }
 0x31b   : > { %v11639_v15 = vcombine.low %v16719_v50, %v16737_v45  ;;  %v16746_v41 = vsel %vm14041_vm15, %v11549_v11, %v7202_v22  ;;  %v7204_v13 = vrot.slane %v7202_v22, 4  ;;  %12777 = vmatpush3.bf16.msra.mxu0 %v13130_v24  ;;  %v16751_v18 = vsel %vm14041_vm15, %v11624_v4, %v8749_v33  ;;  %v13131_v11 = vld [vmem:[#allocation4 + $0x110] sm:$0xff]  }
 0x31c   : > { %v8751_v30 = vrot.slane %v8749_v33, 4  ;;  %12858 = vmatprep.subr.bf16.mxu0 %v16722_v6  ;;  %v7212_v38 = vrot.slane %v16528_v40, 5  ;;  %v11625_v17 = vrot.slane %v8678_v56, 9  ;;  %v8756_v35 = vrot.slane %v16740_v32, 5  ;;  %v8679_v33 = vld [vmem:[#allocation3 + $0x30] sm:$0xe] }
 0x31d   : > { %12699 = vmatmul.mubr.bf16.gmra.mxu0 %v13111_v48  ;;  %12721 = vmatpush3.bf16.msra.mxu1 %v13126_v54  ;;  %v16759_v24 = vsel %vm14041_vm15, %v7204_v13, %v7205_v51  ;;  %v16771_v54 = vsel %vm14041_vm15, %v11550_v57, %v7209_v21  ;;  %v7211_v51 = vrot.slane %v7209_v21, 4  ;;  %v8759_v4 = vrot.slane %v16754_v27, 5  ;;  %v16801_v21 = vld [vmem:[#allocation3 + $0x38] sm:$0x1] }
 0x31e   : > { %12702 = vmatprep.mubr.bf16.mxu0 %v13113_v39  ;;  %12722 = vmatprep.subr.bf16.mxu1 %v13129_v26  ;;  %v16767_v22 = vsel %vm14041_vm15, %v8751_v30, %v8752_v23  ;;  %v16777_v56 = vsel %vm14041_vm15, %v11625_v17, %v8756_v35  ;;  %v8758_v14 = vrot.slane %v8756_v35, 4  ;;  %v7971_v13 = vshrl.u32 %v7922_v34, 16  ;;  %v16788_v30 = vld [vmem:[#allocation3 + $0x34] sm:$0xf]  ;;  %v13132_v17 = vld [vmem:[#allocation4 + $0x108] sm:$0xff]  }
 0x31f   : > { %v16785_v48 = vsel %vm14041_vm15, %v7211_v51, %v7212_v38  ;;  %v7974_v23 = vshll.u32 %v7922_v34, 16  ;;  %v7980_v39 = vshll.u32 %v16676_v29, 16  ;;  %v7984_v31 = vshrl.u32 %v16676_v29, 16  ;;  %v7925_v38 = vld [vmem:[#allocation3 + $0x18] sm:$0xf]  ;;  %v13115_v35 = vld [vmem:[#allocation3 + $0x90] sm:$0xff]  }
 0x320   : > { %12643 = vmatmul.mubr.bf16.gmra.mxu1 %v11556_v52  ;;  %v16797_v2 = vsel %vm14041_vm15, %v8758_v14, %v8759_v4  ;;  %v7990_v52 = vshll.u32 %v16685_v62, 16  ;;  %v7973_v61 = vrot.slane %v7971_v13, 4  ;;  %v11626_v14 = vrot.slane %v8679_v33, 9  ;;  %v13117_v29 = vld [vmem:[#allocation3 + $0x9c] sm:$0xff]  }
 0x321   : > { %12646 = vmatprep.mubr.bf16.mxu1 %v11557_v55  ;;  %12723 = vmatpush3.bf16.msra.mxu1 %v13129_v26  ;;  %v7976_v55 = vrot.slane %v7974_v23, 5  ;;  %v7982_v26 = vrot.slane %v7980_v39, 5  ;;  %v7986_v34 = vrot.slane %v7984_v31, 4  ;;  %v8763_v4 = vrot.slane %v16788_v30, 5  ;;  %v16812_v31 = vld [vmem:[#allocation3 + $0x40] sm:$0xf] }
 0x322   : > { %12724 = vmatprep.subr.bf16.mxu1 %v13131_v11  ;;  %v7992_v51 = vrot.slane %v7990_v52, 5  ;;  %v8766_v62 = vrot.slane %v16801_v21, 5  ;;  %v7995_v47 = vshrl.u32 %v7925_v38, 16  ;;  %v7998_v0 = vshll.u32 %v7925_v38, 16  ;;  %v8680_v33 = vld [vmem:[#allocation3 + $0x3c] sm:$0xe] }
 0x323   : > { %v7977_v57 = vor.u32 %v7976_v55, %v7973_v61  ;;  %v7987_v40 = vor.u32 %v7986_v34, %v7982_v26  ;;  %v16809_v13 = vsel %vm14041_vm15, %v11626_v14, %v8763_v4  ;;  %v8765_v23 = vrot.slane %v8763_v4, 4  ;;  %v13133_v61 = vld [vmem:[#allocation4 + $0x100] sm:$0xff]   ;;  %v16820_v4 = vld [vmem:[#allocation3 + $0x44] sm:$0x1] }
 0x324   : > { %v8004_v39 = vshll.u32 %v16708_v60, 16  ;;  %v7997_v55 = vrot.slane %v7995_v47, 4  ;;  %v8000_v10 = vrot.slane %v7998_v0, 5  ;;  %v8008_v38 = vshrl.u32 %v16708_v60, 16 }
 0x325   : > { %12703 = vmatmul.mubr.bf16.gmra.mxu0 %v13115_v35  ;;  %12725 = vmatpush3.bf16.msra.mxu1 %v13131_v11  ;;  %v7978_v52 = vrot.slane %v7977_v57, 4  ;;  %v7988_v11 = vrot.slane %v7987_v40, 4  ;;  %v16817_v35 = vsel %vm14041_vm15, %v8765_v23, %v8766_v62  ;;  %v8014_v14 = vshll.u32 %v16710_v28, 16  ;;  %v7928_v57 = vld [vmem:[#allocation3 + $0x24] sm:$0xf]  ;;  %v16838_v23 = vld [vmem:[#allocation4 + $0x1b8] sm:$0xff]  }
 0x326   : > { %12706 = vmatprep.mubr.bf16.mxu0 %v13117_v29  ;;  %12726 = vmatprep.subr.bf16.mxu1 %v13132_v17  ;;  %v8006_v34 = vrot.slane %v8004_v39, 5  ;;  %v11642_v60 = vcombine.low %v16809_v13, %v16817_v35  ;;  %v8001_v0 = vor.u32 %v8000_v10, %v7997_v55  ;;  %v8010_v40 = vrot.slane %v8008_v38, 4  ;;  %v13121_v39 = vld [vmem:[#allocation3 + $0xa8] sm:$0xff]  }
 0x327   : > { %v7983_v47 = vsel %vm13595_vm10, %v7978_v52, %v7982_v26  ;;  %v7993_v28 = vsel %vm13595_vm10, %v7988_v11, %v7992_v51  ;;  %v8016_v29 = vrot.slane %v8014_v14, 5  ;;  %v11627_v36 = vrot.slane %v8680_v33, 9  ;;  %v8681_v51 = vld [vmem:[#allocation3 + $0x48] sm:$0xe]  ;;  %v7931_v33 = vld [vmem:[#allocation3 + $0x30] sm:$0xf] }
 0x328   : > { %12647 = vmatmul.mubr.bf16.gmra.mxu1 %v11558_v5  ;;  %v8770_v63 = vrot.slane %v16812_v31, 5  ;;  %v16835_v5 = vcombine.low %v7983_v47, %v7993_v28  ;;  %v8002_v26 = vrot.slane %v8001_v0, 4  ;;  %v8011_v62 = vor.u32 %v8010_v40, %v8006_v34  ;;  %v13123_v52 = vld [vmem:[#allocation3 + $0xb4] sm:$0xff]   ;;  %v16848_v47 = vld [vmem:[#allocation3 + $0x4c] sm:$0xf] }
 0x329   : > { %12650 = vmatprep.mubr.bf16.mxu1 %v11559_v20  ;;  %12727 = vmatpush3.bf16.msra.mxu1 %v13132_v17  ;;  %v8773_v10 = vrot.slane %v16820_v4, 5  ;;  %v8019_v20 = vshrl.u32 %v7928_v57, 16  ;;  %v8022_v17 = vshll.u32 %v7928_v57, 16  ;;  %v8028_v11 = vshll.u32 %v16740_v32, 16 }
 0x32a   : > { %12728 = vmatprep.subr.bf16.mxu1 %v13133_v61  ;;  %v16842_v19 = vsel %vm14041_vm15, %v11627_v36, %v8770_v63  ;;  %v8772_v3 = vrot.slane %v8770_v63, 4  ;;  %v8007_v55 = vsel %vm13595_vm10, %v8002_v26, %v8006_v34  ;;  %v8012_v38 = vrot.slane %v8011_v62, 4  ;;  %v16855_v36 = vld [vmem:[#allocation3 + $0x50] sm:$0x1] }
 0x32b   : > { %v8032_v14 = vshrl.u32 %v16740_v32, 16  ;;  %v8021_v40 = vrot.slane %v8019_v20, 4  ;;  %v8024_v57 = vrot.slane %v8022_v17, 5  ;;  %v8038_v28 = vshll.u32 %v16754_v27, 16 }
 0x32c   : > { %v16852_v0 = vsel %vm14041_vm15, %v8772_v3, %v8773_v10  ;;  %v8017_v34 = vsel %vm13595_vm10, %v8012_v38, %v8016_v29  ;;  %v8030_v63 = vrot.slane %v8028_v11, 5  ;;  %v8777_v3 = vrot.slane %v16848_v47, 5  ;;  %v8682_v38 = vld [vmem:[#allocation3 + $0x54] sm:$0xe]  ;;  %v7934_v11 = vld [vmem:[#allocation3 + $0x3c] sm:$0xf] }
 0x32d   : > { %12707 = vmatmul.mubr.bf16.gmra.mxu0 %v13121_v39  ;;  %12729 = vmatpush3.bf16.msra.mxu1 %v13133_v61  ;;  %v11643_v32 = vcombine.low %v16842_v19, %v16852_v0  ;;  %v8034_v26 = vrot.slane %v8032_v14, 4  ;;  %v16862_v61 = vcombine.low %v8007_v55, %v8017_v34  ;;  %v8025_v62 = vor.u32 %v8024_v57, %v8021_v40  ;;  %v16878_v40 = vld [vmem:[#allocation3 + $0x58] sm:$0xf]  ;;  %v13127_v57 = vld [vmem:[#allocation3 + $0xc0] sm:$0xff]   ;;  %v13140_v19 = vld [vmem:[#allocation4 + $0x1d8] sm:$0xff]  }
 0x32e   : > { %12710 = vmatprep.mubr.bf16.mxu0 %v13123_v52  ;;  %12810 = vmatprep.subr.bf16.mxu1 %v16838_v23  ;;  %v8040_v10 = vrot.slane %v8038_v28, 5  ;;  %v11628_v39 = vrot.slane %v8681_v51, 9  ;;  %v8780_v29 = vrot.slane %v16855_v36, 5  ;;  %v8043_v20 = vshrl.u32 %v7931_v33, 16  ;;  %v16882_v28 = vld [vmem:[#allocation3 + $0x5c] sm:$0x1] }
 0x32f   : > { %v8035_v27 = vor.u32 %v8034_v26, %v8030_v63  ;;  %v8026_v17 = vrot.slane %v8025_v62, 4  ;;  %v8046_v52 = vshll.u32 %v7931_v33, 16  ;;  %v8052_v55 = vshll.u32 %v16788_v30, 16 }
 0x330   : > { %12651 = vmatmul.mubr.bf16.gmra.mxu1 %v11560_v42  ;;  %v8056_v51 = vshrl.u32 %v16788_v30, 16  ;;  %v16876_v53 = vsel %vm14041_vm15, %v11628_v39, %v8777_v3  ;;  %v8779_v42 = vrot.slane %v8777_v3, 4  ;;  %v8045_v14 = vrot.slane %v8043_v20, 4 }
 0x331   : > { %12654 = vmatprep.mubr.bf16.mxu1 %v11561_v49  ;;  %v8036_v7 = vrot.slane %v8035_v27, 4  ;;  %v8031_v59 = vsel %vm13595_vm10, %v8026_v17, %v8030_v63  ;;  %v8048_v25 = vrot.slane %v8046_v52, 5  ;;  %v8054_v49 = vrot.slane %v8052_v55, 5 }
 0x332   : > { %v8058_v33 = vrot.slane %v8056_v51, 4  ;;  %v16888_v34 = vsel %vm14041_vm15, %v8779_v42, %v8780_v29  ;;  %v8062_v26 = vshll.u32 %v16801_v21, 16  ;;  %v11629_v62 = vrot.slane %v8682_v38, 9  ;;  %v16901_v38 = vld [vmem:[#allocation3 + $0x64] sm:$0xf] }
 0x333   : > { %v8041_v30 = vsel %vm13595_vm10, %v8036_v7, %v8040_v10  ;;  %v11644_v63 = vcombine.low %v16876_v53, %v16888_v34  ;;  %v8049_v27 = vor.u32 %v8048_v25, %v8045_v14  ;;  %v8784_v20 = vrot.slane %v16878_v40, 5  ;;  %v8683_v42 = vld [vmem:[#allocation3 + $0x60] sm:$0xe]  ;;  %v16918_v14 = vld [vmem:[#allocation3 + $0x68] sm:$0x1] }
 0x334   : > { %v16891_v39 = vcombine.low %v8031_v59, %v8041_v30  ;;  %v8059_v3 = vor.u32 %v8058_v33, %v8054_v49  ;;  %v8064_v10 = vrot.slane %v8062_v26, 5  ;;  %v8787_v29 = vrot.slane %v16882_v28, 5  ;;  %v13135_v30 = vld [vmem:[#allocation4 + $0x1f0] sm:$0xff]  }
 0x335   : > { %12711 = vmatmul.mubr.bf16.gmra.mxu0 %v13127_v57  ;;  %v8067_v17 = vshrl.u32 %v7934_v11, 16  ;;  %v8050_v21 = vrot.slane %v8049_v27, 4  ;;  %v8070_v55 = vshll.u32 %v7934_v11, 16  ;;  %v8076_v51 = vshll.u32 %v16812_v31, 16  ;;  %v7937_v57 = vld [vmem:[#allocation3 + $0x48] sm:$0xf] }
 0x336   : > { %12778 = vmatprep.mubr.bf16.mxu0 %v11639_v15  ;;  %v8060_v52 = vrot.slane %v8059_v3, 4  ;;  %v16908_v50 = vsel %vm14041_vm15, %v11629_v62, %v8784_v20  ;;  %v8786_v45 = vrot.slane %v8784_v20, 4  ;;  %v8080_v7 = vshrl.u32 %v16812_v31, 16 }
 0x337   : > { %v8069_v15 = vrot.slane %v8067_v17, 4  ;;  %v8055_v11 = vsel %vm13595_vm10, %v8050_v21, %v8054_v49  ;;  %v8072_v58 = vrot.slane %v8070_v55, 5  ;;  %v8086_v44 = vshll.u32 %v16820_v4, 16  ;;  %v8684_v21 = vld [vmem:[#allocation3 + $0x6c] sm:$0xe] }
 0x338   : > { %12655 = vmatmul.mubr.bf16.gmra.mxu1 %v11562_v8  ;;  %v8065_v1 = vsel %vm13595_vm10, %v8060_v52, %v8064_v10  ;;  %v8078_v8 = vrot.slane %v8076_v51, 5  ;;  %v16924_v31 = vsel %vm14041_vm15, %v8786_v45, %v8787_v29  ;;  %v8082_v25 = vrot.slane %v8080_v7, 4  ;;  %v7940_v52 = vld [vmem:[#allocation3 + $0x54] sm:$0xf] }
 0x339   : > { %12658 = vmatprep.mubr.bf16.mxu1 %v11563_v9  ;;  %v16920_v59 = vcombine.low %v8055_v11, %v8065_v1  ;;  %v11645_v37 = vcombine.low %v16908_v50, %v16924_v31  ;;  %v8073_v9 = vor.u32 %v8072_v58, %v8069_v15  ;;  %v11630_v49 = vrot.slane %v8683_v42, 9  ;;  %v13136_v1 = vld [vmem:[#allocation4 + $0x1e8] sm:$0xff]  }
 0x33a   : > { %v8791_v33 = vrot.slane %v16901_v38, 5  ;;  %v8083_v26 = vor.u32 %v8082_v25, %v8078_v8  ;;  %v8088_v62 = vrot.slane %v8086_v44, 5  ;;  %v8794_v27 = vrot.slane %v16918_v14, 5 }
 0x33b   : > { %v8091_v3 = vshrl.u32 %v7937_v57, 16  ;;  %v18631_v10 = vcombine.low %v16751_v18, %v16767_v22  ;;  %v8074_v20 = vrot.slane %v8073_v9, 4  ;;  %v8094_v17 = vshll.u32 %v7937_v57, 16  ;;  %v16943_v22 = vld [vmem:[#allocation3 + $0x70] sm:$0xf] }
 0x33c   : > { %v16936_v4 = vsel %vm14041_vm15, %v11630_v49, %v8791_v33  ;;  %v8793_v29 = vrot.slane %v8791_v33, 4  ;;  %v18632_v55 = vcombine.low %v16777_v56, %v16797_v2  ;;  %v8084_v51 = vrot.slane %v8083_v26, 4  ;;  %v16953_v2 = vld [vmem:[#allocation3 + $0x74] sm:$0x1] }
 0x33d   : > { %12779 = vmatmul.mubr.bf16.vlgmr.msra.gmra.mxu0 %v18631_v10  ;;  %v8093_v45 = vrot.slane %v8091_v3, 4  ;;  %v8100_v15 = vshll.u32 %v16848_v47, 16  ;;  %v8104_v18 = vshrl.u32 %v16848_v47, 16  ;;  %v8079_v7 = vsel %vm13595_vm10, %v8074_v20, %v8078_v8  ;;  %v13138_v20 = vld [vmem:[#allocation4 + $0x1e0] sm:$0xff]  }
 0x33e   : > { %12782 = vmatprep.mubr.bf16.mxu0 %v18632_v55  ;;  %12859 = vmatpush3.bf16.msra.mxu0 %v16722_v6  ;;  %v16950_v42 = vsel %vm14041_vm15, %v8793_v29, %v8794_v27  ;;  %v8096_v11 = vrot.slane %v8094_v17, 5  ;;  %v8110_v56 = vshll.u32 %v16855_v36, 16  ;;  %v18633_v47 = vcombine.low %v16706_v12, %v16729_v16 }
 0x33f   : > { %12860 = vmatprep.subr.bf16.mxu0 %v13135_v30  ;;  %v8089_v6 = vsel %vm13595_vm10, %v8084_v51, %v8088_v62  ;;  %v11646_v58 = vcombine.low %v16936_v4, %v16950_v42  ;;  %v8102_v8 = vrot.slane %v8100_v15, 5  ;;  %v8106_v57 = vrot.slane %v8104_v18, 4  ;;  %v8685_v62 = vld [vmem:[#allocation3 + $0x78] sm:$0xe]  ;;  %v16975_v51 = vld [vmem:[#allocation3 + $0x7c] sm:$0xf] }
 0x340   : > { %12659 = vmatmul.mubr.bf16.gmra.mxu1 %v18633_v47  ;;  %v18634_v25 = vcombine.low %v16746_v41, %v16759_v24  ;;  %v16965_v36 = vcombine.low %v8079_v7, %v8089_v6  ;;  %v8097_v44 = vor.u32 %v8096_v11, %v8093_v45  ;;  %v8112_v9 = vrot.slane %v8110_v56, 5  ;;  %v7943_v24 = vld [vmem:[#allocation3 + $0x60] sm:$0xf] }
 0x341   : > { %v11631_v49 = vrot.slane %v8684_v21, 9  ;;  %v8107_v33 = vor.u32 %v8106_v57, %v8102_v8  ;;  %v8798_v12 = vrot.slane %v16943_v22, 5  ;;  %v8801_v16 = vrot.slane %v16953_v2, 5  ;;  %v16982_v15 = vld [vmem:[#allocation3 + $0x80] sm:$0x1] }
 0x342   : > { %12662 = vmatprep.mubr.bf16.mxu1 %v18634_v25  ;;  %v8115_v26 = vshrl.u32 %v7940_v52, 16  ;;  %12861 = vmatpush3.bf16.msra.mxu0 %v13135_v30  ;;  %v8098_v27 = vrot.slane %v8097_v44, 4  ;;  %v8118_v3 = vshll.u32 %v7940_v52, 16  ;;  %v8124_v10 = vshll.u32 %v16878_v40, 16 }
 0x343   : > { %v8128_v41 = vshrl.u32 %v16878_v40, 16  ;;  %12862 = vmatprep.subr.bf16.mxu0 %v13136_v1  ;;  %v8108_v29 = vrot.slane %v8107_v33, 4  ;;  %v16973_v17 = vsel %vm14041_vm15, %v11631_v49, %v8798_v12  ;;  %v8800_v21 = vrot.slane %v8798_v12, 4  ;;  %v7946_v49 = vld [vmem:[#allocation3 + $0x6c] sm:$0xf] }
 0x344   : > { %v8117_v55 = vrot.slane %v8115_v26, 4  ;;  %v8103_v30 = vsel %vm13595_vm10, %v8098_v27, %v8102_v8  ;;  %v8120_v40 = vrot.slane %v8118_v3, 5  ;;  %v8126_v52 = vrot.slane %v8124_v10, 5  ;;  %v17016_v3 = vld [vmem:[#allocation3 + $0x8c] sm:$0x1] }
 0x345   : > { %12783 = vmatmul.mubr.bf16.gmra.mxu0 %v11642_v60  ;;  %v8130_v45 = vrot.slane %v8128_v41, 4  ;;  %v8113_v18 = vsel %vm13595_vm10, %v8108_v29, %v8112_v9  ;;  %v16991_v7 = vsel %vm14041_vm15, %v8800_v21, %v8801_v16  ;;  %v8134_v13 = vshll.u32 %v16882_v28, 16  ;;  %v8686_v9 = vld [vmem:[#allocation3 + $0x84] sm:$0xe]  ;;  %v17010_v16 = vld [vmem:[#allocation3 + $0x88] sm:$0xf] }
 0x346   : > { %12786 = vmatprep.mubr.bf16.mxu0 %v11643_v32  ;;  %v11632_v35 = vrot.slane %v8685_v62, 9  ;;  %12863 = vmatpush3.bf16.msra.mxu0 %v13136_v1  ;;  %v16994_v60 = vcombine.low %v8103_v30, %v8113_v18  ;;  %v11647_v11 = vcombine.low %v16973_v17, %v16991_v7  ;;  %v8121_v56 = vor.u32 %v8120_v40, %v8117_v55  ;;  %v13142_v10 = vld [vmem:[#allocation4 + $0x1d0] sm:$0xff]   ;;  %v13143_v17 = vld [vmem:[#allocation4 + $0x1a0] sm:$0xff]  }
 0x347   : > { %v8131_v47 = vor.u32 %v8130_v45, %v8126_v52  ;;  %12864 = vmatprep.subr.bf16.mxu0 %v13138_v20  ;;  %v18635_v0 = vcombine.low %v16771_v54, %v16785_v48  ;;  %v8136_v32 = vrot.slane %v8134_v13, 5  ;;  %v8805_v6 = vrot.slane %v16975_v51, 5  ;;  %v13139_v18 = vld [vmem:[#allocation4 + $0x1b0] sm:$0xff]  }
 0x348   : > { %v8808_v28 = vrot.slane %v16982_v15, 5  ;;  %v8139_v8 = vshrl.u32 %v7943_v24, 16  ;;  %v8122_v1 = vrot.slane %v8121_v56, 4  ;;  %v8142_v25 = vshll.u32 %v7943_v24, 16  ;;  %v13144_v56 = vld [vmem:[#allocation4 + $0x1c8] sm:$0xff]  }
 0x349   : > { %12663 = vmatmul.mubr.bf16.gmra.mxu1 %v18635_v0  ;;  %v8132_v57 = vrot.slane %v8131_v47, 4  ;;  %v8148_v44 = vshll.u32 %v16901_v38, 16  ;;  %v17007_v33 = vsel %vm14041_vm15, %v11632_v35, %v8805_v6  ;;  %v8807_v54 = vrot.slane %v8805_v6, 4  ;;  %v8687_v35 = vld [vmem:[#allocation3 + $0x90] sm:$0xe] }
 0x34a   : > { %12730 = vmatprep.mubr.bf16.mxu1 %v16835_v5  ;;  %v8141_v48 = vrot.slane %v8139_v8, 4  ;;  %v8152_v12 = vshrl.u32 %v16901_v38, 16  ;;  %12865 = vmatpush3.bf16.msra.mxu0 %v13138_v20  ;;  %v8127_v5 = vsel %vm13595_vm10, %v8122_v1, %v8126_v52  ;;  %v8144_v62 = vrot.slane %v8142_v25, 5  ;;  %v7949_v0 = vld [vmem:[#allocation3 + $0x78] sm:$0xf]  ;;  %v13141_v25 = vld [vmem:[#allocation4 + $0x1a8] sm:$0xff]  }
 0x34b   : > { %v8137_v26 = vsel %vm13595_vm10, %v8132_v57, %v8136_v32  ;;  %v8150_v27 = vrot.slane %v8148_v44, 5  ;;  %12866 = vmatprep.subr.bf16.mxu0 %v13140_v19  ;;  %v17022_v38 = vsel %vm14041_vm15, %v8807_v54, %v8808_v28  ;;  %v8158_v20 = vshll.u32 %v16918_v14, 16  ;;  %v17052_v8 = vld [vmem:[#allocation3 + $0x98] sm:$0x1] }
 0x34c   : > { %v17018_v41 = vcombine.low %v8127_v5, %v8137_v26  ;;  %v8154_v24 = vrot.slane %v8152_v12, 4  ;;  %v11648_v29 = vcombine.low %v17007_v33, %v17022_v38  ;;  %v8145_v21 = vor.u32 %v8144_v62, %v8141_v48  ;;  %v13146_v5 = vld [vmem:[#allocation4 + $0x1c0] sm:$0xff]  }
 0x34d   : > { %12787 = vmatmul.mubr.bf16.gmra.mxu0 %v11644_v63  ;;  %v11633_v55 = vrot.slane %v8686_v9, 9  ;;  %v8812_v30 = vrot.slane %v17010_v16, 5  ;;  %v8160_v52 = vrot.slane %v8158_v20, 5  ;;  %v8815_v45 = vrot.slane %v17016_v3, 5  ;;  %v7952_v20 = vld [vmem:[#allocation3 + $0x84] sm:$0xf] }
 0x34e   : > { %12790 = vmatprep.mubr.bf16.mxu0 %v11645_v37  ;;  %v8155_v40 = vor.u32 %v8154_v24, %v8150_v27  ;;  %v8163_v14 = vshrl.u32 %v7946_v49, 16  ;;  %12867 = vmatpush3.bf16.msra.mxu0 %v13140_v19  ;;  %v8146_v53 = vrot.slane %v8145_v21, 4  ;;  %v8166_v13 = vshll.u32 %v7946_v49, 16  ;;  %v8688_v24 = vld [vmem:[#allocation3 + $0x9c] sm:$0xe] }
 0x34f   : > { %v17037_v34 = vsel %vm14041_vm15, %v11633_v55, %v8812_v30  ;;  %v8814_v63 = vrot.slane %v8812_v30, 4  ;;  %12868 = vmatprep.subr.bf16.mxu0 %v13142_v10  ;;  %v8172_v37 = vshll.u32 %v16943_v22, 16  ;;  %v8176_v47 = vshrl.u32 %v16943_v22, 16 }
 0x350   : > { %v8156_v50 = vrot.slane %v8155_v40, 4  ;;  %v8165_v31 = vrot.slane %v8163_v14, 4  ;;  %v8151_v19 = vsel %vm13595_vm10, %v8146_v53, %v8150_v27  ;;  %v8168_v6 = vrot.slane %v8166_v13, 5  ;;  %v17081_v7 = vpop.f32.mrf.mxu0 }
 0x351   : > { %12731 = vmatmul.mubr.bf16.vlgmr.msra.gmra.mxu1 %v16862_v61  ;;  %v17047_v32 = vsel %vm14041_vm15, %v8814_v63, %v8815_v45  ;;  %v8182_v28 = vshll.u32 %v16953_v2, 16  ;;  %v17050_v61 = vld [vmem:[#allocation3 + $0x94] sm:$0xf]  ;;  %v8174_v1 = vrot.slane %v8172_v37, 5  ;;  %v8178_v57 = vrot.slane %v8176_v47, 4 }
 0x352   : > { %12734 = vmatprep.mubr.bf16.mxu1 %v16891_v39  ;;  %12811 = vmatpush3.bf16.msra.mxu1 %v16838_v23  ;;  %v8161_v22 = vsel %vm13595_vm10, %v8156_v50, %v8160_v52  ;;  %v11649_v39 = vcombine.low %v17037_v34, %v17047_v32  ;;  %v8169_v2 = vor.u32 %v8168_v6, %v8165_v31  ;;  %v11634_v49 = vrot.slane %v8687_v35, 9  ;;  %v17079_v45 = vld [vmem:[#allocation3 + $0xa4] sm:$0x1]  ;;  %v8689_v47 = vld [vmem:[#allocation3 + $0xa8] sm:$0xe]  ;;  %v13145_v6 = vld [vmem:[#allocation4 + $0x198] sm:$0xff]  }
 0x353   : > { %12812 = vmatprep.subr.bf16.mxu1 %v13139_v18  ;;  %12869 = vmatpush3.bf16.msra.mxu0 %v13142_v10  ;;  %v17059_v44 = vcombine.low %v8151_v19, %v8161_v22  ;;  %v8184_v9 = vrot.slane %v8182_v28, 5  ;;  %v8179_v54 = vor.u32 %v8178_v57, %v8174_v1  ;;  %v8819_v23 = vrot.slane %v17050_v61, 5  ;;  %v17099_v28 = vpop.f32.mrf.mxu0 }
 0x354   : > { %12870 = vmatprep.subr.bf16.mxu0 %v13144_v56  ;;  %v8822_v48 = vrot.slane %v17052_v8, 5  ;;  %v8187_v12 = vshrl.u32 %v7949_v0, 16  ;;  %v8170_v26 = vrot.slane %v8169_v2, 4  ;;  %v8190_v62 = vshll.u32 %v7949_v0, 16 }
 0x355   : > { %12791 = vmatmul.mubr.bf16.gmra.mxu0 %v11646_v58  ;;  %v8196_v27 = vshll.u32 %v16975_v51, 16  ;;  %v8200_v10 = vshrl.u32 %v16975_v51, 16  ;;  %v8180_v21 = vrot.slane %v8179_v54, 4  ;;  %v17073_v55 = vsel %vm14041_vm15, %v11634_v49, %v8819_v23  ;;  %v17075_v58 = vld [vmem:[#allocation3 + $0xa0] sm:$0xf] }
 0x356   : > { %12813 = vmatpush3.bf16.msra.mxu1 %v13139_v18  ;;  %12794 = vmatprep.mubr.bf16.mxu0 %v11647_v11  ;;  %v8821_v4 = vrot.slane %v8819_v23, 4  ;;  %v8189_v42 = vrot.slane %v8187_v12, 4  ;;  %v8175_v51 = vsel %vm13595_vm10, %v8170_v26, %v8174_v1  ;;  %v8192_v30 = vrot.slane %v8190_v62, 5  ;;  %v7955_v12 = vld [vmem:[#allocation3 + $0x90] sm:$0xf] }
 0x357   : > { %12814 = vmatprep.subr.bf16.mxu1 %v13141_v25  ;;  %v8198_v40 = vrot.slane %v8196_v27, 5  ;;  %v8202_v52 = vrot.slane %v8200_v10, 4  ;;  %12871 = vmatpush3.bf16.msra.mxu0 %v13144_v56  ;;  %v8185_v11 = vsel %vm13595_vm10, %v8180_v21, %v8184_v9  ;;  %v8206_v18 = vshll.u32 %v16982_v15, 16  ;;  %v17104_v9 = vld [vmem:[#allocation3 + $0xac] sm:$0xf] }
 0x358   : > { %v17088_v14 = vsel %vm14041_vm15, %v8821_v4, %v8822_v48  ;;  %v11635_v53 = vrot.slane %v8688_v24, 9  ;;  %12872 = vmatprep.subr.bf16.mxu0 %v13146_v5  ;;  %v17092_v63 = vcombine.low %v8175_v51, %v8185_v11  ;;  %v8193_v35 = vor.u32 %v8192_v30, %v8189_v42  ;;  %v17113_v48 = vld [vmem:[#allocation3 + $0xb0] sm:$0x1]  ;;  %v13147_v10 = vld [vmem:[#allocation4 + $0x190] sm:$0xff]   ;;  %v17124_v24 = vpop.f32.mrf.mxu0  ;;  %v8690_v51 = vld [vmem:[#allocation3 + $0xb4] sm:$0xe] }
 0x359   : > { %12735 = vmatmul.mubr.bf16.gmra.mxu1 %v16920_v59  ;;  %v11650_v13 = vcombine.low %v17073_v55, %v17088_v14  ;;  %v8203_v59 = vor.u32 %v8202_v52, %v8198_v40  ;;  %v8208_v56 = vrot.slane %v8206_v18, 5  ;;  %v8826_v50 = vrot.slane %v17075_v58, 5  ;;  %v7958_v30 = vld [vmem:[#allocation3 + $0x9c] sm:$0xf]  ;;  %v17135_v11 = vld [vmem:[#allocation3 + $0xb8] sm:$0xf] }
 0x35a   : > { %12738 = vmatprep.mubr.bf16.mxu1 %v16965_v36  ;;  %v8829_v31 = vrot.slane %v17079_v45, 5  ;;  %v8211_v37 = vshrl.u32 %v7952_v20, 16  ;;  %12815 = vmatpush3.bf16.msra.mxu1 %v13141_v25  ;;  %v8194_v15 = vrot.slane %v8193_v35, 4  ;;  %v8214_v19 = vshll.u32 %v7952_v20, 16  ;;  %v7961_v14 = vld [vmem:[#allocation3 + $0xa8] sm:$0xf] }
 0x35b   : > { %v8204_v0 = vrot.slane %v8203_v59, 4  ;;  %v8220_v36 = vshll.u32 %v17010_v16, 16  ;;  %12816 = vmatprep.subr.bf16.mxu1 %v13143_v17  ;;  %12873 = vmatpush3.bf16.msra.mxu0 %v13146_v5  ;;  %v8827_v22 = vsel %vm14041_vm15, %v11635_v53, %v8826_v50  ;;  %v8828_v1 = vrot.slane %v8826_v50, 4  ;;  %v17142_v59 = vld [vmem:[#allocation3 + $0xbc] sm:$0x1]  ;;  %v17144_v50 = vpop.f32.mrf.mxu0 }
 0x35c   : > { %v8213_v57 = vrot.slane %v8211_v37, 4  ;;  %v8224_v2 = vshrl.u32 %v17010_v16, 16  ;;  %v8199_v25 = vsel %vm13595_vm10, %v8194_v15, %v8198_v40  ;;  %v8216_v54 = vrot.slane %v8214_v19, 5 }
 0x35d   : > { %12795 = vmatmul.mubr.bf16.gmra.mxu0 %v11648_v29  ;;  %v8209_v49 = vsel %vm13595_vm10, %v8204_v0, %v8208_v56  ;;  %v8222_v23 = vrot.slane %v8220_v36, 5  ;;  %v8830_v33 = vsel %vm14041_vm15, %v8828_v1, %v8829_v31  ;;  %v8230_v29 = vshll.u32 %v17016_v3, 16  ;;  %v13148_v56 = vld [vmem:[#allocation4 + $0x188] sm:$0xff]  }
 0x35e   : > { %12798 = vmatprep.mubr.bf16.mxu0 %v11649_v39  ;;  %v17118_v16 = vcombine.low %v8199_v25, %v8209_v49  ;;  %v8226_v38 = vrot.slane %v8224_v2, 4  ;;  %12817 = vmatpush3.bf16.msra.mxu1 %v13143_v17  ;;  %v11651_v5 = vcombine.low %v8827_v22, %v8830_v33  ;;  %v8217_v26 = vor.u32 %v8216_v54, %v8213_v57  ;;  %v8691_v57 = vld [vmem:[#allocation3 + $0xc0] sm:$0xe]  ;;  %v17158_v54 = vpop.f32.mrf.mxu0 }
 0x35f   : > { %v11636_v62 = vrot.slane %v8689_v47, 9  ;;  %v8833_v27 = vrot.slane %v17104_v9, 5  ;;  %12818 = vmatprep.subr.bf16.mxu1 %v13145_v6  ;;  %v8232_v32 = vrot.slane %v8230_v29, 5  ;;  %v8836_v39 = vrot.slane %v17113_v48, 5  ;;  %v17163_v29 = vld [vmem:[#allocation3 + $0xc4] sm:$0xf] }
 0x360   : > { %v8227_v34 = vor.u32 %v8226_v38, %v8222_v23  ;;  %v8235_v20 = vshrl.u32 %v7955_v12, 16  ;;  %v8218_v3 = vrot.slane %v8217_v26, 4  ;;  %v8238_v42 = vshll.u32 %v7955_v12, 16 }
 0x361   : > { %12739 = vmatmul.mubr.bf16.gmra.mxu1 %v16994_v60  ;;  %v17131_v21 = vsel %vm14041_vm15, %v11636_v62, %v8833_v27  ;;  %v8835_v4 = vrot.slane %v8833_v27, 4  ;;  %v8244_v60 = vshll.u32 %v17050_v61, 16  ;;  %v8248_v17 = vshrl.u32 %v17050_v61, 16  ;;  %v17168_v27 = vld [vmem:[#allocation3 + $0xc8] sm:$0x1] }
 0x362   : > { %12742 = vmatprep.mubr.bf16.mxu1 %v17018_v41  ;;  %v8228_v40 = vrot.slane %v8227_v34, 4  ;;  %v8237_v52 = vrot.slane %v8235_v20, 4  ;;  %12819 = vmatpush3.bf16.msra.mxu1 %v13145_v6  ;;  %v8223_v41 = vsel %vm13595_vm10, %v8218_v3, %v8222_v23  ;;  %v8240_v53 = vrot.slane %v8238_v42, 5 }
 0x363   : > { %v8837_v18 = vsel %vm14041_vm15, %v8835_v4, %v8836_v39  ;;  %v8254_v35 = vshll.u32 %v17052_v8, 16  ;;  %12820 = vmatprep.subr.bf16.mxu1 %v13147_v10  ;;  %v8246_v37 = vrot.slane %v8244_v60, 5  ;;  %v8250_v47 = vrot.slane %v8248_v17, 4  ;;  %v17179_v4 = vld [vmem:[#allocation4 + $0x238] sm:$0xff]  }
 0x364   : > { %v8233_v61 = vsel %vm13595_vm10, %v8228_v40, %v8232_v32  ;;  %v11652_v31 = vcombine.low %v17131_v21, %v8837_v18  ;;  %v8241_v8 = vor.u32 %v8240_v53, %v8237_v52  ;;  %v11637_v19 = vrot.slane %v8690_v51, 9  ;;  %v17177_v21 = vpop.f32.mrf.mxu0 }
 0x365   : > { %12799 = vmatmul.mubr.bf16.gmra.mxu0 %v11650_v13  ;;  %v17152_v15 = vcombine.low %v8223_v41, %v8233_v61  ;;  %v8256_v0 = vrot.slane %v8254_v35, 5  ;;  %v8251_v36 = vor.u32 %v8250_v47, %v8246_v37  ;;  %v8840_v6 = vrot.slane %v17135_v11, 5  ;;  %v13150_v13 = vld [vmem:[#allocation4 + $0x180] sm:$0xff]  }
 0x366   : > { %12802 = vmatprep.mubr.bf16.mxu0 %v11651_v5  ;;  %v8843_v22 = vrot.slane %v17142_v59, 5  ;;  %v8259_v1 = vshrl.u32 %v7958_v30, 16  ;;  %12821 = vmatpush3.bf16.msra.mxu1 %v13147_v10  ;;  %v8242_v2 = vrot.slane %v8241_v8, 4  ;;  %v8262_v25 = vshll.u32 %v7958_v30, 16  ;;  %v17191_v8 = vld [vmem:[#allocation3 + $0x1c] sm:$0xf] }
 0x367   : > { %v8268_v49 = vshll.u32 %v17075_v58, 16  ;;  %v8272_v55 = vshrl.u32 %v17075_v58, 16  ;;  %12822 = vmatprep.subr.bf16.mxu1 %v13148_v56  ;;  %v8252_v23 = vrot.slane %v8251_v36, 4  ;;  %v8841_v12 = vsel %vm14041_vm15, %v11637_v19, %v8840_v6 }
 0x368   : > { %v8842_v33 = vrot.slane %v8840_v6, 4  ;;  %v8261_v38 = vrot.slane %v8259_v1, 4  ;;  %v8247_v58 = vsel %vm13595_vm10, %v8242_v2, %v8246_v37  ;;  %v8264_v5 = vrot.slane %v8262_v25, 5 }
 0x369   : > { %12743 = vmatmul.mubr.bf16.gmra.mxu1 %v17059_v44  ;;  %v8270_v26 = vrot.slane %v8268_v49, 5  ;;  %v8274_v62 = vrot.slane %v8272_v55, 4  ;;  %v8257_v44 = vsel %vm13595_vm10, %v8252_v23, %v8256_v0  ;;  %v8278_v34 = vshll.u32 %v17079_v45, 16  ;;  %v17193_v0 = vpop.f32.mrf.mxu0  ;;  %v7964_v49 = vld [vmem:[#allocation3 + $0xb4] sm:$0xf]  ;;  %v17205_v23 = vpop.f32.mrf.mxu1 }
 0x36a   : > { %12746 = vmatprep.mubr.bf16.mxu1 %v17092_v63  ;;  %v8844_v10 = vsel %vm14041_vm15, %v8842_v33, %v8843_v22  ;;  %v11638_v32 = vrot.slane %v8691_v57, 9  ;;  %12823 = vmatpush3.bf16.msra.mxu1 %v13148_v56  ;;  %v17175_v39 = vcombine.low %v8247_v58, %v8257_v44  ;;  %v8265_v20 = vor.u32 %v8264_v5, %v8261_v38  ;;  %v9561_v56 = vld [vmem:[#allocation3 + $0x18] sm:$0xf]  ;;  %v17200_v22 = vld [vmem:[#allocation3 + $0x20] sm:$0x1] }
 0x36b   : > { %v11653_v63 = vcombine.low %v8841_v12, %v8844_v10  ;;  %v8275_v3 = vor.u32 %v8274_v62, %v8270_v26  ;;  %12824 = vmatprep.subr.bf16.mxu1 %v13150_v13  ;;  %v8280_v42 = vrot.slane %v8278_v34, 5  ;;  %v8847_v51 = vrot.slane %v17163_v29, 5  ;;  %v17208_v58 = vpop.f32.mrf.mxu0 }
 0x36c   : > { %v8850_v30 = vrot.slane %v17168_v27, 5  ;;  %v8283_v40 = vshrl.u32 %v7961_v14, 16  ;;  %v8266_v45 = vrot.slane %v8265_v20, 4  ;;  %v8286_v60 = vshll.u32 %v7961_v14, 16  ;;  %18636 = vst [vmem:[#allocation20_spill] sm:$0xff] %v17208_v58 }
 0x36d   : > { %12803 = vmatmul.mubr.bf16.gmra.mxu0 %v11652_v31  ;;  %v8276_v52 = vrot.slane %v8275_v3, 4  ;;  %v8292_v17 = vshll.u32 %v17104_v9, 16  ;;  %v8848_v41 = vsel %vm14041_vm15, %v11638_v32, %v8847_v51  ;;  %v8849_v18 = vrot.slane %v8847_v51, 4 }
 0x36e   : > { %12806 = vmatprep.mubr.bf16.mxu0 %v11653_v63  ;;  %v8285_v53 = vrot.slane %v8283_v40, 4  ;;  %v8296_v35 = vshrl.u32 %v17104_v9, 16  ;;  %12825 = vmatpush3.bf16.msra.mxu1 %v13150_v13  ;;  %v8271_v61 = vsel %vm13595_vm10, %v8266_v45, %v8270_v26  ;;  %v8288_v37 = vrot.slane %v8286_v60, 5  ;;  %v9564_v63 = vld [vmem:[#allocation3 + $0x24] sm:$0xf] }
 0x36f   : > { %v8281_v31 = vsel %vm13595_vm10, %v8276_v52, %v8280_v42  ;;  %v8294_v47 = vrot.slane %v8292_v17, 5  ;;  %12906 = vmatprep.subr.bf16.mxu1 %v17179_v4  ;;  %v8851_v9 = vsel %vm14041_vm15, %v8849_v18, %v8850_v30  ;;  %v8302_v6 = vshll.u32 %v17113_v48, 16  ;;  %v17215_v30 = vpop.f32.mrf.mxu1  ;;  %v17218_v17 = vld [vmem:[#allocation3 + $0x28] sm:$0xf] }
 0x370   : > { %v11611_v19 = vcombine.low %v8271_v61, %v8281_v31  ;;  %v8298_v36 = vrot.slane %v8296_v35, 4  ;;  %v11654_v1 = vcombine.low %v8848_v41, %v8851_v9  ;;  %v8289_v57 = vor.u32 %v8288_v37, %v8285_v53  ;;  %v17220_v41 = vpop.f32.mrf.mxu0  ;;  %v7967_v9 = vld [vmem:[#allocation3 + $0xc0] sm:$0xf] }
 0x371   : > { %12747 = vmatmul.mubr.bf16.gmra.mxu1 %v17118_v16  ;;  %v9610_v2 = vshrl.u32 %v9561_v56, 16  ;;  %v9613_v25 = vshll.u32 %v9561_v56, 16  ;;  %v8304_v14 = vrot.slane %v8302_v6, 5  ;;  %v9619_v16 = vshll.u32 %v17191_v8, 16 }
 0x372   : > { %12750 = vmatprep.mubr.bf16.mxu1 %v17152_v15  ;;  %v8299_v55 = vor.u32 %v8298_v36, %v8294_v47  ;;  %v9623_v13 = vshrl.u32 %v17191_v8, 16  ;;  %v8290_v12 = vrot.slane %v8289_v57, 4  ;;  %v9629_v38 = vshll.u32 %v17200_v22, 16  ;;  %v17231_v57 = vpop.f32.mrf.mxu1 }
 0x373   : > { %v9612_v33 = vrot.slane %v9610_v2, 4  ;;  %v9615_v48 = vrot.slane %v9613_v25, 5  ;;  %v9621_v5 = vrot.slane %v9619_v16, 5  ;;  %v8307_v62 = vshrl.u32 %v7964_v49, 16 }
 0x374   : > { %v8300_v15 = vrot.slane %v8299_v55, 4  ;;  %v9625_v26 = vrot.slane %v9623_v13, 4  ;;  %v8295_v44 = vsel %vm13595_vm10, %v8290_v12, %v8294_v47  ;;  %v9631_v34 = vrot.slane %v9629_v38, 5  ;;  %v17226_v47 = vld [vmem:[#allocation3 + $0x2c] sm:$0x1] }
 0x375   : > { %12807 = vmatmul.mubr.bf16.gmra.mxu0 %v11654_v1  ;;  %v9616_v10 = vor.u32 %v9615_v48, %v9612_v33  ;;  %v8310_v32 = vshll.u32 %v7964_v49, 16  ;;  %v8309_v42 = vrot.slane %v8307_v62, 4  ;;  %v8316_v51 = vshll.u32 %v17135_v11, 16  ;;  %v17233_v49 = vpop.f32.mrf.mxu0 }
 0x376   : > { %v8305_v20 = vsel %vm13595_vm10, %v8300_v15, %v8304_v14  ;;  %v9626_v3 = vor.u32 %v9625_v26, %v9621_v5  ;;  %v8320_v60 = vshrl.u32 %v17135_v11, 16  ;;  %v8326_v35 = vshll.u32 %v17142_v59, 16 }
 0x377   : > { %v11612_v40 = vcombine.low %v8295_v44, %v8305_v20  ;;  %v9617_v45 = vrot.slane %v9616_v10, 4  ;;  %v8312_v52 = vrot.slane %v8310_v32, 5  ;;  %v8318_v53 = vrot.slane %v8316_v51, 5  ;;  %v9567_v44 = vld [vmem:[#allocation3 + $0x30] sm:$0xf]  ;;  %v17240_v10 = vpop.f32.mrf.mxu1 }
 0x378   : > { %v9627_v18 = vrot.slane %v9626_v3, 4  ;;  %v9634_v56 = vshrl.u32 %v9564_v63, 16  ;;  %v8322_v37 = vrot.slane %v8320_v60, 4  ;;  %v9637_v11 = vshll.u32 %v9564_v63, 16  ;;  %v17245_v3 = vld [vmem:[#allocation3 + $0x34] sm:$0xf] }
 0x379   : > { %12751 = vmatmul.mubr.bf16.gmra.mxu1 %v17175_v39  ;;  %v9622_v61 = vsel %vm13595_vm10, %v9617_v45, %v9621_v5  ;;  %v8313_v31 = vor.u32 %v8312_v52, %v8309_v42  ;;  %v8328_v6 = vrot.slane %v8326_v35, 5  ;;  %v9643_v1 = vshll.u32 %v17218_v17, 16  ;;  %v17247_v42 = vpop.f32.mrf.mxu0 }
 0x37a   : > { %12754 = vmatprep.mubr.bf16.mxu1 %v11611_v19  ;;  %v9632_v36 = vsel %vm13595_vm10, %v9627_v18, %v9631_v34  ;;  %v9636_v39 = vrot.slane %v9634_v56, 4  ;;  %v8323_v2 = vor.u32 %v8322_v37, %v8318_v53  ;;  %v9639_v25 = vrot.slane %v9637_v11, 5  ;;  %v17252_v56 = vld [vmem:[#allocation3 + $0x38] sm:$0x1] }
 0x37b   : > { %v11687_v59 = vcombine.low %v9622_v61, %v9632_v36  ;;  %v8314_v19 = vrot.slane %v8313_v31, 4  ;;  %v9645_v55 = vrot.slane %v9643_v1, 5  ;;  %v9647_v14 = vshrl.u32 %v17218_v17, 16  ;;  %v17258_v1 = vpop.f32.mrf.mxu0 }
 0x37c   : > { %v9653_v16 = vshll.u32 %v17226_v47, 16  ;;  %v8331_v13 = vshrl.u32 %v7967_v9, 16  ;;  %v8324_v33 = vrot.slane %v8323_v2, 4  ;;  %v9640_v48 = vor.u32 %v9639_v25, %v9636_v39  ;;  %v9570_v39 = vld [vmem:[#allocation3 + $0x3c] sm:$0xf] }
 0x37d   : > { %12874 = vmatprep.mubr.bf16.mxu0 %v11687_v59  ;;  %v8319_v12 = vsel %vm13595_vm10, %v8314_v19, %v8318_v53  ;;  %v8334_v38 = vshll.u32 %v7967_v9, 16  ;;  %v9649_v15 = vrot.slane %v9647_v14, 4  ;;  %v8340_v62 = vshll.u32 %v17163_v29, 16 }
 0x37e   : > { %v9655_v5 = vrot.slane %v9653_v16, 5  ;;  %v8333_v26 = vrot.slane %v8331_v13, 4  ;;  %v8329_v34 = vsel %vm13595_vm10, %v8324_v33, %v8328_v6  ;;  %v9641_v32 = vrot.slane %v9640_v48, 4 }
 0x37f   : > { %v8336_v63 = vrot.slane %v8334_v38, 5  ;;  %v8344_v20 = vshrl.u32 %v17163_v29, 16  ;;  %v11613_v51 = vcombine.low %v8319_v12, %v8329_v34  ;;  %v9650_v45 = vor.u32 %v9649_v15, %v9645_v55  ;;  %v17267_v38 = vld [vmem:[#allocation3 + $0x44] sm:$0x1] }
 0x380   : > { %v8342_v52 = vrot.slane %v8340_v62, 5  ;;  %v8350_v60 = vshll.u32 %v17168_v27, 16  ;;  %v9646_v18 = vsel %vm13595_vm10, %v9641_v32, %v9645_v55  ;;  %v9658_v61 = vshrl.u32 %v9567_v44, 16  ;;  %v17263_v55 = vld [vmem:[#allocation3 + $0x40] sm:$0xf] }
 0x381   : > { %12755 = vmatmul.mubr.bf16.gmra.mxu1 %v11612_v40  ;;  %v8337_v53 = vor.u32 %v8336_v63, %v8333_v26  ;;  %v8346_v35 = vrot.slane %v8344_v20, 4  ;;  %v9651_v29 = vrot.slane %v9650_v45, 4  ;;  %v9661_v37 = vshll.u32 %v9567_v44, 16  ;;  %v17255_v40 = vpop.f32.mrf.mxu1  ;;  %v9573_v63 = vld [vmem:[#allocation3 + $0x48] sm:$0xf] }
 0x382   : > { %12758 = vmatprep.mubr.bf16.mxu1 %v11613_v51  ;;  %v8352_v31 = vrot.slane %v8350_v60, 5  ;;  %v9667_v11 = vshll.u32 %v17245_v3, 16  ;;  %v9660_v6 = vrot.slane %v9658_v61, 4  ;;  %v9671_v27 = vshrl.u32 %v17245_v3, 16 }
 0x383   : > { %v8338_v9 = vrot.slane %v8337_v53, 4  ;;  %v8347_v36 = vor.u32 %v8346_v35, %v8342_v52  ;;  %v9656_v59 = vsel %vm13595_vm10, %v9651_v29, %v9655_v5  ;;  %v9663_v19 = vrot.slane %v9661_v37, 5  ;;  %v17269_v62 = vpop.f32.mrf.mxu1  ;;  %v17278_v37 = vld [vmem:[#allocation3 + $0x4c] sm:$0xf] }
 0x384   : > { %v9669_v2 = vrot.slane %v9667_v11, 5  ;;  %v9677_v25 = vshll.u32 %v17252_v56, 16  ;;  %v11688_v14 = vcombine.low %v9646_v18, %v9656_v59  ;;  %v9673_v12 = vrot.slane %v9671_v27, 4 }
 0x385   : > { %v8343_v16 = vsel %vm13595_vm10, %v8338_v9, %v8342_v52  ;;  %v8348_v13 = vrot.slane %v8347_v36, 4  ;;  %v9664_v33 = vor.u32 %v9663_v19, %v9660_v6  ;;  %v9682_v15 = vshrl.u32 %v9570_v39, 16  ;;  %v13149_v52 = vld [vmem:[#allocation3 + $0x18] sm:$0xff]   ;;  %v17286_v36 = vld [vmem:[#allocation3 + $0x50] sm:$0x1]  ;;  %v17288_v27 = vpop.f32.mrf.mxu1 }
 0x386   : > { %v9679_v48 = vrot.slane %v9677_v25, 5  ;;  %v9685_v26 = vshll.u32 %v9570_v39, 16  ;;  %12875 = vmatmul.mubr.bf16.vlgmr.msra.gmra.mxu0 %v11688_v14  ;;  %v9674_v44 = vor.u32 %v9673_v12, %v9669_v2  ;;  %v9691_v34 = vshll.u32 %v17263_v55, 16  ;;  %v17275_v20 = vpop.f32.mrf.mxu0 }
 0x387   : > { %v8353_v5 = vsel %vm13595_vm10, %v8348_v13, %v8352_v31  ;;  %v9695_v32 = vshrl.u32 %v17263_v55, 16  ;;  %v9665_v45 = vrot.slane %v9664_v33, 4  ;;  %v9684_v60 = vrot.slane %v9682_v15, 4 }
 0x388   : > { %v11614_v51 = vcombine.low %v8343_v16, %v8353_v5  ;;  %v9687_v18 = vrot.slane %v9685_v26, 5  ;;  %v9675_v53 = vrot.slane %v9674_v44, 4  ;;  %v9693_v35 = vrot.slane %v9691_v34, 5  ;;  %v17290_v39 = vpop.f32.mrf.mxu0  ;;  %v9576_v26 = vld [vmem:[#allocation3 + $0x54] sm:$0xf] }
 0x389   : > { %v9697_v61 = vrot.slane %v9695_v32, 4  ;;  %v9701_v29 = vshll.u32 %v17267_v38, 16  ;;  %v9670_v31 = vsel %vm13595_vm10, %v9665_v45, %v9669_v2  ;;  %v17284_v9 = vadd.f32 %v17081_v7, %v17205_v23  ;;  %v17305_v34 = vld [vmem:[#allocation3 + $0x58] sm:$0xf]  ;;  %v17307_v32 = vpop.f32.mrf.mxu1 }
 0x38a   : > { %12759 = vmatmul.mubr.bf16.gmra.mxu1 %v11614_v51  ;;  %v9688_v11 = vor.u32 %v9687_v18, %v9684_v60  ;;  %v9706_v6 = vshrl.u32 %v9573_v63, 16  ;;  %v9680_v59 = vsel %vm13595_vm10, %v9675_v53, %v9679_v48  ;;  %v9709_v14 = vshll.u32 %v9573_v63, 16  ;;  %18637 = vst [vmem:[#allocation32_spill] sm:$0xff] %v17307_v32  ;;  %v17309_v63 = vpop.f32.mrf.mxu0  ;;  %v13151_v18 = vld [vmem:[#allocation3 + $0x24] sm:$0xff]  }
 0x38b   : > { %12826 = vmatprep.mubr.bf16.mxu1 %v13149_v52  ;;  %v9698_v19 = vor.u32 %v9697_v61, %v9693_v35  ;;  %v9703_v25 = vrot.slane %v9701_v29, 5  ;;  %v11689_v2 = vcombine.low %v9670_v31, %v9680_v59  ;;  %v9715_v7 = vshll.u32 %v17278_v37, 16  ;;  %v13162_v61 = vld [vmem:[#allocation4 + $0x230] sm:$0xff]   ;;  %v9579_v59 = vld [vmem:[#allocation3 + $0x60] sm:$0xf] }
 0x38c   : > { %v9689_v16 = vrot.slane %v9688_v11, 4  ;;  %v9708_v13 = vrot.slane %v9706_v6, 4  ;;  %v9711_v12 = vrot.slane %v9709_v14, 5  ;;  %v9719_v33 = vshrl.u32 %v17278_v37, 16  ;;  %v13152_v11 = vld [vmem:[#allocation3 + $0x30] sm:$0xff]   ;;  %v13156_v32 = vld [vmem:[#allocation3 + $0x60] sm:$0xff]  }
 0x38d   : > { %v9699_v23 = vrot.slane %v9698_v19, 4  ;;  %v9725_v15 = vshll.u32 %v17286_v36, 16  ;;  %12878 = vmatprep.mubr.bf16.mxu0 %v11689_v2  ;;  %v9717_v5 = vrot.slane %v9715_v7, 5  ;;  %v17299_v48 = vadd.f32 %v17099_v28, %v17215_v30  ;;  %v17315_v28 = vld [vmem:[#allocation3 + $0x5c] sm:$0x1]  ;;  %v17328_v7 = vpop.f32.mrf.mxu0 }
 0x38e   : > { %v17303_v44 = vadd.f32 %v17124_v24, %v17231_v57  ;;  %v9694_v51 = vsel %vm13595_vm10, %v9689_v16, %v9693_v35  ;;  %v9712_v52 = vor.u32 %v9711_v12, %v9708_v13  ;;  %v9721_v60 = vrot.slane %v9719_v33, 4  ;;  %v17324_v16 = vld [vmem:[#allocation3 + $0x64] sm:$0xf] }
 0x38f   : > { %v9704_v45 = vsel %vm13595_vm10, %v9699_v23, %v9703_v25  ;;  %v9727_v24 = vrot.slane %v9725_v15, 5  ;;  %v9730_v57 = vshrl.u32 %v9576_v26, 16  ;;  %v9733_v53 = vshll.u32 %v9576_v26, 16 }
 0x390   : > { %v11690_v30 = vcombine.low %v9694_v51, %v9704_v45  ;;  %v9713_v29 = vrot.slane %v9712_v52, 4  ;;  %v9722_v31 = vor.u32 %v9721_v60, %v9717_v5  ;;  %v9739_v6 = vshll.u32 %v17305_v34, 16  ;;  %v17333_v45 = vld [vmem:[#allocation3 + $0x68] sm:$0x1] }
 0x391   : > { %v9743_v35 = vshrl.u32 %v17305_v34, 16  ;;  %v9732_v19 = vrot.slane %v9730_v57, 4  ;;  %v9735_v25 = vrot.slane %v9733_v53, 5  ;;  %v9749_v14 = vshll.u32 %v17315_v28, 16 }
 0x392   : > { %12879 = vmatmul.mubr.bf16.gmra.mxu0 %v11690_v30  ;;  %12827 = vmatmul.mubr.bf16.vlgmr.msra.gmra.mxu1 %v13151_v18  ;;  %v17322_v2 = vadd.f32 %v17158_v54, %v17255_v40  ;;  %v17326_v13 = vpop.f32.mrf.mxu1  ;;  %v9718_v23 = vsel %vm13595_vm10, %v9713_v29, %v9717_v5  ;;  %v9723_v12 = vrot.slane %v9722_v31, 4  ;;  %v9741_v33 = vrot.slane %v9739_v6, 5  ;;  %v13164_v18 = vld [vmem:[#allocation4 + $0x228] sm:$0xff]  }
 0x393   : > { %12830 = vmatprep.mubr.bf16.mxu1 %v13152_v11  ;;  %v9745_v15 = vrot.slane %v9743_v35, 4  ;;  %12907 = vmatpush3.bf16.msra.mxu1 %v17179_v4  ;;  %v9736_v26 = vor.u32 %v9735_v25, %v9732_v19  ;;  %v9751_v51 = vrot.slane %v9749_v14, 5  ;;  %v9754_v54 = vshrl.u32 %v9579_v59, 16  ;;  %v13153_v29 = vld [vmem:[#allocation3 + $0x3c] sm:$0xff]   ;;  %v9582_v25 = vld [vmem:[#allocation3 + $0x6c] sm:$0xf] }
 0x394   : > { %v9757_v40 = vshll.u32 %v9579_v59, 16  ;;  %12908 = vmatprep.subr.bf16.mxu1 %v13162_v61  ;;  %v9728_v52 = vsel %vm13595_vm10, %v9723_v12, %v9727_v24  ;;  %v9763_v30 = vshll.u32 %v17324_v16, 16  ;;  %v9767_v5 = vshrl.u32 %v17324_v16, 16  ;;  %v17339_v11 = vpop.f32.mrf.mxu1 }
 0x395   : > { %v9746_v60 = vor.u32 %v9745_v15, %v9741_v33  ;;  %v11691_v57 = vcombine.low %v9718_v23, %v9728_v52  ;;  %v9737_v53 = vrot.slane %v9736_v26, 4  ;;  %v9756_v4 = vrot.slane %v9754_v54, 4  ;;  %v17352_v15 = vld [vmem:[#allocation3 + $0x70] sm:$0xf]  ;;  %v17354_v26 = vld [vmem:[#allocation3 + $0x74] sm:$0x1] }
 0x396   : > { %v9759_v31 = vrot.slane %v9757_v40, 5  ;;  %v17341_v6 = vpop.f32.mrf.mxu0  ;;  %v9765_v59 = vrot.slane %v9763_v30, 5  ;;  %v9769_v19 = vrot.slane %v9767_v5, 4  ;;  %v9773_v24 = vshll.u32 %v17333_v45, 16  ;;  %v13166_v40 = vld [vmem:[#allocation4 + $0x220] sm:$0xff]  }
 0x397   : > { %v9747_v35 = vrot.slane %v9746_v60, 4  ;;  %12909 = vmatpush3.bf16.msra.mxu1 %v13162_v61  ;;  %12882 = vmatprep.mubr.bf16.mxu0 %v11691_v57  ;;  %v17346_v23 = vadd.f32 %v17177_v21, %v17269_v62  ;;  %v17350_v12 = vadd.f32 %v17193_v0, %v17288_v27  ;;  %v9742_v61 = vsel %vm13595_vm10, %v9737_v53, %v9741_v33  ;;  %v13154_v62 = vld [vmem:[#allocation3 + $0x48] sm:$0xff]   ;;  %v9585_v57 = vld [vmem:[#allocation3 + $0x78] sm:$0xf] }
 0x398   : > { %v9760_v14 = vor.u32 %v9759_v31, %v9756_v4  ;;  %v17356_v54 = vpop.f32.mrf.mxu0  ;;  %v9770_v60 = vor.u32 %v9769_v19, %v9765_v59  ;;  %v9775_v21 = vrot.slane %v9773_v24, 5  ;;  %12910 = vmatprep.subr.bf16.mxu1 %v13164_v18  ;;  %v9778_v27 = vshrl.u32 %v9582_v25, 16  ;;  %v12549_v4 = vpop.f32.mrf.mxu1 }
 0x399   : > { %18638 = vst [vmem:[#allocation21_spill] sm:$0xff] %v17346_v23  ;;  %18639 = vst [vmem:[#allocation27_spill] sm:$0xff] %v17350_v12  ;;  %v9752_v52 = vsel %vm13595_vm10, %v9747_v35, %v9751_v51  ;;  %v9781_v5 = vshll.u32 %v9582_v25, 16  ;;  %v9791_v33 = vshrl.u32 %v17352_v15, 16  ;;  %v9797_v53 = vshll.u32 %v17354_v26, 16 }
 0x39a   : > { %18640 = vst [vmem:[#allocation22_spill] sm:$0xff] %v17356_v54  ;;  %v11692_v30 = vcombine.low %v9742_v61, %v9752_v52  ;;  %12831 = vmatmul.mubr.bf16.gmra.mxu1 %v13153_v29  ;;  %v9761_v0 = vrot.slane %v9760_v14, 4  ;;  %v9771_v31 = vrot.slane %v9770_v60, 4  ;;  %v9787_v54 = vshll.u32 %v17352_v15, 16  ;;  %v17365_v51 = vld [vmem:[#allocation3 + $0x7c] sm:$0xf]  ;;  %v17375_v14 = vpop.f32.mrf.mxu0 }
 0x39b   : > { %12834 = vmatprep.mubr.bf16.mxu1 %v13154_v62  ;;  %12911 = vmatpush3.bf16.msra.mxu1 %v13164_v18  ;;  %v9780_v35 = vrot.slane %v9778_v27, 4  ;;  %v9783_v19 = vrot.slane %v9781_v5, 5  ;;  %v17371_v24 = vadd.f32 %v17220_v41, %v17326_v13  ;;  %v17373_v25 = vld [vmem:[#allocation3 + $0x80] sm:$0x1]  ;;  %v13168_v61 = vld [vmem:[#allocation4 + $0x218] sm:$0xff]   ;;  %v9793_v60 = vrot.slane %v9791_v33, 4  ;;  %v6657_v5 = vpop.f32.mrf.mxu1 }
 0x39c   : > { %12883 = vmatmul.mubr.bf16.gmra.mxu0 %v11692_v30  ;;  %v9766_v29 = vsel %vm13595_vm10, %v9761_v0, %v9765_v59  ;;  %12912 = vmatprep.subr.bf16.mxu1 %v13166_v40  ;;  %v9776_v52 = vsel %vm13595_vm10, %v9771_v31, %v9775_v21  ;;  %v9789_v18 = vrot.slane %v9787_v54, 5  ;;  %v9799_v62 = vrot.slane %v9797_v53, 5  ;;  %v13155_v41 = vld [vmem:[#allocation3 + $0x54] sm:$0xff]   ;;  %v17386_v53 = vpop.f32.mrf.mxu0  ;;  %v17388_v23 = vld [vmem:[#allocation3 + $0x88] sm:$0xf] }
 0x39d   : > { %18641 = vst [vmem:[#allocation26_spill] sm:$0xff] %v17371_v24  ;;  %v11693_v30 = vcombine.low %v9766_v29, %v9776_v52  ;;  %v9784_v59 = vor.u32 %v9783_v19, %v9780_v35  ;;  %v9802_v0 = vshrl.u32 %v9585_v57, 16  ;;  %v9805_v27 = vshll.u32 %v9585_v57, 16  ;;  %v9588_v57 = vld [vmem:[#allocation3 + $0x84] sm:$0xf]  ;;  %18643 = vst [vmem:[#allocation14_spill] sm:$0xff] %v17386_v53 }
 0x39e   : > { %v9794_v12 = vor.u32 %v9793_v60, %v9789_v18  ;;  %v9811_v13 = vshll.u32 %v17365_v51, 16  ;;  %v9815_v24 = vshrl.u32 %v17365_v51, 16  ;;  %v9821_v58 = vshll.u32 %v17373_v25, 16  ;;  %v13170_v29 = vld [vmem:[#allocation4 + $0x210] sm:$0xff]  }
 0x39f   : > { %12913 = vmatpush3.bf16.msra.mxu1 %v13166_v40  ;;  %12886 = vmatprep.mubr.bf16.mxu0 %v11693_v30  ;;  %v9785_v21 = vrot.slane %v9784_v59, 4  ;;  %v9804_v54 = vrot.slane %v9802_v0, 4  ;;  %v9807_v31 = vrot.slane %v9805_v27, 5  ;;  %v17384_v33 = vadd.f32 %v17233_v49, %v17339_v11  ;;  %v17398_v11 = vld [vmem:[#allocation3 + $0x8c] sm:$0x1] }
 0x3a0   : > { %12914 = vmatprep.subr.bf16.mxu1 %v13168_v61  ;;  %v9795_v35 = vrot.slane %v9794_v12, 4  ;;  %v9813_v19 = vrot.slane %v9811_v13, 5  ;;  %v9817_v52 = vrot.slane %v9815_v24, 4  ;;  %v9823_v60 = vrot.slane %v9821_v58, 5 }
 0x3a1   : > { %18642 = vst [vmem:[#allocation28_spill] sm:$0xff] %v17384_v33  ;;  %v9790_v40 = vsel %vm13595_vm10, %v9785_v21, %v9789_v18  ;;  %v9808_v30 = vor.u32 %v9807_v31, %v9804_v54  ;;  %v17393_v59 = vadd.f32 %v17247_v42, %v12549_v4  ;;  %v17396_v49 = vadd.f32 %v17258_v1, %v6657_v5  ;;  %v12552_v0 = vpop.f32.mrf.mxu1  ;;  %v9591_v4 = vld [vmem:[#allocation3 + $0x90] sm:$0xf]  ;;  %v13172_v21 = vld [vmem:[#allocation4 + $0x208] sm:$0xff]  }
 0x3a2   : > { %12835 = vmatmul.mubr.bf16.gmra.mxu1 %v13155_v41  ;;  %v9800_v12 = vsel %vm13595_vm10, %v9795_v35, %v9799_v62  ;;  %v9818_v58 = vor.u32 %v9817_v52, %v9813_v19  ;;  %v9826_v24 = vshrl.u32 %v9588_v57, 16  ;;  %v9829_v27 = vshll.u32 %v9588_v57, 16  ;;  %v17404_v5 = vpop.f32.mrf.mxu0  ;;  %v17407_v35 = vld [vmem:[#allocation3 + $0x94] sm:$0xf] }
 0x3a3   : > { %18644 = vst [vmem:[#allocation25_spill] sm:$0xff] %v17393_v59  ;;  %18645 = vst [vmem:[#allocation29_spill] sm:$0xff] %v17396_v49  ;;  %12838 = vmatprep.mubr.bf16.mxu1 %v13156_v32  ;;  %12915 = vmatpush3.bf16.msra.mxu1 %v13168_v61  ;;  %v11694_v18 = vcombine.low %v9790_v40, %v9800_v12  ;;  %v9809_v41 = vrot.slane %v9808_v30, 4  ;;  %v9835_v13 = vshll.u32 %v17388_v23, 16  ;;  %v9839_v42 = vshrl.u32 %v17388_v23, 16  ;;  %v6670_v1 = vpop.f32.mrf.mxu1 }
 0x3a4   : > { %12916 = vmatprep.subr.bf16.mxu1 %v13170_v29  ;;  %v9819_v54 = vrot.slane %v9818_v58, 4  ;;  %v9828_v31 = vrot.slane %v9826_v24, 4  ;;  %v9831_v62 = vrot.slane %v9829_v27, 5  ;;  %v9845_v32 = vshll.u32 %v17398_v11, 16  ;;  %v17414_v30 = vld [vmem:[#allocation3 + $0x98] sm:$0x1]  ;;  %v17416_v53 = vpop.f32.mrf.mxu0 }
 0x3a5   : > { %12887 = vmatmul.mubr.bf16.gmra.mxu0 %v11694_v18  ;;  %v9814_v61 = vsel %vm13595_vm10, %v9809_v41, %v9813_v19  ;;  %v9837_v57 = vrot.slane %v9835_v13, 5  ;;  %v9841_v52 = vrot.slane %v9839_v42, 4  ;;  %v17412_v40 = vadd.f32 %v17275_v20, %v12552_v0  ;;  %18647 = vst [vmem:[#allocation17_spill] sm:$0xff] %v17414_v30  ;;  %v12553_v12 = vpop.f32.mrf.mxu1  ;;  %18648 = vst [vmem:[#allocation23_spill] sm:$0xff] %v17416_v53  ;;  %v13157_v19 = vld [vmem:[#allocation3 + $0x6c] sm:$0xff]   ;;  %v13158_v20 = vld [vmem:[#allocation3 + $0x78] sm:$0xff]  }
 0x3a6   : > { %v9824_v58 = vsel %vm13595_vm10, %v9819_v54, %v9823_v60  ;;  %v9832_v24 = vor.u32 %v9831_v62, %v9828_v31  ;;  %v9847_v27 = vrot.slane %v9845_v32, 5  ;;  %v9850_v49 = vshrl.u32 %v9591_v4, 16  ;;  %v17421_v0 = vpop.f32.mrf.mxu0  ;;  %v13173_v42 = vld [vmem:[#allocation4 + $0x200] sm:$0xff]  }
 0x3a7   : > { %18646 = vst [vmem:[#allocation30_spill] sm:$0xff] %v17412_v40  ;;  %12917 = vmatpush3.bf16.msra.mxu1 %v13170_v29  ;;  %v11695_v18 = vcombine.low %v9814_v61, %v9824_v58  ;;  %v9842_v59 = vor.u32 %v9841_v52, %v9837_v57  ;;  %v9853_v41 = vshll.u32 %v9591_v4, 16  ;;  %v9859_v13 = vshll.u32 %v17407_v35, 16  ;;  %v6673_v54 = vpop.f32.mrf.mxu1  ;;  %v9594_v31 = vld [vmem:[#allocation3 + $0x9c] sm:$0xf] }
 0x3a8   : > { %12918 = vmatprep.subr.bf16.mxu1 %v13172_v21  ;;  %v9833_v40 = vrot.slane %v9832_v24, 4  ;;  %v9852_v53 = vrot.slane %v9850_v49, 4  ;;  %v9863_v33 = vshrl.u32 %v17407_v35, 16  ;;  %v9869_v60 = vshll.u32 %v17414_v30, 16  ;;  %v17428_v61 = vld [vmem:[#allocation3 + $0xa0] sm:$0xf]  ;;  %v17430_v52 = vpop.f32.mrf.mxu0 }
 0x3a9   : > { %12890 = vmatprep.mubr.bf16.mxu0 %v11695_v18  ;;  %v9843_v29 = vrot.slane %v9842_v59, 4  ;;  %v9855_v62 = vrot.slane %v9853_v41, 5  ;;  %v9861_v4 = vrot.slane %v9859_v13, 5  ;;  %v17426_v32 = vadd.f32 %v17290_v39, %v6670_v1  ;;  %18650 = vst [vmem:[#allocation24_spill] sm:$0xff] %v17430_v52  ;;  %v17437_v59 = vld [vmem:[#allocation3 + $0xa4] sm:$0x1] }
 0x3aa   : > { %12839 = vmatmul.mubr.bf16.gmra.mxu1 %v13157_v19  ;;  %v9838_v49 = vsel %vm13595_vm10, %v9833_v40, %v9837_v57  ;;  %v9865_v58 = vrot.slane %v9863_v33, 4  ;;  %v9871_v24 = vrot.slane %v9869_v60, 5  ;;  %v17435_v30 = vadd.f32 %v17309_v63, %v12553_v12  ;;  %v9597_v13 = vld [vmem:[#allocation3 + $0xa8] sm:$0xf]  ;;  %v17449_v60 = vld [vmem:[#allocation3 + $0xac] sm:$0xf] }
 0x3ab   : > { %18649 = vst [vmem:[#allocation31_spill] sm:$0xff] %v17426_v32  ;;  %12842 = vmatprep.mubr.bf16.mxu1 %v13158_v20  ;;  %12919 = vmatpush3.bf16.msra.mxu1 %v13172_v21  ;;  %v9848_v39 = vsel %vm13595_vm10, %v9843_v29, %v9847_v27  ;;  %v9856_v1 = vor.u32 %v9855_v62, %v9852_v53  ;;  %v9874_v19 = vshrl.u32 %v9594_v31, 16  ;;  %v9877_v33 = vshll.u32 %v9594_v31, 16 }
 0x3ac   : > { %18651 = vst [vmem:[#allocation13_spill] sm:$0xff] %v17435_v30  ;;  %v17442_v18 = vadd.f32 %v17328_v7, %v6673_v54  ;;  %12920 = vmatprep.subr.bf16.mxu1 %v13173_v42  ;;  %v11696_v41 = vcombine.low %v9838_v49, %v9848_v39  ;;  %v9866_v57 = vor.u32 %v9865_v58, %v9861_v4  ;;  %v9883_v40 = vshll.u32 %v17428_v61, 16  ;;  %v17445_v63 = vpop.f32.mrf.mxu0  ;;  %v13159_v39 = vld [vmem:[#allocation3 + $0x84] sm:$0xff]  }
 0x3ad   : > { %v9857_v12 = vrot.slane %v9856_v1, 4  ;;  %v9876_v20 = vrot.slane %v9874_v19, 4  ;;  %v9887_v21 = vshrl.u32 %v17428_v61, 16  ;;  %v9893_v27 = vshll.u32 %v17437_v59, 16  ;;  %v12556_v53 = vpop.f32.mrf.mxu1 }
 0x3ae   : > { %18652 = vst [vmem:[#allocation19_spill] sm:$0xff] %v17442_v18  ;;  %12891 = vmatmul.mubr.bf16.gmra.mxu0 %v11696_v41  ;;  %v9867_v7 = vrot.slane %v9866_v57, 4  ;;  %v9879_v54 = vrot.slane %v9877_v33, 5  ;;  %v9885_v29 = vrot.slane %v9883_v40, 5  ;;  %v17452_v31 = vadd.f32 %v17341_v6, %v12556_v53  ;;  %v17454_v62 = vpop.f32.mrf.mxu0  ;;  %v17462_v33 = vld [vmem:[#allocation3 + $0xb0] sm:$0x1] }
 0x3af   : > { %18654 = vst [vmem:[#allocation18_spill] sm:$0xff] %v17454_v62  ;;  %12921 = vmatpush3.bf16.msra.mxu1 %v13173_v42  ;;  %v9862_v49 = vsel %vm13595_vm10, %v9857_v12, %v9861_v4  ;;  %v9889_v58 = vrot.slane %v9887_v21, 4  ;;  %v9898_v1 = vshrl.u32 %v9597_v13, 16  ;;  %v17458_v19 = vpop.f32.mrf.mxu1  ;;  %v9901_v40 = vshll.u32 %v9597_v13, 16  ;;  %v13161_v53 = vld [vmem:[#allocation3 + $0x90] sm:$0xff]  }
 0x3b0   : > { %18653 = vst [vmem:[#allocation15_spill] sm:$0xff] %v17452_v31  ;;  %18655 = vst [vmem:[#allocation33_spill] sm:$0xff] %v17458_v19  ;;  %v9872_v41 = vsel %vm13595_vm10, %v9867_v7, %v9871_v24  ;;  %v9880_v57 = vor.u32 %v9879_v54, %v9876_v20  ;;  %v9907_v6 = vshll.u32 %v17449_v60, 16  ;;  %v17465_v62 = vpop.f32.mrf.mxu0  ;;  %v9911_v12 = vshrl.u32 %v17449_v60, 16  ;;  %v9600_v20 = vld [vmem:[#allocation3 + $0xb4] sm:$0xf] }
 0x3b1   : > { %v11697_v42 = vcombine.low %v9862_v49, %v9872_v41  ;;  %v9890_v52 = vor.u32 %v9889_v58, %v9885_v29  ;;  %v9900_v4 = vrot.slane %v9898_v1, 4  ;;  %v12557_v21 = vpop.f32.mrf.mxu1  ;;  %v9895_v19 = vrot.slane %v9893_v27, 5 }
 0x3b2   : > { %12843 = vmatmul.mubr.bf16.gmra.mxu1 %v13159_v39  ;;  %v9881_v31 = vrot.slane %v9880_v57, 4  ;;  %v9903_v18 = vrot.slane %v9901_v40, 5  ;;  %v9909_v24 = vrot.slane %v9907_v6, 5  ;;  %v17468_v7 = vpop.f32.mrf.mxu0  ;;  %v9913_v54 = vrot.slane %v9911_v12, 4  ;;  %v17476_v39 = vld [vmem:[#allocation3 + $0xb8] sm:$0xf] }
 0x3b3   : > { %12846 = vmatprep.mubr.bf16.mxu1 %v13161_v53  ;;  %18656 = vst [vmem:[#allocation34_spill] sm:$0xff] %v17468_v7  ;;  %12894 = vmatprep.mubr.bf16.mxu0 %v11697_v42  ;;  %v9891_v13 = vrot.slane %v9890_v52, 4  ;;  %v9917_v30 = vshll.u32 %v17462_v33, 16  ;;  %v17472_v49 = vadd.f32 %v17375_v14, %v12557_v21  ;;  %v17474_v58 = vpop.f32.mrf.mxu1  ;;  %v17484_v40 = vld [vmem:[#allocation3 + $0xbc] sm:$0x1]  ;;  %v9922_v6 = vshrl.u32 %v9600_v20, 16 }
 0x3b4   : > { %18658 = vst [vmem:[#allocation43_spill] sm:$0xff] %v17474_v58  ;;  %v9886_v27 = vsel %vm13595_vm10, %v9881_v31, %v9885_v29  ;;  %v9904_v1 = vor.u32 %v9903_v18, %v9900_v4  ;;  %v9914_v52 = vor.u32 %v9913_v54, %v9909_v24  ;;  %18659 = vst [vmem:[#allocation36_spill] sm:$0xff] %v17484_v40  ;;  %v9925_v53 = vshll.u32 %v9600_v20, 16  ;;  %v13163_v7 = vld [vmem:[#allocation3 + $0x9c] sm:$0xff]  }
 0x3b5   : > { %18657 = vst [vmem:[#allocation35_spill] sm:$0xff] %v17472_v49  ;;  %v17480_v41 = vpop.f32.mrf.mxu0  ;;  %v9896_v57 = vsel %vm13595_vm10, %v9891_v13, %v9895_v19  ;;  %v9931_v12 = vshll.u32 %v17476_v39, 16  ;;  %v9935_v21 = vshrl.u32 %v17476_v39, 16  ;;  %v9603_v49 = vld [vmem:[#allocation3 + $0xc0] sm:$0xf]  ;;  %v9919_v31 = vrot.slane %v9917_v30, 5 }
 0x3b6   : > { %v11698_v14 = vcombine.low %v9886_v27, %v9896_v57  ;;  %v9905_v42 = vrot.slane %v9904_v1, 4  ;;  %v9915_v18 = vrot.slane %v9914_v52, 4  ;;  %v9924_v4 = vrot.slane %v9922_v6, 4  ;;  %v17490_v13 = vld [vmem:[#allocation3 + $0xc4] sm:$0xf]  ;;  %v13165_v57 = vld [vmem:[#allocation3 + $0xa8] sm:$0xff]  }
 0x3b7   : > { %v17488_v29 = vpop.f32.mrf.mxu0  ;;  %v9927_v58 = vrot.slane %v9925_v53, 5  ;;  %v12560_v19 = vpop.f32.mrf.mxu1  ;;  %18661 = vst [vmem:[#allocation37_spill] sm:$0xff] %v17490_v13  ;;  %v9933_v54 = vrot.slane %v9931_v12, 5  ;;  %v9937_v20 = vrot.slane %v9935_v21, 4  ;;  %v9941_v27 = vshll.u32 %v17484_v40, 16 }
 0x3b8   : > { %18660 = vst [vmem:[#allocation44_spill] sm:$0xff] %v17488_v29  ;;  %12895 = vmatmul.mubr.bf16.gmra.mxu0 %v11698_v14  ;;  %v17494_v1 = vadd.f32 %v17404_v5, %v12560_v19  ;;  %v9910_v52 = vsel %vm13595_vm10, %v9905_v42, %v9909_v24  ;;  %v9920_v30 = vsel %vm13595_vm10, %v9915_v18, %v9919_v31  ;;  %v9946_v53 = vshrl.u32 %v9603_v49, 16  ;;  %v17504_v29 = vld [vmem:[#allocation3 + $0xc8] sm:$0x1] }
 0x3b9   : > { %v17496_v32 = vpop.f32.mrf.mxu0  ;;  %v9928_v6 = vor.u32 %v9927_v58, %v9924_v4  ;;  %v17502_v14 = vpop.f32.mrf.mxu1  ;;  %v11699_v12 = vcombine.low %v9910_v52, %v9920_v30  ;;  %v9938_v21 = vor.u32 %v9937_v20, %v9933_v54  ;;  %18664 = vst [vmem:[#allocation39_spill] sm:$0xff] %v17504_v29  ;;  %v9949_v5 = vshll.u32 %v9603_v49, 16 }
 0x3ba   : > { %18662 = vst [vmem:[#allocation38_spill] sm:$0xff] %v17494_v1  ;;  %12847 = vmatmul.mubr.bf16.gmra.mxu1 %v13163_v7  ;;  %18663 = vst [vmem:[#allocation48_spill] sm:$0xff] %v17502_v14  ;;  %v9955_v19 = vshll.u32 %v17490_v13, 16  ;;  %v9948_v24 = vrot.slane %v9946_v53, 4  ;;  %v9959_v42 = vshrl.u32 %v17490_v13, 16  ;;  %v9943_v58 = vrot.slane %v9941_v27, 5 }
 0x3bb   : > { %12850 = vmatprep.mubr.bf16.mxu1 %v13165_v57  ;;  %v17507_v1 = vpop.f32.mrf.mxu0  ;;  %v9929_v40 = vrot.slane %v9928_v6, 4  ;;  %v12561_v18 = vpop.f32.mrf.mxu1  ;;  %12898 = vmatprep.mubr.bf16.mxu0 %v11699_v12  ;;  %v9939_v7 = vrot.slane %v9938_v21, 4  ;;  %v9951_v31 = vrot.slane %v9949_v5, 5  ;;  %v9965_v49 = vshll.u32 %v17504_v29, 16  ;;  %v9606_v6 = vld [vmem:[#allocation3 + $0xcc] sm:$0xf] }
 0x3bc   : > { %18665 = vst [vmem:[#allocation49_spill] sm:$0xff] %v17507_v1  ;;  %v9957_v4 = vrot.slane %v9955_v19, 5  ;;  %v9961_v20 = vrot.slane %v9959_v42, 4  ;;  %v17514_v30 = vadd.f32 %v17421_v0, %v12561_v18  ;;  %v17524_v5 = vld [vmem:[#allocation3 + $0xd0] sm:$0xf]  ;;  %v13167_v29 = vld [vmem:[#allocation3 + $0xb4] sm:$0xff]  }
 0x3bd   : > { %v17510_v52 = vpop.f32.mrf.mxu0  ;;  %v17516_v57 = vpop.f32.mrf.mxu1  ;;  %v9934_v53 = vsel %vm13595_vm10, %v9929_v40, %v9933_v54  ;;  %v9944_v12 = vsel %vm13595_vm10, %v9939_v7, %v9943_v58  ;;  %v9952_v27 = vor.u32 %v9951_v31, %v9948_v24  ;;  %v10381_v0 = vrot.slane %v17191_v8, 5  ;;  %v10315_v31 = vld [vmem:[#allocation3 + $0x18] sm:$0xe]  ;;  %v13171_v13 = vld [vmem:[#allocation3 + $0xcc] sm:$0xff]  }
 0x3be   : > { %18666 = vst [vmem:[#allocation40_spill] sm:$0xff] %v17514_v30  ;;  %18667 = vst [vmem:[#allocation54_spill] sm:$0xff] %v17516_v57  ;;  %v11700_v19 = vcombine.low %v9934_v53, %v9944_v12  ;;  %v9962_v42 = vor.u32 %v9961_v20, %v9957_v4  ;;  %v13169_v57 = vld [vmem:[#allocation3 + $0xc0] sm:$0xff]   ;;  %v9970_v40 = vshrl.u32 %v9606_v6, 16  ;;  %v9973_v54 = vshll.u32 %v9606_v6, 16 }
 0x3bf   : > { %v17522_v21 = vpop.f32.mrf.mxu0  ;;  %v9953_v18 = vrot.slane %v9952_v27, 4  ;;  %v9967_v7 = vrot.slane %v9965_v49, 5  ;;  %v10383_v20 = vrot.slane %v10381_v0, 4  ;;  %v9979_v53 = vshll.u32 %v17524_v5, 16 }
 0x3c0   : > { %v12564_v1 = vpop.f32.mrf.mxu1  ;;  %12899 = vmatmul.mubr.bf16.gmra.mxu0 %v11700_v19  ;;  %v9963_v24 = vrot.slane %v9962_v42, 4  ;;  %v10384_v8 = vrot.slane %v17200_v22, 5  ;;  %v9975_v12 = vrot.slane %v9973_v54, 5  ;;  %v9983_v42 = vshrl.u32 %v17524_v5, 16 }
 0x3c1   : > { %v17528_v30 = vadd.f32 %v17445_v63, %v12564_v1  ;;  %v17530_v14 = vpop.f32.mrf.mxu0  ;;  %v17536_v63 = vld [vmem:[#allocation3 + $0xd4] sm:$0x1]  ;;  %v9972_v1 = vrot.slane %v9970_v40, 4  ;;  %v9958_v27 = vsel %vm13595_vm10, %v9953_v18, %v9957_v4  ;;  %v9981_v19 = vrot.slane %v9979_v53, 5 }
 0x3c2   : > { %12851 = vmatmul.mubr.bf16.gmra.mxu1 %v13167_v29  ;;  %v17532_v58 = vpop.f32.mrf.mxu1  ;;  %v9968_v29 = vsel %vm13595_vm10, %v9963_v24, %v9967_v7  ;;  %v11711_v22 = vrot.slane %v10315_v31, 9  ;;  %v10385_v4 = vsel %vm14041_vm15, %v10383_v20, %v10384_v8  ;;  %v9985_v18 = vrot.slane %v9983_v42, 4  ;;  %v10316_v7 = vld [vmem:[#allocation3 + $0x24] sm:$0xe]  ;;  %v10317_v42 = vld [vmem:[#allocation3 + $0x30] sm:$0xe] }
 0x3c3   : > { %18668 = vst [vmem:[#allocation41_spill] sm:$0xff] %v17528_v30  ;;  %18669 = vst [vmem:[#allocation53_spill] sm:$0xff] %v17532_v58  ;;  %12854 = vmatprep.mubr.bf16.mxu1 %v13169_v57  ;;  %v17538_v6 = vpop.f32.mrf.mxu0  ;;  %v11701_v30 = vcombine.low %v9958_v27, %v9968_v29  ;;  %v9976_v58 = vor.u32 %v9975_v12, %v9972_v1  ;;  %v9989_v24 = vshll.u32 %v17536_v63, 16  ;;  %v10388_v53 = vrot.slane %v17218_v17, 5 }
 0x3c4   : > { %v12565_v49 = vpop.f32.mrf.mxu1  ;;  %v10382_v31 = vsel %vm14041_vm15, %v11711_v22, %v10381_v0  ;;  %v9986_v29 = vor.u32 %v9985_v18, %v9981_v19  ;;  %v10318_v0 = vld [vmem:[#allocation3 + $0x3c] sm:$0xe] }
 0x3c5   : > { %v17546_v57 = vadd.f32 %v17465_v62, %v12565_v49  ;;  %v17548_v40 = vpop.f32.mrf.mxu0  ;;  %v17558_v62 = vadd.f32 %v17144_v50, %v17240_v10  ;;  %12902 = vmatprep.mubr.bf16.mxu0 %v11701_v30  ;;  %v9977_v1 = vrot.slane %v9976_v58, 4  ;;  %v9991_v20 = vrot.slane %v9989_v24, 5 }
 0x3c6   : > { %v17550_v54 = vpop.f32.mrf.mxu1  ;;  %v10390_v8 = vrot.slane %v10388_v53, 4  ;;  %v10391_v49 = vrot.slane %v17226_v47, 5  ;;  %v11712_v50 = vrot.slane %v10316_v7, 9  ;;  %v10395_v10 = vrot.slane %v17245_v3, 5 }
 0x3c7   : > { %18670 = vst [vmem:[#allocation42_spill] sm:$0xff] %v17546_v57  ;;  %v17562_v12 = vpop.f32.mrf.mxu0  ;;  %v11727_v57 = vcombine.low %v10382_v31, %v10385_v4  ;;  %v9982_v22 = vsel %vm13595_vm10, %v9977_v1, %v9981_v19  ;;  %v9987_v18 = vrot.slane %v9986_v29, 4  ;;  %v11713_v3 = vrot.slane %v10317_v42, 9  ;;  %v10319_v31 = vld [vmem:[#allocation3 + $0x48] sm:$0xe] }
 0x3c8   : > { %v12568_v27 = vpop.f32.mrf.mxu1  ;;  %v10392_v47 = vsel %vm14041_vm15, %v10390_v8, %v10391_v49  ;;  %v10389_v4 = vsel %vm14041_vm15, %v11712_v50, %v10388_v53  ;;  %v10397_v24 = vrot.slane %v10395_v10, 4  ;;  %v10398_v7 = vrot.slane %v17252_v56, 5  ;;  %v10320_v42 = vld [vmem:[#allocation3 + $0x54] sm:$0xe] }
 0x3c9   : > { %v17566_v17 = vadd.f32 %v17480_v41, %v12568_v27  ;;  %v17569_v30 = vpop.f32.mrf.mxu0  ;;  %v10402_v41 = vrot.slane %v17263_v55, 5  ;;  %v9992_v19 = vsel %vm13595_vm10, %v9987_v18, %v9991_v20  ;;  %v11714_v27 = vrot.slane %v10318_v0, 9 }
 0x3ca   : > { %12855 = vmatmul.mubr.bf16.gmra.mxu1 %v13171_v13  ;;  %v17571_v58 = vpop.f32.mrf.mxu1  ;;  %v10405_v8 = vrot.slane %v17267_v38, 5  ;;  %v11702_v55 = vcombine.low %v9982_v22, %v9992_v19  ;;  %v11728_v53 = vcombine.low %v10389_v4, %v10392_v47  ;;  %v10399_v49 = vsel %vm14041_vm15, %v10397_v24, %v10398_v7  ;;  %v10321_v24 = vld [vmem:[#allocation3 + $0x60] sm:$0xe]  ;;  %v10322_v19 = vld [vmem:[#allocation3 + $0x6c] sm:$0xe] }
 0x3cb   : > { %18671 = vst [vmem:[#allocation55_spill] sm:$0xff] %v17566_v17  ;;  %12922 = vmatprep.mubr.bf16.mxu1 %v11727_v57  ;;  %v17581_v13 = vpop.f32.mrf.mxu0  ;;  %v10404_v29 = vrot.slane %v10402_v41, 4  ;;  %v10396_v46 = vsel %vm14041_vm15, %v11713_v3, %v10395_v10  ;;  %v11715_v38 = vrot.slane %v10319_v31, 9  ;;  %v10403_v22 = vsel %vm14041_vm15, %v11714_v27, %v10402_v41  ;;  %v18680_v17 = vld [vmem:[#allocation36_spill] sm:$0xff] }
 0x3cc   : > { %v12569_v1 = vpop.f32.mrf.mxu1  ;;  %12903 = vmatmul.mubr.bf16.gmra.mxu0 %v11702_v55  ;;  %v11729_v0 = vcombine.low %v10396_v46, %v10399_v49  ;;  %v10412_v47 = vrot.slane %v17286_v36, 5  ;;  %v10416_v4 = vrot.slane %v17305_v34, 5  ;;  %v10419_v36 = vrot.slane %v17315_v28, 5 }
 0x3cd   : > { %v17587_v57 = vadd.f32 %v17496_v32, %v12569_v1  ;;  %v17591_v56 = vpop.f32.mrf.mxu0  ;;  %v17599_v20 = vsel %vm14041_vm15, %v10404_v29, %v10405_v8  ;;  %v10409_v32 = vrot.slane %v17278_v37, 5  ;;  %v11716_v37 = vrot.slane %v10320_v42, 9 }
 0x3ce   : > { %v17593_v50 = vpop.f32.mrf.mxu1  ;;  %v11730_v3 = vcombine.low %v10403_v22, %v17599_v20  ;;  %v10418_v27 = vrot.slane %v10416_v4, 4  ;;  %v10423_v34 = vrot.slane %v17324_v16, 5  ;;  %v11717_v49 = vrot.slane %v10321_v24, 9  ;;  %v10323_v20 = vld [vmem:[#allocation3 + $0x78] sm:$0xe] }
 0x3cf   : > { %18672 = vst [vmem:[#allocation45_spill] sm:$0xff] %v17587_v57  ;;  %18673 = vst [vmem:[#allocation46_spill] sm:$0xff] %v17593_v50  ;;  %v17604_v18 = vpop.f32.mrf.mxu0  ;;  %v10410_v7 = vsel %vm14041_vm15, %v11715_v38, %v10409_v32  ;;  %v10411_v31 = vrot.slane %v10409_v32, 4  ;;  %v17622_v55 = vsel %vm14041_vm15, %v11716_v37, %v10416_v4  ;;  %v10426_v16 = vrot.slane %v17333_v45, 5 }
 0x3d0   : > { %v12636_v10 = vpop.f32.mrf.mxu1  ;;  %v17632_v28 = vsel %vm14041_vm15, %v10418_v27, %v10419_v36  ;;  %v17644_v4 = vsel %vm14041_vm15, %v11717_v49, %v10423_v34  ;;  %v10433_v45 = vrot.slane %v17354_v26, 5  ;;  %v10437_v24 = vrot.slane %v17365_v51, 5  ;;  %v18678_v26 = vld [vmem:[#allocation27_spill] sm:$0xff] }
 0x3d1   : > { %v17612_v1 = vadd.f32 %v12636_v10, %v17284_v9  ;;  %v17614_v41 = vpop.f32.mrf.mxu0  ;;  %v10413_v8 = vsel %vm14041_vm15, %v10411_v31, %v10412_v47  ;;  %v10430_v9 = vrot.slane %v17352_v15, 5  ;;  %v10425_v15 = vrot.slane %v10423_v34, 4  ;;  %v10324_v10 = vld [vmem:[#allocation3 + $0x84] sm:$0xe] }
 0x3d2   : > { %12923 = vmatmul.mubr.bf16.vlgmr.msra.gmra.mxu1 %v11728_v53  ;;  %v7377_v29 = vpop.f32.mrf.mxu1  ;;  %v11718_v53 = vrot.slane %v10322_v19, 9  ;;  %v11731_v32 = vcombine.low %v10410_v7, %v10413_v8  ;;  %v11719_v37 = vrot.slane %v10323_v20, 9  ;;  %v10444_v19 = vrot.slane %v17388_v23, 5 }
 0x3d3   : > { %12926 = vmatprep.mubr.bf16.mxu1 %v11729_v0  ;;  %v17626_v42 = vadd.f32 %v7377_v29, %v17299_v48  ;;  %v17628_v46 = vpop.f32.mrf.mxu0  ;;  %v10432_v0 = vrot.slane %v10430_v9, 4  ;;  %v17650_v31 = vsel %vm14041_vm15, %v10425_v15, %v10426_v16  ;;  %v10440_v34 = vrot.slane %v17373_v25, 5  ;;  %v10325_v29 = vld [vmem:[#allocation3 + $0x90] sm:$0xe]  ;;  %v10326_v15 = vld [vmem:[#allocation3 + $0x9c] sm:$0xe] }
 0x3d4   : > { %v12637_v38 = vpop.f32.mrf.mxu1  ;;  %v10439_v23 = vrot.slane %v10437_v24, 4  ;;  %v17678_v20 = vsel %vm14041_vm15, %v11719_v37, %v10437_v24  ;;  %v10451_v25 = vrot.slane %v17407_v35, 5  ;;  %v18674_v24 = vld [vmem:[#allocation21_spill] sm:$0xff] }
 0x3d5   : > { %v17638_v48 = vadd.f32 %v12637_v38, %v17303_v44  ;;  %v17640_v47 = vpop.f32.mrf.mxu0  ;;  %v17654_v44 = vsel %vm14041_vm15, %v11718_v53, %v10430_v9  ;;  %v17666_v51 = vsel %vm14041_vm15, %v10432_v0, %v10433_v45  ;;  %v11720_v9 = vrot.slane %v10324_v10, 9 }
 0x3d6   : > { %v7380_v7 = vpop.f32.mrf.mxu1  ;;  %v10447_v38 = vrot.slane %v17398_v11, 5  ;;  %v17684_v45 = vsel %vm14041_vm15, %v10439_v23, %v10440_v34  ;;  %v11721_v10 = vrot.slane %v10325_v29, 9  ;;  %v18675_v34 = vld [vmem:[#allocation17_spill] sm:$0xff]  ;;  %v10453_v29 = vrot.slane %v10451_v25, 4 }
 0x3d7   : > { %v17658_v27 = vadd.f32 %v7380_v7, %v17558_v62  ;;  %v17660_v36 = vpop.f32.mrf.mxu0  ;;  %v10446_v62 = vrot.slane %v10444_v19, 4  ;;  %v10458_v7 = vrot.slane %v17428_v61, 5  ;;  %v11722_v61 = vrot.slane %v10326_v15, 9 }
 0x3d8   : > { %v12640_v8 = vpop.f32.mrf.mxu1  ;;  %v17712_v57 = vsel %vm14041_vm15, %v11721_v10, %v10451_v25 }
 0x3d9   : > { %v17672_v16 = vadd.f32 %v12640_v8, %v17322_v2  ;;  %v17674_v53 = vpop.f32.mrf.mxu0  ;;  %v17688_v2 = vsel %vm14041_vm15, %v11720_v9, %v10444_v19  ;;  %v10454_v8 = vrot.slane %v18675_v34, 5  ;;  %v10327_v9 = vld [vmem:[#allocation3 + $0xa8] sm:$0xe] }
 0x3da   : > { %12927 = vmatmul.mubr.bf16.gmra.mxu1 %v11730_v3  ;;  %v7393_v0 = vpop.f32.mrf.mxu1  ;;  %v17698_v3 = vsel %vm14041_vm15, %v10446_v62, %v10447_v38  ;;  %v10461_v62 = vrot.slane %v17437_v59, 5  ;;  %v10465_v38 = vrot.slane %v17449_v60, 5  ;;  %v11723_v10 = vrot.slane %v10327_v9, 9 }
 0x3db   : > { %12930 = vmatprep.mubr.bf16.mxu1 %v11731_v32  ;;  %v7508_v37 = vadd.f32 %v7393_v0, %v18674_v24  ;;  %v17692_v11 = vpop.f32.mrf.mxu0  ;;  %v10460_v32 = vrot.slane %v10458_v7, 4  ;;  %v18676_v0 = vld [vmem:[#allocation32_spill] sm:$0xff]  ;;  %v17716_v15 = vsel %vm14041_vm15, %v10453_v29, %v10454_v8  ;;  %v10475_v60 = vrot.slane %v18680_v17, 5 }
 0x3dc   : > { %v12641_v23 = vpop.f32.mrf.mxu1  ;;  %v18677_v24 = vld [vmem:[#allocation20_spill] sm:$0xff] }
 0x3dd   : > { %v6947_v49 = vadd.f32 %v18677_v24, %v18676_v0  ;;  %v7511_v22 = vadd.f32 %v12641_v23, %v18678_v26  ;;  %v17706_v35 = vpop.f32.mrf.mxu0  ;;  %v17720_v0 = vsel %vm14041_vm15, %v11722_v61, %v10458_v7  ;;  %v10328_v26 = vld [vmem:[#allocation3 + $0xb4] sm:$0xe]  ;;  %v10472_v23 = vrot.slane %v17476_v39, 5  ;;  %v18679_v39 = vld [vmem:[#allocation26_spill] sm:$0xff] }
 0x3de   : > { %v7396_v34 = vpop.f32.mrf.mxu1  ;;  %v17729_v25 = vsel %vm14041_vm15, %v10460_v32, %v10461_v62  ;;  %v10467_v7 = vrot.slane %v10465_v38, 4  ;;  %v10468_v61 = vrot.slane %v17462_v33, 5  ;;  %v11724_v50 = vrot.slane %v10328_v26, 9  ;;  %v18683_v26 = vld [vmem:[#allocation28_spill] sm:$0xff] }
 0x3df   : > { %v7509_v24 = vadd.f32 %v7396_v34, %v6947_v49  ;;  %v17723_v59 = vpop.f32.mrf.mxu0  ;;  %v11738_v29 = vcombine.low %v17720_v0, %v17729_v25  ;;  %v10474_v19 = vrot.slane %v10472_v23, 4  ;;  %v18681_v32 = vcombine.low %v17622_v55, %v17632_v28  ;;  %v18705_v25 = vld [vmem:[#allocation54_spill] sm:$0xff] }
 0x3e0   : > { %v12644_v8 = vpop.f32.mrf.mxu1  ;;  %v17743_v62 = vsel %vm14041_vm15, %v11723_v10, %v10465_v38  ;;  %v17747_v33 = vsel %vm14041_vm15, %v10467_v7, %v10468_v61  ;;  %v17759_v28 = vsel %vm14041_vm15, %v11724_v50, %v10472_v23  ;;  %v17776_v50 = vadd.f32 %v17522_v21, %v17626_v42 }
 0x3e1   : > { %v7514_v49 = vadd.f32 %v12644_v8, %v18679_v39  ;;  %v17735_v34 = vpop.f32.mrf.mxu0  ;;  %v18682_v8 = vcombine.low %v17644_v4, %v17650_v31  ;;  %v11739_v55 = vcombine.low %v17743_v62, %v17747_v33  ;;  %v17763_v38 = vsel %vm14041_vm15, %v10474_v19, %v10475_v60  ;;  %v18684_v31 = vld [vmem:[#allocation25_spill] sm:$0xff] }
 0x3e2   : > { %12931 = vmatmul.mubr.bf16.gmra.mxu1 %v18681_v32  ;;  %v7409_v9 = vpop.f32.mrf.mxu1  ;;  %v11740_v4 = vcombine.low %v17759_v28, %v17763_v38  ;;  %v17772_v32 = vadd.f32 %v17510_v52, %v17612_v1  ;;  %v17780_v19 = vadd.f32 %v17530_v14, %v17638_v48  ;;  %v17784_v60 = vadd.f32 %v17538_v6, %v17658_v27  ;;  %v18686_v48 = vld [vmem:[#allocation30_spill] sm:$0xff] }
 0x3e3   : > { %12934 = vmatprep.mubr.bf16.mxu1 %v18682_v8  ;;  %v7512_v39 = vadd.f32 %v7409_v9, %v18683_v26  ;;  %v17753_v17 = vpop.f32.mrf.mxu0  ;;  %v17788_v9 = vadd.f32 %v17548_v40, %v17672_v16  ;;  %v18685_v8 = vld [vmem:[#allocation29_spill] sm:$0xff]  ;;  %v17794_v21 = vadd.f32 %v17562_v12, %v7508_v37  ;;  %v17797_v26 = vadd.f32 %v17569_v30, %v7511_v22  ;;  %v18689_v22 = vld [vmem:[#allocation31_spill] sm:$0xff] }
 0x3e4   : > { %v12645_v10 = vpop.f32.mrf.mxu1  ;;  %v17800_v14 = vadd.f32 %v17581_v13, %v7509_v24  ;;  %v17803_v6 = vadd.f32 %v17591_v56, %v7514_v49  ;;  %v18687_v30 = vcombine.low %v17654_v44, %v17666_v51  ;;  %v18688_v56 = vcombine.low %v17678_v20, %v17684_v45 }
 0x3e5   : > { %v7515_v7 = vadd.f32 %v12645_v10, %v18684_v31  ;;  %v17768_v61 = vpop.f32.mrf.mxu0  ;;  %v17809_v16 = vadd.f32 %v17604_v18, %v7512_v39  ;;  %v18690_v39 = vld [vmem:[#allocation13_spill] sm:$0xff]  ;;  %v18691_v31 = vld [vmem:[#allocation19_spill] sm:$0xff] }
 0x3e6   : > { %v7412_v23 = vpop.f32.mrf.mxu1 }
 0x3e7   : > { %v7513_v52 = vadd.f32 %v7412_v23, %v18685_v8  ;;  %v17791_v1 = vpop.f32.mrf.mxu0  ;;  %v17812_v12 = vadd.f32 %v17614_v41, %v7515_v7  ;;  %v18692_v8 = vld [vmem:[#allocation33_spill] sm:$0xff] }
 0x3e8   : > { %v12648_v42 = vpop.f32.mrf.mxu1 }
 0x3e9   : > { %v7518_v40 = vadd.f32 %v12648_v42, %v18686_v48  ;;  %v17806_v27 = vpop.f32.mrf.mxu0  ;;  %v17815_v37 = vadd.f32 %v17628_v46, %v7513_v52  ;;  %v18694_v42 = vld [vmem:[#allocation15_spill] sm:$0xff] }
 0x3ea   : > { %12935 = vmatmul.mubr.bf16.gmra.mxu1 %v18687_v30  ;;  %v7425_v13 = vpop.f32.mrf.mxu1 }
 0x3eb   : > { %12938 = vmatprep.mubr.bf16.mxu1 %v18688_v56  ;;  %v7516_v24 = vadd.f32 %v7425_v13, %v18689_v22  ;;  %v17824_v49 = vpop.f32.mrf.mxu0  ;;  %v17827_v18 = vadd.f32 %v17640_v47, %v7518_v40  ;;  %v18693_v47 = vld [vmem:[#allocation22_spill] sm:$0xff] }
 0x3ec   : > { %v12649_v41 = vpop.f32.mrf.mxu1  ;;  %v6992_v52 = vadd.f32 %v18693_v47, %v18692_v8 }
 0x3ed   : > { %v7519_v46 = vadd.f32 %v12649_v41, %v18690_v39  ;;  %v17830_v10 = vpop.f32.mrf.mxu0  ;;  %v17833_v44 = vadd.f32 %v17660_v36, %v7516_v24  ;;  %v18695_v36 = vcombine.low %v17688_v2, %v17698_v3  ;;  %v18697_v39 = vld [vmem:[#allocation43_spill] sm:$0xff] }
 0x3ee   : > { %v7428_v51 = vpop.f32.mrf.mxu1 }
 0x3ef   : > { %v7517_v7 = vadd.f32 %v7428_v51, %v18691_v31  ;;  %v17836_v20 = vpop.f32.mrf.mxu0  ;;  %v17839_v45 = vadd.f32 %v17674_v53, %v7519_v46  ;;  %v18696_v53 = vcombine.low %v17712_v57, %v17716_v15  ;;  %v18698_v46 = vld [vmem:[#allocation14_spill] sm:$0xff]  ;;  %v18699_v51 = vld [vmem:[#allocation35_spill] sm:$0xff]  ;;  %v18700_v57 = vld [vmem:[#allocation37_spill] sm:$0xff] }
 0x3f0   : > { %v12652_v23 = vpop.f32.mrf.mxu1  ;;  %v10479_v15 = vrot.slane %v18700_v57, 5 }
 0x3f1   : > { %v7522_v48 = vadd.f32 %v12652_v23, %v18694_v42  ;;  %v17844_v40 = vpop.f32.mrf.mxu0  ;;  %v17847_v30 = vadd.f32 %v17692_v11, %v7517_v7  ;;  %v6995_v11 = vadd.f32 %v18698_v46, %v18697_v39  ;;  %v18702_v42 = vld [vmem:[#allocation23_spill] sm:$0xff] }
 0x3f2   : > { %12939 = vmatmul.mubr.bf16.gmra.mxu1 %v18695_v36  ;;  %v7441_v13 = vpop.f32.mrf.mxu1  ;;  %v18703_v36 = vld [vmem:[#allocation38_spill] sm:$0xff]  ;;  %v10329_v39 = vld [vmem:[#allocation3 + $0xc0] sm:$0xe] }
 0x3f3   : > { %12942 = vmatprep.mubr.bf16.mxu1 %v18696_v53  ;;  %v7520_v56 = vadd.f32 %v7441_v13, %v6992_v52  ;;  %v17855_v22 = vpop.f32.mrf.mxu0  ;;  %v17858_v24 = vadd.f32 %v17706_v35, %v7522_v48  ;;  %v18701_v52 = vld [vmem:[#allocation48_spill] sm:$0xff] }
 0x3f4   : > { %v12653_v41 = vpop.f32.mrf.mxu1  ;;  %v7008_v48 = vadd.f32 %v18702_v42, %v18701_v52  ;;  %v11725_v52 = vrot.slane %v10329_v39, 9  ;;  %v18710_v39 = vld [vmem:[#allocation41_spill] sm:$0xff] }
 0x3f5   : > { %v7523_v31 = vadd.f32 %v12653_v41, %v18699_v51  ;;  %v17863_v7 = vpop.f32.mrf.mxu0  ;;  %v17866_v2 = vadd.f32 %v17723_v59, %v7520_v56  ;;  %v10481_v41 = vrot.slane %v10479_v15, 4  ;;  %v10486_v51 = vrot.slane %v17524_v5, 5 }
 0x3f6   : > { %v7444_v3 = vpop.f32.mrf.mxu1 }
 0x3f7   : > { %v7521_v23 = vadd.f32 %v7444_v3, %v6995_v11  ;;  %v17869_v8 = vpop.f32.mrf.mxu0  ;;  %v17872_v35 = vadd.f32 %v17735_v34, %v7523_v31  ;;  %v10330_v11 = vld [vmem:[#allocation3 + $0xcc] sm:$0xe]  ;;  %v18704_v3 = vld [vmem:[#allocation39_spill] sm:$0xff] }
 0x3f8   : > { %v12656_v47 = vpop.f32.mrf.mxu1  ;;  %v10482_v0 = vrot.slane %v18704_v3, 5  ;;  %v11726_v42 = vrot.slane %v10330_v11, 9 }
 0x3f9   : > { %v7526_v13 = vadd.f32 %v12656_v47, %v18703_v36  ;;  %v17877_v53 = vpop.f32.mrf.mxu0  ;;  %v17880_v59 = vadd.f32 %v17753_v17, %v7521_v23  ;;  %v18707_v23 = vld [vmem:[#allocation40_spill] sm:$0xff]  ;;  %v10489_v36 = vrot.slane %v17536_v63, 5 }
 0x3fa   : > { %12943 = vmatmul.mubr.bf16.gmra.mxu1 %v11738_v29  ;;  %v7457_v56 = vpop.f32.mrf.mxu1  ;;  %v18706_v29 = vld [vmem:[#allocation24_spill] sm:$0xff]  ;;  %v10483_v5 = vsel %vm14041_vm15, %v10481_v41, %v10482_v0 }
 0x3fb   : > { %12946 = vmatprep.mubr.bf16.mxu1 %v11739_v55  ;;  %v7524_v34 = vadd.f32 %v7457_v56, %v7008_v48  ;;  %v17888_v46 = vpop.f32.mrf.mxu0  ;;  %v17892_v17 = vadd.f32 %v17768_v61, %v7526_v13  ;;  %v7011_v57 = vadd.f32 %v18706_v29, %v18705_v25  ;;  %v10488_v48 = vrot.slane %v10486_v51, 4 }
 0x3fc   : > { %v12657_v31 = vpop.f32.mrf.mxu1 }
 0x3fd   : > { %v7527_v47 = vadd.f32 %v12657_v31, %v18707_v23  ;;  %v12780_v62 = vpop.f32.mrf.mxu0  ;;  %v17899_v33 = vadd.f32 %v17791_v1, %v7524_v34  ;;  %v10480_v31 = vsel %vm14041_vm15, %v11725_v52, %v10479_v15  ;;  %v18708_v1 = vld [vmem:[#allocation53_spill] sm:$0xff]  ;;  %v18709_v34 = vld [vmem:[#allocation18_spill] sm:$0xff]  ;;  %v10487_v15 = vsel %vm14041_vm15, %v11726_v42, %v10486_v51 }
 0x3fe   : > { %v7460_v55 = vpop.f32.mrf.mxu1  ;;  %v7024_v25 = vadd.f32 %v18709_v34, %v18708_v1  ;;  %v11741_v23 = vcombine.low %v10480_v31, %v10483_v5  ;;  %v10490_v0 = vsel %vm14041_vm15, %v10488_v48, %v10489_v36  ;;  %v18712_v5 = vld [vmem:[#allocation42_spill] sm:$0xff]  ;;  %v18714_v31 = vld [vmem:[#allocation55_spill] sm:$0xff] }
 0x3ff   : > { %v7525_v61 = vadd.f32 %v7460_v55, %v7011_v57  ;;  %v9015_v13 = vpop.f32.mrf.mxu0  ;;  %v17905_v56 = vadd.f32 %v17806_v27, %v7527_v47 }
 0x400   : > { %v12660_v3 = vpop.f32.mrf.mxu1 }
 0x401   : > { %v7530_v29 = vadd.f32 %v12660_v3, %v18710_v39  ;;  %v12781_v41 = vpop.f32.mrf.mxu0  ;;  %v17913_v11 = vadd.f32 %v17824_v49, %v7525_v61  ;;  %v18711_v49 = vld [vmem:[#allocation34_spill] sm:$0xff]  ;;  %v11742_v3 = vcombine.low %v10487_v15, %v10490_v0  ;;  %v18717_v15 = vld [vmem:[#allocation45_spill] sm:$0xff] }
 0x402   : > { %12947 = vmatmul.mubr.bf16.gmra.mxu1 %v11740_v4  ;;  %v7473_v63 = vpop.f32.mrf.mxu1  ;;  %v7027_v52 = vadd.f32 %v18711_v49, %v17550_v54 }
 0x403   : > { %12950 = vmatprep.mubr.bf16.mxu1 %v11741_v23  ;;  %v7528_v27 = vadd.f32 %v7473_v63, %v7024_v25  ;;  %v9018_v57 = vpop.f32.mrf.mxu0  ;;  %v17923_v47 = vadd.f32 %v17830_v10, %v7530_v29  ;;  %v18713_v10 = vld [vmem:[#allocation44_spill] sm:$0xff]  ;;  %v18716_v63 = vld [vmem:[#allocation49_spill] sm:$0xff] }
 0x404   : > { %v12661_v55 = vpop.f32.mrf.mxu1  ;;  %v7040_v36 = vadd.f32 %v18713_v10, %v17571_v58 }
 0x405   : > { %v7531_v28 = vadd.f32 %v12661_v55, %v18712_v5  ;;  %v12784_v38 = vpop.f32.mrf.mxu0  ;;  %v17929_v4 = vadd.f32 %v17836_v20, %v7528_v27 }
 0x406   : > { %v7476_v61 = vpop.f32.mrf.mxu1 }
 0x407   : > { %v7529_v51 = vadd.f32 %v7476_v61, %v7027_v52  ;;  %v9031_v42 = vpop.f32.mrf.mxu0  ;;  %v17932_v43 = vadd.f32 %v17844_v40, %v7531_v28  ;;  %v18715_v40 = vld [vmem:[#allocation46_spill] sm:$0xff] }
 0x408   : > { %v7043_v27 = vadd.f32 %v18716_v63, %v18715_v40 }
 0x409   : > { %v12664_v48 = vpop.f32.mrf.mxu1  ;;  %v12785_v54 = vpop.f32.mrf.mxu0  ;;  %v17938_v34 = vadd.f32 %v17855_v22, %v7529_v51 }
 0x40a   : > { %v7534_v1 = vadd.f32 %v12664_v48, %v18714_v31  ;;  %12951 = vmatmul.mubr.bf16.gmra.mxu1 %v11742_v3 }
 0x40b   : > { %v7489_v20 = vpop.f32.mrf.mxu1  ;;  %v9034_v39 = vpop.f32.mrf.mxu0 }
 0x40c   : > { %v7532_v25 = vadd.f32 %v7489_v20, %v7040_v36  ;;  %v17941_v29 = vadd.f32 %v17863_v7, %v7534_v1 }
 0x40d   : > { %v12665_v23 = vpop.f32.mrf.mxu1  ;;  %v12788_v58 = vpop.f32.mrf.mxu0 }
 0x40e   : > { %v7535_v0 = vadd.f32 %v12665_v23, %v18717_v15  ;;  %v17947_v55 = vadd.f32 %v17869_v8, %v7532_v25 }
 0x40f   : > { %v7492_v49 = vpop.f32.mrf.mxu1  ;;  %v9047_v52 = vpop.f32.mrf.mxu0 }
 0x410   : > { %v7533_v22 = vadd.f32 %v7492_v49, %v7043_v27  ;;  %v17950_v5 = vadd.f32 %v17877_v53, %v7535_v0 }
 0x411   : > { %v12732_v28 = vpop.f32.mrf.mxu1  ;;  %v12789_v61 = vpop.f32.mrf.mxu0 }
 0x412   : > { %v8646_v7 = vadd.f32 %v12732_v28, %v17772_v32  ;;  %v17954_v3 = vadd.f32 %v17888_v46, %v7533_v22 }
 0x413   : > { %v8517_v51 = vpop.f32.mrf.mxu1  ;;  %v9050_v10 = vpop.f32.mrf.mxu0 }
 0x414   : > { %v8644_v48 = vadd.f32 %v8517_v51, %v17776_v50  ;;  %v17957_v36 = vadd.f32 %v12780_v62, %v8646_v7 }
 0x415   : > { %v12733_v8 = vpop.f32.mrf.mxu1  ;;  %v12792_v1 = vpop.f32.mrf.mxu0 }
 0x416   : > { %v8647_v31 = vadd.f32 %v12733_v8, %v17780_v19  ;;  %v17960_v20 = vadd.f32 %v9015_v13, %v8644_v48 }
 0x417   : > { %v8520_v53 = vpop.f32.mrf.mxu1  ;;  %v9063_v32 = vpop.f32.mrf.mxu0 }
 0x418   : > { %v8645_v25 = vadd.f32 %v8520_v53, %v17784_v60  ;;  %v17963_v23 = vadd.f32 %v12781_v41, %v8647_v31 }
 0x419   : > { %v12736_v46 = vpop.f32.mrf.mxu1  ;;  %v12793_v63 = vpop.f32.mrf.mxu0 }
 0x41a   : > { %v8650_v40 = vadd.f32 %v12736_v46, %v17788_v9  ;;  %v17966_v50 = vadd.f32 %v9018_v57, %v8645_v25 }
 0x41b   : > { %v8533_v62 = vpop.f32.mrf.mxu1  ;;  %v9066_v15 = vpop.f32.mrf.mxu0 }
 0x41c   : > { %v8648_v27 = vadd.f32 %v8533_v62, %v17794_v21  ;;  %v17969_v19 = vadd.f32 %v12784_v38, %v8650_v40 }
 0x41d   : > { %v12737_v13 = vpop.f32.mrf.mxu1  ;;  %v12796_v49 = vpop.f32.mrf.mxu0 }
 0x41e   : > { %v8651_v0 = vadd.f32 %v12737_v13, %v17797_v26  ;;  %v17972_v60 = vadd.f32 %v9031_v42, %v8648_v27 }
 0x41f   : > { %v8536_v41 = vpop.f32.mrf.mxu1  ;;  %v9079_v28 = vpop.f32.mrf.mxu0 }
 0x420   : > { %v8649_v22 = vadd.f32 %v8536_v41, %v17800_v14  ;;  %v17975_v9 = vadd.f32 %v12785_v54, %v8651_v0 }
 0x421   : > { %v12740_v57 = vpop.f32.mrf.mxu1  ;;  %v12797_v51 = vpop.f32.mrf.mxu0 }
 0x422   : > { %v8654_v7 = vadd.f32 %v12740_v57, %v17803_v6  ;;  %v17978_v21 = vadd.f32 %v9034_v39, %v8649_v22 }
 0x423   : > { %v8549_v38 = vpop.f32.mrf.mxu1  ;;  %v9082_v8 = vpop.f32.mrf.mxu0 }
 0x424   : > { %v8652_v48 = vadd.f32 %v8549_v38, %v17809_v16  ;;  %v17981_v26 = vadd.f32 %v12788_v58, %v8654_v7 }
 0x425   : > { %v12741_v42 = vpop.f32.mrf.mxu1  ;;  %v12800_v53 = vpop.f32.mrf.mxu0 }
 0x426   : > { %v8655_v31 = vadd.f32 %v12741_v42, %v17812_v12  ;;  %v17984_v14 = vadd.f32 %v9047_v52, %v8652_v48 }
 0x427   : > { %v8552_v54 = vpop.f32.mrf.mxu1  ;;  %v9095_v46 = vpop.f32.mrf.mxu0 }
 0x428   : > { %v8653_v25 = vadd.f32 %v8552_v54, %v17815_v37  ;;  %v17987_v6 = vadd.f32 %v12789_v61, %v8655_v31 }
 0x429   : > { %v12744_v39 = vpop.f32.mrf.mxu1  ;;  %v12801_v62 = vpop.f32.mrf.mxu0 }
 0x42a   : > { %v8658_v40 = vadd.f32 %v12744_v39, %v17827_v18  ;;  %v17990_v16 = vadd.f32 %v9050_v10, %v8653_v25 }
 0x42b   : > { %v8565_v58 = vpop.f32.mrf.mxu1  ;;  %v9098_v13 = vpop.f32.mrf.mxu0 }
 0x42c   : > { %v8656_v27 = vadd.f32 %v8565_v58, %v17833_v44  ;;  %v17993_v12 = vadd.f32 %v12792_v1, %v8658_v40 }
 0x42d   : > { %v12745_v52 = vpop.f32.mrf.mxu1  ;;  %v12804_v41 = vpop.f32.mrf.mxu0 }
 0x42e   : > { %v8659_v0 = vadd.f32 %v12745_v52, %v17839_v45  ;;  %v17996_v37 = vadd.f32 %v9063_v32, %v8656_v27 }
 0x42f   : > { %v8568_v61 = vpop.f32.mrf.mxu1  ;;  %v9111_v57 = vpop.f32.mrf.mxu0 }
 0x430   : > { %v8657_v22 = vadd.f32 %v8568_v61, %v17847_v30  ;;  %v17999_v18 = vadd.f32 %v12793_v63, %v8659_v0 }
 0x431   : > { %v12748_v10 = vpop.f32.mrf.mxu1  ;;  %v12805_v38 = vpop.f32.mrf.mxu0 }
 0x432   : > { %v8662_v7 = vadd.f32 %v12748_v10, %v17858_v24  ;;  %v18002_v44 = vadd.f32 %v9066_v15, %v8657_v22 }
 0x433   : > { %v8581_v1 = vpop.f32.mrf.mxu1  ;;  %v9114_v42 = vpop.f32.mrf.mxu0 }
 0x434   : > { %v8660_v48 = vadd.f32 %v8581_v1, %v17866_v2  ;;  %v18005_v45 = vadd.f32 %v12796_v49, %v8662_v7 }
 0x435   : > { %v12749_v32 = vpop.f32.mrf.mxu1  ;;  %v12808_v25 = vpop.f32.mrf.mxu0 }
 0x436   : > { %v8663_v31 = vadd.f32 %v12749_v32, %v17872_v35  ;;  %v18008_v54 = vadd.f32 %v9079_v28, %v8660_v48 }
 0x437   : > { %v8584_v30 = vpop.f32.mrf.mxu1  ;;  %v9127_v58 = vpop.f32.mrf.mxu0 }
 0x438   : > { %v8661_v63 = vadd.f32 %v8584_v30, %v17880_v59  ;;  %v18011_v39 = vadd.f32 %v12797_v51, %v8663_v31 }
 0x439   : > { %v12752_v24 = vpop.f32.mrf.mxu1  ;;  %v18023_v0 = vpop.f32.mrf.mxu0 }
 0x43a   : > { %v8666_v15 = vadd.f32 %v12752_v24, %v17892_v17  ;;  %v18014_v40 = vadd.f32 %v9082_v8, %v8661_v63 }
 0x43b   : > { %v8597_v2 = vpop.f32.mrf.mxu1  ;;  %v18031_v10 = vpop.f32.mrf.mxu0 }
 0x43c   : > { %v8664_v49 = vadd.f32 %v8597_v2, %v17899_v33  ;;  %v18017_v27 = vadd.f32 %v12800_v53, %v8666_v15 }
 0x43d   : > { %v12753_v35 = vpop.f32.mrf.mxu1 }
 0x43e   : > { %v8667_v28 = vadd.f32 %v12753_v35, %v17905_v56  ;;  %v18020_v52 = vadd.f32 %v9095_v46, %v8664_v49 }
 0x43f   : > { %v8600_v59 = vpop.f32.mrf.mxu1 }
 0x440   : > { %v8665_v51 = vadd.f32 %v8600_v59, %v17913_v11  ;;  %v18025_v61 = vadd.f32 %v12801_v62, %v8667_v28 }
 0x441   : > { %v12756_v17 = vpop.f32.mrf.mxu1 }
 0x442   : > { %v8670_v8 = vadd.f32 %v12756_v17, %v17923_v47  ;;  %v18028_v22 = vadd.f32 %v9098_v13, %v8665_v51 }
 0x443   : > { %v8613_v33 = vpop.f32.mrf.mxu1 }
 0x444   : > { %v8668_v53 = vadd.f32 %v8613_v33, %v17929_v4  ;;  %v18033_v56 = vadd.f32 %v12804_v41, %v8670_v8 }
 0x445   : > { %v12757_v46 = vpop.f32.mrf.mxu1 }
 0x446   : > { %v8671_v7 = vadd.f32 %v12757_v46, %v17932_v43  ;;  %v18036_v11 = vadd.f32 %v9111_v57, %v8668_v53  ;;  %v12876_v48 = vpop.f32.mrf.mxu0 }
 0x447   : > { %v8616_v1 = vpop.f32.mrf.mxu1 }
 0x448   : > { %v8669_v62 = vadd.f32 %v8616_v1, %v17938_v34  ;;  %v18039_v32 = vadd.f32 %v12805_v38, %v8671_v7  ;;  %v10156_v31 = vpop.f32.mrf.mxu0 }
 0x44a   : > { %v18041_v47 = vadd.f32 %v9114_v42, %v8669_v62  ;;  %v12760_v13 = vpop.f32.mrf.mxu1  ;;  %v12877_v43 = vpop.f32.mrf.mxu0 }
 0x44b   : > { %v8674_v4 = vadd.f32 %v12760_v13, %v17941_v29 }
 0x44c   : > { %v8629_v30 = vpop.f32.mrf.mxu1  ;;  %v10159_v15 = vpop.f32.mrf.mxu0 }
 0x44d   : > { %v8672_v41 = vadd.f32 %v8629_v30, %v17947_v55  ;;  %v18045_v63 = vadd.f32 %v12808_v25, %v8674_v4 }
 0x44e   : > { %v12761_v57 = vpop.f32.mrf.mxu1 }
 0x44f   : > { %v18048_v24 = vadd.f32 %v12761_v57, %v17950_v5  ;;  %v18050_v34 = vadd.f32 %v9127_v58, %v8672_v41 }
 0x450   : > { %v8632_v38 = vpop.f32.mrf.mxu1 }
 0x451   : > { %v18053_v42 = vadd.f32 %v8632_v38, %v17954_v3 }
 0x452   : > { %v12828_v2 = vpop.f32.mrf.mxu1  ;;  %v12880_v35 = vpop.f32.mrf.mxu0 }
 0x453   : > { %v9531_v29 = vadd.f32 %v12828_v2, %v17957_v36 }
 0x454   : > { %v9402_v49 = vpop.f32.mrf.mxu1  ;;  %v10172_v17 = vpop.f32.mrf.mxu0 }
 0x455   : > { %v9529_v55 = vadd.f32 %v9402_v49, %v17960_v20  ;;  %v18057_v25 = vadd.f32 %v12876_v48, %v9531_v29 }
 0x456   : > { %v12829_v28 = vpop.f32.mrf.mxu1  ;;  %v12881_v7 = vpop.f32.mrf.mxu0 }
 0x457   : > { %v9532_v5 = vadd.f32 %v12829_v28, %v17963_v23  ;;  %v18060_v59 = vadd.f32 %v10156_v31, %v9529_v55 }
 0x458   : > { %v9405_v58 = vpop.f32.mrf.mxu1  ;;  %v10175_v31 = vpop.f32.mrf.mxu0 }
 0x459   : > { %v9530_v51 = vadd.f32 %v9405_v58, %v17966_v50  ;;  %v18063_v3 = vadd.f32 %v12877_v43, %v9532_v5 }
 0x45a   : > { %v12832_v8 = vpop.f32.mrf.mxu1 }
 0x45b   : > { %v9535_v36 = vadd.f32 %v12832_v8, %v17969_v19  ;;  %v18066_v33 = vadd.f32 %v10159_v15, %v9530_v51 }
 0x45c   : > { %v9418_v20 = vpop.f32.mrf.mxu1  ;;  %v18103_v55 = vpop.f32.mrf.mxu0 }
 0x45d   : > { %v9533_v53 = vadd.f32 %v9418_v20, %v17972_v60  ;;  %v18069_v46 = vadd.f32 %v12880_v35, %v9535_v36 }
 0x45e   : > { %v12833_v23 = vpop.f32.mrf.mxu1 }
 0x45f   : > { %v9536_v1 = vadd.f32 %v12833_v23, %v17975_v9  ;;  %v18072_v62 = vadd.f32 %v10172_v17, %v9533_v53 }
 0x460   : > { %v9421_v50 = vpop.f32.mrf.mxu1 }
 0x461   : > { %v9534_v48 = vadd.f32 %v9421_v50, %v17978_v21  ;;  %v18075_v13 = vadd.f32 %v12881_v7, %v9536_v1 }
 0x462   : > { %v12836_v19 = vpop.f32.mrf.mxu1 }
 0x463   : > { %v18078_v4 = vadd.f32 %v12836_v19, %v17981_v26  ;;  %v18080_v30 = vadd.f32 %v10175_v31, %v9534_v48 }
 0x464   : > { %v9434_v60 = vpop.f32.mrf.mxu1 }
 0x465   : > { %v18083_v41 = vadd.f32 %v9434_v60, %v17984_v14 }
 0x466   : > { %v12837_v43 = vpop.f32.mrf.mxu1 }
 0x467   : > { %v18086_v9 = vadd.f32 %v12837_v43, %v17987_v6 }
 0x468   : > { %v9437_v57 = vpop.f32.mrf.mxu1 }
 0x469   : > { %v18089_v21 = vadd.f32 %v9437_v57, %v17990_v16 }
 0x46a   : > { %v12840_v38 = vpop.f32.mrf.mxu1 }
 0x46b   : > { %v18092_v15 = vadd.f32 %v12840_v38, %v17993_v12 }
 0x46c   : > { %v9450_v26 = vpop.f32.mrf.mxu1 }
 0x46d   : > { %v18095_v2 = vadd.f32 %v9450_v26, %v17996_v37  ;;  %v10885_v37 = vld [vmem:[%s18441_s5 + $0x8] sm:$0xff] }
 0x46e   : > { %v12841_v29 = vpop.f32.mrf.mxu1  ;;  %10964 = vmatprep.mubr.f32.mxu0 %v10885_v37 }
 0x46f   : > { %v18098_v14 = vadd.f32 %v12841_v29, %v17999_v18  ;;  %v18114_v18 = vpop.f32.mrf.mxu0 }
 0x470   : > { %v9453_v49 = vpop.f32.mrf.mxu1 }
 0x471   : > { %v18101_v6 = vadd.f32 %v9453_v49, %v18002_v44 }
 0x472   : > { %v12844_v16 = vpop.f32.mrf.mxu1 }
 0x473   : > { %v18106_v35 = vadd.f32 %v12844_v16, %v18005_v45  ;;  %v18122_v45 = vpop.f32.mrf.mxu0 }
 0x474   : > { %v9466_v12 = vpop.f32.mrf.mxu1 }
 0x475   : > { %18718 = vst [vmem:[#allocation47_spill] sm:$0xff] %v18106_v35  ;;  %v18112_v28 = vadd.f32 %v9466_v12, %v18008_v54  ;;  %v18130_v20 = vpop.f32.mrf.mxu0 }
 0x476   : > { %v12845_v5 = vpop.f32.mrf.mxu1 }
 0x477   : > { %18719 = vst [vmem:[#allocation50_spill] sm:$0xff] %v18112_v28  ;;  %v18117_v44 = vadd.f32 %v12845_v5, %v18011_v39  ;;  %v18138_v23 = vpop.f32.mrf.mxu0 }
 0x478   : > { %v9469_v58 = vpop.f32.mrf.mxu1 }
 0x479   : > { %18720 = vst [vmem:[#allocation51_spill] sm:$0xff] %v18117_v44  ;;  %v18120_v51 = vadd.f32 %v9469_v58, %v18014_v40  ;;  %v18146_v48 = vpop.f32.mrf.mxu0 }
 0x47a   : > { %v12848_v17 = vpop.f32.mrf.mxu1 }
 0x47b   : > { %18721 = vst [vmem:[#allocation52_spill] sm:$0xff] %v18120_v51  ;;  %v18125_v8 = vadd.f32 %v12848_v17, %v18017_v27  ;;  %v12889_v60 = vpop.f32.mrf.mxu0 }
 0x47c   : > { %v9482_v36 = vpop.f32.mrf.mxu1 }
 0x47d   : > { %v18128_v54 = vadd.f32 %v9482_v36, %v18020_v52 }
 0x47e   : > { %v12849_v53 = vpop.f32.mrf.mxu1 }
 0x47f   : > { %18722 = vst [vmem:[#allocation16_spill] sm:$0xff] %v18128_v54  ;;  %v18133_v39 = vadd.f32 %v12849_v53, %v18025_v61  ;;  %v10297_v54 = vadd.f32 %v18138_v23, %v18092_v15  ;;  %v10295_v15 = vadd.f32 %v18146_v48, %v18095_v2 }
 0x480   : > { %v9485_v7 = vpop.f32.mrf.mxu1 }
 0x481   : > { %v18136_v40 = vadd.f32 %v9485_v7, %v18028_v22 }
 0x482   : > { %v12852_v1 = vpop.f32.mrf.mxu1 }
 0x483   : > { %18723 = vst [vmem:[#allocation11_spill] sm:$0xff] %v18136_v40  ;;  %v18141_v27 = vadd.f32 %v12852_v1, %v18033_v56 }
 0x484   : > { %v9498_v50 = vpop.f32.mrf.mxu1 }
 0x485   : > { %v18144_v52 = vadd.f32 %v9498_v50, %v18036_v11  ;;  %v18158_v11 = vpop.f32.mrf.mxu0 }
 0x486   : > { %v12853_v31 = vpop.f32.mrf.mxu1 }
 0x487   : > { %v18149_v61 = vadd.f32 %v12853_v31, %v18039_v32  ;;  %v18160_v49 = vpop.f32.mrf.mxu0 }
 0x488   : > { %v9501_v19 = vpop.f32.mrf.mxu1  ;;  %18724 = vst [vmem:[#allocation10_spill] sm:$0xff] %v18160_v49 }
 0x489   : > { %v18152_v22 = vadd.f32 %v9501_v19, %v18041_v47  ;;  %v18168_v37 = vpop.f32.mrf.mxu0 }
 0x48a   : > { %v12856_v43 = vpop.f32.mrf.mxu1  ;;  %18727 = vst [vmem:[#allocation17_spill] sm:$0xff] %v18168_v37 }
 0x48b   : > { %v9559_v57 = vadd.f32 %v12856_v43, %v18045_v63  ;;  %v18176_v17 = vpop.f32.mrf.mxu0 }
 0x48c   : > { %v9514_v56 = vpop.f32.mrf.mxu1  ;;  %18730 = vst [vmem:[#allocation27_spill] sm:$0xff] %v18176_v17  ;;  %v10298_v17 = vadd.f32 %v12889_v60, %v18098_v14  ;;  %v18241_v14 = vld [vmem:[%s18440_s4] ss:$0 sm:$0xff] }
 0x48d   : > { %v18156_v38 = vadd.f32 %v9514_v56, %v18050_v34  ;;  %v18184_v7 = vpop.f32.mrf.mxu0 }
 0x48e   : > { %v12857_v26 = vpop.f32.mrf.mxu1  ;;  %18733 = vst [vmem:[#allocation28_spill] sm:$0xff] %v18184_v7 }
 0x48f   : > { %v18192_v31 = vpop.f32.mrf.mxu0 }
 0x490   : > { %v9517_v29 = vpop.f32.mrf.mxu1 }
 0x491   : > { %v18198_v43 = vpop.f32.mrf.mxu0 }
 0x492   : > { %v12924_v32 = vpop.f32.mrf.mxu1  ;;  %18736 = vst [vmem:[#allocation30_spill] sm:$0xff] %v18198_v43 }
 0x493   : > { %v18163_v16 = vadd.f32 %v12924_v32, %v18057_v25  ;;  %v18204_v32 = vpop.f32.mrf.mxu0 }
 0x494   : > { %v10654_v47 = vpop.f32.mrf.mxu1 }
 0x495   : > { %18725 = vst [vmem:[#allocation12_spill] sm:$0xff] %v18163_v16  ;;  %v18166_v12 = vadd.f32 %v10654_v47, %v18060_v59 }
 0x496   : > { %v12925_v63 = vpop.f32.mrf.mxu1 }
 0x497   : > { %18726 = vst [vmem:[#allocation21_spill] sm:$0xff] %v18166_v12  ;;  %v18171_v34 = vadd.f32 %v12925_v63, %v18063_v3  ;;  %v18206_v63 = vpop.f32.mrf.mxu0 }
 0x498   : > { %v10657_v5 = vpop.f32.mrf.mxu1  ;;  %18737 = vst [vmem:[#allocation31_spill] sm:$0xff] %v18206_v63 }
 0x499   : > { %18728 = vst [vmem:[#allocation32_spill] sm:$0xff] %v18171_v34  ;;  %v18174_v58 = vadd.f32 %v10657_v5, %v18066_v33 }
 0x49a   : > { %v12928_v36 = vpop.f32.mrf.mxu1 }
 0x49b   : > { %18729 = vst [vmem:[#allocation20_spill] sm:$0xff] %v18174_v58  ;;  %v18179_v25 = vadd.f32 %v12928_v36, %v18069_v46  ;;  %v12900_v36 = vpop.f32.mrf.mxu0 }
 0x49c   : > { %v10670_v53 = vpop.f32.mrf.mxu1  ;;  %v10309_v2 = vadd.f32 %v12900_v36, %v18141_v27 }
 0x49d   : > { %18731 = vst [vmem:[#allocation26_spill] sm:$0xff] %v18179_v25  ;;  %v18182_v59 = vadd.f32 %v10670_v53, %v18072_v62 }
 0x49e   : > { %v12929_v1 = vpop.f32.mrf.mxu1 }
 0x49f   : > { %18732 = vst [vmem:[#allocation36_spill] sm:$0xff] %v18182_v59  ;;  %v18187_v3 = vadd.f32 %v12929_v1, %v18075_v13 }
 0x4a0   : > { %v10673_v50 = vpop.f32.mrf.mxu1 }
 0x4a1   : > { %18734 = vst [vmem:[#allocation25_spill] sm:$0xff] %v18187_v3  ;;  %v18190_v33 = vadd.f32 %v10673_v50, %v18080_v30  ;;  %v18212_v50 = vpop.f32.mrf.mxu0 }
 0x4a2   : > { %v18194_v19 = vpop.f32.mrf.mxu1 }
 0x4a3   : > { %18735 = vst [vmem:[#allocation29_spill] sm:$0xff] %v18190_v33  ;;  %v12901_v16 = vpop.f32.mrf.mxu0 }
 0x4a4   : > { %v18196_v46 = vpop.f32.mrf.mxu1 }
 0x4a5   : > { %v10255_v28 = vpop.f32.mrf.mxu0 }
 0x4a6   : > { %v18200_v62 = vpop.f32.mrf.mxu1 }
 0x4a7   : > { %v12904_v7 = vpop.f32.mrf.mxu0 }
 0x4a8   : > { %v18202_v56 = vpop.f32.mrf.mxu1  ;;  %v10313_v3 = vadd.f32 %v12904_v7, %v9559_v57 }
 0x4a9   : > { %v10268_v33 = vpop.f32.mrf.mxu0 }
 0x4aa   : > { %v12936_v13 = vpop.f32.mrf.mxu1 }
 0x4ac   : > { %v10702_v47 = vpop.f32.mrf.mxu1 }
 0x4ae   : > { %v12937_v30 = vpop.f32.mrf.mxu1 }
 0x4af   : > { %v10796_v63 = vadd.f32 %v12937_v30, %v10298_v17 }
 0x4b0   : > { %v10705_v5 = vpop.f32.mrf.mxu1 }
 0x4b1   : > { %v10835_v23 = vadd.f32 %v18241_v14, %v10796_v63 }
 0x4b2   : > { %v18208_v53 = vpop.f32.mrf.mxu1 }
 0x4b3   : > { %18738 = vst [vmem:[#allocation13_spill] sm:$0xff] %v18208_v53 }
 0x4b4   : > { %v18210_v1 = vpop.f32.mrf.mxu1 }
 0x4b5   : > { %18739 = vst [vmem:[#allocation19_spill] sm:$0xff] %v18210_v1 }
 0x4b6   : > { %v18214_v12 = vpop.f32.mrf.mxu1 }
 0x4b7   : > { %18740 = vst [vmem:[#allocation33_spill] sm:$0xff] %v18214_v12  ;;  %v9173_v12 = vadd.f32 %v18023_v0, %v18048_v24  ;;  %v10795_v0 = vadd.f32 %v12936_v13, %v10297_v54  ;;  %v10296_v24 = vadd.f32 %v18158_v11, %v18101_v6  ;;  %v10310_v54 = vadd.f32 %v12901_v16, %v18149_v61 }
 0x4b8   : > { %v18216_v58 = vpop.f32.mrf.mxu1  ;;  %v10293_v61 = vadd.f32 %v18103_v55, %v18078_v4  ;;  %v10867_v16 = vmax.f32 %v10835_v23, 0.0  ;;  %v10307_v55 = vadd.f32 %v18212_v50, %v18144_v52  ;;  %v18749_v50 = vld [vmem:[#allocation31_spill] sm:$0xff] }
 0x4b9   : > { %18741 = vst [vmem:[#allocation22_spill] sm:$0xff] %v18216_v58  ;;  %v12905_v58 = vpop.f32.mrf.mxu0  ;;  %v9560_v25 = vadd.f32 %v12857_v26, %v9173_v12  ;;  %v10834_v12 = vadd.f32 %v18241_v14, %v10795_v0 }
 0x4ba   : > { %v18218_v34 = vpop.f32.mrf.mxu1  ;;  %v10791_v27 = vadd.f32 %v18194_v19, %v10293_v61  ;;  %v18758_v61 = vld [vmem:[#allocation47_spill] sm:$0xff] }
 0x4bb   : > { %18742 = vst [vmem:[#allocation15_spill] sm:$0xff] %v18218_v34  ;;  %v10314_v34 = vadd.f32 %v12905_v58, %v9560_v25  ;;  %v10866_v7 = vmax.f32 %v10834_v12, 0.0 }
 0x4bc   : > { %v18220_v37 = vpop.f32.mrf.mxu1 }
 0x4bd   : > { %18743 = vst [vmem:[#allocation43_spill] sm:$0xff] %v18220_v37  ;;  %v9171_v37 = vadd.f32 %v18031_v10, %v18053_v42  ;;  %v10311_v10 = vadd.f32 %v10268_v33, %v18156_v38 }
 0x4be   : > { %v18222_v59 = vpop.f32.mrf.mxu1 }
 0x4bf   : > { %18744 = vst [vmem:[#allocation14_spill] sm:$0xff] %v18222_v59  ;;  %v9558_v43 = vadd.f32 %v9517_v29, %v9171_v37  ;;  %v10294_v29 = vadd.f32 %v18122_v45, %v18086_v9  ;;  %v10793_v37 = vadd.f32 %v10702_v47, %v10295_v15  ;;  %v10308_v9 = vadd.f32 %v10255_v28, %v18152_v22 }
 0x4c0   : > { %v18224_v51 = vpop.f32.mrf.mxu1  ;;  %v10291_v22 = vadd.f32 %v18114_v18, %v18083_v41  ;;  %v10305_v18 = vadd.f32 %v18192_v31, %v18125_v8 }
 0x4c1   : > { %18745 = vst [vmem:[#allocation35_spill] sm:$0xff] %v18224_v51  ;;  %v10271_v51 = vpop.f32.mrf.mxu0  ;;  %v10832_v4 = vadd.f32 %v18241_v14, %v10793_v37 }
 0x4c2   : > { %v12948_v53 = vpop.f32.mrf.mxu1  ;;  %v10312_v42 = vadd.f32 %v10271_v51, %v9558_v43  ;;  %v10789_v47 = vadd.f32 %v18196_v46, %v10291_v22  ;;  %v18747_v36 = vld [vmem:[#allocation15_spill] sm:$0xff] }
 0x4c3   : > { %v10807_v25 = vadd.f32 %v12948_v53, %v10309_v2  ;;  %v10864_v41 = vmax.f32 %v10832_v4, 0.0  ;;  %v10803_v53 = vadd.f32 %v18747_v36, %v10305_v18  ;;  %v18769_v18 = vld [vmem:[#allocation32_spill] sm:$0xff] }
 0x4c4   : > { %v18226_v1 = vpop.f32.mrf.mxu1  ;;  %v10828_v31 = vadd.f32 %v18241_v14, %v10789_v47  ;;  %v18756_v12 = vld [vmem:[#allocation43_spill] sm:$0xff]  ;;  %v18771_v36 = vld [vmem:[#allocation12_spill] sm:$0xff] }
 0x4c5   : > { %v10805_v52 = vadd.f32 %v18226_v1, %v10307_v55  ;;  %v18748_v1 = vld [vmem:[#allocation11_spill] sm:$0xff]  ;;  %v18763_v55 = vld [vmem:[#allocation52_spill] sm:$0xff] }
 0x4c6   : > { %v12949_v49 = vpop.f32.mrf.mxu1  ;;  %v10304_v46 = vadd.f32 %v18749_v50, %v18748_v1 }
 0x4c7   : > { %v10808_v48 = vadd.f32 %v12949_v49, %v10310_v54  ;;  %v10292_v49 = vadd.f32 %v18130_v20, %v18089_v21  ;;  %v10306_v20 = vadd.f32 %v18204_v32, %v18133_v39  ;;  %v18753_v54 = vld [vmem:[#allocation25_spill] sm:$0xff] }
 0x4c8   : > { %v10753_v35 = vpop.f32.mrf.mxu1  ;;  %v18752_v15 = vld [vmem:[#allocation35_spill] sm:$0xff] }
 0x4c9   : > { %v10806_v33 = vadd.f32 %v10753_v35, %v10308_v9  ;;  %v10790_v43 = vadd.f32 %v18202_v56, %v10292_v49  ;;  %v10830_v35 = vadd.f32 %v18241_v14, %v10791_v27  ;;  %v18746_v56 = vld [vmem:[#allocation14_spill] sm:$0xff]  ;;  %v10802_v23 = vadd.f32 %v18752_v15, %v10304_v46  ;;  %v18761_v27 = vld [vmem:[#allocation29_spill] sm:$0xff] }
 0x4ca   : > { %v12952_v44 = vpop.f32.mrf.mxu1  ;;  %v10804_v63 = vadd.f32 %v18746_v56, %v10306_v20  ;;  %v10825_v49 = vadd.f32 %v18241_v14, %v18761_v27  ;;  %v18766_v20 = vld [vmem:[#allocation50_spill] sm:$0xff]  ;;  %v10823_v56 = vadd.f32 %v18241_v14, %v18769_v18 }
 0x4cb   : > { %v10811_v59 = vadd.f32 %v12952_v44, %v10313_v3  ;;  %v10794_v44 = vadd.f32 %v10705_v5, %v10296_v24  ;;  %v10847_v3 = vadd.f32 %v18241_v14, %v10808_v48  ;;  %v10845_v39 = vadd.f32 %v18241_v14, %v10806_v33  ;;  %v18757_v48 = vld [vmem:[#allocation26_spill] sm:$0xff] }
 0x4cc   : > { %v10766_v40 = vpop.f32.mrf.mxu1  ;;  %v10829_v5 = vadd.f32 %v18241_v14, %v10790_v43  ;;  %v10844_v24 = vadd.f32 %v18241_v14, %v10805_v52  ;;  %v10862_v8 = vmax.f32 %v10830_v35, 0.0  ;;  %v18765_v43 = vld [vmem:[#allocation36_spill] sm:$0xff]  ;;  %v18768_v35 = vld [vmem:[#allocation22_spill] sm:$0xff] }
 0x4cd   : > { %v10850_v6 = vadd.f32 %v18241_v14, %v10811_v59  ;;  %v10809_v11 = vadd.f32 %v10766_v40, %v10311_v10  ;;  %v10792_v40 = vadd.f32 %v18200_v62, %v10294_v29  ;;  %v10833_v17 = vadd.f32 %v18241_v14, %v10794_v44  ;;  %v18751_v10 = vld [vmem:[#allocation30_spill] sm:$0xff] }
 0x4ce   : > { %v12953_v26 = vpop.f32.mrf.mxu1  ;;  %v10846_v62 = vadd.f32 %v18241_v14, %v10807_v25  ;;  %v10879_v30 = vmax.f32 %v10847_v3, 0.0  ;;  %v10877_v44 = vmax.f32 %v10845_v39, 0.0  ;;  %v10842_v29 = vadd.f32 %v18241_v14, %v10803_v53  ;;  %v18764_v3 = vld [vmem:[#allocation28_spill] sm:$0xff]  ;;  %v18770_v39 = vld [vmem:[#allocation19_spill] sm:$0xff] }
 0x4cf   : > { %v10812_v60 = vadd.f32 %v12953_v26, %v10314_v34  ;;  %v10882_v45 = vmax.f32 %v10850_v6, 0.0  ;;  %v10848_v59 = vadd.f32 %v18241_v14, %v10809_v11  ;;  %v10831_v19 = vadd.f32 %v18241_v14, %v10792_v40  ;;  %v18750_v26 = vld [vmem:[#allocation16_spill] sm:$0xff]  ;;  %v18754_v11 = vld [vmem:[#allocation51_spill] sm:$0xff]  ;;  %v18759_v40 = vld [vmem:[#allocation10_spill] sm:$0xff] }
 0x4d0   : > { %v10769_v57 = vpop.f32.mrf.mxu1  ;;  %v10865_v21 = vmax.f32 %v10833_v17, 0.0  ;;  %v10878_v0 = vmax.f32 %v10846_v62, 0.0  ;;  %v10861_v6 = vmax.f32 %v10829_v5, 0.0  ;;  %v10876_v2 = vmax.f32 %v10844_v24, 0.0  ;;  %v18760_v17 = vld [vmem:[#allocation33_spill] sm:$0xff]  ;;  %v18772_v24 = vld [vmem:[#allocation20_spill] sm:$0xff] }
 0x4d1   : > { %v10851_v51 = vadd.f32 %v18241_v14, %v10812_v60  ;;  %v10810_v38 = vadd.f32 %v10769_v57, %v10312_v42  ;;  %v10880_v13 = vmax.f32 %v10848_v59, 0.0  ;;  %v10863_v32 = vmax.f32 %v10831_v19, 0.0  ;;  %v18767_v62 = vld [vmem:[#allocation17_spill] sm:$0xff] }
 0x4d2   : > { %v10303_v42 = vadd.f32 %v18751_v10, %v18750_v26  ;;  %v10843_v60 = vadd.f32 %v18241_v14, %v10804_v63  ;;  %v10827_v57 = vadd.f32 %v18241_v14, %v18753_v54  ;;  %v10300_v33 = vadd.f32 %v18764_v3, %v18763_v55 }
 0x4d3   : > { %v10883_v34 = vmax.f32 %v10851_v51, 0.0  ;;  %v10849_v58 = vadd.f32 %v18241_v14, %v10810_v38  ;;  %v18755_v51 = vld [vmem:[#allocation27_spill] sm:$0xff]  ;;  %v10299_v52 = vadd.f32 %v18767_v62, %v18766_v20  ;;  %v10857_v63 = vmax.f32 %v10825_v49, 0.0 }
 0x4d4   : > { %v10302_v38 = vadd.f32 %v18755_v51, %v18754_v11  ;;  %v10801_v37 = vadd.f32 %v18756_v12, %v10303_v42  ;;  %v10875_v9 = vmax.f32 %v10843_v60, 0.0  ;;  %v10859_v59 = vmax.f32 %v10827_v57, 0.0  ;;  %v18773_v42 = vld [vmem:[#allocation21_spill] sm:$0xff]  ;;  %v10884_v57 = vld [vmem:[%s18441_s5] sm:$0xff] }
 0x4d5   : > { %12160 = vmatprep.subr.mxu0 %v10883_v34  ;;  %v10881_v28 = vmax.f32 %v10849_v58, 0.0  ;;  %v10826_v34 = vadd.f32 %v18241_v14, %v18757_v48  ;;  %v10860_v58 = vmax.f32 %v10828_v31, 0.0  ;;  %v10798_v47 = vadd.f32 %v18768_v35, %v10300_v33  ;;  %v10889_v11 = vld [vmem:[%s18441_s5 + $0x28] sm:$0xff]  ;;  %v10888_v51 = vld [vmem:[%s18441_s5 + $0x20] sm:$0xff]  ;;  %v10894_v48 = vld [vmem:[%s18441_s5 + $0x50] sm:$0xff] }
 0x4d6   : > { %12161 = vmatpush3.msra.mxu0 %v10867_v16  ;;  %v10301_v16 = vadd.f32 %v18759_v40, %v18758_v61  ;;  %v10800_v25 = vadd.f32 %v18760_v17, %v10302_v38  ;;  %v10840_v22 = vadd.f32 %v18241_v14, %v10801_v37  ;;  %v10822_v53 = vadd.f32 %v18241_v14, %v18771_v36  ;;  %v10891_v38 = vld [vmem:[%s18441_s5 + $0x38] sm:$0xff]  ;;  %v10893_v12 = vld [vmem:[%s18441_s5 + $0x48] sm:$0xff]  ;;  %v10892_v37 = vld [vmem:[%s18441_s5 + $0x40] sm:$0xff] }
 0x4d7   : > { %12162 = vmatprep.subr.mxu0 %v10882_v45  ;;  %v10841_v45 = vadd.f32 %v18241_v14, %v10802_v23  ;;  %v10858_v19 = vmax.f32 %v10826_v34, 0.0  ;;  %v10837_v46 = vadd.f32 %v18241_v14, %v10798_v47  ;;  %v10820_v60 = vadd.f32 %v18241_v14, %v18773_v42  ;;  %v10897_v34 = vld [vmem:[%s18441_s5 + $0x68] sm:$0xff]  ;;  %v10899_v61 = vld [vmem:[%s18441_s5 + $0x78] sm:$0xff]  ;;  %v10898_v40 = vld [vmem:[%s18441_s5 + $0x70] sm:$0xff] }
 0x4d8   : > { %12163 = vmatpush3.msra.mxu0 %v10866_v7  ;;  %v18762_v7 = vld [vmem:[#allocation13_spill] sm:$0xff]  ;;  %v10872_v5 = vmax.f32 %v10840_v22, 0.0  ;;  %v10854_v10 = vmax.f32 %v10822_v53, 0.0 }
 0x4d9   : > { %12164 = vmatprep.subr.mxu0 %v10881_v28  ;;  %v10799_v4 = vadd.f32 %v18762_v7, %v10301_v16  ;;  %v10874_v28 = vmax.f32 %v10842_v29, 0.0  ;;  %v10869_v15 = vmax.f32 %v10837_v46, 0.0  ;;  %v10852_v54 = vmax.f32 %v10820_v60, 0.0  ;;  %v10890_v29 = vld [vmem:[%s18441_s5 + $0x30] sm:$0xff] }
 0x4da   : > { %12165 = vmatpush3.msra.mxu0 %v10865_v21  ;;  %v10824_v21 = vadd.f32 %v18241_v14, %v18765_v43 }
 0x4db   : > { %12166 = vmatprep.subr.mxu0 %v10880_v13  ;;  %v10839_v13 = vadd.f32 %v18241_v14, %v10800_v25 }
 0x4dc   : > { %12167 = vmatpush3.msra.mxu0 %v10864_v41  ;;  %v10873_v41 = vmax.f32 %v10841_v45, 0.0  ;;  %v10856_v1 = vmax.f32 %v10824_v21, 0.0 }
 0x4dd   : > { %12168 = vmatprep.subr.mxu0 %v10879_v30  ;;  %v10838_v30 = vadd.f32 %v18241_v14, %v10799_v4  ;;  %v10871_v50 = vmax.f32 %v10839_v13, 0.0 }
 0x4de   : > { %12169 = vmatpush3.msra.mxu0 %v10863_v32  ;;  %v10797_v32 = vadd.f32 %v18770_v39, %v10299_v52 }
 0x4df   : > { %12170 = vmatprep.subr.mxu0 %v10878_v0  ;;  %v10855_v0 = vmax.f32 %v10823_v56, 0.0  ;;  %v10870_v31 = vmax.f32 %v10838_v30, 0.0 }
 0x4e0   : > { %12171 = vmatpush3.msra.mxu0 %v10862_v8  ;;  %v10821_v8 = vadd.f32 %v18241_v14, %v18772_v24  ;;  %v10836_v26 = vadd.f32 %v18241_v14, %v10797_v32  ;;  %v10886_v14 = vld [vmem:[%s18441_s5 + $0x10] sm:$0xff] }
 0x4e1   : > { %12172 = vmatprep.subr.mxu0 %v10877_v44 }
 0x4e2   : > { %12173 = vmatpush3.msra.mxu0 %v10861_v6  ;;  %v10853_v23 = vmax.f32 %v10821_v8, 0.0  ;;  %v10868_v44 = vmax.f32 %v10836_v26, 0.0  ;;  %v10887_v6 = vld [vmem:[%s18441_s5 + $0x18] sm:$0xff] }
 0x4e3   : > { %12174 = vmatprep.subr.mxu0 %v10876_v2  ;;  %v10895_v2 = vld [vmem:[%s18441_s5 + $0x58] sm:$0xff] }
 0x4e4   : > { %12175 = vmatpush3.msra.mxu0 %v10860_v58  ;;  %v10896_v58 = vld [vmem:[%s18441_s5 + $0x60] sm:$0xff] }
 0x4e5   : > { %12176 = vmatprep.subr.mxu0 %v10875_v9 }
 0x4e6   : > { %12177 = vmatpush3.msra.mxu0 %v10859_v59 }
 0x4e7   : > { %12178 = vmatprep.subr.mxu0 %v10874_v28 }
 0x4e8   : > { %12179 = vmatpush3.msra.mxu0 %v10858_v19 }
 0x4e9   : > { %12180 = vmatprep.subr.mxu0 %v10873_v41 }
 0x4ea   : > { %12181 = vmatpush3.msra.mxu0 %v10857_v63 }
 0x4eb   : > { %12182 = vmatprep.subr.mxu0 %v10872_v5 }
 0x4ec   : > { %12183 = vmatpush3.msra.mxu0 %v10856_v1 }
 0x4ed   : > { %12184 = vmatprep.subr.mxu0 %v10871_v50 }
 0x4ee   : > { %12185 = vmatpush3.msra.mxu0 %v10855_v0 }
 0x4ef   : > { %12186 = vmatprep.subr.mxu0 %v10870_v31 }
 0x4f0   : > { %12187 = vmatpush3.msra.mxu0 %v10854_v10 }
 0x4f1   : > { %12188 = vmatprep.subr.mxu0 %v10869_v15 }
 0x4f2   : > { %12189 = vmatpush3.msra.mxu0 %v10853_v23 }
 0x4f3   : > { %12190 = vmatprep.subr.mxu0 %v10868_v44 }
 0x4f4   : > { %12191 = vmatpush3.msra.mxu0 %v10852_v54 }
 0x4f5   : > { %10965 = vmatmul.mubr.f32.vlgmr.msra.gmra.mxu0 %v10884_v57 }
 0x4f6   : > { %10969 = vmatprep.mubr.f32.mxu0 %v10887_v6 }
 0x4f9   : > { %10970 = vmatmul.mubr.f32.gmra.mxu0 %v10886_v14 }
 0x4fa   : > { %10974 = vmatprep.mubr.f32.mxu0 %v10889_v11 }
 0x4fd   : > { %10975 = vmatmul.mubr.f32.gmra.mxu0 %v10888_v51 }
 0x4fe   : > { %10979 = vmatprep.mubr.f32.mxu0 %v10891_v38 }
 0x501   : > { %10980 = vmatmul.mubr.f32.gmra.mxu0 %v10890_v29 }
 0x502   : > { %10984 = vmatprep.mubr.f32.mxu0 %v10893_v12 }
 0x505   : > { %10985 = vmatmul.mubr.f32.gmra.mxu0 %v10892_v37 }
 0x506   : > { %10989 = vmatprep.mubr.f32.mxu0 %v10895_v2 }
 0x509   : > { %10990 = vmatmul.mubr.f32.gmra.mxu0 %v10894_v48 }
 0x50a   : > { %10994 = vmatprep.mubr.f32.mxu0 %v10897_v34 }
 0x50d   : > { %10995 = vmatmul.mubr.f32.gmra.mxu0 %v10896_v58 }
 0x50e   : > { %10999 = vmatprep.mubr.f32.mxu0 %v10899_v61 }
 0x511   : > { %11000 = vmatmul.mubr.f32.gmra.mxu0 %v10898_v40 }
 0x5b5   : > { %v12192_v16 = vpop.f32.mrf.mxu0 }
 0x5b7   : > { %v12193_v17 = vpop.f32.mrf.mxu0 }
 0x5b8   : > { %v12194_v25 = vadd.f32 %v12193_v17, %v12192_v16 }
 0x5b9   : > { %v12195_v9 = vpop.f32.mrf.mxu0 }
 0x5ba   : > { %11005 = vst [vmem:[%s18375_s20] sm:$0xff] %v12194_v25 }
 0x5bb   : > { %v12196_v45 = vpop.f32.mrf.mxu0 }
 0x5bc   : > { %v12197_v59 = vadd.f32 %v12196_v45, %v12195_v9 }
 0x5bd   : > { %v12198_v27 = vpop.f32.mrf.mxu0 }
 0x5be   : > { %11006 = vst [vmem:[%s18375_s20 + $0x8] sm:$0xff] %v12197_v59 }
 0x5bf   : > { %v12199_v49 = vpop.f32.mrf.mxu0 }
 0x5c0   : > { %v12200_v7 = vadd.f32 %v12199_v49, %v12198_v27 }
 0x5c1   : > { %v12201_v4 = vpop.f32.mrf.mxu0 }
 0x5c2   : > { %11007 = vst [vmem:[%s18375_s20 + $0x10] sm:$0xff] %v12200_v7 }
 0x5c3   : > { %v12202_v55 = vpop.f32.mrf.mxu0 }
 0x5c4   : > { %v12203_v3 = vadd.f32 %v12202_v55, %v12201_v4 }
 0x5c5   : > { %v12204_v33 = vpop.f32.mrf.mxu0 }
 0x5c6   : > { %11008 = vst [vmem:[%s18375_s20 + $0x18] sm:$0xff] %v12203_v3 }
 0x5c7   : > { %v12205_v28 = vpop.f32.mrf.mxu0 }
 0x5c8   : > { %v12206_v22 = vadd.f32 %v12205_v28, %v12204_v33 }
 0x5c9   : > { %v12207_v19 = vpop.f32.mrf.mxu0 }
 0x5ca   : > { %11009 = vst [vmem:[%s18375_s20 + $0x20] sm:$0xff] %v12206_v22 }
 0x5cb   : > { %v12208_v43 = vpop.f32.mrf.mxu0 }
 0x5cc   : > { %v12209_v21 = vadd.f32 %v12208_v43, %v12207_v19 }
 0x5cd   : > { %v12210_v20 = vpop.f32.mrf.mxu0 }
 0x5ce   : > { %11010 = vst [vmem:[%s18375_s20 + $0x28] sm:$0xff] %v12209_v21 }
 0x5cf   : > { %v12211_v62 = vpop.f32.mrf.mxu0 }
 0x5d0   : > { %v12212_v52 = vadd.f32 %v12211_v62, %v12210_v20 }
 0x5d1   : > { %v12213_v13 = vpop.f32.mrf.mxu0 }
 0x5d2   : > { %11011 = vst [vmem:[%s18375_s20 + $0x30] sm:$0xff] %v12212_v52 }
 0x5d3   : > { %v12214_v35 = vpop.f32.mrf.mxu0 }
 0x5d4   : > { %v12215_v47 = vadd.f32 %v12214_v35, %v12213_v13 }
 0x5d6   : > { %11012 = vst [vmem:[%s18375_s20 + $0x38] sm:$0xff] %v12215_v47 }
 0x5d7   : > { %13237 = shalt.err (!%p13234_p0)
}
 0x5d8   : > { %s13238_s15 = scalar_lea.hbm %s18391_s10, 1024  ;;  %s13242_s18 = scalar_lea.hbm %s18442_s6, 2048 }
 0x5d9   : > { %p13239_p1 = scmp.ne.s32.totalorder %s18391_s10, %s13238_s15  ;;  %p13243_p4 = scmp.lt.s32.totalorder %s18391_s10, %s18442_s6 }
 0x5da   : > { %p13244_p7 = scmp.lt.s32.totalorder %s13242_s18, %s13238_s15 }
 0x5db   : > { %p13240_p2 = pnand %p13239_p1, %p13370_p5 }
 0x5dc   : > { %p13245_p6 = por %p13244_p7, %p13243_p4 }
 0x5dd   : > { %p13241_p3 = pneg %p13240_p2 }
 0x5df   : > { %p13246_p8 = pnand %p13245_p6, %p13241_p3 }
 0x5e1   : > { %13249 = shalt.err (!%p13246_p8)
}
 0x5e2   : > { %s13295_s28 = smov 128   ;;  %s13296_s29 = smov 8  }
 0x5e3   : > { %12970 = dma.vmem_to_hbm [thread:$0]  (%p13370_p5), %s18386_s26, 1024, %s18391_s10, %s18396_s11, %s13295_s28, %s13295_s28, %s13296_s29  }
 0x5e4 PF: > { %p12982_p9 = scmp.ge.s32.totalorder %s13288_s24, 2  ;;  %s11042_s9 = sand.u32 1, %s13276_s21  }
 0x5e5   : > { %p18774_p10 = scmp.ne.s32.totalorder %s18460_s8, 0  ;;  %s11043_s12 = scalar_lea.sflag [#allocation6], %s11042_s9 }
 0x5e7   : > { %p12977_p11 = pnand %p12982_p9, %p18774_p10 }
 0x5e9   : > { %p12978_p12 = pneg %p12977_p11 }
 0x5eb   : > { %13271 = dma.done.wait (%p12978_p12), %s11043_s12, 1024  }
 0x5ec   : > { %13273 = vsyncadd (%p12978_p12), %s11043_s12, 4294966272  ;;  %p17_p13 = scmp.ge.s32.totalorder %s13357_s27, 4   ;;  %s18775_s21 = smov %s13280_s22 }
 0x5ed   : > { %s18776_s22 = smov %s13284_s23  ;;  %s18777_s23 = smov %s13368_s30 }
 0x5ee   : > { %s18778_s24 = smov %s13357_s27  ;;  %19 = sbr.rel (!%p17_p13) target bundleno = 4 (0x4), region = 104 }
 0x5f3   :  { %11048 = vsyncpa [#allocation5], 1 }
 0x5f4   :  { %11050 = vsyncpa [#allocation5 + $0x1], 1 }
 0x5f5   :  { %11051 = vsyncpa [#allocation6], 1 }
 0x5f6   :  { %11053 = vsyncpa [#allocation6 + $0x1], 1 }

</bundles_post_ra>
